<compile_context>
chip_gen: v5e
topology: v5e:2x2
jax: 0.10.0
libtpu: 0.0.40
codegen_flags: <defaults>
</compile_context>

<pallas_src>
import jax
import jax.numpy as jnp
from jax.experimental import pallas as pl
from jax.experimental.pallas import tpu as pltpu


# ----------------------------------------------------------------------------
# In-kernel helpers
# ----------------------------------------------------------------------------
def _zero_halo(pad_ref, P, H, W):
    """Zero only the halo strips of an (H+2P, W+2P, C) pad scratch.

    The interior is fully overwritten every grid step, so a full-buffer clear
    is wasted vector stores; a step-0-only clear would not be megacore-safe
    (each core owns its own scratch under 'parallel' semantics)."""
    if P == 0:
        return
    Hp, Wp, C = pad_ref.shape
    dt = pad_ref.dtype
    pad_ref[:P, :, :] = jnp.zeros((P, Wp, C), dt)
    pad_ref[P + H:, :, :] = jnp.zeros((Hp - P - H, Wp, C), dt)
    pad_ref[P:P + H, :P, :] = jnp.zeros((H, P, C), dt)
    pad_ref[P:P + H, P + W:, :] = jnp.zeros((H, Wp - P - W, C), dt)


def _conv_kxk_s1(pad_ref, w_ref, K, Ho, Wo, Cin, Cout):
    """KxK / stride-1 / SAME conv read from a zero-padded bf16 VMEM scratch.

    im2col is built with only K lane-concats (one per kw tap, not K*K pieces);
    the kh taps become K MXU matmuls accumulated in f32 (the kh shift is a
    slice along the untiled leading axis -> effectively free).
    pad_ref: (Ho+K-1, Wo+K-1, Cin) bf16;  w_ref: (K, K*Cin, Cout) bf16.
    Returns the f32 pre-activation of shape (Ho*Wo, Cout)."""
    slabs = [pad_ref[:, kw:kw + Wo, :] for kw in range(K)]
    big = jnp.concatenate(slabs, axis=-1)                 # (Ho+K-1, Wo, K*Cin)
    acc = None
    for kh in range(K):
        patch = big[kh:kh + Ho].reshape(Ho * Wo, K * Cin)
        d = jnp.dot(patch, w_ref[kh], preferred_element_type=jnp.float32)
        acc = d if acc is None else acc + d
    return acc


def _conv_2x2_s2(x_bf16, w_ref, Hs, Ws, Cin, Cout):
    """2x2 / stride-2 conv of an in-VMEM bf16 NHWC value (2*Hs, 2*Ws, Cin).

    Space-to-depth tap selection uses only lane-preserving reshapes + static
    slices (no transposes, no strided loads, no HBM round-trip); 4 small MXU
    matmuls accumulated in f32.
    w_ref: (2, 2*Cin, Cout) bf16 (HWIO flattened over (kw, cin)).
    Returns f32 (Hs*Ws, Cout)."""
    xr = x_bf16.reshape(Hs, 2, 2 * Ws, Cin)               # split H (major dim)
    acc = None
    for kh in range(2):
        w_kh = w_ref[kh]                                   # (2*Cin, Cout)
        slab = xr[:, kh].reshape(Hs, Ws, 2, Cin)           # split W, lane kept
        for kw in range(2):
            tap = slab[:, :, kw, :].reshape(Hs * Ws, Cin)
            d = jnp.dot(tap, w_kh[kw * Cin:(kw + 1) * Cin],
                        preferred_element_type=jnp.float32)
            acc = d if acc is None else acc + d
    return acc


# ----------------------------------------------------------------------------
# Fused encoder kernel: block0 (KxK s1) + n_pairs x [2x2 s2, KxK s1].
# ----------------------------------------------------------------------------
def _make_encoder_kernel(H, W, Cin, wshapes):
    n_blocks = len(wshapes)
    n_pairs = (n_blocks - 1) // 2

    def kernel(*refs):
        x_ref = refs[0]
        w_refs = refs[1:1 + n_blocks]
        out_refs = refs[1 + n_blocks:2 + n_blocks + n_pairs]
        pad_refs = refs[2 + n_blocks + n_pairs:]

        # ---- block 0: KxK, stride 1, SAME padding, ReLU -> pass 0 -----------
        K0, _, _, C0 = wshapes[0]
        P0 = (K0 - 1) // 2
        pad0 = pad_refs[0]
        _zero_halo(pad0, P0, H, W)
        # single bf16 cast of the input at its native (un-amplified) size
        pad0[P0:P0 + H, P0:P0 + W, :] = x_ref[...].astype(pad0.dtype)
        act = jnp.maximum(_conv_kxk_s1(pad0, w_refs[0], K0, H, W, Cin, C0), 0.0)
        out_refs[0][...] = act.T                    # (C0, H*W) f32, lane-dense
        cur = act.astype(jnp.bfloat16).reshape(H, W, C0)   # stays in VMEM
        h, w, c = H, W, C0

        # ---- pairs: ConvBlock(2x2, s2) + ConvBlock(KxK, s1); pass after pair
        for p in range(n_pairs):
            w_a = w_refs[1 + 2 * p]
            w_b = w_refs[2 + 2 * p]
            cm = wshapes[1 + 2 * p][3]
            Kb, _, _, co = wshapes[2 + 2 * p]
            Pb = (Kb - 1) // 2
            hs, ws = h // 2, w // 2

            mid = jnp.maximum(_conv_2x2_s2(cur, w_a, hs, ws, c, cm), 0.0)  # f32

            padb = pad_refs[1 + p]
            _zero_halo(padb, Pb, hs, ws)
            padb[Pb:Pb + hs, Pb:Pb + ws, :] = (
                mid.astype(padb.dtype).reshape(hs, ws, cm))
            act = jnp.maximum(_conv_kxk_s1(padb, w_b, Kb, hs, ws, cm, co), 0.0)
            out_refs[1 + p][...] = act.T            # (co, hs*ws) f32
            cur = act.astype(jnp.bfloat16).reshape(hs, ws, co)
            h, w, c = hs, ws, co

    return kernel


# ----------------------------------------------------------------------------
# Parameters / weight preparation
# ----------------------------------------------------------------------------
def init_fpn_encoder_params(key, in_channels=1, start_features_num=16,
                            expand_rate=2, kernel_sizes=(5, 2, 5, 2, 5),
                            strides=(1, 2, 1, 2, 1), paddings=(2, 0, 2, 0, 2)):
    """Deterministic synthetic HWIO conv weights, shapes exactly as
    FPNEncoder.__init__ would create (bias=False, BN assumed identity)."""
    for k, s, p in zip(kernel_sizes, strides, paddings):
        if s == 1:
            assert p == (k - 1) // 2, "stride-1 blocks assumed SAME-padded"
        else:
            assert (k, s, p) == (2, 2, 0), "stride-2 blocks assumed 2x2 / pad 0"
    weights = []
    feat = start_features_num
    cin = in_channels
    for k, s in zip(kernel_sizes, strides):
        key, sub = jax.random.split(key)
        w = jax.random.normal(sub, (k, k, cin, feat), jnp.float32) / jnp.sqrt(k * k * cin)
        weights.append(w)
        cin = feat
        if s == 2:
            feat *= expand_rate
    return weights


def prepare_weights(weights):
    """HWIO conv weights -> MXU-ready (K, K*Cin, Cout) bf16 layout.  Done once,
    outside the jitted forward: no per-call reshape/cast or weight HBM copies."""
    return [w.reshape(w.shape[0], w.shape[1] * w.shape[2], w.shape[3])
             .astype(jnp.bfloat16) for w in weights]


def _pass_meta(H, W, wshapes):
    meta = [(wshapes[0][3], H, W)]
    ph, pw = H, W
    i = 1
    while i + 1 < len(wshapes):
        ph, pw = ph // 2, pw // 2
        meta.append((wshapes[i + 1][3], ph, pw))
        i += 2
    return meta


# ----------------------------------------------------------------------------
# FPNEncoder.forward
# ----------------------------------------------------------------------------
def fpn_encoder_forward(x_nchw, wprep):
    """x: (B, Cin, H, W) f32 NCHW; wprep: prepare_weights(weights).
    Returns the encoder passes (outputs of blocks 0, 2, 4, ...) in NCHW f32."""
    B, Cin, H, W = x_nchw.shape
    # Recover (K, K, Cin, Cout) per block from the prepared (K, K*Cin, Cout).
    wshapes = [(int(wt.shape[0]), int(wt.shape[0]),
                int(wt.shape[1]) // int(wt.shape[0]), int(wt.shape[2]))
               for wt in wprep]
    n_blocks = len(wshapes)
    n_pairs = (n_blocks - 1) // 2
    assert n_blocks >= 1 and n_blocks % 2 == 1, "expected 1 + 2*n ConvBlocks"
    assert wshapes[0][2] == Cin, "input channels mismatch"
    for i in range(1, n_blocks):
        assert wshapes[i][2] == wshapes[i - 1][3], "channel chain mismatch"
    for i, (k, _, _, _) in enumerate(wshapes):
        if i % 2 == 1:
            assert k == 2, "expected 2x2 stride-2 ConvBlock at odd indices"
        else:
            assert k % 2 == 1, "stride-1 blocks must have odd kernels (SAME pad)"
    assert H % (1 << n_pairs) == 0 and W % (1 << n_pairs) == 0, \
        "spatial dims must be divisible by the total stride"

    x = jnp.transpose(x_nchw, (0, 2, 3, 1)).astype(jnp.float32)  # NCHW -> NHWC

    meta = _pass_meta(H, W, wshapes)
    kernel = _make_encoder_kernel(H, W, Cin, wshapes)

    in_specs = [pl.BlockSpec((None, H, W, Cin), lambda b: (b, 0, 0, 0))]
    in_specs += [pl.BlockSpec(wt.shape, lambda b: (0, 0, 0)) for wt in wprep]
    out_specs = [pl.BlockSpec((None, c, ph * pw), lambda b: (b, 0, 0))
                 for c, ph, pw in meta]
    out_shape = tuple(jax.ShapeDtypeStruct((B, c, ph * pw), jnp.float32)
                      for c, ph, pw in meta)

    # bf16 pad scratch per stride-1 conv (block 0 + second block of each pair)
    scratch = [pltpu.VMEM((H + wshapes[0][0] - 1, W + wshapes[0][0] - 1, Cin),
                          jnp.bfloat16)]
    ph, pw = H, W
    for p in range(n_pairs):
        ph, pw = ph // 2, pw // 2
        kb = wshapes[2 + 2 * p][0]
        cm = wshapes[1 + 2 * p][3]
        scratch.append(pltpu.VMEM((ph + kb - 1, pw + kb - 1, cm), jnp.bfloat16))

    outs = pl.pallas_call(
        kernel,
        out_shape=out_shape,
        grid=(B,),
        in_specs=in_specs,
        out_specs=out_specs,
        scratch_shapes=scratch,
        compiler_params=pltpu.CompilerParams(dimension_semantics=("parallel",)),
    )(x, *wprep)

    # (B, C, H*W) -> (B, C, H, W) is a free reshape (no transpose needed).
    return [o.reshape(B, c, ph, pw) for o, (c, ph, pw) in zip(outs, meta)]


# ----------------------------------------------------------------------------
# Pure-JAX/XLA reference (f32) for correctness checking
# ----------------------------------------------------------------------------
def fpn_encoder_reference(x_nchw, weights):
    cur = jnp.transpose(x_nchw, (0, 2, 3, 1)).astype(jnp.float32)
    passes = []
    for i, w in enumerate(weights):
        k = w.shape[0]
        s, p = (2, 0) if k == 2 else (1, (k - 1) // 2)
        cur = jax.lax.conv_general_dilated(
            cur, w, window_strides=(s, s), padding=((p, p), (p, p)),
            dimension_numbers=("NHWC", "HWIO", "NHWC"))
        cur = jnp.maximum(cur, 0.0)
        if i % 2 == 0:
            passes.append(jnp.transpose(cur, (0, 3, 1, 2)))
    return passes


# ----------------------------------------------------------------------------
if __name__ == "__main__":
    key = jax.random.PRNGKey(0)
    kp, kx = jax.random.split(key)

    weights = init_fpn_encoder_params(kp)     # default FPNEncoder config, Cin=1
    wprep = prepare_weights(weights)          # MXU layout + bf16, done once

    B, H, W = 2, 16, 16
    x = jax.random.normal(kx, (B, 1, H, W), jnp.float32)      # NCHW

    fwd = jax.jit(fpn_encoder_forward)
    passes = jax.block_until_ready(fwd(x, wprep))

    expected = [(B, 16, 16, 16), (B, 32, 8, 8), (B, 64, 4, 4)]
    assert [tuple(p.shape) for p in passes] == expected, [p.shape for p in passes]
    assert all(p.dtype == jnp.float32 for p in passes)
    assert all(bool(jnp.isfinite(p).all()) for p in passes)

    # Numerical check vs. the f32 XLA reference (bf16-MXU operand tolerance).
    ref = fpn_encoder_reference(x, weights)
    for got, want in zip(passes, ref):
        err = float(jnp.max(jnp.abs(got - want)))
        assert err < 0.1, f"max abs err vs reference: {err}"

    print("KERNEL_OK")
</pallas_src>

<mosaic_0001>
module attributes {stable_mosaic.version = 11 : i64} {
  func.func @kernel(%arg0: i32, %arg1: memref<1x16x16x1xf32, #tpu.memory_space<vmem>>, %arg2: memref<5x5x16xbf16, #tpu.memory_space<vmem>>, %arg3: memref<2x32x16xbf16, #tpu.memory_space<vmem>>, %arg4: memref<5x80x32xbf16, #tpu.memory_space<vmem>>, %arg5: memref<2x64x32xbf16, #tpu.memory_space<vmem>>, %arg6: memref<5x160x64xbf16, #tpu.memory_space<vmem>>, %arg7: memref<1x16x256xf32, #tpu.memory_space<vmem>>, %arg8: memref<1x32x64xf32, #tpu.memory_space<vmem>>, %arg9: memref<1x64x16xf32, #tpu.memory_space<vmem>>, %arg10: memref<20x20x1xbf16, #tpu.memory_space<vmem>>, %arg11: memref<12x12x16xbf16, #tpu.memory_space<vmem>>, %arg12: memref<8x8x32xbf16, #tpu.memory_space<vmem>>) attributes {dimension_semantics = [#tpu.dimension_semantics<parallel>], iteration_bounds = array<i64: 2>, scalar_prefetch = 0 : i64, scratch_operands = 3 : i64, tpu.core_type = #tpu.core_type<tc>, window_params = [{transform_indices = @transform_0, window_bounds = array<i64: 1, 16, 16, 1>}, {pipeline_mode = #tpu.pipeline_mode<synchronous>, transform_indices = @transform_1, window_bounds = array<i64: 5, 5, 16>}, {pipeline_mode = #tpu.pipeline_mode<synchronous>, transform_indices = @transform_2, window_bounds = array<i64: 2, 32, 16>}, {pipeline_mode = #tpu.pipeline_mode<synchronous>, transform_indices = @transform_3, window_bounds = array<i64: 5, 80, 32>}, {pipeline_mode = #tpu.pipeline_mode<synchronous>, transform_indices = @transform_4, window_bounds = array<i64: 2, 64, 32>}, {pipeline_mode = #tpu.pipeline_mode<synchronous>, transform_indices = @transform_5, window_bounds = array<i64: 5, 160, 64>}, {transform_indices = @transform_6, window_bounds = array<i64: 1, 16, 256>}, {transform_indices = @transform_7, window_bounds = array<i64: 1, 32, 64>}, {transform_indices = @transform_8, window_bounds = array<i64: 1, 64, 16>}]} {
    %cst = arith.constant 0.000000e+00 : bf16
    %0 = vector.broadcast %cst : bf16 to vector<2x20x1xbf16>
    %c0 = arith.constant 0 : index
    %c0_0 = arith.constant 0 : index
    %c0_1 = arith.constant 0 : index
    %1 = vector.load %arg10[%c0, %c0_0, %c0_1] : memref<20x20x1xbf16, #tpu.memory_space<vmem>>, vector<2x20x1xbf16>
    tpu.vector_store %arg10[%c0, %c0_0, %c0_1], %0 {strides = array<i32>} : memref<20x20x1xbf16, #tpu.memory_space<vmem>>, vector<2x20x1xbf16>,
    %cst_2 = arith.constant 0.000000e+00 : bf16
    %2 = vector.broadcast %cst_2 : bf16 to vector<2x20x1xbf16>
    %c18 = arith.constant 18 : index
    %c0_3 = arith.constant 0 : index
    %c0_4 = arith.constant 0 : index
    %3 = vector.load %arg10[%c18, %c0_3, %c0_4] : memref<20x20x1xbf16, #tpu.memory_space<vmem>>, vector<2x20x1xbf16>
    tpu.vector_store %arg10[%c18, %c0_3, %c0_4], %2 {strides = array<i32>} : memref<20x20x1xbf16, #tpu.memory_space<vmem>>, vector<2x20x1xbf16>,
    %cst_5 = arith.constant 0.000000e+00 : bf16
    %4 = vector.broadcast %cst_5 : bf16 to vector<16x2x1xbf16>
    %c2 = arith.constant 2 : index
    %c0_6 = arith.constant 0 : index
    %c0_7 = arith.constant 0 : index
    %5 = vector.load %arg10[%c2, %c0_6, %c0_7] : memref<20x20x1xbf16, #tpu.memory_space<vmem>>, vector<16x2x1xbf16>
    tpu.vector_store %arg10[%c2, %c0_6, %c0_7], %4 {strides = array<i32>} : memref<20x20x1xbf16, #tpu.memory_space<vmem>>, vector<16x2x1xbf16>,
    %cst_8 = arith.constant 0.000000e+00 : bf16
    %6 = vector.broadcast %cst_8 : bf16 to vector<16x2x1xbf16>
    %c2_9 = arith.constant 2 : index
    %c18_10 = arith.constant 18 : index
    %c0_11 = arith.constant 0 : index
    %7 = vector.load %arg10[%c2_9, %c18_10, %c0_11] : memref<20x20x1xbf16, #tpu.memory_space<vmem>>, vector<16x2x1xbf16>
    tpu.vector_store %arg10[%c2_9, %c18_10, %c0_11], %6 {strides = array<i32>} : memref<20x20x1xbf16, #tpu.memory_space<vmem>>, vector<16x2x1xbf16>,
    %c0_12 = arith.constant 0 : index
    %c0_13 = arith.constant 0 : index
    %c0_14 = arith.constant 0 : index
    %c0_15 = arith.constant 0 : index
    %8 = vector.load %arg1[%c0_12, %c0_13, %c0_14, %c0_15] : memref<1x16x16x1xf32, #tpu.memory_space<vmem>>, vector<1x16x16x1xf32>
    %9 = vector.shape_cast %8 : vector<1x16x16x1xf32> to vector<16x16x1xf32>
    %10 = arith.truncf %9 : vector<16x16x1xf32> to vector<16x16x1xbf16>
    %c2_16 = arith.constant 2 : index
    %c2_17 = arith.constant 2 : index
    %c0_18 = arith.constant 0 : index
    %11 = vector.load %arg10[%c2_16, %c2_17, %c0_18] : memref<20x20x1xbf16, #tpu.memory_space<vmem>>, vector<16x16x1xbf16>
    tpu.vector_store %arg10[%c2_16, %c2_17, %c0_18], %10 {strides = array<i32>} : memref<20x20x1xbf16, #tpu.memory_space<vmem>>, vector<16x16x1xbf16>,
    %c0_19 = arith.constant 0 : index
    %c0_20 = arith.constant 0 : index
    %c0_21 = arith.constant 0 : index
    %12 = vector.load %arg10[%c0_19, %c0_20, %c0_21] : memref<20x20x1xbf16, #tpu.memory_space<vmem>>, vector<20x16x1xbf16>
    %c0_22 = arith.constant 0 : index
    %c1 = arith.constant 1 : index
    %c0_23 = arith.constant 0 : index
    %13 = vector.load %arg10[%c0_22, %c1, %c0_23] : memref<20x20x1xbf16, #tpu.memory_space<vmem>>, vector<20x16x1xbf16>
    %c0_24 = arith.constant 0 : index
    %c2_25 = arith.constant 2 : index
    %c0_26 = arith.constant 0 : index
    %14 = vector.load %arg10[%c0_24, %c2_25, %c0_26] : memref<20x20x1xbf16, #tpu.memory_space<vmem>>, vector<20x16x1xbf16>
    %c0_27 = arith.constant 0 : index
    %c3 = arith.constant 3 : index
    %c0_28 = arith.constant 0 : index
    %15 = vector.load %arg10[%c0_27, %c3, %c0_28] : memref<20x20x1xbf16, #tpu.memory_space<vmem>>, vector<20x16x1xbf16>
    %c0_29 = arith.constant 0 : index
    %c4 = arith.constant 4 : index
    %c0_30 = arith.constant 0 : index
    %16 = vector.load %arg10[%c0_29, %c4, %c0_30] : memref<20x20x1xbf16, #tpu.memory_space<vmem>>, vector<20x16x1xbf16>
    %17 = tpu.concatenate %12, %13, %14, %15, %16 in 2 : vector<20x16x1xbf16>, vector<20x16x1xbf16>, vector<20x16x1xbf16>, vector<20x16x1xbf16>, vector<20x16x1xbf16> -> vector<20x16x5xbf16>
    %18 = vector.extract_strided_slice %17 {offsets = [0, 0, 0], sizes = [16, 16, 5], strides = [1, 1, 1]} : vector<20x16x5xbf16> to vector<16x16x5xbf16>
    %19 = vector.shape_cast %18 : vector<16x16x5xbf16> to vector<256x5xbf16>
    %c0_31 = arith.constant 0 : index
    %c0_32 = arith.constant 0 : index
    %c0_33 = arith.constant 0 : index
    %20 = vector.load %arg2[%c0_31, %c0_32, %c0_33] : memref<5x5x16xbf16, #tpu.memory_space<vmem>>, vector<1x5x16xbf16>
    %21 = vector.shape_cast %20 : vector<1x5x16xbf16> to vector<5x16xbf16>
    %cst_34 = arith.constant dense<0.000000e+00> : vector<256x16xf32>
    %22 = tpu.matmul %19, %21, %cst_34 {dimension_numbers = #tpu.dot_dimension_numbers<[1], [0], [0], [1], [0, 0, 1, 1], [], []>} : vector<256x5xbf16>, vector<5x16xbf16>, vector<256x16xf32> -> vector<256x16xf32>
    %23 = vector.extract_strided_slice %17 {offsets = [1, 0, 0], sizes = [16, 16, 5], strides = [1, 1, 1]} : vector<20x16x5xbf16> to vector<16x16x5xbf16>
    %24 = vector.shape_cast %23 : vector<16x16x5xbf16> to vector<256x5xbf16>
    %c1_35 = arith.constant 1 : index
    %c0_36 = arith.constant 0 : index
    %c0_37 = arith.constant 0 : index
    %25 = vector.load %arg2[%c1_35, %c0_36, %c0_37] : memref<5x5x16xbf16, #tpu.memory_space<vmem>>, vector<1x5x16xbf16>
    %26 = vector.shape_cast %25 : vector<1x5x16xbf16> to vector<5x16xbf16>
    %cst_38 = arith.constant dense<0.000000e+00> : vector<256x16xf32>
    %27 = tpu.matmul %24, %26, %cst_38 {dimension_numbers = #tpu.dot_dimension_numbers<[1], [0], [0], [1], [0, 0, 1, 1], [], []>} : vector<256x5xbf16>, vector<5x16xbf16>, vector<256x16xf32> -> vector<256x16xf32>
    %28 = arith.addf %22, %27 : vector<256x16xf32>
    %29 = vector.extract_strided_slice %17 {offsets = [2, 0, 0], sizes = [16, 16, 5], strides = [1, 1, 1]} : vector<20x16x5xbf16> to vector<16x16x5xbf16>
    %30 = vector.shape_cast %29 : vector<16x16x5xbf16> to vector<256x5xbf16>
    %c2_39 = arith.constant 2 : index
    %c0_40 = arith.constant 0 : index
    %c0_41 = arith.constant 0 : index
    %31 = vector.load %arg2[%c2_39, %c0_40, %c0_41] : memref<5x5x16xbf16, #tpu.memory_space<vmem>>, vector<1x5x16xbf16>
    %32 = vector.shape_cast %31 : vector<1x5x16xbf16> to vector<5x16xbf16>
    %cst_42 = arith.constant dense<0.000000e+00> : vector<256x16xf32>
    %33 = tpu.matmul %30, %32, %cst_42 {dimension_numbers = #tpu.dot_dimension_numbers<[1], [0], [0], [1], [0, 0, 1, 1], [], []>} : vector<256x5xbf16>, vector<5x16xbf16>, vector<256x16xf32> -> vector<256x16xf32>
    %34 = arith.addf %28, %33 : vector<256x16xf32>
    %35 = vector.extract_strided_slice %17 {offsets = [3, 0, 0], sizes = [16, 16, 5], strides = [1, 1, 1]} : vector<20x16x5xbf16> to vector<16x16x5xbf16>
    %36 = vector.shape_cast %35 : vector<16x16x5xbf16> to vector<256x5xbf16>
    %c3_43 = arith.constant 3 : index
    %c0_44 = arith.constant 0 : index
    %c0_45 = arith.constant 0 : index
    %37 = vector.load %arg2[%c3_43, %c0_44, %c0_45] : memref<5x5x16xbf16, #tpu.memory_space<vmem>>, vector<1x5x16xbf16>
    %38 = vector.shape_cast %37 : vector<1x5x16xbf16> to vector<5x16xbf16>
    %cst_46 = arith.constant dense<0.000000e+00> : vector<256x16xf32>
    %39 = tpu.matmul %36, %38, %cst_46 {dimension_numbers = #tpu.dot_dimension_numbers<[1], [0], [0], [1], [0, 0, 1, 1], [], []>} : vector<256x5xbf16>, vector<5x16xbf16>, vector<256x16xf32> -> vector<256x16xf32>
    %40 = arith.addf %34, %39 : vector<256x16xf32>
    %41 = vector.extract_strided_slice %17 {offsets = [4, 0, 0], sizes = [16, 16, 5], strides = [1, 1, 1]} : vector<20x16x5xbf16> to vector<16x16x5xbf16>
    %42 = vector.shape_cast %41 : vector<16x16x5xbf16> to vector<256x5xbf16>
    %c4_47 = arith.constant 4 : index
    %c0_48 = arith.constant 0 : index
    %c0_49 = arith.constant 0 : index
    %43 = vector.load %arg2[%c4_47, %c0_48, %c0_49] : memref<5x5x16xbf16, #tpu.memory_space<vmem>>, vector<1x5x16xbf16>
    %44 = vector.shape_cast %43 : vector<1x5x16xbf16> to vector<5x16xbf16>
    %cst_50 = arith.constant dense<0.000000e+00> : vector<256x16xf32>
    %45 = tpu.matmul %42, %44, %cst_50 {dimension_numbers = #tpu.dot_dimension_numbers<[1], [0], [0], [1], [0, 0, 1, 1], [], []>} : vector<256x5xbf16>, vector<5x16xbf16>, vector<256x16xf32> -> vector<256x16xf32>
    %46 = arith.addf %40, %45 : vector<256x16xf32>
    %cst_51 = arith.constant 0.000000e+00 : f32
    %47 = vector.broadcast %cst_51 : f32 to vector<256x16xf32>
    %48 = arith.maximumf %46, %47 : vector<256x16xf32>
    %49 = tpu.transpose %48, [1, 0] : vector<256x16xf32> -> vector<16x256xf32>
    %c0_52 = arith.constant 0 : index
    %c0_53 = arith.constant 0 : index
    %c0_54 = arith.constant 0 : index
    %50 = vector.load %arg7[%c0_52, %c0_53, %c0_54] : memref<1x16x256xf32, #tpu.memory_space<vmem>>, vector<1x16x256xf32>
    %51 = vector.shape_cast %50 : vector<1x16x256xf32> to vector<16x256xf32>
    %52 = vector.shape_cast %49 : vector<16x256xf32> to vector<1x16x256xf32>
    tpu.vector_store %arg7[%c0_52, %c0_53, %c0_54], %52 {strides = array<i32>} : memref<1x16x256xf32, #tpu.memory_space<vmem>>, vector<1x16x256xf32>,
    %53 = arith.truncf %48 : vector<256x16xf32> to vector<256x16xbf16>
    %54 = vector.shape_cast %53 : vector<256x16xbf16> to vector<16x16x16xbf16>
    %55 = vector.shape_cast %54 : vector<16x16x16xbf16> to vector<8x2x16x16xbf16>
    %c0_55 = arith.constant 0 : index
    %c0_56 = arith.constant 0 : index
    %c0_57 = arith.constant 0 : index
    %56 = vector.load %arg3[%c0_55, %c0_56, %c0_57] : memref<2x32x16xbf16, #tpu.memory_space<vmem>>, vector<1x32x16xbf16>
    %57 = vector.shape_cast %56 : vector<1x32x16xbf16> to vector<32x16xbf16>
    %58 = vector.extract_strided_slice %55 {offsets = [0, 0, 0, 0], sizes = [8, 1, 16, 16], strides = [1, 1, 1, 1]} : vector<8x2x16x16xbf16> to vector<8x1x16x16xbf16>
    %59 = vector.shape_cast %58 : vector<8x1x16x16xbf16> to vector<8x16x16xbf16>
    %60 = vector.shape_cast %59 : vector<8x16x16xbf16> to vector<8x8x2x16xbf16>
    %61 = vector.extract_strided_slice %60 {offsets = [0, 0, 0, 0], sizes = [8, 8, 1, 16], strides = [1, 1, 1, 1]} : vector<8x8x2x16xbf16> to vector<8x8x1x16xbf16>
    %62 = vector.shape_cast %61 : vector<8x8x1x16xbf16> to vector<8x8x16xbf16>
    %63 = vector.shape_cast %62 : vector<8x8x16xbf16> to vector<64x16xbf16>
    %64 = vector.extract_strided_slice %57 {offsets = [0, 0], sizes = [16, 16], strides = [1, 1]} : vector<32x16xbf16> to vector<16x16xbf16>
    %cst_58 = arith.constant dense<0.000000e+00> : vector<64x16xf32>
    %65 = tpu.matmul %63, %64, %cst_58 {dimension_numbers = #tpu.dot_dimension_numbers<[1], [0], [0], [1], [0, 0, 1, 1], [], []>} : vector<64x16xbf16>, vector<16x16xbf16>, vector<64x16xf32> -> vector<64x16xf32>
    %66 = vector.extract_strided_slice %60 {offsets = [0, 0, 1, 0], sizes = [8, 8, 1, 16], strides = [1, 1, 1, 1]} : vector<8x8x2x16xbf16> to vector<8x8x1x16xbf16>
    %67 = vector.shape_cast %66 : vector<8x8x1x16xbf16> to vector<8x8x16xbf16>
    %68 = vector.shape_cast %67 : vector<8x8x16xbf16> to vector<64x16xbf16>
    %69 = vector.extract_strided_slice %57 {offsets = [16, 0], sizes = [16, 16], strides = [1, 1]} : vector<32x16xbf16> to vector<16x16xbf16>
    %cst_59 = arith.constant dense<0.000000e+00> : vector<64x16xf32>
    %70 = tpu.matmul %68, %69, %cst_59 {dimension_numbers = #tpu.dot_dimension_numbers<[1], [0], [0], [1], [0, 0, 1, 1], [], []>} : vector<64x16xbf16>, vector<16x16xbf16>, vector<64x16xf32> -> vector<64x16xf32>
    %71 = arith.addf %65, %70 : vector<64x16xf32>
    %c1_60 = arith.constant 1 : index
    %c0_61 = arith.constant 0 : index
    %c0_62 = arith.constant 0 : index
    %72 = vector.load %arg3[%c1_60, %c0_61, %c0_62] : memref<2x32x16xbf16, #tpu.memory_space<vmem>>, vector<1x32x16xbf16>
    %73 = vector.shape_cast %72 : vector<1x32x16xbf16> to vector<32x16xbf16>
    %74 = vector.extract_strided_slice %55 {offsets = [0, 1, 0, 0], sizes = [8, 1, 16, 16], strides = [1, 1, 1, 1]} : vector<8x2x16x16xbf16> to vector<8x1x16x16xbf16>
    %75 = vector.shape_cast %74 : vector<8x1x16x16xbf16> to vector<8x16x16xbf16>
    %76 = vector.shape_cast %75 : vector<8x16x16xbf16> to vector<8x8x2x16xbf16>
    %77 = vector.extract_strided_slice %76 {offsets = [0, 0, 0, 0], sizes = [8, 8, 1, 16], strides = [1, 1, 1, 1]} : vector<8x8x2x16xbf16> to vector<8x8x1x16xbf16>
    %78 = vector.shape_cast %77 : vector<8x8x1x16xbf16> to vector<8x8x16xbf16>
    %79 = vector.shape_cast %78 : vector<8x8x16xbf16> to vector<64x16xbf16>
    %80 = vector.extract_strided_slice %73 {offsets = [0, 0], sizes = [16, 16], strides = [1, 1]} : vector<32x16xbf16> to vector<16x16xbf16>
    %cst_63 = arith.constant dense<0.000000e+00> : vector<64x16xf32>
    %81 = tpu.matmul %79, %80, %cst_63 {dimension_numbers = #tpu.dot_dimension_numbers<[1], [0], [0], [1], [0, 0, 1, 1], [], []>} : vector<64x16xbf16>, vector<16x16xbf16>, vector<64x16xf32> -> vector<64x16xf32>
    %82 = arith.addf %71, %81 : vector<64x16xf32>
    %83 = vector.extract_strided_slice %76 {offsets = [0, 0, 1, 0], sizes = [8, 8, 1, 16], strides = [1, 1, 1, 1]} : vector<8x8x2x16xbf16> to vector<8x8x1x16xbf16>
    %84 = vector.shape_cast %83 : vector<8x8x1x16xbf16> to vector<8x8x16xbf16>
    %85 = vector.shape_cast %84 : vector<8x8x16xbf16> to vector<64x16xbf16>
    %86 = vector.extract_strided_slice %73 {offsets = [16, 0], sizes = [16, 16], strides = [1, 1]} : vector<32x16xbf16> to vector<16x16xbf16>
    %cst_64 = arith.constant dense<0.000000e+00> : vector<64x16xf32>
    %87 = tpu.matmul %85, %86, %cst_64 {dimension_numbers = #tpu.dot_dimension_numbers<[1], [0], [0], [1], [0, 0, 1, 1], [], []>} : vector<64x16xbf16>, vector<16x16xbf16>, vector<64x16xf32> -> vector<64x16xf32>
    %88 = arith.addf %82, %87 : vector<64x16xf32>
    %cst_65 = arith.constant 0.000000e+00 : f32
    %89 = vector.broadcast %cst_65 : f32 to vector<64x16xf32>
    %90 = arith.maximumf %88, %89 : vector<64x16xf32>
    %cst_66 = arith.constant 0.000000e+00 : bf16
    %91 = vector.broadcast %cst_66 : bf16 to vector<2x12x16xbf16>
    %c0_67 = arith.constant 0 : index
    %c0_68 = arith.constant 0 : index
    %c0_69 = arith.constant 0 : index
    %92 = vector.load %arg11[%c0_67, %c0_68, %c0_69] : memref<12x12x16xbf16, #tpu.memory_space<vmem>>, vector<2x12x16xbf16>
    tpu.vector_store %arg11[%c0_67, %c0_68, %c0_69], %91 {strides = array<i32>} : memref<12x12x16xbf16, #tpu.memory_space<vmem>>, vector<2x12x16xbf16>,
    %cst_70 = arith.constant 0.000000e+00 : bf16
    %93 = vector.broadcast %cst_70 : bf16 to vector<2x12x16xbf16>
    %c10 = arith.constant 10 : index
    %c0_71 = arith.constant 0 : index
    %c0_72 = arith.constant 0 : index
    %94 = vector.load %arg11[%c10, %c0_71, %c0_72] : memref<12x12x16xbf16, #tpu.memory_space<vmem>>, vector<2x12x16xbf16>
    tpu.vector_store %arg11[%c10, %c0_71, %c0_72], %93 {strides = array<i32>} : memref<12x12x16xbf16, #tpu.memory_space<vmem>>, vector<2x12x16xbf16>,
    %cst_73 = arith.constant 0.000000e+00 : bf16
    %95 = vector.broadcast %cst_73 : bf16 to vector<8x2x16xbf16>
    %c2_74 = arith.constant 2 : index
    %c0_75 = arith.constant 0 : index
    %c0_76 = arith.constant 0 : index
    %96 = vector.load %arg11[%c2_74, %c0_75, %c0_76] : memref<12x12x16xbf16, #tpu.memory_space<vmem>>, vector<8x2x16xbf16>
    tpu.vector_store %arg11[%c2_74, %c0_75, %c0_76], %95 {strides = array<i32>} : memref<12x12x16xbf16, #tpu.memory_space<vmem>>, vector<8x2x16xbf16>,
    %cst_77 = arith.constant 0.000000e+00 : bf16
    %97 = vector.broadcast %cst_77 : bf16 to vector<8x2x16xbf16>
    %c2_78 = arith.constant 2 : index
    %c10_79 = arith.constant 10 : index
    %c0_80 = arith.constant 0 : index
    %98 = vector.load %arg11[%c2_78, %c10_79, %c0_80] : memref<12x12x16xbf16, #tpu.memory_space<vmem>>, vector<8x2x16xbf16>
    tpu.vector_store %arg11[%c2_78, %c10_79, %c0_80], %97 {strides = array<i32>} : memref<12x12x16xbf16, #tpu.memory_space<vmem>>, vector<8x2x16xbf16>,
    %99 = arith.truncf %90 : vector<64x16xf32> to vector<64x16xbf16>
    %100 = vector.shape_cast %99 : vector<64x16xbf16> to vector<8x8x16xbf16>
    %c2_81 = arith.constant 2 : index
    %c2_82 = arith.constant 2 : index
    %c0_83 = arith.constant 0 : index
    %101 = vector.load %arg11[%c2_81, %c2_82, %c0_83] : memref<12x12x16xbf16, #tpu.memory_space<vmem>>, vector<8x8x16xbf16>
    tpu.vector_store %arg11[%c2_81, %c2_82, %c0_83], %100 {strides = array<i32>} : memref<12x12x16xbf16, #tpu.memory_space<vmem>>, vector<8x8x16xbf16>,
    %c0_84 = arith.constant 0 : index
    %c0_85 = arith.constant 0 : index
    %c0_86 = arith.constant 0 : index
    %102 = vector.load %arg11[%c0_84, %c0_85, %c0_86] : memref<12x12x16xbf16, #tpu.memory_space<vmem>>, vector<12x8x16xbf16>
    %c0_87 = arith.constant 0 : index
    %c1_88 = arith.constant 1 : index
    %c0_89 = arith.constant 0 : index
    %103 = vector.load %arg11[%c0_87, %c1_88, %c0_89] : memref<12x12x16xbf16, #tpu.memory_space<vmem>>, vector<12x8x16xbf16>
    %c0_90 = arith.constant 0 : index
    %c2_91 = arith.constant 2 : index
    %c0_92 = arith.constant 0 : index
    %104 = vector.load %arg11[%c0_90, %c2_91, %c0_92] : memref<12x12x16xbf16, #tpu.memory_space<vmem>>, vector<12x8x16xbf16>
    %c0_93 = arith.constant 0 : index
    %c3_94 = arith.constant 3 : index
    %c0_95 = arith.constant 0 : index
    %105 = vector.load %arg11[%c0_93, %c3_94, %c0_95] : memref<12x12x16xbf16, #tpu.memory_space<vmem>>, vector<12x8x16xbf16>
    %c0_96 = arith.constant 0 : index
    %c4_97 = arith.constant 4 : index
    %c0_98 = arith.constant 0 : index
    %106 = vector.load %arg11[%c0_96, %c4_97, %c0_98] : memref<12x12x16xbf16, #tpu.memory_space<vmem>>, vector<12x8x16xbf16>
    %107 = tpu.concatenate %102, %103, %104, %105, %106 in 2 : vector<12x8x16xbf16>, vector<12x8x16xbf16>, vector<12x8x16xbf16>, vector<12x8x16xbf16>, vector<12x8x16xbf16> -> vector<12x8x80xbf16>
    %108 = vector.extract_strided_slice %107 {offsets = [0, 0, 0], sizes = [8, 8, 80], strides = [1, 1, 1]} : vector<12x8x80xbf16> to vector<8x8x80xbf16>
    %109 = vector.shape_cast %108 : vector<8x8x80xbf16> to vector<64x80xbf16>
    %c0_99 = arith.constant 0 : index
    %c0_100 = arith.constant 0 : index
    %c0_101 = arith.constant 0 : index
    %110 = vector.load %arg4[%c0_99, %c0_100, %c0_101] : memref<5x80x32xbf16, #tpu.memory_space<vmem>>, vector<1x80x32xbf16>
    %111 = vector.shape_cast %110 : vector<1x80x32xbf16> to vector<80x32xbf16>
    %cst_102 = arith.constant dense<0.000000e+00> : vector<64x32xf32>
    %112 = tpu.matmul %109, %111, %cst_102 {dimension_numbers = #tpu.dot_dimension_numbers<[1], [0], [0], [1], [0, 0, 1, 1], [], []>} : vector<64x80xbf16>, vector<80x32xbf16>, vector<64x32xf32> -> vector<64x32xf32>
    %113 = vector.extract_strided_slice %107 {offsets = [1, 0, 0], sizes = [8, 8, 80], strides = [1, 1, 1]} : vector<12x8x80xbf16> to vector<8x8x80xbf16>
    %114 = vector.shape_cast %113 : vector<8x8x80xbf16> to vector<64x80xbf16>
    %c1_103 = arith.constant 1 : index
    %c0_104 = arith.constant 0 : index
    %c0_105 = arith.constant 0 : index
    %115 = vector.load %arg4[%c1_103, %c0_104, %c0_105] : memref<5x80x32xbf16, #tpu.memory_space<vmem>>, vector<1x80x32xbf16>
    %116 = vector.shape_cast %115 : vector<1x80x32xbf16> to vector<80x32xbf16>
    %cst_106 = arith.constant dense<0.000000e+00> : vector<64x32xf32>
    %117 = tpu.matmul %114, %116, %cst_106 {dimension_numbers = #tpu.dot_dimension_numbers<[1], [0], [0], [1], [0, 0, 1, 1], [], []>} : vector<64x80xbf16>, vector<80x32xbf16>, vector<64x32xf32> -> vector<64x32xf32>
    %118 = arith.addf %112, %117 : vector<64x32xf32>
    %119 = vector.extract_strided_slice %107 {offsets = [2, 0, 0], sizes = [8, 8, 80], strides = [1, 1, 1]} : vector<12x8x80xbf16> to vector<8x8x80xbf16>
    %120 = vector.shape_cast %119 : vector<8x8x80xbf16> to vector<64x80xbf16>
    %c2_107 = arith.constant 2 : index
    %c0_108 = arith.constant 0 : index
    %c0_109 = arith.constant 0 : index
    %121 = vector.load %arg4[%c2_107, %c0_108, %c0_109] : memref<5x80x32xbf16, #tpu.memory_space<vmem>>, vector<1x80x32xbf16>
    %122 = vector.shape_cast %121 : vector<1x80x32xbf16> to vector<80x32xbf16>
    %cst_110 = arith.constant dense<0.000000e+00> : vector<64x32xf32>
    %123 = tpu.matmul %120, %122, %cst_110 {dimension_numbers = #tpu.dot_dimension_numbers<[1], [0], [0], [1], [0, 0, 1, 1], [], []>} : vector<64x80xbf16>, vector<80x32xbf16>, vector<64x32xf32> -> vector<64x32xf32>
    %124 = arith.addf %118, %123 : vector<64x32xf32>
    %125 = vector.extract_strided_slice %107 {offsets = [3, 0, 0], sizes = [8, 8, 80], strides = [1, 1, 1]} : vector<12x8x80xbf16> to vector<8x8x80xbf16>
    %126 = vector.shape_cast %125 : vector<8x8x80xbf16> to vector<64x80xbf16>
    %c3_111 = arith.constant 3 : index
    %c0_112 = arith.constant 0 : index
    %c0_113 = arith.constant 0 : index
    %127 = vector.load %arg4[%c3_111, %c0_112, %c0_113] : memref<5x80x32xbf16, #tpu.memory_space<vmem>>, vector<1x80x32xbf16>
    %128 = vector.shape_cast %127 : vector<1x80x32xbf16> to vector<80x32xbf16>
    %cst_114 = arith.constant dense<0.000000e+00> : vector<64x32xf32>
    %129 = tpu.matmul %126, %128, %cst_114 {dimension_numbers = #tpu.dot_dimension_numbers<[1], [0], [0], [1], [0, 0, 1, 1], [], []>} : vector<64x80xbf16>, vector<80x32xbf16>, vector<64x32xf32> -> vector<64x32xf32>
    %130 = arith.addf %124, %129 : vector<64x32xf32>
    %131 = vector.extract_strided_slice %107 {offsets = [4, 0, 0], sizes = [8, 8, 80], strides = [1, 1, 1]} : vector<12x8x80xbf16> to vector<8x8x80xbf16>
    %132 = vector.shape_cast %131 : vector<8x8x80xbf16> to vector<64x80xbf16>
    %c4_115 = arith.constant 4 : index
    %c0_116 = arith.constant 0 : index
    %c0_117 = arith.constant 0 : index
    %133 = vector.load %arg4[%c4_115, %c0_116, %c0_117] : memref<5x80x32xbf16, #tpu.memory_space<vmem>>, vector<1x80x32xbf16>
    %134 = vector.shape_cast %133 : vector<1x80x32xbf16> to vector<80x32xbf16>
    %cst_118 = arith.constant dense<0.000000e+00> : vector<64x32xf32>
    %135 = tpu.matmul %132, %134, %cst_118 {dimension_numbers = #tpu.dot_dimension_numbers<[1], [0], [0], [1], [0, 0, 1, 1], [], []>} : vector<64x80xbf16>, vector<80x32xbf16>, vector<64x32xf32> -> vector<64x32xf32>
    %136 = arith.addf %130, %135 : vector<64x32xf32>
    %cst_119 = arith.constant 0.000000e+00 : f32
    %137 = vector.broadcast %cst_119 : f32 to vector<64x32xf32>
    %138 = arith.maximumf %136, %137 : vector<64x32xf32>
    %139 = tpu.transpose %138, [1, 0] : vector<64x32xf32> -> vector<32x64xf32>
    %c0_120 = arith.constant 0 : index
    %c0_121 = arith.constant 0 : index
    %c0_122 = arith.constant 0 : index
    %140 = vector.load %arg8[%c0_120, %c0_121, %c0_122] : memref<1x32x64xf32, #tpu.memory_space<vmem>>, vector<1x32x64xf32>
    %141 = vector.shape_cast %140 : vector<1x32x64xf32> to vector<32x64xf32>
    %142 = vector.shape_cast %139 : vector<32x64xf32> to vector<1x32x64xf32>
    tpu.vector_store %arg8[%c0_120, %c0_121, %c0_122], %142 {strides = array<i32>} : memref<1x32x64xf32, #tpu.memory_space<vmem>>, vector<1x32x64xf32>,
    %143 = arith.truncf %138 : vector<64x32xf32> to vector<64x32xbf16>
    %144 = vector.shape_cast %143 : vector<64x32xbf16> to vector<8x8x32xbf16>
    %145 = vector.shape_cast %144 : vector<8x8x32xbf16> to vector<4x2x8x32xbf16>
    %c0_123 = arith.constant 0 : index
    %c0_124 = arith.constant 0 : index
    %c0_125 = arith.constant 0 : index
    %146 = vector.load %arg5[%c0_123, %c0_124, %c0_125] : memref<2x64x32xbf16, #tpu.memory_space<vmem>>, vector<1x64x32xbf16>
    %147 = vector.shape_cast %146 : vector<1x64x32xbf16> to vector<64x32xbf16>
    %148 = vector.extract_strided_slice %145 {offsets = [0, 0, 0, 0], sizes = [4, 1, 8, 32], strides = [1, 1, 1, 1]} : vector<4x2x8x32xbf16> to vector<4x1x8x32xbf16>
    %149 = vector.shape_cast %148 : vector<4x1x8x32xbf16> to vector<4x8x32xbf16>
    %150 = vector.shape_cast %149 : vector<4x8x32xbf16> to vector<4x4x2x32xbf16>
    %151 = vector.extract_strided_slice %150 {offsets = [0, 0, 0, 0], sizes = [4, 4, 1, 32], strides = [1, 1, 1, 1]} : vector<4x4x2x32xbf16> to vector<4x4x1x32xbf16>
    %152 = vector.shape_cast %151 : vector<4x4x1x32xbf16> to vector<4x4x32xbf16>
    %153 = vector.shape_cast %152 : vector<4x4x32xbf16> to vector<16x32xbf16>
    %154 = vector.extract_strided_slice %147 {offsets = [0, 0], sizes = [32, 32], strides = [1, 1]} : vector<64x32xbf16> to vector<32x32xbf16>
    %cst_126 = arith.constant dense<0.000000e+00> : vector<16x32xf32>
    %155 = tpu.matmul %153, %154, %cst_126 {dimension_numbers = #tpu.dot_dimension_numbers<[1], [0], [0], [1], [0, 0, 1, 1], [], []>} : vector<16x32xbf16>, vector<32x32xbf16>, vector<16x32xf32> -> vector<16x32xf32>
    %156 = vector.extract_strided_slice %150 {offsets = [0, 0, 1, 0], sizes = [4, 4, 1, 32], strides = [1, 1, 1, 1]} : vector<4x4x2x32xbf16> to vector<4x4x1x32xbf16>
    %157 = vector.shape_cast %156 : vector<4x4x1x32xbf16> to vector<4x4x32xbf16>
    %158 = vector.shape_cast %157 : vector<4x4x32xbf16> to vector<16x32xbf16>
    %159 = vector.extract_strided_slice %147 {offsets = [32, 0], sizes = [32, 32], strides = [1, 1]} : vector<64x32xbf16> to vector<32x32xbf16>
    %cst_127 = arith.constant dense<0.000000e+00> : vector<16x32xf32>
    %160 = tpu.matmul %158, %159, %cst_127 {dimension_numbers = #tpu.dot_dimension_numbers<[1], [0], [0], [1], [0, 0, 1, 1], [], []>} : vector<16x32xbf16>, vector<32x32xbf16>, vector<16x32xf32> -> vector<16x32xf32>
    %161 = arith.addf %155, %160 : vector<16x32xf32>
    %c1_128 = arith.constant 1 : index
    %c0_129 = arith.constant 0 : index
    %c0_130 = arith.constant 0 : index
    %162 = vector.load %arg5[%c1_128, %c0_129, %c0_130] : memref<2x64x32xbf16, #tpu.memory_space<vmem>>, vector<1x64x32xbf16>
    %163 = vector.shape_cast %162 : vector<1x64x32xbf16> to vector<64x32xbf16>
    %164 = vector.extract_strided_slice %145 {offsets = [0, 1, 0, 0], sizes = [4, 1, 8, 32], strides = [1, 1, 1, 1]} : vector<4x2x8x32xbf16> to vector<4x1x8x32xbf16>
    %165 = vector.shape_cast %164 : vector<4x1x8x32xbf16> to vector<4x8x32xbf16>
    %166 = vector.shape_cast %165 : vector<4x8x32xbf16> to vector<4x4x2x32xbf16>
    %167 = vector.extract_strided_slice %166 {offsets = [0, 0, 0, 0], sizes = [4, 4, 1, 32], strides = [1, 1, 1, 1]} : vector<4x4x2x32xbf16> to vector<4x4x1x32xbf16>
    %168 = vector.shape_cast %167 : vector<4x4x1x32xbf16> to vector<4x4x32xbf16>
    %169 = vector.shape_cast %168 : vector<4x4x32xbf16> to vector<16x32xbf16>
    %170 = vector.extract_strided_slice %163 {offsets = [0, 0], sizes = [32, 32], strides = [1, 1]} : vector<64x32xbf16> to vector<32x32xbf16>
    %cst_131 = arith.constant dense<0.000000e+00> : vector<16x32xf32>
    %171 = tpu.matmul %169, %170, %cst_131 {dimension_numbers = #tpu.dot_dimension_numbers<[1], [0], [0], [1], [0, 0, 1, 1], [], []>} : vector<16x32xbf16>, vector<32x32xbf16>, vector<16x32xf32> -> vector<16x32xf32>
    %172 = arith.addf %161, %171 : vector<16x32xf32>
    %173 = vector.extract_strided_slice %166 {offsets = [0, 0, 1, 0], sizes = [4, 4, 1, 32], strides = [1, 1, 1, 1]} : vector<4x4x2x32xbf16> to vector<4x4x1x32xbf16>
    %174 = vector.shape_cast %173 : vector<4x4x1x32xbf16> to vector<4x4x32xbf16>
    %175 = vector.shape_cast %174 : vector<4x4x32xbf16> to vector<16x32xbf16>
    %176 = vector.extract_strided_slice %163 {offsets = [32, 0], sizes = [32, 32], strides = [1, 1]} : vector<64x32xbf16> to vector<32x32xbf16>
    %cst_132 = arith.constant dense<0.000000e+00> : vector<16x32xf32>
    %177 = tpu.matmul %175, %176, %cst_132 {dimension_numbers = #tpu.dot_dimension_numbers<[1], [0], [0], [1], [0, 0, 1, 1], [], []>} : vector<16x32xbf16>, vector<32x32xbf16>, vector<16x32xf32> -> vector<16x32xf32>
    %178 = arith.addf %172, %177 : vector<16x32xf32>
    %cst_133 = arith.constant 0.000000e+00 : f32
    %179 = vector.broadcast %cst_133 : f32 to vector<16x32xf32>
    %180 = arith.maximumf %178, %179 : vector<16x32xf32>
    %cst_134 = arith.constant 0.000000e+00 : bf16
    %181 = vector.broadcast %cst_134 : bf16 to vector<2x8x32xbf16>
    %c0_135 = arith.constant 0 : index
    %c0_136 = arith.constant 0 : index
    %c0_137 = arith.constant 0 : index
    %182 = vector.load %arg12[%c0_135, %c0_136, %c0_137] : memref<8x8x32xbf16, #tpu.memory_space<vmem>>, vector<2x8x32xbf16>
    tpu.vector_store %arg12[%c0_135, %c0_136, %c0_137], %181 {strides = array<i32>} : memref<8x8x32xbf16, #tpu.memory_space<vmem>>, vector<2x8x32xbf16>,
    %cst_138 = arith.constant 0.000000e+00 : bf16
    %183 = vector.broadcast %cst_138 : bf16 to vector<2x8x32xbf16>
    %c6 = arith.constant 6 : index
    %c0_139 = arith.constant 0 : index
    %c0_140 = arith.constant 0 : index
    %184 = vector.load %arg12[%c6, %c0_139, %c0_140] : memref<8x8x32xbf16, #tpu.memory_space<vmem>>, vector<2x8x32xbf16>
    tpu.vector_store %arg12[%c6, %c0_139, %c0_140], %183 {strides = array<i32>} : memref<8x8x32xbf16, #tpu.memory_space<vmem>>, vector<2x8x32xbf16>,
    %cst_141 = arith.constant 0.000000e+00 : bf16
    %185 = vector.broadcast %cst_141 : bf16 to vector<4x2x32xbf16>
    %c2_142 = arith.constant 2 : index
    %c0_143 = arith.constant 0 : index
    %c0_144 = arith.constant 0 : index
    %186 = vector.load %arg12[%c2_142, %c0_143, %c0_144] : memref<8x8x32xbf16, #tpu.memory_space<vmem>>, vector<4x2x32xbf16>
    tpu.vector_store %arg12[%c2_142, %c0_143, %c0_144], %185 {strides = array<i32>} : memref<8x8x32xbf16, #tpu.memory_space<vmem>>, vector<4x2x32xbf16>,
    %cst_145 = arith.constant 0.000000e+00 : bf16
    %187 = vector.broadcast %cst_145 : bf16 to vector<4x2x32xbf16>
    %c2_146 = arith.constant 2 : index
    %c6_147 = arith.constant 6 : index
    %c0_148 = arith.constant 0 : index
    %188 = vector.load %arg12[%c2_146, %c6_147, %c0_148] : memref<8x8x32xbf16, #tpu.memory_space<vmem>>, vector<4x2x32xbf16>
    tpu.vector_store %arg12[%c2_146, %c6_147, %c0_148], %187 {strides = array<i32>} : memref<8x8x32xbf16, #tpu.memory_space<vmem>>, vector<4x2x32xbf16>,
    %189 = arith.truncf %180 : vector<16x32xf32> to vector<16x32xbf16>
    %190 = vector.shape_cast %189 : vector<16x32xbf16> to vector<4x4x32xbf16>
    %c2_149 = arith.constant 2 : index
    %c2_150 = arith.constant 2 : index
    %c0_151 = arith.constant 0 : index
    %191 = vector.load %arg12[%c2_149, %c2_150, %c0_151] : memref<8x8x32xbf16, #tpu.memory_space<vmem>>, vector<4x4x32xbf16>
    tpu.vector_store %arg12[%c2_149, %c2_150, %c0_151], %190 {strides = array<i32>} : memref<8x8x32xbf16, #tpu.memory_space<vmem>>, vector<4x4x32xbf16>,
    %c0_152 = arith.constant 0 : index
    %c0_153 = arith.constant 0 : index
    %c0_154 = arith.constant 0 : index
    %192 = vector.load %arg12[%c0_152, %c0_153, %c0_154] : memref<8x8x32xbf16, #tpu.memory_space<vmem>>, vector<8x4x32xbf16>
    %c0_155 = arith.constant 0 : index
    %c1_156 = arith.constant 1 : index
    %c0_157 = arith.constant 0 : index
    %193 = vector.load %arg12[%c0_155, %c1_156, %c0_157] : memref<8x8x32xbf16, #tpu.memory_space<vmem>>, vector<8x4x32xbf16>
    %c0_158 = arith.constant 0 : index
    %c2_159 = arith.constant 2 : index
    %c0_160 = arith.constant 0 : index
    %194 = vector.load %arg12[%c0_158, %c2_159, %c0_160] : memref<8x8x32xbf16, #tpu.memory_space<vmem>>, vector<8x4x32xbf16>
    %c0_161 = arith.constant 0 : index
    %c3_162 = arith.constant 3 : index
    %c0_163 = arith.constant 0 : index
    %195 = vector.load %arg12[%c0_161, %c3_162, %c0_163] : memref<8x8x32xbf16, #tpu.memory_space<vmem>>, vector<8x4x32xbf16>
    %c0_164 = arith.constant 0 : index
    %c4_165 = arith.constant 4 : index
    %c0_166 = arith.constant 0 : index
    %196 = vector.load %arg12[%c0_164, %c4_165, %c0_166] : memref<8x8x32xbf16, #tpu.memory_space<vmem>>, vector<8x4x32xbf16>
    %197 = tpu.concatenate %192, %193, %194, %195, %196 in 2 : vector<8x4x32xbf16>, vector<8x4x32xbf16>, vector<8x4x32xbf16>, vector<8x4x32xbf16>, vector<8x4x32xbf16> -> vector<8x4x160xbf16>
    %198 = vector.extract_strided_slice %197 {offsets = [0, 0, 0], sizes = [4, 4, 160], strides = [1, 1, 1]} : vector<8x4x160xbf16> to vector<4x4x160xbf16>
    %199 = vector.shape_cast %198 : vector<4x4x160xbf16> to vector<16x160xbf16>
    %c0_167 = arith.constant 0 : index
    %c0_168 = arith.constant 0 : index
    %c0_169 = arith.constant 0 : index
    %200 = vector.load %arg6[%c0_167, %c0_168, %c0_169] : memref<5x160x64xbf16, #tpu.memory_space<vmem>>, vector<1x160x64xbf16>
    %201 = vector.shape_cast %200 : vector<1x160x64xbf16> to vector<160x64xbf16>
    %cst_170 = arith.constant dense<0.000000e+00> : vector<16x64xf32>
    %202 = tpu.matmul %199, %201, %cst_170 {dimension_numbers = #tpu.dot_dimension_numbers<[1], [0], [0], [1], [0, 0, 1, 1], [], []>} : vector<16x160xbf16>, vector<160x64xbf16>, vector<16x64xf32> -> vector<16x64xf32>
    %203 = vector.extract_strided_slice %197 {offsets = [1, 0, 0], sizes = [4, 4, 160], strides = [1, 1, 1]} : vector<8x4x160xbf16> to vector<4x4x160xbf16>
    %204 = vector.shape_cast %203 : vector<4x4x160xbf16> to vector<16x160xbf16>
    %c1_171 = arith.constant 1 : index
    %c0_172 = arith.constant 0 : index
    %c0_173 = arith.constant 0 : index
    %205 = vector.load %arg6[%c1_171, %c0_172, %c0_173] : memref<5x160x64xbf16, #tpu.memory_space<vmem>>, vector<1x160x64xbf16>
    %206 = vector.shape_cast %205 : vector<1x160x64xbf16> to vector<160x64xbf16>
    %cst_174 = arith.constant dense<0.000000e+00> : vector<16x64xf32>
    %207 = tpu.matmul %204, %206, %cst_174 {dimension_numbers = #tpu.dot_dimension_numbers<[1], [0], [0], [1], [0, 0, 1, 1], [], []>} : vector<16x160xbf16>, vector<160x64xbf16>, vector<16x64xf32> -> vector<16x64xf32>
    %208 = arith.addf %202, %207 : vector<16x64xf32>
    %209 = vector.extract_strided_slice %197 {offsets = [2, 0, 0], sizes = [4, 4, 160], strides = [1, 1, 1]} : vector<8x4x160xbf16> to vector<4x4x160xbf16>
    %210 = vector.shape_cast %209 : vector<4x4x160xbf16> to vector<16x160xbf16>
    %c2_175 = arith.constant 2 : index
    %c0_176 = arith.constant 0 : index
    %c0_177 = arith.constant 0 : index
    %211 = vector.load %arg6[%c2_175, %c0_176, %c0_177] : memref<5x160x64xbf16, #tpu.memory_space<vmem>>, vector<1x160x64xbf16>
    %212 = vector.shape_cast %211 : vector<1x160x64xbf16> to vector<160x64xbf16>
    %cst_178 = arith.constant dense<0.000000e+00> : vector<16x64xf32>
    %213 = tpu.matmul %210, %212, %cst_178 {dimension_numbers = #tpu.dot_dimension_numbers<[1], [0], [0], [1], [0, 0, 1, 1], [], []>} : vector<16x160xbf16>, vector<160x64xbf16>, vector<16x64xf32> -> vector<16x64xf32>
    %214 = arith.addf %208, %213 : vector<16x64xf32>
    %215 = vector.extract_strided_slice %197 {offsets = [3, 0, 0], sizes = [4, 4, 160], strides = [1, 1, 1]} : vector<8x4x160xbf16> to vector<4x4x160xbf16>
    %216 = vector.shape_cast %215 : vector<4x4x160xbf16> to vector<16x160xbf16>
    %c3_179 = arith.constant 3 : index
    %c0_180 = arith.constant 0 : index
    %c0_181 = arith.constant 0 : index
    %217 = vector.load %arg6[%c3_179, %c0_180, %c0_181] : memref<5x160x64xbf16, #tpu.memory_space<vmem>>, vector<1x160x64xbf16>
    %218 = vector.shape_cast %217 : vector<1x160x64xbf16> to vector<160x64xbf16>
    %cst_182 = arith.constant dense<0.000000e+00> : vector<16x64xf32>
    %219 = tpu.matmul %216, %218, %cst_182 {dimension_numbers = #tpu.dot_dimension_numbers<[1], [0], [0], [1], [0, 0, 1, 1], [], []>} : vector<16x160xbf16>, vector<160x64xbf16>, vector<16x64xf32> -> vector<16x64xf32>
    %220 = arith.addf %214, %219 : vector<16x64xf32>
    %221 = vector.extract_strided_slice %197 {offsets = [4, 0, 0], sizes = [4, 4, 160], strides = [1, 1, 1]} : vector<8x4x160xbf16> to vector<4x4x160xbf16>
    %222 = vector.shape_cast %221 : vector<4x4x160xbf16> to vector<16x160xbf16>
    %c4_183 = arith.constant 4 : index
    %c0_184 = arith.constant 0 : index
    %c0_185 = arith.constant 0 : index
    %223 = vector.load %arg6[%c4_183, %c0_184, %c0_185] : memref<5x160x64xbf16, #tpu.memory_space<vmem>>, vector<1x160x64xbf16>
    %224 = vector.shape_cast %223 : vector<1x160x64xbf16> to vector<160x64xbf16>
    %cst_186 = arith.constant dense<0.000000e+00> : vector<16x64xf32>
    %225 = tpu.matmul %222, %224, %cst_186 {dimension_numbers = #tpu.dot_dimension_numbers<[1], [0], [0], [1], [0, 0, 1, 1], [], []>} : vector<16x160xbf16>, vector<160x64xbf16>, vector<16x64xf32> -> vector<16x64xf32>
    %226 = arith.addf %220, %225 : vector<16x64xf32>
    %cst_187 = arith.constant 0.000000e+00 : f32
    %227 = vector.broadcast %cst_187 : f32 to vector<16x64xf32>
    %228 = arith.maximumf %226, %227 : vector<16x64xf32>
    %229 = tpu.transpose %228, [1, 0] : vector<16x64xf32> -> vector<64x16xf32>
    %c0_188 = arith.constant 0 : index
    %c0_189 = arith.constant 0 : index
    %c0_190 = arith.constant 0 : index
    %230 = vector.load %arg9[%c0_188, %c0_189, %c0_190] : memref<1x64x16xf32, #tpu.memory_space<vmem>>, vector<1x64x16xf32>
    %231 = vector.shape_cast %230 : vector<1x64x16xf32> to vector<64x16xf32>
    %232 = vector.shape_cast %229 : vector<64x16xf32> to vector<1x64x16xf32>
    tpu.vector_store %arg9[%c0_188, %c0_189, %c0_190], %232 {strides = array<i32>} : memref<1x64x16xf32, #tpu.memory_space<vmem>>, vector<1x64x16xf32>,
    return
  }
  func.func @transform_0(%arg0: i32) -> (i32, i32, i32, i32) {
    %c0_i32 = arith.constant 0 : i32
    %c0_i32_0 = arith.constant 0 : i32
    %c0_i32_1 = arith.constant 0 : i32
    %c0_i32_2 = arith.constant 0 : i32
    return %arg0, %c0_i32, %c0_i32_0, %c0_i32_1 : i32, i32, i32, i32
  }
  func.func @transform_1(%arg0: i32) -> (i32, i32, i32) {
    %c0_i32 = arith.constant 0 : i32
    %c0_i32_0 = arith.constant 0 : i32
    %c0_i32_1 = arith.constant 0 : i32
    %c0_i32_2 = arith.constant 0 : i32
    return %c0_i32, %c0_i32_0, %c0_i32_1 : i32, i32, i32
  }
  func.func @transform_2(%arg0: i32) -> (i32, i32, i32) {
    %c0_i32 = arith.constant 0 : i32
    %c0_i32_0 = arith.constant 0 : i32
    %c0_i32_1 = arith.constant 0 : i32
    %c0_i32_2 = arith.constant 0 : i32
    return %c0_i32, %c0_i32_0, %c0_i32_1 : i32, i32, i32
  }
  func.func @transform_3(%arg0: i32) -> (i32, i32, i32) {
    %c0_i32 = arith.constant 0 : i32
    %c0_i32_0 = arith.constant 0 : i32
    %c0_i32_1 = arith.constant 0 : i32
    %c0_i32_2 = arith.constant 0 : i32
    return %c0_i32, %c0_i32_0, %c0_i32_1 : i32, i32, i32
  }
  func.func @transform_4(%arg0: i32) -> (i32, i32, i32) {
    %c0_i32 = arith.constant 0 : i32
    %c0_i32_0 = arith.constant 0 : i32
    %c0_i32_1 = arith.constant 0 : i32
    %c0_i32_2 = arith.constant 0 : i32
    return %c0_i32, %c0_i32_0, %c0_i32_1 : i32, i32, i32
  }
  func.func @transform_5(%arg0: i32) -> (i32, i32, i32) {
    %c0_i32 = arith.constant 0 : i32
    %c0_i32_0 = arith.constant 0 : i32
    %c0_i32_1 = arith.constant 0 : i32
    %c0_i32_2 = arith.constant 0 : i32
    return %c0_i32, %c0_i32_0, %c0_i32_1 : i32, i32, i32
  }
  func.func @transform_6(%arg0: i32) -> (i32, i32, i32) {
    %c0_i32 = arith.constant 0 : i32
    %c0_i32_0 = arith.constant 0 : i32
    %c0_i32_1 = arith.constant 0 : i32
    return %arg0, %c0_i32, %c0_i32_0 : i32, i32, i32
  }
  func.func @transform_7(%arg0: i32) -> (i32, i32, i32) {
    %c0_i32 = arith.constant 0 : i32
    %c0_i32_0 = arith.constant 0 : i32
    %c0_i32_1 = arith.constant 0 : i32
    return %arg0, %c0_i32, %c0_i32_0 : i32, i32, i32
  }
  func.func @transform_8(%arg0: i32) -> (i32, i32, i32) {
    %c0_i32 = arith.constant 0 : i32
    %c0_i32_0 = arith.constant 0 : i32
    %c0_i32_1 = arith.constant 0 : i32
    return %arg0, %c0_i32, %c0_i32_0 : i32, i32, i32
  }
}

</mosaic_0001>

<bundles_post_ra>
// kernel: fpn_encoder_forward.1
= control target key start
LH: loop header
LB: loop body
LE: loop exit
PB: predicated region body
PF: predicated region fallthrough
CT: control target
= control target key end

     0   :  { %s9126_s27 = smov 0   ;;  %s13388_s0 = inlined_call_operand.vmem [shape: f32[2,16,16,1], index: 0, kind: input, shape index: {}]   ;;  %s13389_s1 = inlined_call_operand.vmem [shape: bf16[5,5,16], index: 1, kind: input, shape index: {}]   ;;  %s13390_s2 = inlined_call_operand.vmem [shape: bf16[2,32,16], index: 2, kind: input, shape index: {}]   ;;  %s13391_s3 = inlined_call_operand.vmem [shape: bf16[5,80,32], index: 3, kind: input, shape index: {}]   ;;  %s13392_s4 = inlined_call_operand.vmem [shape: bf16[2,64,32], index: 4, kind: input, shape index: {}]   ;;  %s13393_s5 = inlined_call_operand.vmem [shape: bf16[5,160,64], index: 5, kind: input, shape index: {}]   ;;  %s13394_s6 = inlined_call_operand.vmem [shape: f32[2,16,256], index: 6, kind: output, shape index: {0}]   ;;  %s13395_s7 = inlined_call_operand.vmem [shape: f32[2,32,64], index: 7, kind: output, shape index: {1}]   ;;  %s13396_s8 = inlined_call_operand.vmem [shape: f32[2,64,16], index: 8, kind: output, shape index: {2}]  }
   0x1 LB: > { %s8265_s28 = sadd.s32 4294967295, %s9068_s27   ;;  %p8269_p0 = scmp.ge.s32.totalorder %s9068_s27, 1  ;;  %s9068_s27 = sphi %s9126_s27, %s19_s27  }
   0x2   : > { %p267_p1 = scmp.lt.s32.totalorder %s9068_s27, 3 }
   0x4   : > { %p268_p2 = pnand %p8269_p0, %p267_p1 }
   0x6   : > { %271 = sbr.rel (%p268_p2) target bundleno = 4293 (0x10c5), region = 44 }
   0xb   : > { %vm332_vm0 = vcmask 3072   ;;  %vm335_vm1 = vcmask 1024   ;;  %v13397_v0 = vmov 0   ;;  %p311_p3 = scmp.lt.s32.totalorder %s8265_s28, 1  ;;  %vm348_vm2 = vcmask 0   ;;  %s9071_s11 = smov 1  }
   0xc   : > { %337 = vst.msk [vmem:[#allocation2 + $0xc] sm:$0xf] %vm332_vm0, %v13397_v0  ;;  %vm938_vm3 = vsmask.f32 7424  ;;  %vm365_vm4 = vcmask 1025   ;;  %vm478_vm5 = vcmask 1040384  }
   0xd   : > { %338 = vst.msk [vmem:[#allocation2 + $0x10] sm:$0xf] %vm332_vm0, %v13397_v0  ;;  %s13981_s28 = smov (!%p311_p3, %s8265_s28), 1  ;;  %vm479_vm6 = vcmask 1044484   ;;  %vm609_vm7 = vcmask 3073   ;;  %s9072_s12 = smov 3  }
   0xe   : > { %339 = vst.msk [vmem:[#allocation2 + $0x14] sm:$0x3] %vm335_vm1, %v13397_v0  ;;  %s8897_s29 = sshll.u32 %s13981_s28, 8  ;;  %vm1440_vm8 = vsmask.f32 6400  ;;  %vm9184_vm9 = vmor %vm478_vm5, %vm479_vm6  ;;  %vm1279_vm10 = vcmask 1046528  }
   0xf   : > { %333 = vst.msk [vmem:[#allocation2] sm:$0xf] %vm332_vm0, %v13397_v0  ;;  %s9156_s10 = scalar_lea.vmem %s13388_s0, %s8897_s29  ;;  %vm1881_vm11 = vcmask 1045504   ;;  %s9073_s13 = smov 2   ;;  %vm1982_vm12 = vcmask 7168   ;;  %vm2182_vm13 = vcmask 1041408  }
  0x10   : > { %334 = vst.msk [vmem:[#allocation2 + $0x4] sm:$0xf] %vm332_vm0, %v13397_v0  ;;  %v382_v5 = vld [vmem:[%s9156_s10] sm:$0xff]  ;;  %v383_v6 = vld [vmem:[%s9156_s10 + $0x8] sm:$0xff]  ;;  %s9074_s14 = smov 4   ;;  %v384_v57 = vld [vmem:[%s9156_s10 + $0x10] sm:$0xff] }
  0x11   : > { %336 = vst.msk [vmem:[#allocation2 + $0x8] sm:$0x3] %vm335_vm1, %v13397_v0  ;;  %v414_v10 = vpack.c.bf16 %v382_v5, %v382_v5  ;;  %v415_v13 = vpack.c.bf16 %v383_v6, %v383_v6  ;;  %vm2183_vm14 = vcmask 1042432   ;;  %vm2023_vm15 = vcmask 15360   ;;  %s9078_s15 = smov 48   ;;  %s9079_s16 = smov 64  }
  0x12   : > { %341 = vst.msk [vmem:[#allocation2 + $0xd8] sm:$0xf] %vm332_vm0, %v13397_v0  ;;  %s9080_s18 = smov 96   ;;  %s8900_s22 = sshll.u32 %s13981_s28, 6 }
  0x13   : > { %342 = vst.msk [vmem:[#allocation2 + $0xdc] sm:$0xf] %vm332_vm0, %v13397_v0  ;;  %v719_v1 = vld [vmem:[#allocation2 + $0xc] sm:$0xe]  ;;  %v481_v18 = vrot.slane %v414_v10, 7  ;;  %v483_v26 = vrot.slane %v415_v13, 7  ;;  %s330_s25 = scalar_lea.vmem %s13396_s8, %s8900_s22 }
  0x14   : > { %v759_v2 = vld [vmem:[#allocation2 + $0xc] sm:$0xc]  ;;  %343 = vst.msk [vmem:[#allocation2 + $0xe0] sm:$0x3] %vm335_vm1, %v13397_v0  ;;  %v1240_v4 = vunpack.c.l.b16 %v719_v1 }
  0x15   : > { %v9158_v3 = vld [vmem:[#allocation2 + $0xc] sm:$0xff]   ;;  %v699_v7 = vld [vmem:[#allocation2 + $0x14] sm:$0x1]  ;;  %344 = vst.msk [vmem:[#allocation2 + $0xe4] sm:$0xf] %vm332_vm0, %v13397_v0  ;;  %v1842_v17 = vunpack.c.l.b16 %v759_v2  ;;  %v482_v38 = vrot.slane %v481_v18, 4 }
  0x16   : > { %v821_v8 = vunpack.c.h.b16 %v9158_v3  ;;  %v739_v9 = vld [vmem:[#allocation2 + $0x14] sm:$0x3]  ;;  %v899_v11 = vunpack.c.l.b16 %v699_v7  ;;  %345 = vst.msk [vmem:[#allocation2 + $0xe8] sm:$0xf] %vm332_vm0, %v13397_v0  ;;  %v952_v19 = vshrl.u32 %v9158_v3, 16  ;;  %v954_v20 = vshll.u32 %v9158_v3, 16 }
  0x17   : > { %v1401_v12 = vunpack.c.l.b16 %v739_v9  ;;  %346 = vst.msk [vmem:[#allocation2 + $0xec] sm:$0x3] %vm335_vm1, %v13397_v0  ;;  %v485_v39 = vrot.slane %v483_v26, 4  ;;  %v484_v42 = vsel %vm9184_vm9, %v482_v38, %v483_v26  ;;  %v386_v9 = vld [vmem:[%s9156_s10 + $0x20] sm:$0xff]  ;;  %vm2064_vm1 = vcmask 23552  }
  0x18   : > { %v1260_v14 = vpack.c.b16 %v821_v8, %v1240_v4  ;;  %v919_v15 = vpack.c.b16 %v899_v11, %v899_v11  ;;  %349 = vst.msk [vmem:[#allocation2 + $0x18] sm:$0x1] %vm348_vm2, %v13397_v0  ;;  %v956_v27 = vrot.slane %v954_v20, 1  ;;  %v1862_v37 = vpack.c.b16 %v821_v8, %v1842_v17  ;;  %v390_v38 = vld [vmem:[%s9156_s10 + $0x40] sm:$0xff] }
  0x19   : > { %v1421_v16 = vpack.c.b16 %v1401_v12, %v1401_v12  ;;  %366 = vst.msk [vmem:[#allocation2 + $0x20] sm:$0x2] %vm365_vm4, %v13397_v0  ;;  %v416_v4 = vpack.c.bf16 %v384_v57, %v384_v57  ;;  %v385_v12 = vld [vmem:[%s9156_s10 + $0x18] sm:$0xff] }
  0x1a   : > { %v1459_v21 = vshrl.u32 %v1260_v14, 16  ;;  %v1462_v22 = vshll.u32 %v1260_v14, 16  ;;  %v959_v23 = vshll.u32 %v919_v15, 16  ;;  %610 = vst.msk [vmem:[#allocation2 + $0x18] sm:$0xe] %vm609_vm7, %v481_v18  ;;  %v957_v33 = vor.u32 %v956_v27, %v952_v19  ;;  %v388_v18 = vld [vmem:[%s9156_s10 + $0x30] sm:$0xff] }
  0x1b   : > { %v1467_v24 = vshrl.u32 %v1421_v16, 16  ;;  %v1470_v25 = vshll.u32 %v1421_v16, 16  ;;  %350 = vst.msk [vmem:[#allocation2 + $0x24] sm:$0x1] %vm348_vm2, %v13397_v0  ;;  %v1283_v43 = vrot.slane %v1260_v14, 1  ;;  %v1284_v44 = vrot.slane %v919_v15, 1 }
  0x1c   : > { %v1461_v28 = vrot.slane %v1459_v21, 1  ;;  %v1464_v29 = vrot.slane %v1462_v22, 2  ;;  %v961_v30 = vrot.slane %v959_v23, 1  ;;  %351 = vst.msk [vmem:[#allocation2 + $0x30] sm:$0x1] %vm348_vm2, %v13397_v0  ;;  %v1885_v45 = vrot.slane %v1862_v37, 2 }
  0x1d   : > { %v1469_v31 = vrot.slane %v1467_v24, 1  ;;  %v1472_v32 = vrot.slane %v1470_v25, 2  ;;  %352 = vst.msk [vmem:[#allocation2 + $0x3c] sm:$0x1] %vm348_vm2, %v13397_v0  ;;  %v1886_v46 = vrot.slane %v1421_v16, 2  ;;  %v1285_v49 = vsel %vm1279_vm10, %v1283_v43, %v1284_v44  ;;  %v387_v22 = vld [vmem:[%s9156_s10 + $0x28] sm:$0xff] }
  0x1e   : > { %v1465_v34 = vor.u32 %v1464_v29, %v1461_v28  ;;  %353 = vst.msk [vmem:[#allocation2 + $0x48] sm:$0x1] %vm348_vm2, %v13397_v0  ;;  %v962_v40 = vsel %vm938_vm3, %v957_v33, %v961_v30  ;;  %v418_v23 = vpack.c.bf16 %v386_v9, %v386_v9  ;;  %v417_v25 = vpack.c.bf16 %v385_v12, %v385_v12 }
  0x1f   : > { %v1473_v36 = vor.u32 %v1472_v32, %v1469_v31  ;;  %354 = vst.msk [vmem:[#allocation2 + $0x54] sm:$0x1] %vm348_vm2, %v13397_v0  ;;  %1181 = vrot.lane.b32.xlu0 %v962_v40, %s9071_s11  ;;  %v1887_v50 = vsel %vm1881_vm11, %v1885_v45, %v1886_v46  ;;  %v486_v26 = vrot.slane %v416_v4, 7  ;;  %v420_v29 = vpack.c.bf16 %v388_v18, %v388_v18  ;;  %v389_v32 = vld [vmem:[%s9156_s10 + $0x38] sm:$0xff]  ;;  %v391_v46 = vld [vmem:[%s9156_s10 + $0x48] sm:$0xff] }
  0x20   : > { %612 = vst.msk [vmem:[#allocation2 + $0x20] sm:$0x1] %vm348_vm2, %v485_v39  ;;  %v419_v31 = vpack.c.bf16 %v387_v22, %v387_v22  ;;  %v488_v37 = vrot.slane %v417_v25, 7  ;;  %v421_v39 = vpack.c.bf16 %v389_v32, %v389_v32 }
  0x21   : > { %v1474_v41 = vsel %vm1440_vm8, %v1465_v34, %v1473_v36  ;;  %611 = vst.msk [vmem:[#allocation2 + $0x1c] sm:$0xf] %vm332_vm0, %v484_v42  ;;  %v720_v47 = vld [vmem:[#allocation2 + $0x18] sm:$0xe]  ;;  %v491_v34 = vrot.slane %v418_v23, 7  ;;  %v487_v36 = vrot.slane %v486_v26, 4  ;;  %v422_v42 = vpack.c.bf16 %v390_v38, %v390_v38 }
  0x22   : > { %1783 = vrot.lane.b32.xlu1 %v1474_v41, %s9072_s12  ;;  %355 = vst.msk [vmem:[#allocation2 + $0x60] sm:$0x1] %vm348_vm2, %v13397_v0  ;;  %v760_v48 = vld [vmem:[#allocation2 + $0x18] sm:$0xc]  ;;  %v1241_v52 = vunpack.c.l.b16 %v720_v47  ;;  %v496_v40 = vrot.slane %v420_v29, 7  ;;  %v493_v41 = vrot.slane %v419_v31, 7 }
  0x23   : > { %356 = vst.msk [vmem:[#allocation2 + $0x6c] sm:$0x1] %vm348_vm2, %v13397_v0  ;;  %v1843_v53 = vunpack.c.l.b16 %v760_v48  ;;  %v492_v43 = vrot.slane %v491_v34, 4  ;;  %v489_v47 = vsel %vm9184_vm9, %v487_v36, %v488_v37  ;;  %v490_v48 = vrot.slane %v488_v37, 4 }
  0x24   : > { %357 = vst.msk [vmem:[#allocation2 + $0x78] sm:$0x1] %vm348_vm2, %v13397_v0 }
  0x25   : > { %358 = vst.msk [vmem:[#allocation2 + $0x84] sm:$0x1] %vm348_vm2, %v13397_v0 }
  0x26   : > { %359 = vst.msk [vmem:[#allocation2 + $0x90] sm:$0x1] %vm348_vm2, %v13397_v0 }
  0x27   : > { %v740_v51 = vld [vmem:[#allocation2 + $0x20] sm:$0x3]  ;;  %360 = vst.msk [vmem:[#allocation2 + $0x9c] sm:$0x1] %vm348_vm2, %v13397_v0  ;;  %1342 = vrot.lane.b32.xlu0 %v1285_v49, %s9073_s13 }
  0x28   : > { %v9028_v54 = vld [vmem:[#allocation2 + $0x18] sm:$0xff]   ;;  %v1402_v55 = vunpack.c.l.b16 %v740_v51  ;;  %361 = vst.msk [vmem:[#allocation2 + $0xa8] sm:$0x1] %vm348_vm2, %v13397_v0  ;;  %v700_v59 = vld [vmem:[#allocation2 + $0x20] sm:$0x1]  ;;  %v498_v51 = vrot.slane %v421_v39, 7 }
  0x29   : > { %v8995_v56 = vunpack.c.h.b16 %v9028_v54  ;;  %362 = vst.msk [vmem:[#allocation2 + $0xb4] sm:$0x1] %vm348_vm2, %v13397_v0  ;;  %v900_v62 = vunpack.c.l.b16 %v700_v59  ;;  %v966_v13 = vshll.u32 %v9028_v54, 16  ;;  %v964_v17 = vshrl.u32 %v9028_v54, 16 }
  0x2a   : > { %1944 = vrot.lane.b32.xlu1 %v1887_v50, %s9074_s14  ;;  %v1422_v58 = vpack.c.b16 %v1402_v55, %v1402_v55  ;;  %363 = vst.msk [vmem:[#allocation2 + $0xc0] sm:$0x1] %vm348_vm2, %v13397_v0  ;;  %v497_v50 = vrot.slane %v496_v40, 4  ;;  %v494_v54 = vsel %vm9184_vm9, %v492_v43, %v493_v41  ;;  %v495_v55 = vrot.slane %v493_v41, 4 }
  0x2b   : > { %v9225_v60 = vpack.c.b16 %v8995_v56, %v1241_v52  ;;  %364 = vst.msk [vmem:[#allocation2 + $0xcc] sm:$0x1] %vm348_vm2, %v13397_v0  ;;  %v1863_v61 = vpack.c.b16 %v8995_v56, %v1843_v53  ;;  %v920_v8 = vpack.c.b16 %v900_v62, %v900_v62  ;;  %v968_v20 = vrot.slane %v966_v13, 1  ;;  %v392_v56 = vld [vmem:[%s9156_s10 + $0x50] sm:$0xff] }
  0x2c   : > { %v1484_v63 = vshrl.u32 %v1422_v58, 16  ;;  %v1487_v1 = vshll.u32 %v1422_v58, 16  ;;  %367 = vst.msk [vmem:[#allocation2 + $0x2c] sm:$0x2] %vm365_vm4, %v13397_v0  ;;  %v1889_v2 = vrot.slane %v1422_v58, 2  ;;  %v423_v52 = vpack.c.bf16 %v391_v46, %v391_v46 }
  0x2d   : > { %v1476_v5 = vshrl.u32 %v9225_v60, 16  ;;  %v1479_v6 = vshll.u32 %v9225_v60, 16  ;;  %368 = vst.msk [vmem:[#allocation2 + $0x38] sm:$0x2] %vm365_vm4, %v13397_v0  ;;  %v1888_v7 = vrot.slane %v1863_v61, 2  ;;  %v971_v21 = vshll.u32 %v920_v8, 16 }
  0x2e   : > { %v1486_v10 = vrot.slane %v1484_v63, 1  ;;  %v1489_v11 = vrot.slane %v1487_v1, 2  ;;  %369 = vst.msk [vmem:[#allocation2 + $0x44] sm:$0x2] %vm365_vm4, %v13397_v0  ;;  %v969_v27 = vor.u32 %v968_v20, %v964_v17  ;;  %v1286_v44 = vrot.slane %v9225_v60, 1  ;;  %v393_v60 = vld [vmem:[%s9156_s10 + $0x58] sm:$0xff] }
  0x2f   : > { %v1478_v14 = vrot.slane %v1476_v5, 1  ;;  %v1481_v15 = vrot.slane %v1479_v6, 2  ;;  %370 = vst.msk [vmem:[#allocation2 + $0x50] sm:$0x2] %vm365_vm4, %v13397_v0  ;;  %v1890_v16 = vsel %vm1881_vm11, %v1888_v7, %v1889_v2  ;;  %v973_v28 = vrot.slane %v971_v21, 1 }
  0x30   : > { %v1490_v19 = vor.u32 %v1489_v11, %v1486_v10  ;;  %371 = vst.msk [vmem:[#allocation2 + $0x5c] sm:$0x2] %vm365_vm4, %v13397_v0  ;;  %v1287_v45 = vrot.slane %v920_v8, 1  ;;  %v501_v53 = vrot.slane %v422_v42, 7  ;;  %v424_v57 = vpack.c.bf16 %v392_v56, %v392_v56 }
  0x31   : > { %v1482_v24 = vor.u32 %v1481_v15, %v1478_v14  ;;  %372 = vst.msk [vmem:[#allocation2 + $0x68] sm:$0x2] %vm365_vm4, %v13397_v0  ;;  %v974_v33 = vsel %vm938_vm3, %v969_v27, %v973_v28  ;;  %v499_v58 = vsel %vm9184_vm9, %v497_v50, %v498_v51  ;;  %v500_v59 = vrot.slane %v498_v51, 4 }
  0x32   : > { %1946 = vrot.lane.b32.xlu1 %v1890_v16, %s9074_s14  ;;  %373 = vst.msk [vmem:[#allocation2 + $0x74] sm:$0x2] %vm365_vm4, %v13397_v0  ;;  %1183 = vrot.lane.b32.xlu2 %v974_v33, %s9071_s11  ;;  %v1288_v49 = vsel %vm1279_vm10, %v1286_v44, %v1287_v45  ;;  %v502_v61 = vrot.slane %v501_v53, 4  ;;  %v503_v62 = vrot.slane %v423_v52, 7  ;;  %v425_v63 = vpack.c.bf16 %v393_v60, %v393_v60 }
  0x33   : > { %v1491_v30 = vsel %vm1440_vm8, %v1482_v24, %v1490_v19  ;;  %374 = vst.msk [vmem:[#allocation2 + $0x80] sm:$0x2] %vm365_vm4, %v13397_v0  ;;  %v506_v1 = vrot.slane %v424_v57, 7 }
  0x34   : > { %1785 = vrot.lane.b32.xlu0 %v1491_v30, %s9072_s12  ;;  %375 = vst.msk [vmem:[#allocation2 + $0x8c] sm:$0x2] %vm365_vm4, %v13397_v0  ;;  %v9292_v4 = vrot.slane %v425_v63, 7  ;;  %v504_v8 = vsel %vm9184_vm9, %v502_v61, %v503_v62  ;;  %v505_v12 = vrot.slane %v503_v62, 4 }
  0x35   : > { %376 = vst.msk [vmem:[#allocation2 + $0x98] sm:$0x2] %vm365_vm4, %v13397_v0  ;;  %v507_v2 = vrot.slane %v506_v1, 4 }
  0x36   : > { %377 = vst.msk [vmem:[#allocation2 + $0xa4] sm:$0x2] %vm365_vm4, %v13397_v0 }
  0x37   : > { %378 = vst.msk [vmem:[#allocation2 + $0xb0] sm:$0x2] %vm365_vm4, %v13397_v0  ;;  %v509_v17 = vsel %vm9184_vm9, %v507_v2, %v9292_v4 }
  0x38   : > { %379 = vst.msk [vmem:[#allocation2 + $0xbc] sm:$0x2] %vm365_vm4, %v13397_v0 }
  0x39   : > { %380 = vst.msk [vmem:[#allocation2 + $0xc8] sm:$0x2] %vm365_vm4, %v13397_v0 }
  0x3a   : > { %381 = vst.msk [vmem:[#allocation2 + $0xd4] sm:$0x2] %vm365_vm4, %v13397_v0  ;;  %1344 = vrot.lane.b32.xlu2 %v1288_v49, %s9073_s13  ;;  %vm2105_vm4 = vcmask 31744  }
  0x3b   : > { %613 = vst.msk [vmem:[#allocation2 + $0x24] sm:$0xe] %vm609_vm7, %v486_v26 }
  0x3c   : > { %614 = vst.msk [vmem:[#allocation2 + $0x28] sm:$0xf] %vm332_vm0, %v489_v47 }
  0x3d   : > { %615 = vst.msk [vmem:[#allocation2 + $0x2c] sm:$0x1] %vm348_vm2, %v490_v48 }
  0x3e   : > { %616 = vst.msk [vmem:[#allocation2 + $0x30] sm:$0xe] %vm609_vm7, %v491_v34 }
  0x3f   : > { %617 = vst.msk [vmem:[#allocation2 + $0x34] sm:$0xf] %vm332_vm0, %v494_v54 }
  0x40   : > { %618 = vst.msk [vmem:[#allocation2 + $0x38] sm:$0x1] %vm348_vm2, %v495_v55 }
  0x41   : > { %619 = vst.msk [vmem:[#allocation2 + $0x3c] sm:$0xe] %vm609_vm7, %v496_v40 }
  0x42   : > { %v721_v5 = vld [vmem:[#allocation2 + $0x24] sm:$0xe]  ;;  %620 = vst.msk [vmem:[#allocation2 + $0x40] sm:$0xf] %vm332_vm0, %v499_v58 }
  0x43   : > { %v9295_v6 = vld [vmem:[#allocation2 + $0x24] sm:$0xff]   ;;  %v1242_v7 = vunpack.c.l.b16 %v721_v5  ;;  %621 = vst.msk [vmem:[#allocation2 + $0x44] sm:$0x1] %vm348_vm2, %v500_v59 }
  0x44   : > { %v701_v9 = vld [vmem:[#allocation2 + $0x2c] sm:$0x1]  ;;  %v825_v10 = vunpack.c.h.b16 %v9295_v6  ;;  %622 = vst.msk [vmem:[#allocation2 + $0x48] sm:$0xe] %vm609_vm7, %v501_v53  ;;  %v761_v51 = vld [vmem:[#allocation2 + $0x24] sm:$0xc] }
  0x45   : > { %v741_v11 = vld [vmem:[#allocation2 + $0x2c] sm:$0x3]  ;;  %v901_v13 = vunpack.c.l.b16 %v701_v9  ;;  %v722_v15 = vld [vmem:[#allocation2 + $0x30] sm:$0xe]  ;;  %623 = vst.msk [vmem:[#allocation2 + $0x4c] sm:$0xf] %vm332_vm0, %v504_v8  ;;  %v1844_v2 = vunpack.c.l.b16 %v761_v51 }
  0x46   : > { %v1403_v14 = vunpack.c.l.b16 %v741_v11  ;;  %v762_v16 = vld [vmem:[#allocation2 + $0x30] sm:$0xc]  ;;  %v1262_v18 = vpack.c.b16 %v825_v10, %v1242_v7  ;;  %v1243_v20 = vunpack.c.l.b16 %v722_v15  ;;  %624 = vst.msk [vmem:[#allocation2 + $0x50] sm:$0x1] %vm348_vm2, %v505_v12  ;;  %v976_v7 = vshrl.u32 %v9295_v6, 16 }
  0x47   : > { %v9029_v19 = vld [vmem:[#allocation2 + $0x30] sm:$0xff]   ;;  %v1845_v21 = vunpack.c.l.b16 %v762_v16  ;;  %v921_v22 = vpack.c.b16 %v901_v13, %v901_v13  ;;  %v702_v24 = vld [vmem:[#allocation2 + $0x38] sm:$0x1]  ;;  %625 = vst.msk [vmem:[#allocation2 + $0x54] sm:$0xe] %vm609_vm7, %v506_v1  ;;  %v978_v9 = vshll.u32 %v9295_v6, 16 }
  0x48   : > { %v9308_v23 = vpack.c.b16 %v1403_v14, %v1403_v14  ;;  %v988_v25 = vshrl.u32 %v9029_v19, 16  ;;  %v990_v26 = vshll.u32 %v9029_v19, 16  ;;  %v1289_v27 = vrot.slane %v1262_v18, 1  ;;  %v742_v40 = vld [vmem:[#allocation2 + $0x38] sm:$0x3] }
  0x49   : > { %v1493_v28 = vshrl.u32 %v1262_v18, 16  ;;  %v1496_v29 = vshll.u32 %v1262_v18, 16  ;;  %v902_v30 = vunpack.c.l.b16 %v702_v24  ;;  %v1290_v31 = vrot.slane %v921_v22, 1  ;;  %v9312_v41 = vld [vmem:[#allocation2 + $0x3c] sm:$0xff]   ;;  %626 = vst.msk [vmem:[#allocation2 + $0x58] sm:$0xf] %vm332_vm0, %v509_v17 }
  0x4a   : > { %v1501_v32 = vshrl.u32 %v9308_v23, 16  ;;  %v1504_v33 = vshll.u32 %v9308_v23, 16  ;;  %v992_v34 = vrot.slane %v990_v26, 1  ;;  %v8999_v39 = vunpack.c.h.b16 %v9029_v19  ;;  %v703_v46 = vld [vmem:[#allocation2 + $0x44] sm:$0x1] }
  0x4b   : > { %v1495_v36 = vrot.slane %v1493_v28, 1  ;;  %v1498_v37 = vrot.slane %v1496_v29, 2  ;;  %v922_v38 = vpack.c.b16 %v902_v30, %v902_v30  ;;  %v1291_v42 = vsel %vm1279_vm10, %v1289_v27, %v1290_v31  ;;  %v723_v59 = vld [vmem:[#allocation2 + $0x3c] sm:$0xe]  ;;  %v743_v63 = vld [vmem:[#allocation2 + $0x44] sm:$0x3] }
  0x4c   : > { %v1503_v43 = vrot.slane %v1501_v32, 1  ;;  %v1506_v44 = vrot.slane %v1504_v33, 2  ;;  %v993_v45 = vor.u32 %v992_v34, %v988_v25  ;;  %1346 = vrot.lane.b32.xlu0 %v1291_v42, %s9073_s13  ;;  %v9317_v49 = vpack.c.b16 %v8999_v39, %v1243_v20  ;;  %v763_v13 = vld [vmem:[#allocation2 + $0x3c] sm:$0xc]  ;;  %v9348_v34 = vld [vmem:[#allocation2 + $0x48] sm:$0xff]  }
  0x4d   : > { %v1499_v47 = vor.u32 %v1498_v37, %v1495_v36  ;;  %v995_v48 = vshll.u32 %v922_v38, 16  ;;  %v1293_v50 = vrot.slane %v922_v38, 1  ;;  %v1404_v53 = vunpack.c.l.b16 %v742_v40  ;;  %v704_v40 = vld [vmem:[#allocation2 + $0x50] sm:$0x1]  ;;  %v724_v42 = vld [vmem:[#allocation2 + $0x48] sm:$0xe] }
  0x4e   : > { %v1507_v52 = vor.u32 %v1506_v44, %v1503_v43  ;;  %v1865_v54 = vpack.c.b16 %v8999_v39, %v1845_v21  ;;  %v1292_v56 = vrot.slane %v9317_v49, 1  ;;  %v829_v57 = vunpack.c.h.b16 %v9312_v41 }
  0x4f   : > { %v997_v55 = vrot.slane %v995_v48, 1  ;;  %v903_v58 = vunpack.c.l.b16 %v703_v46  ;;  %v9324_v61 = vpack.c.b16 %v1404_v53, %v1404_v53  ;;  %v983_v11 = vshll.u32 %v921_v22, 16  ;;  %v744_v46 = vld [vmem:[#allocation2 + $0x50] sm:$0x3] }
  0x50   : > { %v1508_v60 = vsel %vm1440_vm8, %v1499_v47, %v1507_v52  ;;  %v1894_v62 = vrot.slane %v1865_v54, 2  ;;  %v1294_v8 = vsel %vm1279_vm10, %v1292_v56, %v1293_v50  ;;  %v1244_v12 = vunpack.c.l.b16 %v723_v59 }
  0x51   : > { %1787 = vrot.lane.b32.xlu1 %v1508_v60, %s9072_s12  ;;  %v998_v1 = vsel %vm938_vm3, %v993_v45, %v997_v55  ;;  %v9328_v5 = vpack.c.b16 %v903_v58, %v903_v58  ;;  %v1000_v14 = vshrl.u32 %v9312_v41, 16  ;;  %v1002_v15 = vshll.u32 %v9312_v41, 16 }
  0x52   : > { %v1405_v17 = vunpack.c.l.b16 %v743_v63  ;;  %v1895_v18 = vrot.slane %v9324_v61, 2  ;;  %v980_v19 = vrot.slane %v978_v9, 1  ;;  %v985_v20 = vrot.slane %v983_v11, 1 }
  0x53   : > { %v1007_v16 = vshll.u32 %v9328_v5, 16  ;;  %v9337_v21 = vpack.c.b16 %v829_v57, %v1244_v12  ;;  %v1004_v24 = vrot.slane %v1002_v15, 1  ;;  %v1846_v26 = vunpack.c.l.b16 %v763_v13  ;;  %v9374_v13 = vld [vmem:[#allocation2 + $0x54] sm:$0xff]  }
  0x54   : > { %1187 = vrot.lane.b32.xlu0 %v998_v1, %s9071_s11  ;;  %v9340_v22 = vpack.c.b16 %v1405_v17, %v1405_v17  ;;  %v981_v27 = vor.u32 %v980_v19, %v976_v7  ;;  %v1864_v30 = vpack.c.b16 %v825_v10, %v1844_v2  ;;  %v1896_v43 = vsel %vm1881_vm11, %v1894_v62, %v1895_v18  ;;  %v725_v18 = vld [vmem:[#allocation2 + $0x54] sm:$0xe] }
  0x55   : > { %v1009_v25 = vrot.slane %v1007_v16, 1  ;;  %v1527_v28 = vshrl.u32 %v9337_v21, 16  ;;  %v1530_v29 = vshll.u32 %v9337_v21, 16  ;;  %v1005_v31 = vor.u32 %v1004_v24, %v1000_v14 }
  0x56   : > { %v1535_v32 = vshrl.u32 %v9340_v22, 16  ;;  %v1538_v33 = vshll.u32 %v9340_v22, 16  ;;  %v986_v36 = vsel %vm938_vm3, %v981_v27, %v985_v20  ;;  %v9351_v39 = vpack.c.b16 %v829_v57, %v1846_v26 }
  0x57   : > { %v1529_v37 = vrot.slane %v1527_v28, 1  ;;  %v1532_v38 = vrot.slane %v1530_v29, 2  ;;  %1185 = vrot.lane.b32.xlu2 %v986_v36, %s9071_s11  ;;  %v1898_v45 = vrot.slane %v9340_v22, 2  ;;  %v1010_v47 = vsel %vm938_vm3, %v1005_v31, %v1009_v25  ;;  %v765_v25 = vld [vmem:[#allocation2 + $0x54] sm:$0xc]  ;;  %v394_v28 = vld [vmem:[%s9156_s10 + $0x60] sm:$0xff] }
  0x58   : > { %v1537_v10 = vrot.slane %v1535_v32, 1  ;;  %v1540_v44 = vrot.slane %v1538_v33, 2  ;;  %v1891_v48 = vrot.slane %v1864_v30, 2  ;;  %v1892_v50 = vrot.slane %v9308_v23, 2  ;;  %v395_v33 = vld [vmem:[%s9156_s10 + $0x68] sm:$0xff] }
  0x59   : > { %1348 = vrot.lane.b32.xlu1 %v1294_v8, %s9073_s13  ;;  %v9003_v51 = vunpack.c.h.b16 %v9348_v34  ;;  %v1533_v52 = vor.u32 %v1532_v38, %v1529_v37  ;;  %v904_v54 = vunpack.c.l.b16 %v704_v40  ;;  %v1245_v55 = vunpack.c.l.b16 %v724_v42 }
  0x5a   : > { %v1541_v53 = vor.u32 %v1540_v44, %v1537_v10  ;;  %v1897_v56 = vrot.slane %v9351_v39, 2  ;;  %v1406_v57 = vunpack.c.l.b16 %v744_v46  ;;  %v1510_v58 = vshrl.u32 %v9317_v49, 16 }
  0x5b   : > { %v1513_v59 = vshll.u32 %v9317_v49, 16  ;;  %v1893_v60 = vsel %vm1881_vm11, %v1891_v48, %v1892_v50  ;;  %v9365_v62 = vpack.c.b16 %v904_v54, %v904_v54  ;;  %v1265_v23 = vpack.c.b16 %v9003_v51, %v1245_v55  ;;  %v764_v48 = vld [vmem:[#allocation2 + $0x48] sm:$0xc] }
  0x5c   : > { %1950 = vrot.lane.b32.xlu0 %v1896_v43, %s9074_s14  ;;  %v1518_v63 = vshrl.u32 %v9324_v61, 16  ;;  %v9370_v2 = vpack.c.b16 %v1406_v57, %v1406_v57  ;;  %v1512_v1 = vrot.slane %v1510_v58, 1  ;;  %v1521_v8 = vshll.u32 %v9324_v61, 16  ;;  %v396_v50 = vld [vmem:[%s9156_s10 + $0x70] sm:$0xff] }
  0x5d   : > { %v1515_v7 = vrot.slane %v1513_v59, 2  ;;  %v1542_v9 = vsel %vm1440_vm8, %v1533_v52, %v1541_v53  ;;  %v1298_v49 = vrot.slane %v1265_v23, 1  ;;  %v1544_v11 = vshrl.u32 %v1265_v23, 16  ;;  %v397_v59 = vld [vmem:[%s9156_s10 + $0x78] sm:$0xff] }
  0x5e   : > { %v1547_v12 = vshll.u32 %v1265_v23, 16  ;;  %v1299_v14 = vrot.slane %v9365_v62, 1  ;;  %v1552_v15 = vshrl.u32 %v9370_v2, 16  ;;  %v1555_v16 = vshll.u32 %v9370_v2, 16 }
  0x5f   : > { %v1520_v17 = vrot.slane %v1518_v63, 1  ;;  %1948 = vrot.lane.b32.xlu2 %v1893_v60, %s9074_s14  ;;  %v1546_v61 = vrot.slane %v1544_v11, 1  ;;  %v1516_v20 = vor.u32 %v1515_v7, %v1512_v1  ;;  %v1523_v24 = vrot.slane %v1521_v8, 2  ;;  %v398_v7 = vld [vmem:[%s9156_s10 + $0x80] sm:$0xff] }
  0x60   : > { %v1549_v19 = vrot.slane %v1547_v12, 2  ;;  %v1554_v22 = vrot.slane %v1552_v15, 1  ;;  %v1557_v26 = vrot.slane %v1555_v16, 2  ;;  %v510_v27 = vrot.slane %v9292_v4, 4 }
  0x61   : > { %1189 = vrot.lane.b32.xlu1 %v1010_v47, %s9071_s11  ;;  %v1524_v30 = vor.u32 %v1523_v24, %v1520_v17  ;;  %v833_v31 = vunpack.c.h.b16 %v9374_v13  ;;  %v1246_v32 = vunpack.c.l.b16 %v725_v18  ;;  %v1295_v37 = vrot.slane %v9337_v21, 1  ;;  %v399_v18 = vld [vmem:[%s9156_s10 + $0x88] sm:$0xff] }
  0x62   : > { %v1550_v29 = vor.u32 %v1549_v19, %v1546_v61  ;;  %v1558_v36 = vor.u32 %v1557_v26, %v1554_v22  ;;  %627 = vst.msk [vmem:[#allocation2 + $0x5c] sm:$0x1] %vm348_vm2, %v510_v27  ;;  %v1296_v38 = vrot.slane %v9328_v5, 1  ;;  %v1848_v39 = vunpack.c.l.b16 %v765_v25 }
  0x63   : > { %v1899_v4 = vsel %vm1881_vm11, %v1897_v56, %v1898_v45  ;;  %v426_v40 = vpack.c.bf16 %v394_v28, %v394_v28  ;;  %v1300_v42 = vsel %vm1279_vm10, %v1298_v49, %v1299_v14  ;;  %v1525_v43 = vsel %vm1440_vm8, %v1516_v20, %v1524_v30 }
  0x64   : > { %1791 = vrot.lane.b32.xlu0 %v1542_v9, %s9072_s12  ;;  %v9392_v10 = vpack.c.b16 %v833_v31, %v1246_v32  ;;  %v427_v44 = vpack.c.bf16 %v395_v33, %v395_v33  ;;  %v1559_v46 = vsel %vm1440_vm8, %v1550_v29, %v1558_v36  ;;  %v1026_v47 = vshll.u32 %v9374_v13, 16 }
  0x65   : > { %v9396_v21 = vpack.c.b16 %v833_v31, %v1848_v39  ;;  %v511_v5 = vrot.slane %v426_v40, 7  ;;  %v1024_v45 = vshrl.u32 %v9374_v13, 16  ;;  %v1297_v52 = vsel %vm1279_vm10, %v1295_v37, %v1296_v38 }
  0x66   : > { %v513_v53 = vrot.slane %v427_v44, 7  ;;  %v1014_v54 = vshll.u32 %v9348_v34, 16  ;;  %v1012_v56 = vshrl.u32 %v9348_v34, 16  ;;  %v1019_v57 = vshll.u32 %v9365_v62, 16 }
  0x67   : > { %1789 = vrot.lane.b32.xlu2 %v1525_v43, %s9072_s12  ;;  %v512_v55 = vrot.slane %v511_v5, 4  ;;  %628 = vst.msk [vmem:[#allocation2 + $0x60] sm:$0xe] %vm609_vm7, %v511_v5  ;;  %v1847_v58 = vunpack.c.l.b16 %v764_v48  ;;  %v1301_v60 = vrot.slane %v9392_v10, 1  ;;  %v428_v1 = vpack.c.bf16 %v396_v50, %v396_v50 }
  0x68   : > { %v515_v23 = vrot.slane %v513_v53, 4  ;;  %v1016_v63 = vrot.slane %v1014_v54, 1  ;;  %v1028_v9 = vrot.slane %v1026_v47, 1  ;;  %v1903_v11 = vrot.slane %v9396_v21, 2 }
  0x69   : > { %1952 = vrot.lane.b32.xlu1 %v1899_v4, %s9074_s14  ;;  %v705_v8 = vld [vmem:[#allocation2 + $0x5c] sm:$0x1]  ;;  %v514_v12 = vsel %vm9184_vm9, %v512_v55, %v513_v53  ;;  %v1867_v62 = vpack.c.b16 %v9003_v51, %v1847_v58  ;;  %v1901_v16 = vrot.slane %v9370_v2, 2  ;;  %v429_v17 = vpack.c.bf16 %v397_v59, %v397_v59 }
  0x6a   : > { %v745_v49 = vld [vmem:[#allocation2 + $0x5c] sm:$0x3]  ;;  %v905_v14 = vunpack.c.l.b16 %v705_v8  ;;  %629 = vst.msk [vmem:[#allocation2 + $0x64] sm:$0xf] %vm332_vm0, %v514_v12  ;;  %v1017_v61 = vor.u32 %v1016_v63, %v1012_v56  ;;  %v1021_v19 = vrot.slane %v1019_v57, 1  ;;  %v516_v20 = vrot.slane %v428_v1, 7 }
  0x6b   : > { %v1407_v15 = vunpack.c.l.b16 %v745_v49  ;;  %630 = vst.msk [vmem:[#allocation2 + $0x68] sm:$0x1] %vm348_vm2, %v515_v23  ;;  %v430_v24 = vpack.c.bf16 %v398_v7, %v398_v7  ;;  %v1900_v34 = vrot.slane %v1867_v62, 2  ;;  %v518_v51 = vrot.slane %v429_v17, 7 }
  0x6c   : > { %1352 = vrot.lane.b32.xlu0 %v1300_v42, %s9073_s13  ;;  %v925_v25 = vpack.c.b16 %v905_v14, %v905_v14  ;;  %v1029_v26 = vor.u32 %v1028_v9, %v1024_v45  ;;  %v517_v27 = vrot.slane %v516_v20, 4  ;;  %631 = vst.msk [vmem:[#allocation2 + $0x6c] sm:$0xe] %vm609_vm7, %v516_v20  ;;  %v431_v2 = vpack.c.bf16 %v399_v18, %v399_v18 }
  0x6d   : > { %v9420_v22 = vpack.c.b16 %v1407_v15, %v1407_v15  ;;  %v9423_v28 = vrot.slane %v430_v24, 7  ;;  %v520_v33 = vrot.slane %v518_v51, 4  ;;  %v1022_v36 = vsel %vm938_vm3, %v1017_v61, %v1021_v19 }
  0x6e   : > { %v1031_v29 = vshll.u32 %v925_v25, 16  ;;  %v1302_v30 = vrot.slane %v925_v25, 1  ;;  %v726_v32 = vld [vmem:[#allocation2 + $0x60] sm:$0xe]  ;;  %v519_v38 = vsel %vm9184_vm9, %v517_v27, %v518_v51  ;;  %v1561_v39 = vshrl.u32 %v9392_v10, 16 }
  0x6f   : > { %v1904_v31 = vrot.slane %v9420_v22, 2  ;;  %1350 = vrot.lane.b32.xlu2 %v1297_v52, %s9073_s13  ;;  %v766_v37 = vld [vmem:[#allocation2 + $0x60] sm:$0xc]  ;;  %v1564_v4 = vshll.u32 %v9392_v10, 16  ;;  %634 = vst.msk [vmem:[#allocation2 + $0x78] sm:$0xe] %vm609_vm7, %v9423_v28  ;;  %v1247_v42 = vunpack.c.l.b16 %v726_v32  ;;  %v9436_v44 = vsel %vm1881_vm11, %v1900_v34, %v1901_v16 }
  0x70   : > { %v1033_v40 = vrot.slane %v1031_v29, 1  ;;  %v1849_v43 = vunpack.c.l.b16 %v766_v37  ;;  %632 = vst.msk [vmem:[#allocation2 + $0x70] sm:$0xf] %vm332_vm0, %v519_v38  ;;  %v1569_v10 = vshrl.u32 %v9420_v22, 16  ;;  %v523_v5 = vrot.slane %v431_v2, 7  ;;  %v400_v32 = vld [vmem:[%s9156_s10 + $0x90] sm:$0xff] }
  0x71   : > { %1793 = vrot.lane.b32.xlu1 %v1559_v46, %s9072_s12  ;;  %v1303_v46 = vsel %vm1279_vm10, %v1301_v60, %v1302_v30  ;;  %v1905_v47 = vsel %vm1881_vm11, %v1903_v11, %v1904_v31  ;;  %v9031_v21 = vld [vmem:[#allocation2 + $0x60] sm:$0xff]   ;;  %633 = vst.msk [vmem:[#allocation2 + $0x74] sm:$0x1] %vm348_vm2, %v520_v33  ;;  %v9445_v57 = vrot.slane %v1561_v39, 1  ;;  %v9447_v58 = vrot.slane %v1564_v4, 2 }
  0x72   : > { %v1034_v48 = vsel %vm938_vm3, %v1029_v26, %v1033_v40  ;;  %v706_v50 = vld [vmem:[#allocation2 + $0x68] sm:$0x1]  ;;  %v1036_v45 = vshrl.u32 %v9031_v21, 16  ;;  %v1038_v52 = vshll.u32 %v9031_v21, 16  ;;  %v9007_v53 = vunpack.c.h.b16 %v9031_v21 }
  0x73   : > { %v746_v54 = vld [vmem:[#allocation2 + $0x68] sm:$0x3]  ;;  %v906_v55 = vunpack.c.l.b16 %v706_v50  ;;  %v727_v63 = vld [vmem:[#allocation2 + $0x6c] sm:$0xe]  ;;  %v9451_v1 = vrot.slane %v1569_v10, 1  ;;  %v1572_v9 = vshll.u32 %v9420_v22, 16  ;;  %v1567_v31 = vor.u32 %v9447_v58, %v9445_v57 }
  0x74   : > { %1193 = vrot.lane.b32.xlu0 %v1034_v48, %s9071_s11  ;;  %v1408_v56 = vunpack.c.l.b16 %v746_v54  ;;  %v1040_v59 = vrot.slane %v1038_v52, 1  ;;  %v9449_v60 = vpack.c.b16 %v9007_v53, %v1247_v42  ;;  %v1869_v23 = vpack.c.b16 %v9007_v53, %v1849_v43  ;;  %v401_v57 = vld [vmem:[%s9156_s10 + $0x98] sm:$0xff] }
  0x75   : > { %v9453_v7 = vpack.c.b16 %v906_v55, %v906_v55  ;;  %v522_v49 = vrot.slane %v9423_v28, 4  ;;  %v1248_v14 = vunpack.c.l.b16 %v727_v63  ;;  %v1574_v37 = vrot.slane %v1572_v9, 2 }
  0x76   : > { %v1428_v8 = vpack.c.b16 %v1408_v56, %v1408_v56  ;;  %v1041_v11 = vor.u32 %v1040_v59, %v1036_v45  ;;  %v1578_v12 = vshrl.u32 %v9449_v60, 16  ;;  %v1581_v62 = vshll.u32 %v9449_v60, 16  ;;  %v728_v43 = vld [vmem:[#allocation2 + $0x78] sm:$0xe] }
  0x77   : > { %v1043_v15 = vshll.u32 %v9453_v7, 16  ;;  %1191 = vrot.lane.b32.xlu2 %v1022_v36, %s9071_s11  ;;  %v1906_v18 = vrot.slane %v1869_v23, 2  ;;  %v9462_v61 = vld [vmem:[#allocation2 + $0x6c] sm:$0xff]   ;;  %v524_v34 = vsel %vm9184_vm9, %v522_v49, %v523_v5  ;;  %v525_v38 = vrot.slane %v523_v5, 4 }
  0x78   : > { %v1586_v16 = vshrl.u32 %v1428_v8, 16  ;;  %v1589_v17 = vshll.u32 %v1428_v8, 16  ;;  %v1580_v19 = vrot.slane %v1578_v12, 1  ;;  %v1583_v20 = vrot.slane %v1581_v62, 2  ;;  %v707_v24 = vld [vmem:[#allocation2 + $0x74] sm:$0x1] }
  0x79   : > { %1354 = vrot.lane.b32.xlu1 %v1303_v46, %s9073_s13  ;;  %v837_v25 = vunpack.c.h.b16 %v9462_v61  ;;  %v747_v22 = vld [vmem:[#allocation2 + $0x74] sm:$0x3]  ;;  %v1045_v51 = vrot.slane %v1043_v15, 1  ;;  %v1907_v2 = vrot.slane %v1428_v8, 2  ;;  %635 = vst.msk [vmem:[#allocation2 + $0x7c] sm:$0xf] %vm332_vm0, %v524_v34  ;;  %v907_v28 = vunpack.c.l.b16 %v707_v24 }
  0x7a   : > { %v1588_v26 = vrot.slane %v1586_v16, 1  ;;  %v1591_v27 = vrot.slane %v1589_v17, 2  ;;  %v1409_v30 = vunpack.c.l.b16 %v747_v22  ;;  %v1584_v33 = vor.u32 %v1583_v20, %v1580_v19  ;;  %636 = vst.msk [vmem:[#allocation2 + $0x80] sm:$0x1] %vm348_vm2, %v525_v38  ;;  %v402_v15 = vld [vmem:[%s9156_s10 + $0xa0] sm:$0xff] }
  0x7b   : > { %v1268_v29 = vpack.c.b16 %v837_v25, %v1248_v14  ;;  %v1046_v39 = vsel %vm938_vm3, %v1041_v11, %v1045_v51  ;;  %v9475_v4 = vpack.c.b16 %v907_v28, %v907_v28  ;;  %v1908_v46 = vsel %vm1881_vm11, %v1906_v18, %v1907_v2 }
  0x7c   : > { %1956 = vrot.lane.b32.xlu0 %v1905_v47, %s9074_s14  ;;  %v1592_v36 = vor.u32 %v1591_v27, %v1588_v26  ;;  %v9477_v40 = vpack.c.b16 %v1409_v30, %v1409_v30  ;;  %v1575_v10 = vor.u32 %v1574_v37, %v9451_v1  ;;  %v768_v47 = vld [vmem:[#allocation2 + $0x78] sm:$0xc]  ;;  %v432_v48 = vpack.c.bf16 %v400_v32, %v400_v32  ;;  %v767_v27 = vld [vmem:[#allocation2 + $0x6c] sm:$0xc]  ;;  %v403_v37 = vld [vmem:[%s9156_s10 + $0xa8] sm:$0xff] }
  0x7d   : > { %v1595_v42 = vshrl.u32 %v1268_v29, 16  ;;  %v1598_v21 = vshll.u32 %v1268_v29, 16  ;;  %v1307_v50 = vrot.slane %v1268_v29, 1  ;;  %v1308_v5 = vrot.slane %v9475_v4, 1 }
  0x7e   : > { %v1603_v45 = vshrl.u32 %v9477_v40, 16  ;;  %v1606_v52 = vshll.u32 %v9477_v40, 16  ;;  %v1593_v53 = vsel %vm1440_vm8, %v1584_v33, %v1592_v36  ;;  %v1249_v56 = vunpack.c.l.b16 %v728_v43 }
  0x7f   : > { %1954 = vrot.lane.b32.xlu2 %v9436_v44, %s9074_s14  ;;  %v1597_v54 = vrot.slane %v1595_v42, 1  ;;  %v1600_v55 = vrot.slane %v1598_v21, 2  ;;  %v1576_v23 = vsel %vm1440_vm8, %v1567_v31, %v1575_v10  ;;  %v1851_v1 = vunpack.c.l.b16 %v768_v47 }
  0x80   : > { %v1605_v58 = vrot.slane %v1603_v45, 1  ;;  %v1608_v59 = vrot.slane %v1606_v52, 2  ;;  %v9032_v63 = vld [vmem:[#allocation2 + $0x78] sm:$0xff]   ;;  %v1304_v49 = vrot.slane %v9449_v60, 1  ;;  %v1305_v11 = vrot.slane %v9453_v7, 1  ;;  %v9517_v45 = vld [vmem:[%s9156_s10 + $0xb0] sm:$0xff] }
  0x81   : > { %1195 = vrot.lane.b32.xlu1 %v1046_v39, %s9071_s11  ;;  %v1062_v8 = vshll.u32 %v9032_v63, 16  ;;  %v9011_v9 = vunpack.c.h.b16 %v9032_v63  ;;  %v1309_v12 = vsel %vm1279_vm10, %v1307_v50, %v1308_v5  ;;  %v1060_v44 = vshrl.u32 %v9032_v63, 16  ;;  %v708_v20 = vld [vmem:[#allocation2 + $0x80] sm:$0x1] }
  0x82   : > { %v433_v62 = vpack.c.bf16 %v401_v57, %v401_v57  ;;  %v526_v14 = vrot.slane %v432_v48, 7  ;;  %v1601_v16 = vor.u32 %v1600_v55, %v1597_v54  ;;  %v1609_v19 = vor.u32 %v1608_v59, %v1605_v58  ;;  %v748_v24 = vld [vmem:[#allocation2 + $0x80] sm:$0x3]  ;;  %v9523_v55 = vld [vmem:[%s9156_s10 + $0xb8] sm:$0xff] }
  0x83   : > { %v1064_v17 = vrot.slane %v1062_v8, 1  ;;  %v9496_v18 = vpack.c.b16 %v9011_v9, %v1249_v56  ;;  %v1871_v22 = vpack.c.b16 %v9011_v9, %v1851_v1  ;;  %v908_v51 = vunpack.c.l.b16 %v708_v20 }
  0x84   : > { %1797 = vrot.lane.b32.xlu0 %v1593_v53, %s9072_s12  ;;  %v527_v34 = vrot.slane %v526_v14, 4  ;;  %v528_v60 = vrot.slane %v433_v62, 7  ;;  %v1306_v7 = vsel %vm1279_vm10, %v1304_v49, %v1305_v11  ;;  %v1410_v26 = vunpack.c.l.b16 %v748_v24  ;;  %637 = vst.msk [vmem:[#allocation2 + $0x84] sm:$0xe] %vm609_vm7, %v526_v14 }
  0x85   : > { %v434_v2 = vpack.c.bf16 %v402_v15, %v402_v15  ;;  %v1065_v28 = vor.u32 %v1064_v17, %v1060_v44  ;;  %v928_v31 = vpack.c.b16 %v908_v51, %v908_v51  ;;  %v1310_v32 = vrot.slane %v9496_v18, 1 }
  0x86   : > { %v529_v29 = vsel %vm9184_vm9, %v527_v34, %v528_v60  ;;  %v530_v30 = vrot.slane %v528_v60, 4  ;;  %v9505_v33 = vpack.c.b16 %v1410_v26, %v1410_v26  ;;  %v1055_v36 = vshll.u32 %v9475_v4, 16 }
  0x87   : > { %1795 = vrot.lane.b32.xlu2 %v1576_v23, %s9072_s12  ;;  %638 = vst.msk [vmem:[#allocation2 + $0x88] sm:$0xf] %vm332_vm0, %v529_v29  ;;  %v1912_v38 = vrot.slane %v1871_v22, 2  ;;  %v1048_v39 = vshrl.u32 %v9462_v61, 16  ;;  %v1050_v42 = vshll.u32 %v9462_v61, 16  ;;  %v1850_v43 = vunpack.c.l.b16 %v767_v27 }
  0x88   : > { %639 = vst.msk [vmem:[#allocation2 + $0x8c] sm:$0x1] %vm348_vm2, %v530_v30  ;;  %v1311_v21 = vrot.slane %v928_v31, 1  ;;  %v1913_v10 = vrot.slane %v9505_v33, 2  ;;  %v1057_v47 = vrot.slane %v1055_v36, 1  ;;  %v435_v4 = vpack.c.bf16 %v403_v37, %v403_v37 }
  0x89   : > { %1958 = vrot.lane.b32.xlu1 %v1908_v46, %s9074_s14  ;;  %v1067_v46 = vshll.u32 %v928_v31, 16  ;;  %v1052_v48 = vrot.slane %v1050_v42, 1  ;;  %v1870_v50 = vpack.c.b16 %v837_v25, %v1850_v43  ;;  %v531_v5 = vrot.slane %v434_v2, 7 }
  0x8a   : > { %v1610_v52 = vsel %vm1440_vm8, %v1601_v16, %v1609_v19  ;;  %v1910_v54 = vrot.slane %v9477_v40, 2  ;;  %v1312_v56 = vsel %vm1279_vm10, %v1310_v32, %v1311_v21  ;;  %v9527_v63 = vsel %vm1881_vm11, %v1912_v38, %v1913_v10  ;;  %v8278_v21 = vld [vmem:[%s13389_s1 + $0x4] sm:$0x7] }
  0x8b   : > { %v1069_v53 = vrot.slane %v1067_v46, 1  ;;  %v1053_v57 = vor.u32 %v1052_v48, %v1048_v39  ;;  %v729_v58 = vld [vmem:[#allocation2 + $0x84] sm:$0xe]  ;;  %v1909_v25 = vrot.slane %v1870_v50, 2  ;;  %v532_v23 = vrot.slane %v531_v5, 4 }
  0x8c   : > { %1358 = vrot.lane.b32.xlu0 %v1309_v12, %s9073_s13  ;;  %v769_v59 = vld [vmem:[#allocation2 + $0x84] sm:$0xc]  ;;  %v1250_v1 = vunpack.c.l.b16 %v729_v58  ;;  %v533_v8 = vrot.slane %v435_v4, 7  ;;  %640 = vst.msk [vmem:[#allocation2 + $0x90] sm:$0xe] %vm609_vm7, %v531_v5  ;;  %v436_v9 = vpack.c.bf16 %v9517_v45, %v9517_v45  ;;  %v437_v44 = vpack.c.bf16 %v9523_v55, %v9523_v55 }
  0x8d   : > { %v1070_v40 = vsel %vm938_vm3, %v1065_v28, %v1069_v53  ;;  %v1058_v11 = vsel %vm938_vm3, %v1053_v57, %v1057_v47  ;;  %v1852_v12 = vunpack.c.l.b16 %v769_v59  ;;  %v9542_v16 = vsel %vm1881_vm11, %v1909_v25, %v1910_v54  ;;  %v8345_v4 = vld [vmem:[%s13389_s1 + $0x10] sm:$0x7]  ;;  %v1184_v59 = vpop.permute.xlu2 %1183  ;;  %v8328_v45 = vld [vmem:[%s13389_s1 + $0xc] sm:$0x7] }
  0x8e   : > { %v9533_v49 = vld [vmem:[#allocation2 + $0x84] sm:$0xff]   ;;  %v534_v17 = vsel %vm9184_vm9, %v532_v23, %v533_v8  ;;  %v535_v24 = vrot.slane %v533_v8, 4  ;;  %v9075_v37 = vmov 65535  }
  0x8f   : > { %1356 = vrot.lane.b32.xlu2 %v1306_v7, %s9073_s13  ;;  %v709_v62 = vld [vmem:[#allocation2 + $0x8c] sm:$0x1]  ;;  %v841_v14 = vunpack.c.h.b16 %v9533_v49  ;;  %641 = vst.msk [vmem:[#allocation2 + $0x94] sm:$0xf] %vm332_vm0, %v534_v17  ;;  %v1072_v27 = vshrl.u32 %v9533_v49, 16  ;;  %v1074_v2 = vshll.u32 %v9533_v49, 16 }
  0x90   : > { %v749_v15 = vld [vmem:[#allocation2 + $0x8c] sm:$0x3]  ;;  %v909_v19 = vunpack.c.l.b16 %v709_v62  ;;  %642 = vst.msk [vmem:[#allocation2 + $0x98] sm:$0x1] %vm348_vm2, %v535_v24  ;;  %v2184_v38 = vsel %vm2182_vm13, 4294967295, %v9075_v37  ;;  %v1620_v24 = vshrl.u32 %v9505_v33, 16 }
  0x91   : > { %1799 = vrot.lane.b32.xlu1 %v1610_v52, %s9072_s12  ;;  %v1411_v20 = vunpack.c.l.b16 %v749_v15  ;;  %v9547_v22 = vpack.c.b16 %v841_v14, %v1250_v1  ;;  %v1182_v34 = vpop.permute.xlu0 %1181  ;;  %v9553_v7 = vpack.c.b16 %v841_v14, %v1852_v12  ;;  %v1076_v39 = vrot.slane %v1074_v2, 1  ;;  %v9057_v37 = vld [vmem:[#allocation2 + $0x18] sm:$0xff]  }
  0x92   : > { %v9549_v60 = vpack.c.b16 %v909_v19, %v909_v19  ;;  %v1986_v46 = vsel %vm1982_vm12, %v9158_v3, %v1182_v34  ;;  %v9580_v54 = vsel %vm2183_vm14, %v2184_v38, 0  ;;  %vm2149_vm14 = vcmask 39936  }
  0x93   : > { %v9551_v51 = vpack.c.b16 %v1411_v20, %v1411_v20  ;;  %v1629_v28 = vshrl.u32 %v9547_v22, 16  ;;  %v1632_v29 = vshll.u32 %v9547_v22, 16  ;;  %v730_v36 = vld [vmem:[#allocation2 + $0x90] sm:$0xe]  ;;  %v1077_v5 = vor.u32 %v1076_v39, %v1072_v27 }
  0x94   : > { %v1784_v26 = vpop.permute.xlu1 %1783  ;;  %1199 = vrot.lane.b32.xlu0 %v1070_v40, %s9071_s11  ;;  %v1079_v30 = vshll.u32 %v9549_v60, 16  ;;  %v1251_v50 = vunpack.c.l.b16 %v730_v36  ;;  %v1915_v52 = vrot.slane %v9553_v7, 2  ;;  %v2187_v23 = vand.u32 %v8278_v21, %v9580_v54 }
  0x95   : > { %v1637_v31 = vshrl.u32 %v9551_v51, 16  ;;  %v1640_v32 = vshll.u32 %v9551_v51, 16  ;;  %v1631_v42 = vrot.slane %v1629_v28, 1  ;;  %v1634_v43 = vrot.slane %v1632_v29, 2 }
  0x96   : > { %v1081_v10 = vrot.slane %v1079_v30, 1  ;;  %v1916_v3 = vrot.slane %v9551_v51, 2  ;;  %v9577_v53 = vld [vmem:[#allocation2 + $0x90] sm:$0xff]   ;;  %2196 = vmatpush.bf16.msra.mxu0 %v2187_v23  ;;  %v1612_v19 = vshrl.u32 %v9496_v18, 16  ;;  %v1615_v20 = vshll.u32 %v9496_v18, 16 }
  0x97   : > { %v1639_v47 = vrot.slane %v1637_v31, 1  ;;  %v1642_v48 = vrot.slane %v1640_v32, 2  ;;  %1197 = vrot.lane.b32.xlu2 %v1058_v11, %s9071_s11  ;;  %v1635_v57 = vor.u32 %v1634_v43, %v1631_v42  ;;  %v9015_v25 = vunpack.c.h.b16 %v9577_v53  ;;  %v710_v1 = vld [vmem:[#allocation2 + $0x98] sm:$0x1]  ;;  %v8311_v42 = vld [vmem:[%s13389_s1 + $0x8] sm:$0x7] }
  0x98   : > { %v750_v8 = vld [vmem:[#allocation2 + $0x98] sm:$0x3]  ;;  %v2633_v11 = vand.u32 %v8345_v4, %v9580_v54  ;;  %v910_v12 = vunpack.c.l.b16 %v710_v1  ;;  %v1614_v29 = vrot.slane %v1612_v19, 1  ;;  %v1988_v38 = vsel %vm1982_vm12, %v9057_v37, %v1184_v59  ;;  %v409_v19 = vld [vmem:[%s9156_s10 + $0xd8] sm:$0xff] }
  0x99   : > { %1360 = vrot.lane.b32.xlu1 %v1312_v56, %s9073_s13  ;;  %v1643_v58 = vor.u32 %v1642_v48, %v1639_v47  ;;  %v1082_v56 = vsel %vm938_vm3, %v1077_v5, %v1081_v10  ;;  %v1343_v40 = vpop.permute.xlu0 %1342  ;;  %v1271_v62 = vpack.c.b16 %v9015_v25, %v1251_v50  ;;  %v1412_v14 = vunpack.c.l.b16 %v750_v8  ;;  %v406_v47 = vld [vmem:[%s9156_s10 + $0xc0] sm:$0xff]  ;;  %v407_v5 = vld [vmem:[%s9156_s10 + $0xc8] sm:$0xff] }
  0x9a   : > { %v2027_v17 = vsel %vm2023_vm15, %v1986_v46, %v1343_v40  ;;  %2642 = vmatpush.bf16.msrb.mxu0 %v2633_v11  ;;  %v9594_v34 = vpack.c.b16 %v910_v12, %v910_v12  ;;  %v1622_v21 = vrot.slane %v1620_v24, 1  ;;  %v1623_v10 = vshll.u32 %v9505_v33, 16  ;;  %v1345_v33 = vpop.permute.xlu2 %1344  ;;  %v408_v11 = vld [vmem:[%s9156_s10 + $0xd0] sm:$0xff] }
  0x9b   : > { %v1316_v51 = vrot.slane %v1271_v62, 1  ;;  %v9596_v7 = vpack.c.b16 %v1412_v14, %v1412_v14  ;;  %v1646_v27 = vshrl.u32 %v1271_v62, 16  ;;  %v1649_v2 = vshll.u32 %v1271_v62, 16 }
  0x9c   : > { %v1945_v15 = vpop.permute.xlu1 %1944  ;;  %1962 = vrot.lane.b32.xlu0 %v9527_v63, %s9074_s14  ;;  %v2068_v28 = vsel %vm2064_vm1, %v2027_v17, %v1784_v26  ;;  %v1617_v63 = vrot.slane %v1615_v20, 2  ;;  %v1317_v30 = vrot.slane %v9594_v34, 1  ;;  %v1644_v36 = vsel %vm1440_vm8, %v1635_v57, %v1643_v58 }
  0x9d   : > { %v9600_v31 = vrot.slane %v1646_v27, 1  ;;  %v1654_v18 = vshrl.u32 %v9596_v7, 16  ;;  %v1657_v32 = vshll.u32 %v9596_v7, 16  ;;  %v9609_v26 = vrot.slane %v1649_v2, 2 }
  0x9e   : > { %v9612_v39 = vsel %vm2105_vm4, %v2068_v28, %v1945_v15  ;;  %v1618_v48 = vor.u32 %v1617_v63, %v1614_v29  ;;  %v536_v50 = vrot.slane %v436_v9, 7  ;;  %v538_v4 = vrot.slane %v437_v44, 7 }
  0x9f   : > { %1960 = vrot.lane.b32.xlu2 %v9542_v16, %s9074_s14  ;;  %v1656_v43 = vrot.slane %v1654_v18, 1  ;;  %v1659_v46 = vrot.slane %v1657_v32, 2  ;;  %8279 = vmatmul.msk.bf16.vlgmr.msra.gmra.mxu0 %vm2149_vm14, %v9612_v39  ;;  %v1917_v16 = vsel %vm1881_vm11, %v1915_v52, %v1916_v3  ;;  %v1318_v57 = vsel %vm1279_vm10, %v1316_v51, %v1317_v30  ;;  %v410_v32 = vld [vmem:[%s9156_s10 + $0xe0] sm:$0xff] }
  0xa0   : > { %v1652_v58 = vor.u32 %v9609_v26, %v9600_v31  ;;  %v1625_v59 = vrot.slane %v1623_v10, 2  ;;  %v2377_v52 = vand.u32 %v8311_v42, %v9580_v54  ;;  %v2029_v55 = vsel %vm2023_vm15, %v1988_v38, %v1345_v33  ;;  %643 = vst.msk [vmem:[#allocation2 + $0x9c] sm:$0xe] %vm609_vm7, %v536_v50  ;;  %v770_v31 = vld [vmem:[#allocation2 + $0x90] sm:$0xc] }
  0xa1   : > { %1201 = vrot.lane.b32.xlu1 %v1082_v56, %s9071_s11  ;;  %v537_v9 = vrot.slane %v536_v50, 4  ;;  %v540_v44 = vrot.slane %v538_v4, 4  ;;  %v438_v3 = vpack.c.bf16 %v406_v47, %v406_v47  ;;  %v1660_v23 = vor.u32 %v1659_v46, %v1656_v43 }
  0xa2   : > { %v1626_v56 = vor.u32 %v1625_v59, %v1622_v21  ;;  %2386 = vmatpush.bf16.msra.mxu2 %v2377_v52  ;;  %v439_v8 = vpack.c.bf16 %v407_v5, %v407_v5  ;;  %v2505_v40 = vand.u32 %v8328_v45, %v9580_v54  ;;  %v1313_v14 = vrot.slane %v9547_v22, 1 }
  0xa3   : > { %v539_v12 = vsel %vm9184_vm9, %v537_v9, %v538_v4  ;;  %645 = vst.msk [vmem:[#allocation2 + $0xa4] sm:$0x1] %vm348_vm2, %v540_v44  ;;  %v1314_v15 = vrot.slane %v9549_v60, 1  ;;  %v541_v17 = vrot.slane %v438_v3, 7  ;;  %v1086_v27 = vshll.u32 %v9577_v53, 16 }
  0xa4   : > { %1803 = vrot.lane.b32.xlu0 %v1644_v36, %s9072_s12  ;;  %v1947_v1 = vpop.permute.xlu1 %1946  ;;  %v1627_v20 = vsel %vm1440_vm8, %v1618_v48, %v1626_v56  ;;  %644 = vst.msk [vmem:[#allocation2 + $0xa0] sm:$0xf] %vm332_vm0, %v539_v12  ;;  %v543_v51 = vrot.slane %v439_v8, 7  ;;  %2514 = vmatpush.bf16.msra.mxu3 %v2505_v40  ;;  %v1091_v2 = vshll.u32 %v9594_v34, 16  ;;  %v440_v28 = vpack.c.bf16 %v408_v11, %v408_v11 }
  0xa5   : > { %v542_v60 = vrot.slane %v541_v17, 4  ;;  %646 = vst.msk [vmem:[#allocation2 + $0xa8] sm:$0xe] %vm609_vm7, %v541_v17  ;;  %v1084_v63 = vshrl.u32 %v9577_v53, 16  ;;  %v1088_v30 = vrot.slane %v1086_v27, 1  ;;  %v441_v18 = vpack.c.bf16 %v409_v19, %v409_v19 }
  0xa6   : > { %v1786_v62 = vpop.permute.xlu0 %1785  ;;  %v545_v29 = vrot.slane %v543_v51, 4  ;;  %v546_v37 = vrot.slane %v440_v28, 7  ;;  %v1661_v38 = vsel %vm1440_vm8, %v1652_v58, %v1660_v23  ;;  %v1315_v34 = vsel %vm1279_vm10, %v1313_v14, %v1314_v15 }
  0xa7   : > { %v2070_v24 = vsel %vm2064_vm1, %v2029_v55, %v1786_v62  ;;  %1801 = vrot.lane.b32.xlu2 %v1627_v20, %s9072_s12  ;;  %v544_v36 = vsel %vm9184_vm9, %v542_v60, %v543_v51  ;;  %v731_v26 = vld [vmem:[#allocation2 + $0x9c] sm:$0xe]  ;;  %v1093_v43 = vrot.slane %v1091_v2, 1  ;;  %v1853_v46 = vunpack.c.l.b16 %v770_v31 }
  0xa8   : > { %v9654_v22 = vsel %vm2105_vm4, %v2070_v24, %v1947_v1  ;;  %v771_v42 = vld [vmem:[#allocation2 + $0x9c] sm:$0xc]  ;;  %647 = vst.msk [vmem:[#allocation2 + $0xac] sm:$0xf] %vm332_vm0, %v544_v36  ;;  %v442_v21 = vpack.c.bf16 %v410_v32, %v410_v32  ;;  %v1252_v47 = vunpack.c.l.b16 %v731_v26  ;;  %v1089_v48 = vor.u32 %v1088_v30, %v1084_v63 }
  0xa9   : > { %1964 = vrot.lane.b32.xlu1 %v1917_v16, %s9074_s14  ;;  %8312 = vmatmul.msk.bf16.vlgmr.msra.gmra.mxu2 %vm2149_vm14, %v9654_v22  ;;  %648 = vst.msk [vmem:[#allocation2 + $0xb0] sm:$0x1] %vm348_vm2, %v545_v29  ;;  %v547_v50 = vrot.slane %v546_v37, 4  ;;  %v548_v4 = vrot.slane %v441_v18, 7  ;;  %v1854_v33 = vunpack.c.l.b16 %v771_v42  ;;  %v9679_v44 = vpack.c.b16 %v9015_v25, %v1853_v46 }
  0xaa   : > { %v711_v10 = vld [vmem:[#allocation2 + $0xa4] sm:$0x1]  ;;  %649 = vst.msk [vmem:[#allocation2 + $0xb4] sm:$0xe] %vm609_vm7, %v546_v37  ;;  %v1919_v3 = vrot.slane %v9596_v7, 2  ;;  %v1094_v56 = vsel %vm938_vm3, %v1089_v48, %v1093_v43  ;;  %v9688_v8 = vrot.slane %v442_v21, 7 }
  0xab   : > { %v751_v16 = vld [vmem:[#allocation2 + $0xa4] sm:$0x3]  ;;  %v9669_v5 = vld [vmem:[#allocation2 + $0x9c] sm:$0xff]   ;;  %v911_v58 = vunpack.c.l.b16 %v711_v10  ;;  %v549_v45 = vsel %vm9184_vm9, %v547_v50, %v548_v4  ;;  %v550_v55 = vrot.slane %v548_v4, 4  ;;  %v1918_v28 = vrot.slane %v9679_v44, 2 }
  0xac   : > { %1364 = vrot.lane.b32.xlu0 %v1318_v57, %s9073_s13  ;;  %v1413_v59 = vunpack.c.l.b16 %v751_v16  ;;  %v845_v57 = vunpack.c.h.b16 %v9669_v5  ;;  %v732_v52 = vld [vmem:[#allocation2 + $0xa8] sm:$0xe]  ;;  %650 = vst.msk [vmem:[#allocation2 + $0xb8] sm:$0xf] %vm332_vm0, %v549_v45  ;;  %v1096_v15 = vshrl.u32 %v9669_v5, 16  ;;  %v1098_v17 = vshll.u32 %v9669_v5, 16 }
  0xad   : > { %v931_v9 = vpack.c.b16 %v911_v58, %v911_v58  ;;  %v772_v1 = vld [vmem:[#allocation2 + $0xa8] sm:$0xc]  ;;  %v1253_v14 = vunpack.c.l.b16 %v732_v52  ;;  %651 = vst.msk [vmem:[#allocation2 + $0xbc] sm:$0x1] %vm348_vm2, %v550_v55  ;;  %v411_v48 = vld [vmem:[%s9156_s10 + $0xe8] sm:$0xff] }
  0xae   : > { %v9683_v23 = vpack.c.b16 %v845_v57, %v1252_v47  ;;  %v9690_v62 = vpack.c.b16 %v1413_v59, %v1413_v59  ;;  %v1874_v20 = vpack.c.b16 %v845_v57, %v1854_v33  ;;  %v1100_v29 = vrot.slane %v1098_v17, 1  ;;  %652 = vst.msk [vmem:[#allocation2 + $0xc0] sm:$0xe] %vm609_vm7, %v9688_v8 }
  0xaf   : > { %1362 = vrot.lane.b32.xlu2 %v1315_v34, %s9073_s13  ;;  %8280 = vmatmul.msk.bf16.gmra.mxu0 %vm2149_vm14, %v9654_v22  ;;  %v1103_v40 = vshll.u32 %v931_v9, 16  ;;  %v1320_v11 = vrot.slane %v931_v9, 1  ;;  %v9692_v25 = vld [vmem:[#allocation2 + $0xa8] sm:$0xff]  }
  0xb0   : > { %v1319_v19 = vrot.slane %v9683_v23, 1  ;;  %v712_v24 = vld [vmem:[#allocation2 + $0xb0] sm:$0x1]  ;;  %v1108_v60 = vshrl.u32 %v9692_v25, 16  ;;  %v1110_v30 = vshll.u32 %v9692_v25, 16  ;;  %v9019_v31 = vunpack.c.h.b16 %v9692_v25 }
  0xb1   : > { %1805 = vrot.lane.b32.xlu1 %v1661_v38, %s9072_s12  ;;  %v1186_v12 = vpop.permute.xlu2 %1185  ;;  %v1105_v51 = vrot.slane %v1103_v40, 1  ;;  %v912_v27 = vunpack.c.l.b16 %v712_v24  ;;  %v752_v2 = vld [vmem:[#allocation2 + $0xb0] sm:$0x3]  ;;  %v733_v18 = vld [vmem:[#allocation2 + $0xb4] sm:$0xe]  ;;  %v1922_v32 = vrot.slane %v9690_v62, 2  ;;  %v1855_v38 = vunpack.c.l.b16 %v772_v1 }
  0xb2   : > { %v1321_v63 = vsel %vm1279_vm10, %v1319_v19, %v1320_v11  ;;  %v1414_v37 = vunpack.c.l.b16 %v752_v2  ;;  %v1101_v26 = vor.u32 %v1100_v29, %v1096_v15  ;;  %v1921_v42 = vrot.slane %v1874_v20, 2 }
  0xb3   : > { %v9706_v36 = vpack.c.b16 %v912_v27, %v912_v27  ;;  %v1112_v34 = vrot.slane %v1110_v30, 1  ;;  %v9708_v43 = vpack.c.b16 %v9019_v31, %v1253_v14  ;;  %v9710_v46 = vld [vmem:[#allocation2 + $0xb4] sm:$0xff]   ;;  %v1254_v16 = vunpack.c.l.b16 %v733_v18 }
  0xb4   : > { %v9715_v10 = vpack.c.b16 %v1414_v37, %v1414_v37  ;;  %v849_v47 = vunpack.c.h.b16 %v9710_v46  ;;  %v1106_v50 = vsel %vm938_vm3, %v1101_v26, %v1105_v51  ;;  %v713_v33 = vld [vmem:[#allocation2 + $0xbc] sm:$0x1]  ;;  %v1875_v9 = vpack.c.b16 %v9019_v31, %v1855_v38 }
  0xb5   : > { %v1115_v21 = vshll.u32 %v9706_v36, 16  ;;  %v1113_v4 = vor.u32 %v1112_v34, %v1108_v60  ;;  %v1680_v58 = vshrl.u32 %v9708_v43, 16  ;;  %v1683_v59 = vshll.u32 %v9708_v43, 16  ;;  %1205 = vrot.lane.b32.xlu0 %v1106_v50, %s9071_s11  ;;  %v753_v44 = vld [vmem:[#allocation2 + $0xbc] sm:$0x3] }
  0xb6   : > { %v1688_v45 = vshrl.u32 %v9715_v10, 16  ;;  %v1691_v55 = vshll.u32 %v9715_v10, 16  ;;  %v913_v40 = vunpack.c.l.b16 %v713_v33  ;;  %v443_v11 = vpack.c.bf16 %v411_v48, %v411_v48 }
  0xb7   : > { %1203 = vrot.lane.b32.xlu2 %v1094_v56, %s9071_s11  ;;  %v1117_v57 = vrot.slane %v1115_v21, 1  ;;  %v1682_v56 = vrot.slane %v1680_v58, 1  ;;  %v1685_v1 = vrot.slane %v1683_v59, 2  ;;  %v9727_v17 = vpack.c.b16 %v849_v47, %v1254_v16 }
  0xb8   : > { %v1690_v14 = vrot.slane %v1688_v45, 1  ;;  %v1693_v15 = vrot.slane %v1691_v55, 2  ;;  %v1663_v19 = vshrl.u32 %v9683_v23, 16  ;;  %v1990_v20 = vsel %vm1982_vm12, %v9295_v6, %v1186_v12 }
  0xb9   : > { %1366 = vrot.lane.b32.xlu1 %v1321_v63, %s9073_s13  ;;  %v1949_v52 = vpop.permute.xlu2 %1948  ;;  %v1118_v24 = vsel %vm938_vm3, %v1113_v4, %v1117_v57  ;;  %v1920_v51 = vsel %vm1881_vm11, %v1918_v28, %v1919_v3  ;;  %v1415_v27 = vunpack.c.l.b16 %v753_v44  ;;  %v1923_v60 = vsel %vm1881_vm11, %v1921_v42, %v1922_v32 }
  0xba   : > { %v1924_v29 = vrot.slane %v1875_v9, 2  ;;  %v1697_v63 = vshrl.u32 %v9727_v17, 16  ;;  %v1700_v30 = vshll.u32 %v9727_v17, 16  ;;  %v1686_v31 = vor.u32 %v1685_v1, %v1682_v56  ;;  %v698_v56 = vld [vmem:[#allocation2 + $0x8] sm:$0x1] }
  0xbb   : > { %v1925_v18 = vrot.slane %v9715_v10, 2  ;;  %v9740_v37 = vpack.c.b16 %v913_v40, %v913_v40  ;;  %v9742_v6 = vpack.c.b16 %v1415_v27, %v1415_v27  ;;  %v1694_v3 = vor.u32 %v1693_v15, %v1690_v14 }
  0xbc   : > { %v1665_v12 = vrot.slane %v1663_v19, 1  ;;  %v1666_v28 = vshll.u32 %v9683_v23, 16  ;;  %v1699_v32 = vrot.slane %v1697_v63, 1  ;;  %v1671_v42 = vshrl.u32 %v9690_v62, 16  ;;  %v9781_v63 = vld [vmem:[#allocation2] sm:$0xff]  }
  0xbd   : > { %v1705_v38 = vshrl.u32 %v9742_v6, 16  ;;  %v1708_v26 = vshll.u32 %v9742_v6, 16  ;;  %1968 = vrot.lane.b32.xlu0 %v1923_v60, %s9074_s14  ;;  %v1702_v21 = vrot.slane %v1700_v30, 2  ;;  %v1674_v48 = vshll.u32 %v9690_v62, 16 }
  0xbe   : > { %v1347_v2 = vpop.permute.xlu0 %1346  ;;  %v1668_v16 = vrot.slane %v1666_v28, 2  ;;  %v552_v50 = vrot.slane %v9688_v8, 4  ;;  %v1673_v59 = vrot.slane %v1671_v42, 1  ;;  %v553_v55 = vrot.slane %v443_v11, 7 }
  0xbf   : > { %v2031_v7 = vsel %vm2023_vm15, %v1990_v20, %v1347_v2  ;;  %1966 = vrot.lane.b32.xlu2 %v1920_v51, %s9074_s14  ;;  %v1707_v23 = vrot.slane %v1705_v38, 1  ;;  %v1710_v58 = vrot.slane %v1708_v26, 2  ;;  %v1676_v45 = vrot.slane %v1674_v48, 2  ;;  %v9058_v20 = vld [vmem:[#allocation2 + $0x30] sm:$0xff]   ;;  %v734_v51 = vld [vmem:[#allocation2 + $0xc0] sm:$0xe] }
  0xc0   : > { %v1669_v57 = vor.u32 %v1668_v16, %v1665_v12  ;;  %v1926_v9 = vsel %vm1881_vm11, %v1924_v29, %v1925_v18  ;;  %v555_v44 = vrot.slane %v553_v55, 4  ;;  %v1695_v1 = vsel %vm1440_vm8, %v1686_v31, %v1694_v3  ;;  %v718_v3 = vld [vmem:[#allocation2] sm:$0xe]  ;;  %v738_v48 = vld [vmem:[#allocation2 + $0x8] sm:$0x3] }
  0xc1   : > { %1207 = vrot.lane.b32.xlu1 %v1118_v24, %s9071_s11  ;;  %v1790_v10 = vpop.permute.xlu2 %1789  ;;  %v1677_v62 = vor.u32 %v1676_v45, %v1673_v59  ;;  %v1325_v40 = vrot.slane %v9727_v17, 1  ;;  %v1326_v11 = vrot.slane %v9740_v37, 1  ;;  %v1703_v14 = vor.u32 %v1702_v21, %v1699_v32  ;;  %v774_v12 = vld [vmem:[#allocation2 + $0xc0] sm:$0xc] }
  0xc2   : > { %v1711_v15 = vor.u32 %v1710_v58, %v1707_v23  ;;  %654 = vst.msk [vmem:[#allocation2 + $0xc8] sm:$0x1] %vm348_vm2, %v555_v44  ;;  %v1322_v17 = vrot.slane %v9708_v43, 1  ;;  %v1323_v27 = vrot.slane %v9706_v36, 1  ;;  %v898_v60 = vunpack.c.l.b16 %v698_v56  ;;  %v773_v44 = vld [vmem:[#allocation2 + $0xb4] sm:$0xc] }
  0xc3   : > { %v1788_v34 = vpop.permute.xlu1 %1787  ;;  %v1678_v19 = vsel %vm1440_vm8, %v1669_v57, %v1677_v62  ;;  %v1327_v31 = vsel %vm1279_vm10, %v1325_v40, %v1326_v11  ;;  %v1255_v18 = vunpack.c.l.b16 %v734_v51  ;;  %v942_v32 = vshll.u32 %v9781_v63, 16 }
  0xc4   : > { %v2072_v4 = vsel %vm2064_vm1, %v2031_v7, %v1788_v34  ;;  %v1122_v7 = vshll.u32 %v9710_v46, 16  ;;  %v1712_v43 = vsel %vm1440_vm8, %v1703_v14, %v1711_v15  ;;  %v1324_v36 = vsel %vm1279_vm10, %v1322_v17, %v1323_v27  ;;  %v758_v17 = vld [vmem:[#allocation2] sm:$0xc] }
  0xc5   : > { %v9756_v33 = vsel %vm2105_vm4, %v2072_v4, %v1949_v52  ;;  %v554_v52 = vsel %vm9184_vm9, %v552_v50, %v553_v55  ;;  %1809 = vrot.lane.b32.xlu0 %v1695_v1, %s9072_s12  ;;  %v9788_v28 = vpack.c.b16 %v898_v60, %v898_v60  ;;  %v1120_v42 = vshrl.u32 %v9710_v46, 16 }
  0xc6   : > { %8329 = vmatmul.msk.bf16.vlgmr.msra.gmra.mxu3 %vm2149_vm14, %v9756_v33  ;;  %8313 = vmatmul.msk.bf16.gmra.mxu2 %vm2149_vm14, %v9756_v33  ;;  %v1188_v8 = vpop.permute.xlu0 %1187  ;;  %653 = vst.msk [vmem:[#allocation2 + $0xc4] sm:$0xf] %vm332_vm0, %v554_v52  ;;  %v1124_v34 = vrot.slane %v1122_v7, 1  ;;  %v1127_v21 = vshll.u32 %v9740_v37, 16  ;;  %v8991_v16 = vunpack.c.h.b16 %v9781_v63  ;;  %v1239_v59 = vunpack.c.l.b16 %v718_v3 }
  0xc7   : > { %8281 = vmatmul.msk.bf16.gmra.mxu0 %vm2149_vm14, %v9756_v33  ;;  %v1992_v24 = vsel %vm1982_vm12, %v9058_v20, %v1188_v8  ;;  %1807 = vrot.lane.b32.xlu2 %v1678_v19, %s9072_s12  ;;  %v940_v37 = vshrl.u32 %v9781_v63, 16  ;;  %v1400_v52 = vunpack.c.l.b16 %v738_v48 }
  0xc8   : > { %v1125_v14 = vor.u32 %v1124_v34, %v1120_v42  ;;  %v1129_v15 = vrot.slane %v1127_v21, 1  ;;  %v9815_v51 = vpack.c.b16 %v8991_v16, %v1239_v59 }
  0xc9   : > { %1970 = vrot.lane.b32.xlu1 %v1926_v9, %s9074_s14  ;;  %v9779_v29 = vpop.permute.xlu2 %1350  ;;  %v714_v4 = vld [vmem:[#allocation2 + $0xc8] sm:$0x1]  ;;  %v1857_v9 = vunpack.c.l.b16 %v774_v12 }
  0xca   : > { %v914_v57 = vunpack.c.l.b16 %v714_v4  ;;  %v754_v55 = vld [vmem:[#allocation2 + $0xc8] sm:$0x3]  ;;  %v1130_v3 = vsel %vm938_vm3, %v1125_v14, %v1129_v15  ;;  %v1442_v21 = vshrl.u32 %v9815_v51, 16  ;;  %v1445_v4 = vshll.u32 %v9815_v51, 16 }
  0xcb   : > { %v1349_v2 = vpop.permute.xlu1 %1348  ;;  %v1416_v20 = vunpack.c.l.b16 %v754_v55 }
  0xcc   : > { %v2033_v30 = vsel %vm2023_vm15, %v1992_v24, %v1349_v2  ;;  %v934_v40 = vpack.c.b16 %v914_v57, %v914_v57  ;;  %v947_v24 = vshll.u32 %v9788_v28, 16 }
  0xcd   : > { %v9791_v26 = vld [vmem:[#allocation2 + $0xc0] sm:$0xff]   ;;  %v2074_v50 = vsel %vm2064_vm1, %v2033_v30, %v1790_v10  ;;  %v944_v10 = vrot.slane %v942_v32, 1  ;;  %1370 = vrot.lane.b32.xlu0 %v1327_v31, %s9073_s13  ;;  %v1856_v30 = vunpack.c.l.b16 %v773_v44 }
  0xce   : > { %v1951_v38 = vpop.permute.xlu0 %1950  ;;  %v1134_v23 = vshll.u32 %v9791_v26, 16  ;;  %v9023_v58 = vunpack.c.h.b16 %v9791_v26  ;;  %v1132_v45 = vshrl.u32 %v9791_v26, 16  ;;  %v1139_v60 = vshll.u32 %v934_v40, 16 }
  0xcf   : > { %1368 = vrot.lane.b32.xlu2 %v1324_v36, %s9073_s13  ;;  %v9807_v56 = vsel %vm2105_vm4, %v2074_v50, %v1951_v38  ;;  %v1329_v2 = vrot.slane %v934_v40, 1  ;;  %v1436_v36 = vpack.c.b16 %v1416_v20, %v1416_v20  ;;  %v945_v32 = vor.u32 %v944_v10, %v940_v37 }
  0xd0   : > { %v1136_v8 = vrot.slane %v1134_v23, 1  ;;  %v9802_v62 = vpack.c.b16 %v9023_v58, %v1255_v18  ;;  %v1141_v31 = vrot.slane %v1139_v60, 1  ;;  %v1877_v12 = vpack.c.b16 %v9023_v58, %v1857_v9 }
  0xd1   : > { %1811 = vrot.lane.b32.xlu1 %v1712_v43, %s9072_s12  ;;  %v9809_v11 = vpop.permute.xlu2 %1191  ;;  %v1841_v43 = vunpack.c.l.b16 %v758_v17  ;;  %v1420_v38 = vpack.c.b16 %v1400_v52, %v1400_v52  ;;  %v949_v34 = vrot.slane %v947_v24, 1  ;;  %v1876_v48 = vpack.c.b16 %v849_v47, %v1856_v30 }
  0xd2   : > { %v1328_v19 = vrot.slane %v9802_v62, 1  ;;  %v1137_v27 = vor.u32 %v1136_v8, %v1132_v45  ;;  %v1928_v23 = vrot.slane %v9742_v6, 2  ;;  %v1714_v58 = vshrl.u32 %v9802_v62, 16 }
  0xd3   : > { %v1190_v1 = vpop.permute.xlu1 %1189  ;;  %v1927_v45 = vrot.slane %v1876_v48, 2  ;;  %v1717_v55 = vshll.u32 %v9802_v62, 16  ;;  %v1722_v9 = vshrl.u32 %v1436_v36, 16  ;;  %v1725_v47 = vshll.u32 %v1436_v36, 16 }
  0xd4   : > { %v1330_v18 = vsel %vm1279_vm10, %v1328_v19, %v1329_v2  ;;  %v1142_v42 = vsel %vm938_vm3, %v1137_v27, %v1141_v31  ;;  %v1994_v50 = vsel %vm1982_vm12, %v9312_v41, %v1190_v1  ;;  %v1930_v37 = vrot.slane %v1877_v12, 2 }
  0xd5   : > { %1211 = vrot.lane.b32.xlu0 %v1142_v42, %s9071_s11  ;;  %v1931_v8 = vrot.slane %v1436_v36, 2  ;;  %v1450_v41 = vshrl.u32 %v1420_v38, 16  ;;  %v1453_v10 = vshll.u32 %v1420_v38, 16  ;;  %v2035_v52 = vsel %vm2023_vm15, %v1994_v50, %v9779_v29 }
  0xd6   : > { %8330 = vmatmul.msk.bf16.gmra.mxu3 %vm2149_vm14, %v9807_v56  ;;  %8314 = vmatmul.msk.bf16.gmra.mxu2 %vm2149_vm14, %v9807_v56  ;;  %v1792_v7 = vpop.permute.xlu0 %1791  ;;  %v1861_v6 = vpack.c.b16 %v8991_v16, %v1841_v43  ;;  %v950_v44 = vsel %vm938_vm3, %v945_v32, %v949_v34  ;;  %v1444_v1 = vrot.slane %v1442_v21, 1  ;;  %v1447_v40 = vrot.slane %v1445_v4, 2  ;;  %v9059_v34 = vld [vmem:[#allocation2 + $0x48] sm:$0xff]  }
  0xd7   : > { %8282 = vmatmul.msk.bf16.gmra.mxu0 %vm2149_vm14, %v9807_v56  ;;  %1209 = vrot.lane.b32.xlu2 %v1130_v3, %s9071_s11  ;;  %v1716_v14 = vrot.slane %v1714_v58, 1  ;;  %v1929_v62 = vsel %vm1881_vm11, %v1927_v45, %v1928_v23  ;;  %v1719_v19 = vrot.slane %v1717_v55, 2  ;;  %v1724_v20 = vrot.slane %v1722_v9, 1 }
  0xd8   : > { %v1727_v24 = vrot.slane %v1725_v47, 2  ;;  %v2076_v17 = vsel %vm2064_vm1, %v2035_v52, %v1792_v7  ;;  %v1932_v27 = vsel %vm1881_vm11, %v1930_v37, %v1931_v8  ;;  %v1452_v60 = vrot.slane %v1450_v41, 1 }
  0xd9   : > { %1372 = vrot.lane.b32.xlu1 %v1330_v18, %s9073_s13  ;;  %v1955_v57 = vpop.permute.xlu2 %1954  ;;  %v1455_v29 = vrot.slane %v1453_v10, 2  ;;  %v1882_v16 = vrot.slane %v1861_v6, 2  ;;  %v1883_v2 = vrot.slane %v1420_v38, 2  ;;  %v1720_v3 = vor.u32 %v1719_v19, %v1716_v14 }
  0xda   : > { %v1728_v43 = vor.u32 %v1727_v24, %v1724_v20  ;;  %v1448_v7 = vor.u32 %v1447_v40, %v1444_v1  ;;  %v1996_v21 = vsel %vm1982_vm12, %v9059_v34, %v9809_v11  ;;  %v1280_v4 = vrot.slane %v9815_v51, 1 }
  0xdb   : > { %v1953_v59 = vpop.permute.xlu1 %1952  ;;  %v1456_v36 = vor.u32 %v1455_v29, %v1452_v60  ;;  %v1884_v12 = vsel %vm1881_vm11, %v1882_v16, %v1883_v2  ;;  %v1281_v23 = vrot.slane %v9788_v28, 1 }
  0xdc   : > { %v9849_v30 = vsel %vm2105_vm4, %v2076_v17, %v1953_v59  ;;  %v1729_v38 = vsel %vm1440_vm8, %v1720_v3, %v1728_v43 }
  0xdd   : > { %1974 = vrot.lane.b32.xlu0 %v1932_v27, %s9074_s14  ;;  %v1457_v42 = vsel %vm1440_vm8, %v1448_v7, %v1456_v36  ;;  %v1282_v45 = vsel %vm1279_vm10, %v1280_v4, %v1281_v23 }
  0xde   : > { %v1353_v15 = vpop.permute.xlu0 %1352 }
  0xdf   : > { %1972 = vrot.lane.b32.xlu2 %v1929_v62, %s9074_s14  ;;  %v2037_v58 = vsel %vm2023_vm15, %v1996_v21, %v1353_v15 }
  0xe1   : > { %1179 = vrot.lane.b32.xlu1 %v950_v44, %s9071_s11  ;;  %v1796_v18 = vpop.permute.xlu2 %1795 }
  0xe3   : > { %v1794_v31 = vpop.permute.xlu1 %1793 }
  0xe4   : > { %v2078_v55 = vsel %vm2064_vm1, %v2037_v58, %v1794_v31 }
  0xe5   : > { %1781 = vrot.lane.b32.xlu0 %v1457_v42, %s9072_s12  ;;  %v9873_v11 = vsel %vm2105_vm4, %v2078_v55, %v1955_v57 }
  0xe6   : > { %8331 = vmatmul.msk.bf16.gmra.mxu3 %vm2149_vm14, %v9849_v30  ;;  %8315 = vmatmul.msk.bf16.gmra.mxu2 %vm2149_vm14, %v9849_v30  ;;  %v1194_v32 = vpop.permute.xlu0 %1193 }
  0xe7   : > { %8283 = vmatmul.msk.bf16.gmra.mxu0 %vm2149_vm14, %v9849_v30  ;;  %1813 = vrot.lane.b32.xlu2 %v1729_v38, %s9072_s12  ;;  %v1998_v51 = vsel %vm1982_vm12, %v9374_v13, %v1194_v32  ;;  %v9060_v13 = vld [vmem:[#allocation2 + $0x60] sm:$0xff]   ;;  %v9061_v32 = vld [vmem:[#allocation2 + $0x78] sm:$0xff]  }
  0xe9   : > { %1942 = vrot.lane.b32.xlu1 %v1884_v12, %s9074_s14  ;;  %v1357_v50 = vpop.permute.xlu2 %1356 }
  0xeb   : > { %v1355_v48 = vpop.permute.xlu1 %1354 }
  0xec   : > { %v2039_v57 = vsel %vm2023_vm15, %v1998_v51, %v1355_v48 }
  0xed   : > { %v2080_v10 = vsel %vm2064_vm1, %v2039_v57, %v1796_v18 }
  0xee   : > { %v1957_v59 = vpop.permute.xlu0 %1956 }
  0xef   : > { %1340 = vrot.lane.b32.xlu2 %v1282_v45, %s9073_s13  ;;  %v9886_v52 = vsel %vm2105_vm4, %v2080_v10, %v1957_v59  ;;  %v2146_v45 = vld [vmem:[%s13389_s1] sm:$0x7] }
  0xf0   : > { %v2281_v55 = vand.u32 %v9580_v54, %v2146_v45 }
  0xf1   : > { %v1198_v47 = vpop.permute.xlu2 %1197 }
  0xf2   : > { %v2002_v29 = vsel %vm1982_vm12, %v9462_v61, %v1198_v47  ;;  %2290 = vmatpush.bf16.msra.mxu1 %v2281_v55 }
  0xf3   : > { %v1196_v9 = vpop.permute.xlu1 %1195 }
  0xf4   : > { %v2000_v40 = vsel %vm1982_vm12, %v9060_v13, %v1196_v9 }
  0xf5   : > { %v2041_v62 = vsel %vm2023_vm15, %v2000_v40, %v1357_v50 }
  0xf6   : > { %8332 = vmatmul.msk.bf16.gmra.mxu3 %vm2149_vm14, %v9873_v11  ;;  %8316 = vmatmul.msk.bf16.gmra.mxu2 %vm2149_vm14, %v9873_v11  ;;  %v1798_v28 = vpop.permute.xlu0 %1797 }
  0xf7   : > { %8284 = vmatmul.msk.bf16.gmra.mxu0 %vm2149_vm14, %v9873_v11  ;;  %v2082_v20 = vsel %vm2064_vm1, %v2041_v62, %v1798_v28 }
  0xf9   : > { %v1961_v8 = vpop.permute.xlu2 %1960 }
  0xfb   : > { %v1959_v37 = vpop.permute.xlu1 %1958 }
  0xfc   : > { %v9898_v24 = vsel %vm2105_vm4, %v2082_v20, %v1959_v37 }
  0xfe   : > { %v1359_v41 = vpop.permute.xlu0 %1358 }
  0xff   : > { %v2043_v31 = vsel %vm2023_vm15, %v2002_v29, %v1359_v41 }
 0x101   : > { %v1802_v44 = vpop.permute.xlu2 %1801 }
 0x103   : > { %v1800_v6 = vpop.permute.xlu1 %1799 }
 0x104   : > { %v2084_v3 = vsel %vm2064_vm1, %v2043_v31, %v1800_v6 }
 0x105   : > { %v9913_v43 = vsel %vm2105_vm4, %v2084_v3, %v1961_v8 }
 0x106   : > { %8333 = vmatmul.msk.bf16.gmra.mxu3 %vm2149_vm14, %v9886_v52  ;;  %8317 = vmatmul.msk.bf16.gmra.mxu2 %vm2149_vm14, %v9886_v52  ;;  %v1200_v1 = vpop.permute.xlu0 %1199 }
 0x107   : > { %8285 = vmatmul.msk.bf16.gmra.mxu0 %vm2149_vm14, %v9886_v52  ;;  %v2004_v38 = vsel %vm1982_vm12, %v9061_v32, %v1200_v1 }
 0x109   : > { %v1363_v15 = vpop.permute.xlu2 %1362 }
 0x10b   : > { %v1361_v14 = vpop.permute.xlu1 %1360 }
 0x10c   : > { %v2045_v34 = vsel %vm2023_vm15, %v2004_v38, %v1361_v14 }
 0x10d   : > { %v2086_v48 = vsel %vm2064_vm1, %v2045_v34, %v1802_v44 }
 0x10e   : > { %v1963_v19 = vpop.permute.xlu0 %1962 }
 0x10f   : > { %v9931_v23 = vsel %vm2105_vm4, %v2086_v48, %v1963_v19 }
 0x111   : > { %v1204_v27 = vpop.permute.xlu2 %1203 }
 0x113   : > { %v1202_v17 = vpop.permute.xlu1 %1201 }
 0x114   : > { %v2006_v9 = vsel %vm1982_vm12, %v9533_v49, %v1202_v17  ;;  %v2008_v49 = vsel %vm1982_vm12, %v9577_v53, %v1204_v27 }
 0x115   : > { %v2047_v37 = vsel %vm2023_vm15, %v2006_v9, %v1363_v15 }
 0x116   : > { %8334 = vmatmul.msk.bf16.gmra.mxu3 %vm2149_vm14, %v9898_v24  ;;  %8318 = vmatmul.msk.bf16.gmra.mxu2 %vm2149_vm14, %v9898_v24  ;;  %v1804_v60 = vpop.permute.xlu0 %1803 }
 0x117   : > { %8286 = vmatmul.msk.bf16.gmra.mxu0 %vm2149_vm14, %v9898_v24  ;;  %v2088_v57 = vsel %vm2064_vm1, %v2047_v37, %v1804_v60 }
 0x119   : > { %v1967_v2 = vpop.permute.xlu2 %1966 }
 0x11b   : > { %v1965_v16 = vpop.permute.xlu1 %1964 }
 0x11c   : > { %v9909_v18 = vpop.f32.mrf.mxu0  ;;  %v9950_v41 = vsel %vm2105_vm4, %v2088_v57, %v1965_v16 }
 0x11e   : > { %v1365_v7 = vpop.permute.xlu0 %1364 }
 0x11f   : > { %v2049_v40 = vsel %vm2023_vm15, %v2008_v49, %v1365_v7 }
 0x121   : > { %v1808_v61 = vpop.permute.xlu2 %1807 }
 0x123   : > { %v1806_v36 = vpop.permute.xlu1 %1805 }
 0x124   : > { %v9921_v12 = vpop.f32.mrf.mxu0  ;;  %v2090_v20 = vsel %vm2064_vm1, %v2049_v40, %v1806_v36 }
 0x125   : > { %v9970_v17 = vsel %vm2105_vm4, %v2090_v20, %v1967_v2 }
 0x126   : > { %8335 = vmatmul.msk.bf16.gmra.mxu3 %vm2149_vm14, %v9913_v43  ;;  %8319 = vmatmul.msk.bf16.gmra.mxu2 %vm2149_vm14, %v9913_v43 }
 0x127   : > { %8287 = vmatmul.msk.bf16.gmra.mxu0 %vm2149_vm14, %v9913_v43  ;;  %v1206_v21 = vpop.permute.xlu0 %1205 }
 0x128   : > { %v2010_v16 = vsel %vm1982_vm12, %v9669_v5, %v1206_v21 }
 0x129   : > { %v9926_v50 = vpop.permute.xlu2 %1368 }
 0x12b   : > { %v1367_v42 = vpop.permute.xlu1 %1366 }
 0x12c   : > { %v9928_v4 = vpop.f32.mrf.mxu0  ;;  %v2051_v7 = vsel %vm2023_vm15, %v2010_v16, %v1367_v42  ;;  %v9995_v5 = vpop.f32.mrf.mxu2 }
 0x12d   : > { %v2092_v34 = vsel %vm2064_vm1, %v2051_v7, %v1808_v61 }
 0x12f   : > { %v1969_v59 = vpop.permute.xlu0 %1968 }
 0x131   : > { %v1210_v47 = vpop.permute.xlu2 %1209 }
 0x133   : > { %v1208_v58 = vpop.permute.xlu1 %1207 }
 0x134   : > { %v9945_v28 = vpop.f32.mrf.mxu0  ;;  %v2012_v61 = vsel %vm1982_vm12, %v9692_v25, %v1208_v58 }
 0x135   : > { %v2053_v48 = vsel %vm2023_vm15, %v2012_v61, %v9926_v50 }
 0x136   : > { %8336 = vmatmul.msk.bf16.gmra.mxu3 %vm2149_vm14, %v9931_v23  ;;  %8320 = vmatmul.msk.bf16.gmra.mxu2 %vm2149_vm14, %v9931_v23 }
 0x137   : > { %8288 = vmatmul.msk.bf16.gmra.mxu0 %vm2149_vm14, %v9931_v23  ;;  %v1810_v8 = vpop.permute.xlu0 %1809 }
 0x138   : > { %v2094_v45 = vsel %vm2064_vm1, %v2053_v48, %v1810_v8 }
 0x139   : > { %v1973_v6 = vpop.permute.xlu2 %1972 }
 0x13b   : > { %v1971_v51 = vpop.permute.xlu1 %1970 }
 0x13c   : > { %v10017_v55 = vsel %vm2105_vm4, %v2094_v45, %v1971_v51 }
 0x13f   : > { %v1371_v54 = vpop.permute.xlu0 %1370 }
 0x141   : > { %v1814_v62 = vpop.permute.xlu2 %1813 }
 0x143   : > { %v1812_v10 = vpop.permute.xlu1 %1811 }
 0x144   : > { %v9952_v44 = vpop.f32.mrf.mxu0 }
 0x146   : > { %8337 = vmatmul.msk.bf16.gmra.mxu3 %vm2149_vm14, %v9950_v41  ;;  %8321 = vmatmul.msk.bf16.gmra.mxu2 %vm2149_vm14, %v9950_v41 }
 0x147   : > { %8289 = vmatmul.msk.bf16.gmra.mxu0 %vm2149_vm14, %v9950_v41  ;;  %v1212_v14 = vpop.permute.xlu0 %1211 }
 0x148   : > { %v2016_v15 = vsel %vm1982_vm12, %v9791_v26, %v1212_v14 }
 0x149   : > { %v1341_v27 = vpop.permute.xlu2 %1340  ;;  %v10025_v25 = vpop.f32.mrf.mxu3 }
 0x14b   : > { %v1373_v1 = vpop.permute.xlu1 %1372 }
 0x14c   : > { %v9962_v13 = vpop.f32.mrf.mxu0  ;;  %v2057_v19 = vsel %vm2023_vm15, %v2016_v15, %v1373_v1 }
 0x14d   : > { %v2098_v40 = vsel %vm2064_vm1, %v2057_v19, %v1814_v62 }
 0x14f   : > { %v1975_v53 = vpop.permute.xlu0 %1974 }
 0x151   : > { %v10039_v8 = vpop.f32.mrf.mxu3 }
 0x153   : > { %v1180_v60 = vpop.permute.xlu1 %1179 }
 0x154   : > { %v9972_v29 = vpop.f32.mrf.mxu0  ;;  %v1984_v26 = vsel %vm1982_vm12, %v9781_v63, %v1180_v60  ;;  %v9993_v63 = vsel %vm2105_vm4, %v2092_v34, %v1969_v59  ;;  %v10011_v59 = vpop.f32.mrf.mxu2  ;;  %v10066_v60 = vsel %vm2105_vm4, %v2098_v40, %v1975_v53 }
 0x155   : > { %v2025_v2 = vsel %vm2023_vm15, %v1984_v26, %v1341_v27 }
 0x156   : > { %8338 = vmatmul.msk.bf16.gmra.mxu3 %vm2149_vm14, %v9970_v17  ;;  %8322 = vmatmul.msk.bf16.gmra.mxu2 %vm2149_vm14, %v9970_v17 }
 0x157   : > { %8290 = vmatmul.msk.bf16.gmra.mxu0 %vm2149_vm14, %v9970_v17  ;;  %v1782_v36 = vpop.permute.xlu0 %1781 }
 0x158   : > { %v2066_v32 = vsel %vm2064_vm1, %v2025_v2, %v1782_v36 }
 0x15b   : > { %v1943_v31 = vpop.permute.xlu1 %1942 }
 0x15c   : > { %v9985_v3 = vpop.f32.mrf.mxu0  ;;  %v2107_v38 = vsel %vm2105_vm4, %v2066_v32, %v1943_v31  ;;  %v10029_v50 = vpop.f32.mrf.mxu2 }
 0x15d   : > { %8295 = vmatmul.msk.bf16.vlgmr.msra.gmra.mxu1 %vm2149_vm14, %v2107_v38 }
 0x164   : > { %v9997_v21 = vpop.f32.mrf.mxu0  ;;  %v10041_v57 = vpop.f32.mrf.mxu2 }
 0x166   : > { %8339 = vmatmul.msk.bf16.gmra.mxu3 %vm2149_vm14, %v9993_v63  ;;  %8323 = vmatmul.msk.bf16.gmra.mxu2 %vm2149_vm14, %v9993_v63 }
 0x167   : > { %8291 = vmatmul.msk.bf16.gmra.mxu0 %vm2149_vm14, %v9993_v63 }
 0x16c   : > { %v10007_v42 = vpop.f32.mrf.mxu0 }
 0x16d   : > { %8296 = vmatmul.msk.bf16.gmra.mxu1 %vm2149_vm14, %v9612_v39  ;;  %v2014_v39 = vsel %vm1982_vm12, %v9710_v46, %v1210_v47  ;;  %v10054_v46 = vpop.f32.mrf.mxu3 }
 0x16e   : > { %v2055_v51 = vsel %vm2023_vm15, %v2014_v39, %v1371_v54 }
 0x16f   : > { %v2096_v37 = vsel %vm2064_vm1, %v2055_v51, %v1812_v10  ;;  %v412_v10 = vld [vmem:[%s9156_s10 + $0xf0] sm:$0xff] }
 0x170   : > { %v10044_v49 = vsel %vm2105_vm4, %v2096_v37, %v1973_v6  ;;  %v413_v6 = vld [vmem:[%s9156_s10 + $0xf8] sm:$0xff]  ;;  %v444_v54 = vpack.c.bf16 %v412_v10, %v412_v10 }
 0x171   : > { %v445_v14 = vpack.c.bf16 %v413_v6, %v413_v6 }
 0x172   : > { %v556_v15 = vrot.slane %v444_v54, 7 }
 0x173   : > { %v558_v20 = vrot.slane %v445_v14, 7 }
 0x174   : > { %v10019_v9 = vpop.f32.mrf.mxu0  ;;  %v557_v26 = vrot.slane %v556_v15, 4  ;;  %655 = vst.msk [vmem:[#allocation2 + $0xcc] sm:$0xe] %vm609_vm7, %v556_v15  ;;  %vm3434_vm7 = vcmask 1045509  }
 0x175   : > { %v560_v16 = vrot.slane %v558_v20, 4  ;;  %v10073_v31 = vpop.f32.mrf.mxu3 }
 0x176   : > { %8340 = vmatmul.msk.bf16.gmra.mxu3 %vm2149_vm14, %v10017_v55  ;;  %8324 = vmatmul.msk.bf16.gmra.mxu2 %vm2149_vm14, %v10017_v55  ;;  %v559_v2 = vsel %vm9184_vm9, %v557_v26, %v558_v20  ;;  %vm3440_vm9 = vcmask 1047559  }
 0x177   : > { %8292 = vmatmul.msk.bf16.gmra.mxu0 %vm2149_vm14, %v10017_v55  ;;  %656 = vst.msk [vmem:[#allocation2 + $0xd0] sm:$0xf] %vm332_vm0, %v559_v2  ;;  %vm2928_vm0 = vcmask 1041409  }
 0x178   : > { %657 = vst.msk [vmem:[#allocation2 + $0xd4] sm:$0x1] %vm348_vm2, %v560_v16  ;;  %vm2932_vm2 = vcmask 1042434  }
 0x17b   : > { %v735_v19 = vld [vmem:[#allocation2 + $0xcc] sm:$0xe] }
 0x17c   : > { %v10033_v58 = vpop.f32.mrf.mxu0  ;;  %v1256_v7 = vunpack.c.l.b16 %v735_v19 }
 0x17d   : > { %13600 = vst [vmem:[#allocation5_spill] sm:$0xff] %v10033_v58  ;;  %8297 = vmatmul.msk.bf16.gmra.mxu1 %vm2149_vm14, %v9654_v22  ;;  %v10056_v22 = vpop.f32.mrf.mxu2 }
 0x17e   : > { %v10087_v35 = vld [vmem:[#allocation2 + $0xcc] sm:$0xff]  }
 0x17f   : > { %v13399_v53 = vunpack.c.h.b16 %v10087_v35  ;;  %v755_v36 = vld [vmem:[#allocation2 + $0xd4] sm:$0x3] }
 0x180   : > { %v1417_v32 = vunpack.c.l.b16 %v755_v36  ;;  %v715_v38 = vld [vmem:[#allocation2 + $0xd4] sm:$0x1] }
 0x181   : > { %v1276_v34 = vpack.c.b16 %v13399_v53, %v1256_v7  ;;  %v915_v61 = vunpack.c.l.b16 %v715_v38  ;;  %v716_v7 = vld [vmem:[#allocation2 + $0xe0] sm:$0x1]  ;;  %v10106_v38 = vld [vmem:[#allocation2 + $0xd8] sm:$0xff]  }
 0x182   : > { %v10094_v48 = vpack.c.b16 %v1417_v32, %v1417_v32  ;;  %v916_v32 = vunpack.c.l.b16 %v716_v7 }
 0x183   : > { %v1731_v45 = vshrl.u32 %v1276_v34, 16  ;;  %v1734_v39 = vshll.u32 %v1276_v34, 16  ;;  %v935_v51 = vpack.c.b16 %v915_v61, %v915_v61  ;;  %v1331_v37 = vrot.slane %v1276_v34, 1 }
 0x184   : > { %v10046_v1 = vpop.f32.mrf.mxu0  ;;  %v1739_v10 = vshrl.u32 %v10094_v48, 16  ;;  %v1742_v6 = vshll.u32 %v10094_v48, 16  ;;  %v936_v34 = vpack.c.b16 %v916_v32, %v916_v32  ;;  %v1158_v61 = vshll.u32 %v10106_v38, 16 }
 0x185   : > { %v10075_v62 = vpop.f32.mrf.mxu2  ;;  %v1733_v40 = vrot.slane %v1731_v45, 1  ;;  %v1736_v14 = vrot.slane %v1734_v39, 2  ;;  %v1332_v15 = vrot.slane %v935_v51, 1  ;;  %v1151_v7 = vshll.u32 %v935_v51, 16 }
 0x186   : > { %8341 = vmatmul.msk.bf16.gmra.mxu3 %vm2149_vm14, %v10044_v49  ;;  %8325 = vmatmul.msk.bf16.gmra.mxu2 %vm2149_vm14, %v10044_v49  ;;  %v1741_v20 = vrot.slane %v1739_v10, 1  ;;  %v1744_v26 = vrot.slane %v1742_v6, 2  ;;  %v1160_v39 = vrot.slane %v1158_v61, 1  ;;  %v1335_v32 = vrot.slane %v936_v34, 1 }
 0x187   : > { %8293 = vmatmul.msk.bf16.gmra.mxu0 %vm2149_vm14, %v10044_v49  ;;  %v1737_v16 = vor.u32 %v1736_v14, %v1733_v40  ;;  %v1333_v2 = vsel %vm1279_vm10, %v1331_v37, %v1332_v15  ;;  %v1163_v37 = vshll.u32 %v936_v34, 16  ;;  %v736_v40 = vld [vmem:[#allocation2 + $0xd8] sm:$0xe]  ;;  %v9027_v15 = vunpack.c.h.b16 %v10106_v38 }
 0x188   : > { %v1745_v19 = vor.u32 %v1744_v26, %v1741_v20  ;;  %1374 = vrot.lane.b32.xlu0 %v1333_v2, %s9073_s13  ;;  %v1257_v20 = vunpack.c.l.b16 %v736_v40  ;;  %v756_v26 = vld [vmem:[#allocation2 + $0xe0] sm:$0x3] }
 0x189   : > { %v1165_v6 = vrot.slane %v1163_v37, 1  ;;  %v1418_v2 = vunpack.c.l.b16 %v756_v26  ;;  %v1144_v37 = vshrl.u32 %v10087_v35, 16 }
 0x18a   : > { %v1746_v36 = vsel %vm1440_vm8, %v1737_v16, %v1745_v19  ;;  %v776_v16 = vld [vmem:[#allocation2 + $0xd8] sm:$0xc] }
 0x18b   : > { %1815 = vrot.lane.b32.xlu1 %v1746_v36, %s9072_s12  ;;  %v1859_v19 = vunpack.c.l.b16 %v776_v16  ;;  %v1277_v36 = vpack.c.b16 %v9027_v15, %v1257_v20  ;;  %v775_v20 = vld [vmem:[#allocation2 + $0xcc] sm:$0xc] }
 0x18c   : > { %v10058_v47 = vpop.f32.mrf.mxu0  ;;  %v1858_v26 = vunpack.c.l.b16 %v775_v20 }
 0x18d   : > { %8298 = vmatmul.msk.bf16.gmra.mxu1 %vm2149_vm14, %v9756_v33 }
 0x194   : > { %v10069_v27 = vpop.f32.mrf.mxu0 }
 0x196   : > { %8342 = vmatmul.msk.bf16.gmra.mxu3 %vm2149_vm14, %v10066_v60  ;;  %8326 = vmatmul.msk.bf16.gmra.mxu2 %vm2149_vm14, %v10066_v60 }
 0x197   : > { %8294 = vmatmul.msk.bf16.gmra.mxu0 %vm2149_vm14, %v10066_v60 }
 0x19c   : > { %v10085_v33 = vpop.f32.mrf.mxu0 }
 0x19d   : > { %13601 = vst [vmem:[#allocation6_spill] sm:$0xff] %v10085_v33  ;;  %8299 = vmatmul.msk.bf16.gmra.mxu1 %vm2149_vm14, %v9807_v56  ;;  %v1153_v33 = vrot.slane %v1151_v7, 1  ;;  %v1934_v7 = vrot.slane %v10094_v48, 2 }
 0x1a4   : > { %v10098_v54 = vpop.f32.mrf.mxu0 }
 0x1a7   : > { %8346 = vmatmul.msk.bf16.vlgmr.msrb.gmra.mxu0 %vm2149_vm14, %v9807_v56  ;;  %v1156_v56 = vshrl.u32 %v10106_v38, 16 }
 0x1a9   : > { %v1161_v10 = vor.u32 %v1160_v39, %v1156_v56  ;;  %v1438_v56 = vpack.c.b16 %v1418_v2, %v1418_v2  ;;  %v1879_v39 = vpack.c.b16 %v9027_v15, %v1859_v19  ;;  %v13604_v2 = vunpack.c.h.b16 %v10087_v35 }
 0x1ab   : > { %v1166_v14 = vsel %vm938_vm3, %v1161_v10, %v1165_v6  ;;  %v1146_v10 = vshll.u32 %v10087_v35, 16  ;;  %v1334_v6 = vrot.slane %v1277_v36, 1  ;;  %v1936_v0 = vrot.slane %v1879_v39, 2 }
 0x1ac   : > { %v10109_v45 = vpop.f32.mrf.mxu0  ;;  %1215 = vrot.lane.b32.xlu0 %v1166_v14, %s9071_s11  ;;  %v1937_v40 = vrot.slane %v1438_v56, 2  ;;  %v1756_v39 = vshrl.u32 %v1438_v56, 16 }
 0x1ad   : > { %13602 = vst [vmem:[#allocation7_spill] sm:$0xff] %v10109_v45  ;;  %8300 = vmatmul.msk.bf16.gmra.mxu1 %vm2149_vm14, %v9849_v30  ;;  %v1148_v53 = vrot.slane %v1146_v10, 1  ;;  %v1336_v51 = vsel %vm1279_vm10, %v1334_v6, %v1335_v32  ;;  %v1751_v32 = vshll.u32 %v1277_v36, 16 }
 0x1ae   : > { %1376 = vrot.lane.b32.xlu1 %v1336_v51, %s9073_s13  ;;  %v1938_v34 = vsel %vm1881_vm11, %v1936_v0, %v1937_v40  ;;  %v1758_v40 = vrot.slane %v1756_v39, 1 }
 0x1af   : > { %v1149_v14 = vor.u32 %v1148_v53, %v1144_v37  ;;  %v1748_v53 = vshrl.u32 %v1277_v36, 16  ;;  %v1759_v37 = vshll.u32 %v1438_v56, 16  ;;  %v1753_v48 = vrot.slane %v1751_v32, 2 }
 0x1b1   : > { %v1154_v15 = vsel %vm938_vm3, %v1149_v14, %v1153_v33  ;;  %v1750_v6 = vrot.slane %v1748_v53, 1  ;;  %v1761_v51 = vrot.slane %v1759_v37, 2  ;;  %v717_v53 = vld [vmem:[#allocation2 + $0xec] sm:$0x1] }
 0x1b2   : > { %1213 = vrot.lane.b32.xlu2 %v1154_v15, %s9071_s11  ;;  %v917_v39 = vunpack.c.l.b16 %v717_v53 }
 0x1b3   : > { %v1762_v14 = vor.u32 %v1761_v51, %v1758_v40  ;;  %v737_v51 = vld [vmem:[#allocation2 + $0xe4] sm:$0xe] }
 0x1b4   : > { %v10117_v61 = vpop.f32.mrf.mxu0  ;;  %1978 = vrot.lane.b32.xlu0 %v1938_v34, %s9074_s14  ;;  %v1754_v34 = vor.u32 %v1753_v48, %v1750_v6  ;;  %v10185_v37 = vpack.c.b16 %v917_v39, %v917_v39 }
 0x1b6   : > { %v1763_v15 = vsel %vm1440_vm8, %v1754_v34, %v1762_v14  ;;  %v1175_v40 = vshll.u32 %v10185_v37, 16  ;;  %v757_v34 = vld [vmem:[#allocation2 + $0xec] sm:$0x3]  ;;  %v1258_v14 = vunpack.c.l.b16 %v737_v51 }
 0x1b7   : > { %8347 = vmatmul.msk.bf16.gmra.mxu0 %vm2149_vm14, %v9849_v30  ;;  %v1878_v30 = vpack.c.b16 %v13604_v2, %v1858_v26 }
 0x1b9   : > { %v1933_v19 = vrot.slane %v1878_v30, 2 }
 0x1bb   : > { %v1935_v0 = vsel %vm1881_vm11, %v1933_v19, %v1934_v7 }
 0x1bc   : > { %v10129_v16 = vpop.f32.mrf.mxu0  ;;  %1976 = vrot.lane.b32.xlu2 %v1935_v0, %s9074_s14 }
 0x1bd   : > { %13603 = vst [vmem:[#allocation8_spill] sm:$0xff] %v10129_v16  ;;  %8301 = vmatmul.msk.bf16.gmra.mxu1 %vm2149_vm14, %v9873_v11 }
 0x1c4   : > { %v10138_v33 = vpop.f32.mrf.mxu0  ;;  %1817 = vrot.lane.b32.xlu2 %v1763_v15, %s9072_s12 }
 0x1c5   : > { %13605 = vst [vmem:[#allocation9_spill] sm:$0xff] %v10138_v33 }
 0x1c7   : > { %8348 = vmatmul.msk.bf16.gmra.mxu0 %vm2149_vm14, %v9873_v11 }
 0x1cc   : > { %v10142_v10 = vpop.f32.mrf.mxu0 }
 0x1cd   : > { %13606 = vst [vmem:[#allocation10_spill] sm:$0xff] %v10142_v10  ;;  %8302 = vmatmul.msk.bf16.gmra.mxu1 %vm2149_vm14, %v9886_v52 }
 0x1d4   : > { %v10148_v11 = vpop.f32.mrf.mxu0 }
 0x1d7   : > { %8349 = vmatmul.msk.bf16.gmra.mxu0 %vm2149_vm14, %v9886_v52 }
 0x1da   : > { %v10156_v56 = vpop.f32.mrf.mxu1 }
 0x1dc   : > { %v10152_v36 = vpop.f32.mrf.mxu0 }
 0x1dd   : > { %13607 = vst [vmem:[#allocation11_spill] sm:$0xff] %v10152_v36  ;;  %8303 = vmatmul.msk.bf16.gmra.mxu1 %vm2149_vm14, %v9898_v24  ;;  %v1419_v36 = vunpack.c.l.b16 %v757_v34 }
 0x1e2   : > { %v10164_v2 = vpop.f32.mrf.mxu1 }
 0x1e4   : > { %v10158_v20 = vpop.f32.mrf.mxu0 }
 0x1e5   : > { %13608 = vst [vmem:[#allocation12_spill] sm:$0xff] %v10158_v20 }
 0x1e7   : > { %8350 = vmatmul.msk.bf16.gmra.mxu0 %vm2149_vm14, %v9898_v24  ;;  %v10178_v24 = vld [vmem:[#allocation2 + $0xe4] sm:$0xff]  }
 0x1e8   : > { %v857_v0 = vunpack.c.h.b16 %v10178_v24  ;;  %v1168_v6 = vshrl.u32 %v10178_v24, 16 }
 0x1ea   : > { %v10172_v30 = vpop.f32.mrf.mxu1  ;;  %v10192_v16 = vpack.c.b16 %v857_v0, %v1258_v14 }
 0x1ec   : > { %v10162_v26 = vpop.f32.mrf.mxu0 }
 0x1ed   : > { %13609 = vst [vmem:[#allocation13_spill] sm:$0xff] %v10162_v26  ;;  %8304 = vmatmul.msk.bf16.gmra.mxu1 %vm2149_vm14, %v9913_v43  ;;  %v777_v26 = vld [vmem:[#allocation2 + $0xe4] sm:$0xc] }
 0x1f2   : > { %v10180_v7 = vpop.f32.mrf.mxu1 }
 0x1f4   : > { %v10168_v52 = vpop.f32.mrf.mxu0 }
 0x1f7   : > { %8351 = vmatmul.msk.bf16.gmra.mxu0 %vm2149_vm14, %v9913_v43  ;;  %v1170_v43 = vshll.u32 %v10178_v24, 16 }
 0x1f9   : > { %v1172_v48 = vrot.slane %v1170_v43, 1  ;;  %v1765_v43 = vshrl.u32 %v10192_v16, 16 }
 0x1fa   : > { %v10194_v53 = vpop.f32.mrf.mxu1 }
 0x1fb   : > { %v1173_v15 = vor.u32 %v1172_v48, %v1168_v6  ;;  %v1860_v48 = vunpack.c.l.b16 %v777_v26 }
 0x1fc   : > { %v10174_v19 = vpop.f32.mrf.mxu0 }
 0x1fd   : > { %13610 = vst [vmem:[#allocation14_spill] sm:$0xff] %v10174_v19  ;;  %8305 = vmatmul.msk.bf16.gmra.mxu1 %vm2149_vm14, %v9931_v23  ;;  %v1177_v19 = vrot.slane %v1175_v40, 1  ;;  %v1767_v40 = vrot.slane %v1765_v43, 1  ;;  %v1880_v20 = vpack.c.b16 %v857_v0, %v1860_v48  ;;  %v10210_v43 = vpop.f32.mrf.mxu2 }
 0x1ff   : > { %v1178_v58 = vsel %vm938_vm3, %v1173_v15, %v1177_v19  ;;  %v10204_v19 = vpop.f32.mrf.mxu3  ;;  %v1939_v10 = vrot.slane %v1880_v20, 2  ;;  %vm2936_vm3 = vcmask 1043459  }
 0x200   : > { %1217 = vrot.lane.b32.xlu1 %v1178_v58, %s9071_s11  ;;  %s8898_s11 = sshll.u32 %s13981_s28, 5 }
 0x201   : > { %s325_s21 = scalar_lea.vmem %s13395_s7, %s8898_s11 }
 0x202   : > { %v10214_v0 = vpop.f32.mrf.mxu1 }
 0x204   : > { %v10183_v32 = vpop.f32.mrf.mxu0 }
 0x205   : > { %13611 = vst [vmem:[#allocation15_spill] sm:$0xff] %v10183_v32  ;;  %v1768_v32 = vshll.u32 %v10192_v16, 16 }
 0x207   : > { %8352 = vmatmul.msk.bf16.gmra.mxu0 %vm2149_vm14, %v9931_v23  ;;  %v1439_v23 = vpack.c.b16 %v1419_v36, %v1419_v36  ;;  %v1770_v34 = vrot.slane %v1768_v32, 2 }
 0x209   : > { %v1773_v51 = vshrl.u32 %v1439_v23, 16  ;;  %v1776_v6 = vshll.u32 %v1439_v23, 16  ;;  %v1771_v36 = vor.u32 %v1770_v34, %v1767_v40  ;;  %v1940_v58 = vrot.slane %v1439_v23, 2  ;;  %v10220_v23 = vpop.f32.mrf.mxu3 }
 0x20b   : > { %v1775_v14 = vrot.slane %v1773_v51, 1  ;;  %v1941_v26 = vsel %vm1881_vm11, %v1939_v10, %v1940_v58  ;;  %v2293_v10 = vadd.f32 %v10156_v56, %v9909_v18  ;;  %v10238_v18 = vpop.f32.mrf.mxu1  ;;  %vm5150_vm11 = vcmask 125952  }
 0x20c   : > { %v10196_v39 = vpop.f32.mrf.mxu0  ;;  %v1214_v32 = vpop.permute.xlu2 %1213  ;;  %1980 = vrot.lane.b32.xlu1 %v1941_v26, %s9074_s14  ;;  %s9077_s14 = smov 16  }
 0x20d   : > { %13612 = vst [vmem:[#allocation16_spill] sm:$0xff] %v10196_v39  ;;  %8306 = vmatmul.msk.bf16.gmra.mxu1 %vm2149_vm14, %v9950_v41  ;;  %v1778_v39 = vrot.slane %v1776_v6, 2  ;;  %v2018_v20 = vsel %vm1982_vm12, %v10087_v35, %v1214_v32  ;;  %v1816_v6 = vpop.permute.xlu1 %1815  ;;  %v2468_v35 = vadd.f32 %v9995_v5, %v2293_v10  ;;  %v1337_v5 = vrot.slane %v10192_v16, 1 }
 0x20e   : > { %v1338_v32 = vrot.slane %v10185_v37, 1 }
 0x20f   : > { %v1779_v15 = vor.u32 %v1778_v39, %v1775_v14  ;;  %v1375_v39 = vpop.permute.xlu0 %1374  ;;  %v2596_v56 = vadd.f32 %v10025_v25, %v2468_v35 }
 0x210   : > { %v2059_v51 = vsel %vm2023_vm15, %v2018_v20, %v1375_v39 }
 0x211   : > { %v1780_v45 = vsel %vm1440_vm8, %v1771_v36, %v1779_v15  ;;  %v2100_v48 = vsel %vm2064_vm1, %v2059_v51, %v1816_v6  ;;  %v10243_v15 = vpop.f32.mrf.mxu3  ;;  %v1339_v51 = vsel %vm1279_vm10, %v1337_v5, %v1338_v32  ;;  %v2298_v6 = vadd.f32 %v10172_v30, %v9928_v4 }
 0x212   : > { %1819 = vrot.lane.b32.xlu0 %v1780_v45, %s9072_s12  ;;  %1378 = vrot.lane.b32.xlu2 %v1339_v51, %s9073_s13  ;;  %vm3437_vm8 = vcmask 1046534   ;;  %vm3550_vm10 = vcmask 130048   ;;  %s9076_s13 = smov 32  }
 0x213   : > { %v10253_v39 = vpop.f32.mrf.mxu1 }
 0x214   : > { %v10206_v33 = vpop.f32.mrf.mxu0 }
 0x215   : > { %13613 = vst [vmem:[#allocation17_spill] sm:$0xff] %v10206_v33 }
 0x216   : > { %v1977_v40 = vpop.permute.xlu2 %1976 }
 0x217   : > { %8353 = vmatmul.msk.bf16.gmra.mxu0 %vm2149_vm14, %v9950_v41  ;;  %v10229_v34 = vsel %vm2105_vm4, %v2100_v48, %v1977_v40  ;;  %v10231_v41 = vpop.f32.mrf.mxu2 }
 0x218   : > { %8343 = vmatmul.msk.bf16.gmra.mxu3 %vm2149_vm14, %v10229_v34  ;;  %8327 = vmatmul.msk.bf16.gmra.mxu2 %vm2149_vm14, %v10229_v34 }
 0x219   : > { %v10271_v30 = vpop.f32.mrf.mxu3 }
 0x21b   : > { %v10285_v5 = vpop.f32.mrf.mxu1 }
 0x21c   : > { %v10225_v45 = vpop.f32.mrf.mxu0 }
 0x21d   : > { %13614 = vst [vmem:[#allocation18_spill] sm:$0xff] %v10225_v45  ;;  %8307 = vmatmul.msk.bf16.gmra.mxu1 %vm2149_vm14, %v9970_v17 }
 0x21e   : > { %v1216_v36 = vpop.permute.xlu0 %1215  ;;  %v1818_v16 = vpop.permute.xlu2 %1817 }
 0x21f   : > { %v2020_v25 = vsel %vm1982_vm12, %v10106_v38, %v1216_v36  ;;  %v2470_v38 = vadd.f32 %v10029_v50, %v2298_v6  ;;  %v2295_v36 = vadd.f32 %v10164_v2, %v9921_v12  ;;  %v2300_v50 = vadd.f32 %v10180_v7, %v9945_v28 }
 0x220   : > { %v1377_v10 = vpop.permute.xlu1 %1376 }
 0x221   : > { %v2469_v12 = vadd.f32 %v10011_v59, %v2295_v36  ;;  %v2471_v2 = vadd.f32 %v10041_v57, %v2300_v50 }
 0x223   : > { %v2597_v7 = vadd.f32 %v10039_v8, %v2469_v12  ;;  %v2599_v6 = vadd.f32 %v10073_v31, %v2471_v2  ;;  %v2308_v12 = vadd.f32 %v10238_v18, %v9972_v29  ;;  %v2303_v18 = vadd.f32 %v10194_v53, %v9952_v44 }
 0x224   : > { %v2644_v14 = vpop.f32.mrf.mxu0 }
 0x225   : > { %v2724_v58 = vadd.f32 %v2644_v14, %v2596_v56  ;;  %v2472_v45 = vadd.f32 %v10056_v22, %v2303_v18 }
 0x226   : > { %v1979_v35 = vpop.permute.xlu0 %1978 }
 0x227   : > { %v10245_v26 = vmax.f32 %v2724_v58, 0.0  ;;  %8354 = vmatmul.msk.bf16.gmra.mxu0 %vm2149_vm14, %v9970_v17  ;;  %v2061_v17 = vsel %vm2023_vm15, %v2020_v25, %v1377_v10  ;;  %v2598_v58 = vadd.f32 %v10054_v46, %v2470_v38  ;;  %v10301_v46 = vpop.f32.mrf.mxu2 }
 0x228   : > { %v2102_v40 = vsel %vm2064_vm1, %v2061_v17, %v1818_v16 }
 0x229   : > { %13615 = vst [vmem:[#allocation19_spill] sm:$0xff] %v10245_v26  ;;  %v2856_v20 = vpack.c.bf16 %v10245_v26, %v10245_v26  ;;  %v10269_v4 = vsel %vm2105_vm4, %v2102_v40, %v1979_v35  ;;  %v10306_v40 = vpop.f32.mrf.mxu3 }
 0x22a   : > { %8344 = vmatmul.msk.bf16.gmra.mxu3 %vm2149_vm14, %v10269_v4 }
 0x22b   : > { %v2908_v48 = vrot.slane %v2856_v20, 3 }
 0x22c   : > { %v2646_v37 = vpop.f32.mrf.mxu0 }
 0x22d   : > { %v10264_v56 = vsel %vm478_vm5, %v2856_v20, %v2908_v48  ;;  %8308 = vmatmul.msk.bf16.gmra.mxu1 %vm2149_vm14, %v9993_v63  ;;  %v10278_v14 = vsel %vm2928_vm0, %v2856_v20, %v2908_v48  ;;  %v10299_v28 = vsel %vm2932_vm2, %v2856_v20, %v2908_v48  ;;  %v2725_v57 = vadd.f32 %v2646_v37, %v2597_v7 }
 0x22e   : > { %3120 = vst [vmem:[#allocation1] ss:$9 sm:$0xff] %v10264_v56  ;;  %v13402_v32 = vrot.slane %v10278_v14, 1  ;;  %v13401_v17 = vrot.slane %v10299_v28, 2  ;;  %v10319_v8 = vsel %vm2936_vm3, %v2856_v20, %v2908_v48 }
 0x22f   : > { %v10321_v31 = vmax.f32 %v2725_v57, 0.0  ;;  %v10323_v38 = vpop.f32.mrf.mxu2  ;;  %v13400_v37 = vrot.slane %v10319_v8, 3  ;;  %v2474_v57 = vadd.f32 %v10210_v43, %v2308_v12 }
 0x231   : > { %13618 = vst [vmem:[#allocation22_spill] sm:$0xff] %v10321_v31 }
 0x234   : > { %v2649_v25 = vpop.f32.mrf.mxu0 }
 0x235   : > { %v10288_v10 = vld [vmem:[#allocation1] sm:$0xf]  ;;  %v10290_v51 = vadd.f32 %v2649_v25, %v2598_v58  ;;  %v2857_v58 = vpack.c.bf16 %v10321_v31, %v10321_v31  ;;  %v10332_v25 = vpop.f32.mrf.mxu3 }
 0x236   : > { %3124 = vst [vmem:[#allocation1] ss:$9 sm:$0xff] %v13402_v32  ;;  %v2602_v32 = vadd.f32 %v10243_v15, %v2474_v57  ;;  %v2600_v15 = vadd.f32 %v10204_v19, %v2472_v45 }
 0x237   : > { %13616 = vst [vmem:[#allocation20_spill] sm:$0xff] %v10290_v51  ;;  %8355 = vmatmul.msk.bf16.gmra.mxu0 %vm2149_vm14, %v9993_v63  ;;  %v10312_v63 = vpop.f32.mrf.mxu1  ;;  %v2909_v48 = vrot.slane %v2857_v58, 3 }
 0x239   : > { %v10389_v18 = vsel %vm2936_vm3, %v2857_v58, %v2909_v48 }
 0x23a   : > { %13626 = vst [vmem:[#allocation30_spill] sm:$0xff] %v10389_v18 }
 0x23c   : > { %v2651_v16 = vpop.f32.mrf.mxu0 }
 0x23d   : > { %v10308_v59 = vld [vmem:[#allocation1] sm:$0xf]  ;;  %v10310_v35 = vadd.f32 %v2651_v16, %v2599_v6  ;;  %8309 = vmatmul.msk.bf16.gmra.mxu1 %vm2149_vm14, %v10017_v55  ;;  %v10343_v6 = vsel %vm478_vm5, %v2857_v58, %v2909_v48  ;;  %v2413_v16 = vpop.f32.mrf.mxu2 }
 0x23e   : > { %3128 = vst [vmem:[#allocation1] ss:$9 sm:$0xff] %v13401_v17  ;;  %v2310_v17 = vadd.f32 %v10253_v39, %v9985_v3  ;;  %v10373_v3 = vsel %vm2932_vm2, %v2857_v58, %v2909_v48 }
 0x23f   : > { %13617 = vst [vmem:[#allocation21_spill] sm:$0xff] %v10310_v35  ;;  %v2317_v20 = vpop.f32.mrf.mxu1  ;;  %v13406_v22 = vrot.slane %v10373_v3, 2 }
 0x240   : > { %v2475_v33 = vadd.f32 %v10231_v41, %v2310_v17  ;;  %13623 = vst [vmem:[#allocation27_spill] sm:$0xff] %v10373_v3 }
 0x242   : > { %v2603_v39 = vadd.f32 %v10271_v30, %v2475_v33  ;;  %v13407_v33 = vrot.slane %v10389_v18, 3 }
 0x244   : > { %v2654_v36 = vpop.f32.mrf.mxu0 }
 0x245   : > { %v10326_v50 = vld [vmem:[#allocation1] sm:$0xf]  ;;  %v10370_v44 = vpop.f32.mrf.mxu2  ;;  %v2728_v17 = vadd.f32 %v2654_v36, %v2600_v15  ;;  %v2318_v15 = vadd.f32 %v2317_v20, %v10019_v9  ;;  %v2305_v9 = vadd.f32 %v10214_v0, %v9962_v13 }
 0x246   : > { %3132 = vst [vmem:[#allocation1] ss:$9 sm:$0xff] %v13400_v37  ;;  %v10350_v37 = vsel %vm2928_vm0, %v2857_v58, %v2909_v48 }
 0x247   : > { %8356 = vmatmul.msk.bf16.gmra.mxu0 %vm2149_vm14, %v10017_v55  ;;  %v2541_v55 = vpop.f32.mrf.mxu3  ;;  %13619 = vst [vmem:[#allocation23_spill] sm:$0xff] %v10350_v37  ;;  %v10352_v29 = vpop.f32.mrf.mxu1  ;;  %v13405_v31 = vrot.slane %v10350_v37, 1 }
 0x248   : > { %13620 = vst [vmem:[#allocation24_spill] sm:$0xff] %v10352_v29 }
 0x249   : > { %13622 = vst [vmem:[#allocation26_spill] sm:$0xff] %v10370_v44 }
 0x24c   : > { %v10338_v2 = vpop.f32.mrf.mxu0 }
 0x24d   : > { %v10340_v7 = vld [vmem:[#allocation1] sm:$0xf]  ;;  %8310 = vmatmul.msk.bf16.gmra.mxu1 %vm2149_vm14, %v10044_v49  ;;  %v10393_v19 = vpop.f32.mrf.mxu2 }
 0x24e   : > { %3135 = vst [vmem:[#allocation1] ss:$9 sm:$0xff] %v10343_v6 }
 0x24f   : > { %v10375_v53 = vpop.f32.mrf.mxu3 }
 0x250   : > { %13624 = vst [vmem:[#allocation28_spill] sm:$0xff] %v10375_v53 }
 0x254   : > { %v2659_v43 = vpop.f32.mrf.mxu0 }
 0x255   : > { %v10360_v12 = vld [vmem:[#allocation1] sm:$0xf]  ;;  %v10362_v26 = vadd.f32 %v2659_v43, %v2602_v32  ;;  %v10379_v32 = vpop.f32.mrf.mxu1  ;;  %v10391_v43 = vmax.f32 %v2728_v17, 0.0 }
 0x256   : > { %3139 = vst [vmem:[#allocation1] ss:$9 sm:$0xff] %v13405_v31 }
 0x257   : > { %13621 = vst [vmem:[#allocation25_spill] sm:$0xff] %v10362_v26  ;;  %8357 = vmatmul.msk.bf16.gmra.mxu0 %vm2149_vm14, %v10044_v49  ;;  %v10398_v30 = vpop.f32.mrf.mxu3  ;;  %v2860_v36 = vpack.c.bf16 %v10391_v43, %v10391_v43 }
 0x258   : > { %13627 = vst [vmem:[#allocation31_spill] sm:$0xff] %v10391_v43  ;;  %v2478_v43 = vadd.f32 %v2413_v16, %v2318_v15  ;;  %v2473_v16 = vadd.f32 %v10075_v62, %v2305_v9 }
 0x259   : > { %v2910_v48 = vrot.slane %v2860_v36, 3 }
 0x25a   : > { %v2606_v20 = vadd.f32 %v2541_v55, %v2478_v43  ;;  %v2601_v55 = vadd.f32 %v10220_v23, %v2473_v16 }
 0x25b   : > { %v10439_v13 = vsel %vm2932_vm2, %v2860_v36, %v2910_v48 }
 0x25c   : > { %v2661_v57 = vpop.f32.mrf.mxu0  ;;  %13631 = vst [vmem:[#allocation35_spill] sm:$0xff] %v10439_v13 }
 0x25d   : > { %v10382_v41 = vld [vmem:[#allocation1] sm:$0xf]  ;;  %v10384_v49 = vadd.f32 %v2661_v57, %v2603_v39  ;;  %v10406_v58 = vpop.f32.mrf.mxu1  ;;  %v10411_v39 = vpop.f32.mrf.mxu2 }
 0x25e   : > { %3143 = vst [vmem:[#allocation1] ss:$9 sm:$0xff] %v13406_v22  ;;  %v10418_v22 = vsel %vm478_vm5, %v2860_v36, %v2910_v48 }
 0x25f   : > { %13625 = vst [vmem:[#allocation29_spill] sm:$0xff] %v10384_v49 }
 0x260   : > { %13628 = vst [vmem:[#allocation32_spill] sm:$0xff] %v10418_v22 }
 0x264   : > { %v10396_v45 = vpop.f32.mrf.mxu0 }
 0x265   : > { %v10400_v31 = vld [vmem:[#allocation1] sm:$0xf]  ;;  %v2327_v53 = vpop.f32.mrf.mxu1  ;;  %v2423_v35 = vpop.f32.mrf.mxu2 }
 0x266   : > { %3147 = vst [vmem:[#allocation1] ss:$9 sm:$0xff] %v13407_v33  ;;  %v10421_v33 = vpop.f32.mrf.mxu3 }
 0x267   : > { %8358 = vmatmul.msk.bf16.gmra.mxu0 %vm2149_vm14, %v10066_v60  ;;  %v10424_v60 = vsel %vm2928_vm0, %v2860_v36, %v2910_v48 }
 0x268   : > { %13629 = vst [vmem:[#allocation33_spill] sm:$0xff] %v10424_v60  ;;  %v13409_v44 = vrot.slane %v10424_v60, 1  ;;  %v2313_v60 = vadd.f32 %v10285_v5, %v9997_v21 }
 0x26c   : > { %v10413_v57 = vpop.f32.mrf.mxu0 }
 0x26d   : > { %v10415_v17 = vld [vmem:[#allocation1] sm:$0xf]  ;;  %v10441_v0 = vpop.f32.mrf.mxu1  ;;  %v10452_v62 = vpop.f32.mrf.mxu2 }
 0x26e   : > { %3150 = vst [vmem:[#allocation1] ss:$9 sm:$0xff] %v10418_v22  ;;  %v2551_v15 = vpop.f32.mrf.mxu3 }
 0x26f   : > { %13632 = vst [vmem:[#allocation36_spill] sm:$0xff] %v10441_v0 }
 0x270   : > { %13634 = vst [vmem:[#allocation38_spill] sm:$0xff] %v10452_v62 }
 0x274   : > { %v2669_v29 = vpop.f32.mrf.mxu0 }
 0x275   : > { %v10429_v49 = vld [vmem:[#allocation1] sm:$0xf]  ;;  %v10431_v26 = vadd.f32 %v2669_v29, %v2606_v20  ;;  %v13410_v29 = vrot.slane %v10439_v13, 2  ;;  %v10462_v16 = vpop.f32.mrf.mxu1 }
 0x276   : > { %3154 = vst [vmem:[#allocation1] ss:$9 sm:$0xff] %v13409_v44  ;;  %v2729_v44 = vadd.f32 %v10338_v2, %v2601_v55  ;;  %v10459_v0 = vpop.f32.mrf.mxu3  ;;  %v2328_v55 = vadd.f32 %v2327_v53, %v10069_v27 }
 0x277   : > { %13630 = vst [vmem:[#allocation34_spill] sm:$0xff] %v10431_v26  ;;  %8359 = vmatmul.msk.bf16.gmra.mxu0 %vm2149_vm14, %v10229_v34  ;;  %v10455_v34 = vsel %vm2936_vm3, %v2860_v36, %v2910_v48  ;;  %v10474_v48 = vpop.f32.mrf.mxu2 }
 0x278   : > { %13635 = vst [vmem:[#allocation39_spill] sm:$0xff] %v10455_v34  ;;  %v10457_v9 = vmax.f32 %v2729_v44, 0.0  ;;  %v13412_v23 = vrot.slane %v10455_v34, 3  ;;  %v1218_v44 = vpop.permute.xlu1 %1217  ;;  %v2482_v53 = vadd.f32 %v2423_v35, %v2328_v55 }
 0x279   : > { %13637 = vst [vmem:[#allocation41_spill] sm:$0xff] %v10459_v0  ;;  %v1379_v0 = vpop.permute.xlu2 %1378 }
 0x27a   : > { %13636 = vst [vmem:[#allocation40_spill] sm:$0xff] %v10457_v9  ;;  %v2861_v2 = vpack.c.bf16 %v10457_v9, %v10457_v9  ;;  %v2610_v22 = vadd.f32 %v2551_v15, %v2482_v53 }
 0x27c   : > { %v10445_v43 = vpop.f32.mrf.mxu0  ;;  %v2911_v36 = vrot.slane %v2861_v2, 3 }
 0x27d   : > { %13633 = vst [vmem:[#allocation37_spill] sm:$0xff] %v10445_v43  ;;  %v10447_v20 = vld [vmem:[#allocation1] sm:$0xf] }
 0x27e   : > { %3158 = vst [vmem:[#allocation1] ss:$9 sm:$0xff] %v13410_v29  ;;  %v2022_v29 = vsel %vm1982_vm12, %v10178_v24, %v1218_v44  ;;  %v10481_v51 = vpop.f32.mrf.mxu3  ;;  %v10493_v24 = vsel %vm2928_vm0, %v2861_v2, %v2911_v36  ;;  %v10511_v5 = vsel %vm2932_vm2, %v2861_v2, %v2911_v36  ;;  %vm5152_vm12 = vcmask 123904  }
 0x27f   : > { %v2063_v34 = vsel %vm2023_vm15, %v2022_v29, %v1379_v0  ;;  %v10498_v18 = vpop.f32.mrf.mxu2  ;;  %13640 = vst [vmem:[#allocation44_spill] sm:$0xff] %v10511_v5  ;;  %vm5162_vm15 = vcmask 122880  }
 0x280   : > { %v1981_v13 = vpop.permute.xlu1 %1980 }
 0x284   : > { %v10464_v43 = vpop.f32.mrf.mxu0  ;;  %v1820_v27 = vpop.permute.xlu0 %1819 }
 0x285   : > { %v10466_v26 = vld [vmem:[#allocation1] sm:$0xf]  ;;  %v2104_v44 = vsel %vm2064_vm1, %v2063_v34, %v1820_v27  ;;  %v2476_v34 = vadd.f32 %v10301_v46, %v2313_v60  ;;  %vm5171_vm1 = vcmask 123905  }
 0x286   : > { %3162 = vst [vmem:[#allocation1] ss:$9 sm:$0xff] %v13412_v23  ;;  %v10486_v23 = vsel %vm478_vm5, %v2861_v2, %v2911_v36  ;;  %v2145_v37 = vsel %vm2105_vm4, %v2104_v44, %v1981_v13  ;;  %v10506_v35 = vpop.f32.mrf.mxu3  ;;  %v13421_v13 = vrot.slane %v10511_v5, 2  ;;  %v3360_v44 = vunpack.c.l.b16 %v10288_v10 }
 0x287   : > { %8360 = vmatmul.msk.bf16.gmra.mxu0 %vm2149_vm14, %v10269_v4  ;;  %13638 = vst [vmem:[#allocation42_spill] sm:$0xff] %v10486_v23  ;;  %v10489_v4 = vpop.f32.mrf.mxu1  ;;  %v2604_v15 = vadd.f32 %v10306_v40, %v2476_v34  ;;  %v2433_v27 = vpop.f32.mrf.mxu2  ;;  %v8902_v40 = vld [vmem:[%s13390_s2 + $0x8] sm:$0xff]  ;;  %v3370_v10 = vunpack.c.l.b16 %v10466_v26  ;;  %v3369_v26 = vunpack.c.l.b16 %v10447_v20  ;;  %vm5228_vm4 = vcmask 125953  }
 0x288   : > { %3570 = vmatpush.bf16.msrb.mxu1 %v8902_v40 }
 0x28c   : > { %v10479_v62 = vpop.f32.mrf.mxu0 }
 0x28d   : > { %v10483_v9 = vld [vmem:[#allocation1] sm:$0xf] }
 0x28e   : > { %3165 = vst [vmem:[#allocation1] ss:$9 sm:$0xff] %v10486_v23  ;;  %v13422_v23 = vrot.slane %v10493_v24, 1  ;;  %v10520_v46 = vpop.f32.mrf.mxu3  ;;  %v3371_v40 = vunpack.c.l.b16 %v10483_v9 }
 0x28f   : > { %v2337_v21 = vpop.f32.mrf.mxu1 }
 0x294   : > { %v2679_v3 = vpop.f32.mrf.mxu0 }
 0x295   : > { %v3166_v0 = vld [vmem:[#allocation1] sm:$0xf]  ;;  %v10502_v29 = vadd.f32 %v2679_v3, %v2610_v22  ;;  %v2732_v22 = vadd.f32 %v10396_v45, %v2604_v15  ;;  %v3362_v45 = vunpack.c.l.b16 %v10326_v50  ;;  %v3424_v50 = vrot.slane %v3360_v44, 1 }
 0x296   : > { %3169 = vst [vmem:[#allocation1] ss:$9 sm:$0xff] %v13422_v23 }
 0x297   : > { %13639 = vst [vmem:[#allocation43_spill] sm:$0xff] %v10502_v29  ;;  %8361 = vmatmul.msk.bf16.gmra.mxu0 %vm2149_vm14, %v2145_v37  ;;  %v10523_v37 = vsel %vm2936_vm3, %v2861_v2, %v2911_v36  ;;  %v10525_v60 = vmax.f32 %v2732_v22, 0.0  ;;  %v10527_v53 = vpop.f32.mrf.mxu1  ;;  %v3361_v2 = vunpack.c.l.b16 %v10308_v59  ;;  %v3363_v36 = vunpack.c.l.b16 %v10340_v7 }
 0x298   : > { %13642 = vst [vmem:[#allocation46_spill] sm:$0xff] %v10523_v37  ;;  %v13425_v34 = vrot.slane %v10523_v37, 3  ;;  %v3426_v23 = vrot.slane %v3362_v45, 7  ;;  %v3364_v59 = vunpack.c.l.b16 %v10360_v12  ;;  %v3372_v7 = vunpack.c.l.b16 %v3166_v0  ;;  %v10559_v37 = vpop.f32.mrf.mxu3 }
 0x299   : > { %13643 = vst [vmem:[#allocation47_spill] sm:$0xff] %v10525_v60  ;;  %v3425_v29 = vsel %vm2928_vm0, %v3361_v2, %v3424_v50  ;;  %v2338_v12 = vadd.f32 %v2337_v21, %v10117_v61  ;;  %v3367_v0 = vunpack.c.l.b16 %v10415_v17  ;;  %vm5809_vm14 = vcmask 261120  }
 0x29a   : > { %13644 = vst [vmem:[#allocation48_spill] sm:$0xff] %v10527_v53  ;;  %v3368_v53 = vunpack.c.l.b16 %v10429_v49  ;;  %v3366_v49 = vunpack.c.l.b16 %v10400_v31  ;;  %v3427_v9 = vsel %vm2932_vm2, %v3426_v23, %v3425_v29  ;;  %v3448_v31 = vrot.slane %v3372_v7, 5 }
 0x29b   : > { %13646 = vst [vmem:[#allocation50_spill] sm:$0xff] %v10559_v37  ;;  %v2325_v37 = vadd.f32 %v10406_v58, %v10058_v47 }
 0x29c   : > { %v10515_v55 = vpop.f32.mrf.mxu0  ;;  %v3442_v2 = vrot.slane %v3368_v53, 1  ;;  %v3436_v53 = vrot.slane %v3366_v49, 3 }
 0x29d   : > { %13641 = vst [vmem:[#allocation45_spill] sm:$0xff] %v10515_v55  ;;  %v3170_v3 = vld [vmem:[#allocation1] sm:$0xf]  ;;  %v10548_v55 = vpop.f32.mrf.mxu2 }
 0x29e   : > { %3173 = vst [vmem:[#allocation1] ss:$9 sm:$0xff] %v13421_v13  ;;  %v10541_v13 = vpack.c.bf16 %v10525_v60, %v10525_v60  ;;  %v3428_v60 = vrot.slane %v3363_v36, 6  ;;  %v3373_v44 = vunpack.c.l.b16 %v3170_v3  ;;  %v3446_v36 = vrot.slane %v3371_v40, 6 }
 0x29f   : > { %13645 = vst [vmem:[#allocation49_spill] sm:$0xff] %v10548_v55  ;;  %v3444_v55 = vrot.slane %v3370_v10, 7  ;;  %v10563_v50 = vpop.f32.mrf.mxu1  ;;  %v3430_v3 = vrot.slane %v3364_v59, 5  ;;  %v3443_v17 = vsel %vm2928_vm0, %v3369_v26, %v3442_v2  ;;  %v2486_v40 = vadd.f32 %v2433_v27, %v2338_v12 }
 0x2a0   : > { %v10553_v5 = vrot.slane %v10541_v13, 3  ;;  %v3429_v20 = vsel %vm2936_vm3, %v3428_v60, %v3427_v9  ;;  %v3450_v29 = vrot.slane %v3373_v44, 4  ;;  %v3439_v59 = vrot.slane %v3367_v0, 2 }
 0x2a1   : > { %v3445_v10 = vsel %vm2932_vm2, %v3444_v55, %v3443_v17  ;;  %v3432_v9 = vsel %vm479_vm6, %v3430_v3, %v3429_v20  ;;  %v2614_v2 = vadd.f32 %v10520_v46, %v2486_v40 }
 0x2a2   : > { %v10571_v23 = vsel %vm478_vm5, %v10541_v13, %v10553_v5  ;;  %v3447_v7 = vsel %vm2936_vm3, %v3446_v36, %v3445_v10  ;;  %v10582_v26 = vsel %vm2928_vm0, %v10541_v13, %v10553_v5 }
 0x2a3   : > { %v13429_v3 = vrot.slane %v10582_v26, 1 }
 0x2a4   : > { %v10535_v15 = vpop.f32.mrf.mxu0 }
 0x2a5   : > { %v3174_v22 = vld [vmem:[#allocation1] sm:$0xf]  ;;  %v10586_v27 = vpop.f32.mrf.mxu2 }
 0x2a6   : > { %3177 = vst [vmem:[#allocation1] ss:$9 sm:$0xff] %v13425_v34  ;;  %v3365_v34 = vunpack.c.l.b16 %v10382_v41  ;;  %v3374_v45 = vunpack.c.l.b16 %v3174_v22 }
 0x2a8   : > { %v3433_v61 = vrot.slane %v3365_v34, 4  ;;  %v3452_v60 = vrot.slane %v3374_v45, 3  ;;  %v3449_v34 = vsel %vm479_vm6, %v3448_v31, %v3447_v7  ;;  %v2315_v45 = vadd.f32 %v10312_v63, %v10007_v42  ;;  %v10604_v63 = vpop.f32.mrf.mxu1 }
 0x2a9   : > { %v3451_v55 = vsel %vm3434_vm7, %v3450_v29, %v3449_v34  ;;  %v10611_v29 = vsel %vm2932_vm2, %v10541_v13, %v10553_v5 }
 0x2aa   : > { %v3435_v44 = vsel %vm3434_vm7, %v3433_v61, %v3432_v9  ;;  %v3453_v0 = vsel %vm3437_vm8, %v3452_v60, %v3451_v55  ;;  %v10596_v61 = vpop.f32.mrf.mxu3  ;;  %v2477_v46 = vadd.f32 %v10323_v38, %v2315_v45  ;;  %v13428_v10 = vrot.slane %v10611_v29, 2 }
 0x2ab   : > { %v3438_v12 = vsel %vm3437_vm8, %v3436_v53, %v3435_v44 }
 0x2ac   : > { %v10565_v41 = vpop.f32.mrf.mxu0  ;;  %v3441_v36 = vsel %vm3440_vm9, %v3439_v59, %v3438_v12 }
 0x2ad   : > { %v3178_v22 = vld [vmem:[#allocation1] sm:$0xf]  ;;  %v10614_v53 = vpop.f32.mrf.mxu2 }
 0x2ae   : > { %3180 = vst [vmem:[#allocation1] ss:$9 sm:$0xff] %v10571_v23  ;;  %v3375_v21 = vunpack.c.l.b16 %v3178_v22 }
 0x2b0   : > { %v3454_v49 = vrot.slane %v3375_v21, 2  ;;  %v2605_v21 = vadd.f32 %v10332_v25, %v2477_v46  ;;  %v2347_v7 = vpop.f32.mrf.mxu1  ;;  %v10629_v25 = vsel %vm2936_vm3, %v10541_v13, %v10553_v5 }
 0x2b1   : > { %v13427_v34 = vrot.slane %v10629_v25, 3  ;;  %v2348_v5 = vadd.f32 %v2347_v7, %v10148_v11  ;;  %v2323_v11 = vadd.f32 %v10379_v32, %v10046_v1 }
 0x2b2   : > { %v3455_v20 = vsel %vm3440_vm9, %v3454_v49, %v3453_v0  ;;  %v2733_v59 = vadd.f32 %v10413_v57, %v2605_v21  ;;  %v10624_v38 = vpop.f32.mrf.mxu3 }
 0x2b3   : > { %v3540_v22 = vpack.c.b16 %v3455_v20, %v3441_v36 }
 0x2b4   : > { %v2689_v31 = vpop.f32.mrf.mxu0  ;;  %v10631_v9 = vmax.f32 %v2733_v59, 0.0 }
 0x2b5   : > { %v10598_v17 = vld [vmem:[#allocation1] sm:$0xf]  ;;  %v10600_v42 = vadd.f32 %v2689_v31, %v2614_v2  ;;  %8366 = vmatmul.msk.bf16.vlgmr.msrb.gmra.mxu1 %vm3550_vm10, %v3540_v22  ;;  %v2443_v49 = vpop.f32.mrf.mxu2 }
 0x2b6   : > { %3184 = vst [vmem:[#allocation1] ss:$9 sm:$0xff] %v13429_v3  ;;  %v2865_v57 = vpack.c.bf16 %v10631_v9, %v10631_v9  ;;  %v2490_v20 = vadd.f32 %v2443_v49, %v2348_v5  ;;  %v2480_v49 = vadd.f32 %v10393_v19, %v2323_v11 }
 0x2b7   : > { %13647 = vst [vmem:[#allocation51_spill] sm:$0xff] %v10600_v42 }
 0x2b8   : > { %13649 = vst [vmem:[#allocation53_spill] sm:$0xff] %v10631_v9  ;;  %v2913_v12 = vrot.slane %v2865_v57, 3  ;;  %v10642_v0 = vpop.f32.mrf.mxu1  ;;  %v2608_v1 = vadd.f32 %v10398_v30, %v2480_v49 }
 0x2b9   : > { %13650 = vst [vmem:[#allocation54_spill] sm:$0xff] %v10642_v0 }
 0x2ba   : > { %v2571_v45 = vpop.f32.mrf.mxu3  ;;  %v10650_v36 = vsel %vm478_vm5, %v2865_v57, %v2913_v12  ;;  %v10656_v22 = vsel %vm2928_vm0, %v2865_v57, %v2913_v12  ;;  %v10673_v5 = vsel %vm2932_vm2, %v2865_v57, %v2913_v12  ;;  %v10691_v11 = vsel %vm2936_vm3, %v2865_v57, %v2913_v12 }
 0x2bb   : > { %13652 = vst [vmem:[#allocation56_spill] sm:$0xff] %v10656_v22  ;;  %v2618_v21 = vadd.f32 %v2571_v45, %v2490_v20  ;;  %v13431_v59 = vrot.slane %v10656_v22, 1  ;;  %v13432_v32 = vrot.slane %v10673_v5, 2  ;;  %v13434_v49 = vrot.slane %v10691_v11, 3 }
 0x2bc   : > { %v10617_v60 = vpop.f32.mrf.mxu0  ;;  %13655 = vst [vmem:[#allocation59_spill] sm:$0xff] %v10673_v5 }
 0x2bd   : > { %13648 = vst [vmem:[#allocation52_spill] sm:$0xff] %v10617_v60  ;;  %v10619_v40 = vld [vmem:[#allocation1] sm:$0xf]  ;;  %v10653_v31 = vpop.f32.mrf.mxu2 }
 0x2be   : > { %3188 = vst [vmem:[#allocation1] ss:$9 sm:$0xff] %v13428_v10 }
 0x2bf   : > { %13651 = vst [vmem:[#allocation55_spill] sm:$0xff] %v10653_v31 }
 0x2c0   : > { %v10663_v7 = vpop.f32.mrf.mxu1  ;;  %13657 = vst [vmem:[#allocation61_spill] sm:$0xff] %v10691_v11 }
 0x2c2   : > { %v10658_v46 = vpop.f32.mrf.mxu3 }
 0x2c3   : > { %13653 = vst [vmem:[#allocation57_spill] sm:$0xff] %v10658_v46 }
 0x2c4   : > { %v10634_v44 = vpop.f32.mrf.mxu0 }
 0x2c5   : > { %v10636_v55 = vld [vmem:[#allocation1] sm:$0xf]  ;;  %v10675_v9 = vpop.f32.mrf.mxu2 }
 0x2c6   : > { %3192 = vst [vmem:[#allocation1] ss:$9 sm:$0xff] %v13427_v34 }
 0x2c8   : > { %v10688_v19 = vpop.f32.mrf.mxu1 }
 0x2cc   : > { %v10645_v13 = vpop.f32.mrf.mxu0 }
 0x2cd   : > { %v10647_v2 = vld [vmem:[#allocation1] sm:$0xf]  ;;  %v10695_v30 = vpop.f32.mrf.mxu2 }
 0x2ce   : > { %3195 = vst [vmem:[#allocation1] ss:$9 sm:$0xff] %v10650_v36 }
 0x2d0   : > { %v2357_v57 = vpop.f32.mrf.mxu1 }
 0x2d4   : > { %v2699_v34 = vpop.f32.mrf.mxu0 }
 0x2d5   : > { %v10665_v10 = vld [vmem:[#allocation1] sm:$0xf]  ;;  %v10667_v3 = vadd.f32 %v2699_v34, %v2618_v21  ;;  %v2736_v34 = vadd.f32 %v10464_v43, %v2608_v1  ;;  %v10684_v21 = vpop.f32.mrf.mxu3 }
 0x2d6   : > { %3199 = vst [vmem:[#allocation1] ss:$9 sm:$0xff] %v13431_v59 }
 0x2d7   : > { %13654 = vst [vmem:[#allocation58_spill] sm:$0xff] %v10667_v3  ;;  %v10693_v59 = vmax.f32 %v2736_v34, 0.0  ;;  %v2358_v34 = vadd.f32 %v2357_v57, %v10168_v52  ;;  %v2453_v3 = vpop.f32.mrf.mxu2 }
 0x2d9   : > { %13658 = vst [vmem:[#allocation62_spill] sm:$0xff] %v10693_v59  ;;  %v2868_v43 = vpack.c.bf16 %v10693_v59, %v10693_v59  ;;  %v2494_v59 = vadd.f32 %v2453_v3, %v2358_v34 }
 0x2db   : > { %v2914_v12 = vrot.slane %v2868_v43, 3 }
 0x2dc   : > { %v10679_v45 = vpop.f32.mrf.mxu0 }
 0x2dd   : > { %13656 = vst [vmem:[#allocation60_spill] sm:$0xff] %v10679_v45  ;;  %v10681_v20 = vld [vmem:[#allocation1] sm:$0xf]  ;;  %v10706_v1 = vpop.f32.mrf.mxu3  ;;  %v10714_v0 = vsel %vm478_vm5, %v2868_v43, %v2914_v12  ;;  %v10718_v60 = vsel %vm2928_vm0, %v2868_v43, %v2914_v12  ;;  %v10729_v3 = vsel %vm2932_vm2, %v2868_v43, %v2914_v12 }
 0x2de   : > { %3203 = vst [vmem:[#allocation1] ss:$9 sm:$0xff] %v13432_v32  ;;  %v13441_v52 = vrot.slane %v10718_v60, 1  ;;  %v13440_v22 = vrot.slane %v10729_v3, 2 }
 0x2df   : > { %13659 = vst [vmem:[#allocation63_spill] sm:$0xff] %v10714_v0 }
 0x2e0   : > { %13661 = vst [vmem:[#allocation65_spill] sm:$0xff] %v10729_v3 }
 0x2e4   : > { %v10698_v45 = vpop.f32.mrf.mxu0 }
 0x2e5   : > { %v10700_v46 = vld [vmem:[#allocation1] sm:$0xf] }
 0x2e6   : > { %3207 = vst [vmem:[#allocation1] ss:$9 sm:$0xff] %v13434_v49  ;;  %v2581_v49 = vpop.f32.mrf.mxu3 }
 0x2e7   : > { %v2622_v42 = vadd.f32 %v2581_v49, %v2494_v59 }
 0x2ec   : > { %v10709_v32 = vpop.f32.mrf.mxu0 }
 0x2ed   : > { %v10711_v31 = vld [vmem:[#allocation1] sm:$0xf] }
 0x2ee   : > { %3210 = vst [vmem:[#allocation1] ss:$9 sm:$0xff] %v10714_v0  ;;  %v2481_v0 = vadd.f32 %v10411_v39, %v2325_v37 }
 0x2f0   : > { %v2609_v34 = vadd.f32 %v10421_v33, %v2481_v0 }
 0x2f2   : > { %v2737_v58 = vadd.f32 %v10479_v62, %v2609_v34 }
 0x2f4   : > { %v2709_v57 = vpop.f32.mrf.mxu0  ;;  %v10739_v59 = vmax.f32 %v2737_v58, 0.0 }
 0x2f5   : > { %v3211_v11 = vld [vmem:[#allocation1] sm:$0xf]  ;;  %v10723_v5 = vadd.f32 %v2709_v57, %v2622_v42  ;;  %v10737_v42 = vsel %vm2936_vm3, %v2868_v43, %v2914_v12  ;;  %v2333_v43 = vadd.f32 %v10462_v16, %v10098_v54 }
 0x2f6   : > { %3214 = vst [vmem:[#allocation1] ss:$9 sm:$0xff] %v13441_v52  ;;  %v13439_v39 = vrot.slane %v10737_v42, 3  ;;  %v2869_v49 = vpack.c.bf16 %v10739_v59, %v10739_v59 }
 0x2f7   : > { %13660 = vst [vmem:[#allocation64_spill] sm:$0xff] %v10723_v5  ;;  %v2484_v34 = vadd.f32 %v10474_v48, %v2333_v43 }
 0x2f8   : > { %13662 = vst [vmem:[#allocation66_spill] sm:$0xff] %v10737_v42  ;;  %v2915_v33 = vrot.slane %v2869_v49, 3 }
 0x2f9   : > { %13663 = vst [vmem:[#allocation67_spill] sm:$0xff] %v10739_v59 }
 0x2fa   : > { %v10747_v62 = vsel %vm478_vm5, %v2869_v49, %v2915_v33  ;;  %v10753_v12 = vsel %vm2928_vm0, %v2869_v49, %v2915_v33  ;;  %v10770_v48 = vsel %vm2936_vm3, %v2869_v49, %v2915_v33 }
 0x2fb   : > { %13664 = vst [vmem:[#allocation68_spill] sm:$0xff] %v10747_v62  ;;  %v13443_v57 = vrot.slane %v10753_v12, 1 }
 0x2fc   : > { %13665 = vst [vmem:[#allocation69_spill] sm:$0xff] %v10753_v12  ;;  %v3381_v12 = vunpack.c.l.b16 %v10681_v20 }
 0x2fd   : > { %v3215_v47 = vld [vmem:[#allocation1] sm:$0xf]  ;;  %13668 = vst [vmem:[#allocation72_spill] sm:$0xff] %v10770_v48 }
 0x2fe   : > { %3218 = vst [vmem:[#allocation1] ss:$9 sm:$0xff] %v13440_v22  ;;  %v2612_v22 = vadd.f32 %v10481_v51, %v2484_v34  ;;  %v13450_v51 = vrot.slane %v10770_v48, 3 }
 0x300   : > { %v2740_v52 = vadd.f32 %v10535_v15, %v2612_v22  ;;  %v3378_v22 = vunpack.c.l.b16 %v10636_v55 }
 0x302   : > { %v10767_v59 = vmax.f32 %v2740_v52, 0.0  ;;  %v3379_v52 = vunpack.c.l.b16 %v10647_v2  ;;  %v3383_v2 = vunpack.c.l.b16 %v10711_v31 }
 0x304   : > { %13667 = vst [vmem:[#allocation71_spill] sm:$0xff] %v10767_v59  ;;  %v10774_v43 = vpack.c.bf16 %v10767_v59, %v10767_v59  ;;  %v3380_v59 = vunpack.c.l.b16 %v10665_v10 }
 0x305   : > { %v3219_v37 = vld [vmem:[#allocation1] sm:$0xf] }
 0x306   : > { %3222 = vst [vmem:[#allocation1] ss:$9 sm:$0xff] %v13439_v39  ;;  %v10760_v39 = vsel %vm2932_vm2, %v2869_v49, %v2915_v33  ;;  %v3386_v34 = vunpack.c.l.b16 %v3219_v37  ;;  %v2916_v33 = vrot.slane %v10774_v43, 3  ;;  %v3382_v37 = vunpack.c.l.b16 %v10700_v46 }
 0x307   : > { %13666 = vst [vmem:[#allocation70_spill] sm:$0xff] %v10760_v39  ;;  %v13444_v54 = vrot.slane %v10760_v39, 2 }
 0x308   : > { %v3472_v42 = vrot.slane %v3386_v34, 7  ;;  %v10790_v10 = vsel %vm478_vm5, %v10774_v43, %v2916_v33 }
 0x30d   : > { %v3223_v0 = vld [vmem:[#allocation1] sm:$0xf] }
 0x30e   : > { %3225 = vst [vmem:[#allocation1] ss:$9 sm:$0xff] %v10747_v62  ;;  %v3387_v49 = vunpack.c.l.b16 %v3223_v0  ;;  %v3385_v62 = vunpack.c.l.b16 %v3215_v47  ;;  %v3464_v47 = vrot.slane %v3381_v12, 4 }
 0x310   : > { %v3474_v3 = vrot.slane %v3387_v49, 6 }
 0x315   : > { %v3226_v58 = vld [vmem:[#allocation1] sm:$0xf] }
 0x316   : > { %3229 = vst [vmem:[#allocation1] ss:$9 sm:$0xff] %v13443_v57  ;;  %v3376_v57 = vunpack.c.l.b16 %v10598_v17  ;;  %v3388_v5 = vunpack.c.l.b16 %v3226_v58  ;;  %v3377_v17 = vunpack.c.l.b16 %v10619_v40 }
 0x318   : > { %v3456_v39 = vrot.slane %v3376_v57, 1  ;;  %v3462_v57 = vrot.slane %v3380_v59, 5  ;;  %v3476_v40 = vrot.slane %v3388_v5, 5  ;;  %v3468_v59 = vrot.slane %v3383_v2, 2 }
 0x31a   : > { %v3457_v20 = vsel %vm2928_vm0, %v3377_v17, %v3456_v39 }
 0x31d   : > { %v3230_v16 = vld [vmem:[#allocation1] sm:$0xf] }
 0x31e   : > { %3233 = vst [vmem:[#allocation1] ss:$9 sm:$0xff] %v13444_v54  ;;  %v3384_v54 = vunpack.c.l.b16 %v3211_v11  ;;  %v3389_v55 = vunpack.c.l.b16 %v3230_v16  ;;  %v3460_v11 = vrot.slane %v3379_v52, 6 }
 0x320   : > { %v3470_v0 = vrot.slane %v3384_v54, 1  ;;  %v3478_v46 = vrot.slane %v3389_v55, 4 }
 0x322   : > { %v3471_v58 = vsel %vm2928_vm0, %v3385_v62, %v3470_v0 }
 0x323   : > { %v3473_v31 = vsel %vm2932_vm2, %v3472_v42, %v3471_v58  ;;  %v10805_v42 = vsel %vm2928_vm0, %v10774_v43, %v2916_v33 }
 0x324   : > { %v3475_v5 = vsel %vm2936_vm3, %v3474_v3, %v3473_v31  ;;  %v13463_v0 = vrot.slane %v10805_v42, 1 }
 0x325   : > { %v3234_v15 = vld [vmem:[#allocation1] sm:$0xf]  ;;  %v3477_v62 = vsel %vm479_vm6, %v3476_v40, %v3475_v5 }
 0x326   : > { %3237 = vst [vmem:[#allocation1] ss:$9 sm:$0xff] %v13450_v51  ;;  %v3390_v48 = vunpack.c.l.b16 %v3234_v15  ;;  %v3458_v51 = vrot.slane %v3378_v22, 7  ;;  %v3466_v22 = vrot.slane %v3382_v37, 3  ;;  %v13669_v37 = vld [vmem:[#allocation7_spill] sm:$0xff] }
 0x327   : > { %v2335_v2 = vadd.f32 %v10489_v4, %v13669_v37 }
 0x328   : > { %v3459_v15 = vsel %vm2932_vm2, %v3458_v51, %v3457_v20  ;;  %v3480_v54 = vrot.slane %v3390_v48, 3  ;;  %v3479_v51 = vsel %vm3434_vm7, %v3478_v46, %v3477_v62  ;;  %v10822_v20 = vsel %vm2932_vm2, %v10774_v43, %v2916_v33 }
 0x329   : > { %v3461_v52 = vsel %vm2936_vm3, %v3460_v11, %v3459_v15  ;;  %v2485_v40 = vadd.f32 %v10498_v18, %v2335_v2  ;;  %v13462_v4 = vrot.slane %v10822_v20, 2  ;;  %v13673_v2 = vld [vmem:[#allocation10_spill] sm:$0xff] }
 0x32a   : > { %v3463_v39 = vsel %vm479_vm6, %v3462_v57, %v3461_v52  ;;  %v3481_v17 = vsel %vm3437_vm8, %v3480_v54, %v3479_v51 }
 0x32b   : > { %v3465_v12 = vsel %vm3434_vm7, %v3464_v47, %v3463_v39  ;;  %v2613_v47 = vadd.f32 %v10506_v35, %v2485_v40 }
 0x32c   : > { %v3467_v48 = vsel %vm3437_vm8, %v3466_v22, %v3465_v12 }
 0x32d   : > { %v3238_v16 = vld [vmem:[#allocation1] sm:$0xf]  ;;  %v3469_v55 = vsel %vm3440_vm9, %v3468_v59, %v3467_v48  ;;  %v2741_v46 = vadd.f32 %v10565_v41, %v2613_v47 }
 0x32e   : > { %3240 = vst [vmem:[#allocation1] ss:$9 sm:$0xff] %v10790_v10  ;;  %v3391_v34 = vunpack.c.l.b16 %v3238_v16  ;;  %v10833_v16 = vsel %vm2936_vm3, %v10774_v43, %v2916_v33  ;;  %v13671_v33 = vld [vmem:[#allocation9_spill] sm:$0xff] }
 0x32f   : > { %v10835_v18 = vmax.f32 %v2741_v46, 0.0  ;;  %v13461_v15 = vrot.slane %v10833_v16, 3 }
 0x330   : > { %v3482_v49 = vrot.slane %v3391_v34, 2  ;;  %v2343_v34 = vadd.f32 %v10563_v50, %v13671_v33 }
 0x331   : > { %13670 = vst [vmem:[#allocation7_spill] sm:$0xff] %v10835_v18  ;;  %v2873_v35 = vpack.c.bf16 %v10835_v18, %v10835_v18 }
 0x332   : > { %v3483_v3 = vsel %vm3440_vm9, %v3482_v49, %v3481_v17  ;;  %v2488_v5 = vadd.f32 %v10586_v27, %v2343_v34 }
 0x333   : > { %v3541_v11 = vpack.c.b16 %v3483_v3, %v3469_v55  ;;  %v2917_v41 = vrot.slane %v2873_v35, 3 }
 0x334   : > { %v2616_v62 = vadd.f32 %v10596_v61, %v2488_v5 }
 0x335   : > { %v10814_v57 = vld [vmem:[#allocation1] sm:$0xf]  ;;  %8367 = vmatmul.msk.bf16.gmra.mxu1 %vm3550_vm10, %v3541_v11  ;;  %v10847_v54 = vsel %vm478_vm5, %v2873_v35, %v2917_v41  ;;  %v10851_v43 = vsel %vm2928_vm0, %v2873_v35, %v2917_v41  ;;  %v10862_v39 = vsel %vm2932_vm2, %v2873_v35, %v2917_v41  ;;  %v10872_v49 = vsel %vm2936_vm3, %v2873_v35, %v2917_v41 }
 0x336   : > { %3244 = vst [vmem:[#allocation1] ss:$9 sm:$0xff] %v13463_v0  ;;  %v13460_v52 = vrot.slane %v10851_v43, 1  ;;  %v13457_v12 = vrot.slane %v10862_v39, 2  ;;  %v2744_v50 = vadd.f32 %v10634_v44, %v2616_v62  ;;  %v13456_v27 = vrot.slane %v10872_v49, 3 }
 0x337   : > { %v2345_v11 = vadd.f32 %v10604_v63, %v13673_v2 }
 0x338   : > { %v10874_v48 = vmax.f32 %v2744_v50, 0.0 }
 0x339   : > { %v2489_v46 = vadd.f32 %v10614_v53, %v2345_v11 }
 0x33a   : > { %13672 = vst [vmem:[#allocation9_spill] sm:$0xff] %v10874_v48  ;;  %v2876_v61 = vpack.c.bf16 %v10874_v48, %v10874_v48 }
 0x33b   : > { %v2617_v41 = vadd.f32 %v10624_v38, %v2489_v46 }
 0x33c   : > { %v2918_v55 = vrot.slane %v2876_v61, 3 }
 0x33d   : > { %v10826_v58 = vld [vmem:[#allocation1] sm:$0xf]  ;;  %v2745_v5 = vadd.f32 %v10645_v13, %v2617_v41 }
 0x33e   : > { %3248 = vst [vmem:[#allocation1] ss:$9 sm:$0xff] %v13462_v4  ;;  %v10886_v3 = vsel %vm478_vm5, %v2876_v61, %v2918_v55  ;;  %v10890_v37 = vsel %vm2928_vm0, %v2876_v61, %v2918_v55  ;;  %v10899_v35 = vsel %vm2932_vm2, %v2876_v61, %v2918_v55  ;;  %v10907_v63 = vsel %vm2936_vm3, %v2876_v61, %v2918_v55  ;;  %v13675_v61 = vld [vmem:[#allocation12_spill] sm:$0xff] }
 0x33f   : > { %v13455_v40 = vrot.slane %v10890_v37, 1  ;;  %v13453_v33 = vrot.slane %v10899_v35, 2  ;;  %v10909_v62 = vmax.f32 %v2745_v5, 0.0  ;;  %v13454_v53 = vrot.slane %v10907_v63, 3 }
 0x340   : > { %v2353_v55 = vadd.f32 %v10663_v7, %v13675_v61 }
 0x341   : > { %13674 = vst [vmem:[#allocation10_spill] sm:$0xff] %v10909_v62  ;;  %v2877_v2 = vpack.c.bf16 %v10909_v62, %v10909_v62 }
 0x342   : > { %v2492_v5 = vadd.f32 %v10675_v9, %v2353_v55 }
 0x343   : > { %v2919_v38 = vrot.slane %v2877_v2, 3 }
 0x345   : > { %v10838_v22 = vld [vmem:[#allocation1] sm:$0xf]  ;;  %v10917_v13 = vsel %vm478_vm5, %v2877_v2, %v2919_v38  ;;  %v10923_v46 = vsel %vm2928_vm0, %v2877_v2, %v2919_v38  ;;  %v10940_v9 = vsel %vm2936_vm3, %v2877_v2, %v2919_v38 }
 0x346   : > { %3252 = vst [vmem:[#allocation1] ss:$9 sm:$0xff] %v13461_v15  ;;  %v13458_v41 = vrot.slane %v10923_v46, 1 }
 0x34d   : > { %v10844_v31 = vld [vmem:[#allocation1] sm:$0xf] }
 0x34e   : > { %3255 = vst [vmem:[#allocation1] ss:$9 sm:$0xff] %v10847_v54 }
 0x355   : > { %v10856_v59 = vld [vmem:[#allocation1] sm:$0xf] }
 0x356   : > { %3259 = vst [vmem:[#allocation1] ss:$9 sm:$0xff] %v13460_v52  ;;  %v3396_v52 = vunpack.c.l.b16 %v10856_v59 }
 0x35d   : > { %v10866_v51 = vld [vmem:[#allocation1] sm:$0xf] }
 0x35e   : > { %3263 = vst [vmem:[#allocation1] ss:$9 sm:$0xff] %v13457_v12  ;;  %v3397_v0 = vunpack.c.l.b16 %v10866_v51 }
 0x365   : > { %v10877_v17 = vld [vmem:[#allocation1] sm:$0xf] }
 0x366   : > { %3267 = vst [vmem:[#allocation1] ss:$9 sm:$0xff] %v13456_v27 }
 0x36d   : > { %v10883_v44 = vld [vmem:[#allocation1] sm:$0xf] }
 0x36e   : > { %3270 = vst [vmem:[#allocation1] ss:$9 sm:$0xff] %v10886_v3 }
 0x375   : > { %v3271_v47 = vld [vmem:[#allocation1] sm:$0xf] }
 0x376   : > { %3274 = vst [vmem:[#allocation1] ss:$9 sm:$0xff] %v13455_v40  ;;  %v2620_v40 = vadd.f32 %v10684_v21, %v2492_v5  ;;  %v13466_v21 = vrot.slane %v10940_v9, 3 }
 0x378   : > { %v2748_v27 = vadd.f32 %v10698_v45, %v2620_v40  ;;  %v3394_v40 = vunpack.c.l.b16 %v10838_v22 }
 0x37a   : > { %v10937_v12 = vmax.f32 %v2748_v27, 0.0  ;;  %v3395_v27 = vunpack.c.l.b16 %v10844_v31  ;;  %v3399_v31 = vunpack.c.l.b16 %v10883_v44 }
 0x37c   : > { %13676 = vst [vmem:[#allocation12_spill] sm:$0xff] %v10937_v12  ;;  %v10944_v55 = vpack.c.bf16 %v10937_v12, %v10937_v12 }
 0x37d   : > { %v3275_v34 = vld [vmem:[#allocation1] sm:$0xf] }
 0x37e   : > { %3278 = vst [vmem:[#allocation1] ss:$9 sm:$0xff] %v13453_v33  ;;  %v3401_v12 = vunpack.c.l.b16 %v3275_v34  ;;  %v3492_v34 = vrot.slane %v3397_v0, 4 }
 0x385   : > { %v3279_v50 = vld [vmem:[#allocation1] sm:$0xf] }
 0x386   : > { %3282 = vst [vmem:[#allocation1] ss:$9 sm:$0xff] %v13454_v53  ;;  %v10930_v53 = vsel %vm2932_vm2, %v2877_v2, %v2919_v38  ;;  %v3402_v5 = vunpack.c.l.b16 %v3279_v50  ;;  %v2920_v38 = vrot.slane %v10944_v55, 3  ;;  %v3398_v50 = vunpack.c.l.b16 %v10877_v17 }
 0x387   : > { %v13459_v7 = vrot.slane %v10930_v53, 2 }
 0x388   : > { %v3500_v48 = vrot.slane %v3402_v5, 7  ;;  %v10960_v59 = vsel %vm478_vm5, %v10944_v55, %v2920_v38 }
 0x38d   : > { %v3283_v11 = vld [vmem:[#allocation1] sm:$0xf] }
 0x38e   : > { %3285 = vst [vmem:[#allocation1] ss:$9 sm:$0xff] %v10917_v13  ;;  %v3403_v2 = vunpack.c.l.b16 %v3283_v11 }
 0x390   : > { %v3502_v18 = vrot.slane %v3403_v2, 6 }
 0x395   : > { %v3286_v33 = vld [vmem:[#allocation1] sm:$0xf] }
 0x396   : > { %3289 = vst [vmem:[#allocation1] ss:$9 sm:$0xff] %v13458_v41  ;;  %v3392_v41 = vunpack.c.l.b16 %v10814_v57  ;;  %v3404_v15 = vunpack.c.l.b16 %v3286_v33  ;;  %v3393_v57 = vunpack.c.l.b16 %v10826_v58  ;;  %v3490_v33 = vrot.slane %v3396_v52, 5 }
 0x397   : > { %v3496_v52 = vrot.slane %v3399_v31, 2 }
 0x398   : > { %v3484_v4 = vrot.slane %v3392_v41, 1  ;;  %v3504_v58 = vrot.slane %v3404_v15, 5 }
 0x39a   : > { %v3485_v51 = vsel %vm2928_vm0, %v3393_v57, %v3484_v4 }
 0x39d   : > { %v3290_v61 = vld [vmem:[#allocation1] sm:$0xf] }
 0x39e   : > { %3293 = vst [vmem:[#allocation1] ss:$9 sm:$0xff] %v13459_v7  ;;  %v3400_v7 = vunpack.c.l.b16 %v3271_v47  ;;  %v3405_v22 = vunpack.c.l.b16 %v3290_v61  ;;  %v3488_v47 = vrot.slane %v3395_v27, 6 }
 0x3a0   : > { %v3498_v11 = vrot.slane %v3400_v7, 1  ;;  %v3506_v17 = vrot.slane %v3405_v22, 4 }
 0x3a2   : > { %v3499_v41 = vsel %vm2928_vm0, %v3401_v12, %v3498_v11 }
 0x3a3   : > { %v3501_v44 = vsel %vm2932_vm2, %v3500_v48, %v3499_v41  ;;  %v10975_v48 = vsel %vm2928_vm0, %v10944_v55, %v2920_v38 }
 0x3a4   : > { %v3503_v15 = vsel %vm2936_vm3, %v3502_v18, %v3501_v44  ;;  %v13474_v11 = vrot.slane %v10975_v48, 1  ;;  %v11012_v44 = vpop.f32.mrf.mxu1 }
 0x3a5   : > { %v3294_v45 = vld [vmem:[#allocation1] sm:$0xf]  ;;  %v3505_v4 = vsel %vm479_vm6, %v3504_v58, %v3503_v15  ;;  %13679 = vst [vmem:[#allocation73_spill] sm:$0xff] %v11012_v44 }
 0x3a6   : > { %3297 = vst [vmem:[#allocation1] ss:$9 sm:$0xff] %v13466_v21  ;;  %v3406_v62 = vunpack.c.l.b16 %v3294_v45  ;;  %v3486_v21 = vrot.slane %v3394_v40, 7  ;;  %v3494_v40 = vrot.slane %v3398_v50, 3  ;;  %v13677_v50 = vld [vmem:[#allocation13_spill] sm:$0xff] }
 0x3a7   : > { %v2355_v31 = vadd.f32 %v10688_v19, %v13677_v50 }
 0x3a8   : > { %v3487_v45 = vsel %vm2932_vm2, %v3486_v21, %v3485_v51  ;;  %v3508_v7 = vrot.slane %v3406_v62, 3  ;;  %v3507_v21 = vsel %vm3434_vm7, %v3506_v17, %v3505_v4  ;;  %v10992_v51 = vsel %vm2932_vm2, %v10944_v55, %v2920_v38 }
 0x3a9   : > { %v3489_v27 = vsel %vm2936_vm3, %v3488_v47, %v3487_v45  ;;  %v2493_v58 = vadd.f32 %v10695_v30, %v2355_v31  ;;  %v13473_v19 = vrot.slane %v10992_v51, 2 }
 0x3aa   : > { %v3491_v0 = vsel %vm479_vm6, %v3490_v33, %v3489_v27  ;;  %v3509_v57 = vsel %vm3437_vm8, %v3508_v7, %v3507_v21  ;;  %v11016_v7 = vpop.f32.mrf.mxu2 }
 0x3ab   : > { %v3493_v12 = vsel %vm3434_vm7, %v3492_v34, %v3491_v0  ;;  %v2621_v34 = vadd.f32 %v10706_v1, %v2493_v58  ;;  %13680 = vst [vmem:[#allocation74_spill] sm:$0xff] %v11016_v7  ;;  %v13684_v0 = vld [vmem:[#allocation15_spill] sm:$0xff] }
 0x3ac   : > { %v3495_v62 = vsel %vm3437_vm8, %v3494_v40, %v3493_v12  ;;  %v2362_v27 = vpop.f32.mrf.mxu1 }
 0x3ad   : > { %v3298_v61 = vld [vmem:[#allocation1] sm:$0xf]  ;;  %v3497_v22 = vsel %vm3440_vm9, %v3496_v52, %v3495_v62  ;;  %v2749_v17 = vadd.f32 %v10709_v32, %v2621_v34  ;;  %v11026_v52 = vpop.f32.mrf.mxu0  ;;  %v2363_v4 = vadd.f32 %v2362_v27, %v13684_v0 }
 0x3ae   : > { %3300 = vst [vmem:[#allocation1] ss:$9 sm:$0xff] %v10960_v59  ;;  %v3407_v5 = vunpack.c.l.b16 %v3298_v61  ;;  %v11003_v61 = vsel %vm2936_vm3, %v10944_v55, %v2920_v38  ;;  %v11024_v38 = vpop.f32.mrf.mxu3 }
 0x3af   : > { %v11005_v30 = vmax.f32 %v2749_v17, 0.0  ;;  %v13472_v45 = vrot.slane %v11003_v61, 3  ;;  %13681 = vst [vmem:[#allocation75_spill] sm:$0xff] %v11024_v38 }
 0x3b0   : > { %v3510_v2 = vrot.slane %v3407_v5, 2  ;;  %13682 = vst [vmem:[#allocation76_spill] sm:$0xff] %v11026_v52 }
 0x3b1   : > { %13678 = vst [vmem:[#allocation13_spill] sm:$0xff] %v11005_v30  ;;  %v2881_v1 = vpack.c.bf16 %v11005_v30, %v11005_v30 }
 0x3b2   : > { %v3511_v18 = vsel %vm3440_vm9, %v3510_v2, %v3509_v57  ;;  %v2458_v2 = vpop.f32.mrf.mxu2 }
 0x3b3   : > { %v3542_v47 = vpack.c.b16 %v3511_v18, %v3497_v22  ;;  %v2921_v32 = vrot.slane %v2881_v1, 3  ;;  %v2496_v62 = vadd.f32 %v2458_v2, %v2363_v4 }
 0x3b5   : > { %v10984_v33 = vld [vmem:[#allocation1] sm:$0xf]  ;;  %8368 = vmatmul.msk.bf16.gmra.mxu1 %vm3550_vm10, %v3542_v47  ;;  %v11021_v55 = vsel %vm478_vm5, %v2881_v1, %v2921_v32  ;;  %v11029_v15 = vsel %vm2928_vm0, %v2881_v1, %v2921_v32  ;;  %v11038_v22 = vsel %vm2932_vm2, %v2881_v1, %v2921_v32  ;;  %v2714_v18 = vpop.f32.mrf.mxu0  ;;  %v11046_v34 = vsel %vm2936_vm3, %v2881_v1, %v2921_v32  ;;  %v2364_v1 = vpop.f32.mrf.mxu1 }
 0x3b6   : > { %3304 = vst [vmem:[#allocation1] ss:$9 sm:$0xff] %v13474_v11  ;;  %v13470_v12 = vrot.slane %v11029_v15, 1  ;;  %v2586_v57 = vpop.f32.mrf.mxu3  ;;  %v13469_v31 = vrot.slane %v11038_v22, 2  ;;  %v13471_v27 = vrot.slane %v11046_v34, 3  ;;  %v3408_v7 = vunpack.c.l.b16 %v10984_v33 }
 0x3b7   : > { %13683 = vst [vmem:[#allocation77_spill] sm:$0xff] %v11029_v15  ;;  %v2624_v50 = vadd.f32 %v2586_v57, %v2496_v62 }
 0x3b8   : > { %13685 = vst [vmem:[#allocation15_spill] sm:$0xff] %v11038_v22 }
 0x3b9   : > { %v2752_v58 = vadd.f32 %v2714_v18, %v2624_v50  ;;  %13686 = vst [vmem:[#allocation78_spill] sm:$0xff] %v11046_v34  ;;  %v13690_v18 = vld [vmem:[#allocation16_spill] sm:$0xff] }
 0x3ba   : > { %v2365_v50 = vadd.f32 %v2364_v1, %v13690_v18 }
 0x3bb   : > { %v11048_v17 = vmax.f32 %v2752_v58, 0.0 }
 0x3bd   : > { %v10996_v41 = vld [vmem:[#allocation1] sm:$0xf]  ;;  %13687 = vst [vmem:[#allocation79_spill] sm:$0xff] %v11048_v17  ;;  %v2884_v4 = vpack.c.bf16 %v11048_v17, %v11048_v17  ;;  %v2716_v11 = vpop.f32.mrf.mxu0 }
 0x3be   : > { %3308 = vst [vmem:[#allocation1] ss:$9 sm:$0xff] %v13473_v19 }
 0x3bf   : > { %v2922_v2 = vrot.slane %v2884_v4, 3 }
 0x3c1   : > { %v11060_v57 = vsel %vm478_vm5, %v2884_v4, %v2922_v2  ;;  %v11064_v32 = vsel %vm2928_vm0, %v2884_v4, %v2922_v2  ;;  %v11071_v19 = vsel %vm2932_vm2, %v2884_v4, %v2922_v2  ;;  %v11077_v1 = vsel %vm2936_vm3, %v2884_v4, %v2922_v2 }
 0x3c2   : > { %13688 = vst [vmem:[#allocation80_spill] sm:$0xff] %v11060_v57  ;;  %v13477_v58 = vrot.slane %v11064_v32, 1  ;;  %v13479_v30 = vrot.slane %v11071_v19, 2 }
 0x3c3   : > { %13689 = vst [vmem:[#allocation81_spill] sm:$0xff] %v11064_v32 }
 0x3c4   : > { %13691 = vst [vmem:[#allocation16_spill] sm:$0xff] %v11071_v19 }
 0x3c5   : > { %v11008_v40 = vld [vmem:[#allocation1] sm:$0xf]  ;;  %13692 = vst [vmem:[#allocation82_spill] sm:$0xff] %v11077_v1 }
 0x3c6   : > { %3312 = vst [vmem:[#allocation1] ss:$9 sm:$0xff] %v13472_v45  ;;  %v2588_v45 = vpop.f32.mrf.mxu3 }
 0x3cd   : > { %v11018_v5 = vld [vmem:[#allocation1] sm:$0xf] }
 0x3ce   : > { %3315 = vst [vmem:[#allocation1] ss:$9 sm:$0xff] %v11021_v55 }
 0x3d5   : > { %v11033_v21 = vld [vmem:[#allocation1] sm:$0xf] }
 0x3d6   : > { %3319 = vst [vmem:[#allocation1] ss:$9 sm:$0xff] %v13470_v12  ;;  %v2460_v12 = vpop.f32.mrf.mxu2 }
 0x3dd   : > { %v11041_v47 = vld [vmem:[#allocation1] sm:$0xf] }
 0x3de   : > { %3323 = vst [vmem:[#allocation1] ss:$9 sm:$0xff] %v13469_v31  ;;  %v3413_v33 = vunpack.c.l.b16 %v11041_v47 }
 0x3e5   : > { %v11051_v0 = vld [vmem:[#allocation1] sm:$0xf] }
 0x3e6   : > { %3327 = vst [vmem:[#allocation1] ss:$9 sm:$0xff] %v13471_v27  ;;  %v2497_v27 = vadd.f32 %v2460_v12, %v2365_v50  ;;  %v13478_v12 = vrot.slane %v11077_v1, 3  ;;  %v3411_v1 = vunpack.c.l.b16 %v11018_v5 }
 0x3e8   : > { %v2625_v17 = vadd.f32 %v2588_v45, %v2497_v27  ;;  %v3516_v5 = vrot.slane %v3411_v1, 6 }
 0x3ea   : > { %v2753_v38 = vadd.f32 %v2716_v11, %v2625_v17 }
 0x3ec   : > { %v11079_v18 = vmax.f32 %v2753_v38, 0.0 }
 0x3ed   : > { %v11057_v62 = vld [vmem:[#allocation1] sm:$0xf] }
 0x3ee   : > { %3330 = vst [vmem:[#allocation1] ss:$9 sm:$0xff] %v11060_v57 }
 0x3ef   : > { %13693 = vst [vmem:[#allocation83_spill] sm:$0xff] %v11079_v18 }
 0x3f5   : > { %v3331_v31 = vld [vmem:[#allocation1] sm:$0xf] }
 0x3f6   : > { %3334 = vst [vmem:[#allocation1] ss:$9 sm:$0xff] %v13477_v58  ;;  %v2885_v58 = vpack.c.bf16 %v11079_v18, %v11079_v18  ;;  %v3416_v19 = vunpack.c.l.b16 %v3331_v31 }
 0x3f8   : > { %v2923_v45 = vrot.slane %v2885_v58, 3  ;;  %v3526_v31 = vrot.slane %v3416_v19, 1 }
 0x3fa   : > { %v11087_v11 = vsel %vm478_vm5, %v2885_v58, %v2923_v45  ;;  %v11091_v17 = vsel %vm2928_vm0, %v2885_v58, %v2923_v45  ;;  %v11097_v2 = vsel %vm2932_vm2, %v2885_v58, %v2923_v45  ;;  %v11103_v18 = vsel %vm2936_vm3, %v2885_v58, %v2923_v45 }
 0x3fb   : > { %13694 = vst [vmem:[#allocation84_spill] sm:$0xff] %v11087_v11  ;;  %v13483_v38 = vrot.slane %v11091_v17, 1  ;;  %v13493_v44 = vrot.slane %v11103_v18, 3  ;;  %v3512_v58 = vrot.slane %v3408_v7, 1  ;;  %v3409_v45 = vunpack.c.l.b16 %v10996_v41 }
 0x3fc   : > { %13695 = vst [vmem:[#allocation85_spill] sm:$0xff] %v11091_v17  ;;  %v3410_v17 = vunpack.c.l.b16 %v11008_v40  ;;  %v3414_v40 = vunpack.c.l.b16 %v11051_v0 }
 0x3fd   : > { %v3335_v52 = vld [vmem:[#allocation1] sm:$0xf]  ;;  %13696 = vst [vmem:[#allocation86_spill] sm:$0xff] %v11097_v2  ;;  %v3513_v7 = vsel %vm2928_vm0, %v3409_v45, %v3512_v58 }
 0x3fe   : > { %3338 = vst [vmem:[#allocation1] ss:$9 sm:$0xff] %v13479_v30  ;;  %v3417_v57 = vunpack.c.l.b16 %v3335_v52  ;;  %v3514_v22 = vrot.slane %v3410_v17, 7  ;;  %v3522_v0 = vrot.slane %v3414_v40, 3  ;;  %v13699_v40 = vrot.slane %v10299_v28, 2 }
 0x3ff   : > { %13697 = vst [vmem:[#allocation87_spill] sm:$0xff] %v11103_v18 }
 0x400   : > { %v3527_v41 = vsel %vm2928_vm0, %v3417_v57, %v3526_v31 }
 0x405   : > { %v3339_v50 = vld [vmem:[#allocation1] sm:$0xf] }
 0x406   : > { %3342 = vst [vmem:[#allocation1] ss:$9 sm:$0xff] %v13478_v12  ;;  %v13487_v12 = vrot.slane %v11097_v2, 2 }
 0x40d   : > { %v3343_v27 = vld [vmem:[#allocation1] sm:$0xf] }
 0x40e   : > { %3345 = vst [vmem:[#allocation1] ss:$9 sm:$0xff] %v11087_v11  ;;  %v3419_v32 = vunpack.c.l.b16 %v3343_v27 }
 0x410   : > { %v3530_v27 = vrot.slane %v3419_v32, 6 }
 0x415   : > { %v3346_v4 = vld [vmem:[#allocation1] sm:$0xf] }
 0x416   : > { %3349 = vst [vmem:[#allocation1] ss:$9 sm:$0xff] %v13483_v38  ;;  %v3418_v38 = vunpack.c.l.b16 %v3339_v50  ;;  %v3420_v2 = vunpack.c.l.b16 %v3346_v4  ;;  %v3520_v4 = vrot.slane %v3413_v33, 4 }
 0x418   : > { %v3528_v18 = vrot.slane %v3418_v38, 7 }
 0x41d   : > { %v3350_v30 = vld [vmem:[#allocation1] sm:$0xf] }
 0x41e   : > { %3353 = vst [vmem:[#allocation1] ss:$9 sm:$0xff] %v13487_v12  ;;  %v3412_v12 = vunpack.c.l.b16 %v11033_v21  ;;  %v3421_v34 = vunpack.c.l.b16 %v3350_v30  ;;  %v3532_v21 = vrot.slane %v3420_v2, 5  ;;  %v3515_v30 = vsel %vm2932_vm2, %v3514_v22, %v3513_v7 }
 0x41f   : > { %v3517_v19 = vsel %vm2936_vm3, %v3516_v5, %v3515_v30  ;;  %v13700_v5 = vrot.slane %v10319_v8, 3 }
 0x420   : > { %v3518_v15 = vrot.slane %v3412_v12, 5  ;;  %v3534_v47 = vrot.slane %v3421_v34, 4 }
 0x422   : > { %v3519_v12 = vsel %vm479_vm6, %v3518_v15, %v3517_v19  ;;  %v13698_v15 = vrot.slane %v10278_v14, 1 }
 0x423   : > { %v3521_v34 = vsel %vm3434_vm7, %v3520_v4, %v3519_v12 }
 0x425   : > { %v3354_v11 = vld [vmem:[#allocation1] sm:$0xf] }
 0x426   : > { %3357 = vst [vmem:[#allocation1] ss:$9 sm:$0xff] %v13493_v44  ;;  %v3422_v50 = vunpack.c.l.b16 %v3354_v11  ;;  %v3415_v44 = vunpack.c.l.b16 %v11057_v62  ;;  %v3529_v11 = vsel %vm2932_vm2, %v3528_v18, %v3527_v41  ;;  %v3523_v18 = vsel %vm3437_vm8, %v3522_v0, %v3521_v34  ;;  %v13703_v41 = vld [vmem:[#allocation27_spill] sm:$0xff]  ;;  %v13707_v0 = vld [vmem:[#allocation32_spill] sm:$0xff]  ;;  %v13714_v34 = vld [vmem:[#allocation42_spill] sm:$0xff] }
 0x427   : > { %v3531_v1 = vsel %vm2936_vm3, %v3530_v27, %v3529_v11  ;;  %v13708_v11 = vld [vmem:[#allocation33_spill] sm:$0xff] }
 0x428   : > { %v3536_v17 = vrot.slane %v3422_v50, 3  ;;  %v3524_v32 = vrot.slane %v3415_v44, 2  ;;  %v3533_v57 = vsel %vm479_vm6, %v3532_v21, %v3531_v1  ;;  %v13701_v21 = vld [vmem:[#allocation23_spill] sm:$0xff] }
 0x429   : > { %v3535_v22 = vsel %vm3434_vm7, %v3534_v47, %v3533_v57  ;;  %v13702_v7 = vrot.slane %v13701_v21, 1  ;;  %v13704_v47 = vrot.slane %v13703_v41, 2  ;;  %v13712_v1 = vld [vmem:[#allocation39_spill] sm:$0xff] }
 0x42a   : > { %v3537_v2 = vsel %vm3437_vm8, %v3536_v17, %v3535_v22  ;;  %v13709_v17 = vrot.slane %v13708_v11, 1  ;;  %v13713_v12 = vrot.slane %v13712_v1, 3 }
 0x42d   : > { %v3358_v52 = vld [vmem:[#allocation1] sm:$0xf] }
 0x42e   : > { %3592 = vst [vmem:[#allocation1] ss:$9 sm:$0xff] %v10264_v56  ;;  %v3423_v62 = vunpack.c.l.b16 %v3358_v52  ;;  %v3525_v56 = vsel %vm3440_vm9, %v3524_v32, %v3523_v18  ;;  %v13705_v52 = vld [vmem:[#allocation30_spill] sm:$0xff] }
 0x42f   : > { %v13706_v30 = vrot.slane %v13705_v52, 3 }
 0x430   : > { %v3538_v38 = vrot.slane %v3423_v62, 2  ;;  %v13710_v62 = vld [vmem:[#allocation35_spill] sm:$0xff] }
 0x431   : > { %v13711_v19 = vrot.slane %v13710_v62, 2 }
 0x432   : > { %v3539_v58 = vsel %vm3440_vm9, %v3538_v38, %v3537_v2  ;;  %v13715_v38 = vrot.slane %v10493_v24, 1  ;;  %v13716_v2 = vld [vmem:[#allocation44_spill] sm:$0xff] }
 0x433   : > { %v3543_v44 = vpack.c.b16 %v3539_v58, %v3525_v56  ;;  %v13717_v56 = vrot.slane %v13716_v2, 2  ;;  %v8901_v58 = vld [vmem:[%s13390_s2] sm:$0xff] }
 0x434   : > { %3989 = vmatpush.bf16.msrb.mxu2 %v8901_v58 }
 0x435   : > { %v3593_v45 = vld [vmem:[#allocation1] sm:$0xf]  ;;  %8369 = vmatmul.msk.bf16.gmra.mxu1 %vm3550_vm10, %v3543_v44 }
 0x436   : > { %3595 = vst [vmem:[#allocation1] ss:$9 sm:$0xff] %v13698_v15  ;;  %v3784_v52 = vunpack.c.l.b16 %v3593_v45 }
 0x43d   : > { %v3596_v33 = vld [vmem:[#allocation1] sm:$0xf] }
 0x43e   : > { %3598 = vst [vmem:[#allocation1] ss:$9 sm:$0xff] %v13699_v40  ;;  %v3785_v44 = vunpack.c.l.b16 %v3596_v33 }
 0x440   : > { %v3848_v62 = vrot.slane %v3785_v44, 7 }
 0x445   : > { %v3599_v50 = vld [vmem:[#allocation1] sm:$0xf] }
 0x446   : > { %3601 = vst [vmem:[#allocation1] ss:$9 sm:$0xff] %v13700_v5  ;;  %v3786_v5 = vunpack.c.l.b16 %v3599_v50 }
 0x44d   : > { %v3602_v31 = vld [vmem:[#allocation1] sm:$0xf] }
 0x44e   : > { %3604 = vst [vmem:[#allocation1] ss:$9 sm:$0xff] %v10343_v6 }
 0x455   : > { %v3605_v27 = vld [vmem:[#allocation1] sm:$0xf] }
 0x456   : > { %3607 = vst [vmem:[#allocation1] ss:$9 sm:$0xff] %v13702_v7  ;;  %v13718_v7 = vld [vmem:[#allocation46_spill] sm:$0xff] }
 0x457   : > { %v13719_v41 = vrot.slane %v13718_v7, 3 }
 0x45d   : > { %v3608_v4 = vld [vmem:[#allocation1] sm:$0xf] }
 0x45e   : > { %3610 = vst [vmem:[#allocation1] ss:$9 sm:$0xff] %v13704_v47  ;;  %v3787_v47 = vunpack.c.l.b16 %v3602_v31  ;;  %v3789_v11 = vunpack.c.l.b16 %v3608_v4  ;;  %v3849_v31 = vsel %vm2928_vm0, %v3848_v62, %v3784_v52  ;;  %v13721_v62 = vrot.slane %v10611_v29, 2 }
 0x460   : > { %v3852_v50 = vrot.slane %v3787_v47, 5 }
 0x465   : > { %v3611_v14 = vld [vmem:[#allocation1] sm:$0xf] }
 0x466   : > { %3613 = vst [vmem:[#allocation1] ss:$9 sm:$0xff] %v13706_v30  ;;  %v3788_v30 = vunpack.c.l.b16 %v3605_v27  ;;  %v3790_v1 = vunpack.c.l.b16 %v3611_v14 }
 0x468   : > { %v3854_v2 = vrot.slane %v3788_v30, 4 }
 0x46d   : > { %v3614_v28 = vld [vmem:[#allocation1] sm:$0xf] }
 0x46e   : > { %3616 = vst [vmem:[#allocation1] ss:$9 sm:$0xff] %v13707_v0 }
 0x475   : > { %v3617_v8 = vld [vmem:[#allocation1] sm:$0xf] }
 0x476   : > { %3619 = vst [vmem:[#allocation1] ss:$9 sm:$0xff] %v13709_v17 }
 0x47d   : > { %v3620_v6 = vld [vmem:[#allocation1] sm:$0xf] }
 0x47e   : > { %3622 = vst [vmem:[#allocation1] ss:$9 sm:$0xff] %v13711_v19  ;;  %v3793_v15 = vunpack.c.l.b16 %v3620_v6  ;;  %v3791_v6 = vunpack.c.l.b16 %v3614_v28 }
 0x480   : > { %v3862_v19 = vrot.slane %v3793_v15, 7  ;;  %v3860_v44 = vrot.slane %v3791_v6, 1 }
 0x485   : > { %v3623_v32 = vld [vmem:[#allocation1] sm:$0xf] }
 0x486   : > { %3625 = vst [vmem:[#allocation1] ss:$9 sm:$0xff] %v13713_v12  ;;  %v3794_v21 = vunpack.c.l.b16 %v3623_v32 }
 0x488   : > { %v3864_v33 = vrot.slane %v3794_v21, 6 }
 0x48d   : > { %v3626_v57 = vld [vmem:[#allocation1] sm:$0xf] }
 0x48e   : > { %3628 = vst [vmem:[#allocation1] ss:$9 sm:$0xff] %v13714_v34  ;;  %v3795_v24 = vunpack.c.l.b16 %v3626_v57  ;;  %v3850_v34 = vrot.slane %v3786_v5, 6  ;;  %v3856_v57 = vrot.slane %v3789_v11, 3  ;;  %v13720_v11 = vrot.slane %v10582_v26, 1 }
 0x490   : > { %v3866_v32 = vrot.slane %v3795_v24, 5 }
 0x495   : > { %v3629_v22 = vld [vmem:[#allocation1] sm:$0xf] }
 0x496   : > { %3631 = vst [vmem:[#allocation1] ss:$9 sm:$0xff] %v13715_v38  ;;  %v3796_v0 = vunpack.c.l.b16 %v3629_v22  ;;  %v3792_v38 = vunpack.c.l.b16 %v3617_v8  ;;  %v3851_v22 = vsel %vm2932_vm2, %v3850_v34, %v3849_v31  ;;  %v13729_v31 = vld [vmem:[#allocation63_spill] sm:$0xff] }
 0x497   : > { %v3853_v8 = vsel %vm2936_vm3, %v3852_v50, %v3851_v22  ;;  %v13725_v50 = vld [vmem:[#allocation59_spill] sm:$0xff]  ;;  %v13733_v22 = vld [vmem:[#allocation66_spill] sm:$0xff] }
 0x498   : > { %v3863_v45 = vsel %vm2928_vm0, %v3862_v19, %v3792_v38 }
 0x499   : > { %v3865_v14 = vsel %vm2932_vm2, %v3864_v33, %v3863_v45  ;;  %v13723_v33 = vld [vmem:[#allocation56_spill] sm:$0xff]  ;;  %v13731_v45 = vld [vmem:[#allocation65_spill] sm:$0xff] }
 0x49a   : > { %v3867_v15 = vsel %vm2936_vm3, %v3866_v32, %v3865_v14  ;;  %v13724_v6 = vrot.slane %v13723_v33, 1  ;;  %v13726_v32 = vrot.slane %v13725_v50, 2 }
 0x49d   : > { %v3632_v18 = vld [vmem:[#allocation1] sm:$0xf] }
 0x49e   : > { %3634 = vst [vmem:[#allocation1] ss:$9 sm:$0xff] %v13717_v56  ;;  %v3797_v17 = vunpack.c.l.b16 %v3632_v18  ;;  %v3868_v56 = vrot.slane %v3796_v0, 4  ;;  %v3858_v18 = vrot.slane %v3790_v1, 2  ;;  %v13722_v1 = vrot.slane %v10629_v25, 3 }
 0x4a0   : > { %v3870_v27 = vrot.slane %v3797_v17, 3  ;;  %v3869_v5 = vsel %vm479_vm6, %v3868_v56, %v3867_v15 }
 0x4a2   : > { %v3871_v7 = vsel %vm3434_vm7, %v3870_v27, %v3869_v5  ;;  %v13732_v27 = vrot.slane %v13731_v45, 2 }
 0x4a5   : > { %v3635_v40 = vld [vmem:[#allocation1] sm:$0xf] }
 0x4a6   : > { %3637 = vst [vmem:[#allocation1] ss:$9 sm:$0xff] %v13719_v41  ;;  %v3798_v12 = vunpack.c.l.b16 %v3635_v40  ;;  %v3855_v40 = vsel %vm479_vm6, %v3854_v2, %v3853_v8  ;;  %v13727_v2 = vld [vmem:[#allocation61_spill] sm:$0xff] }
 0x4a7   : > { %v3857_v21 = vsel %vm3434_vm7, %v3856_v57, %v3855_v40  ;;  %v13728_v56 = vrot.slane %v13727_v2, 3  ;;  %v13730_v57 = vrot.slane %v10718_v60, 1  ;;  %v13736_v8 = vld [vmem:[#allocation69_spill] sm:$0xff]  ;;  %v13738_v40 = vld [vmem:[#allocation70_spill] sm:$0xff] }
 0x4a8   : > { %v3872_v58 = vrot.slane %v3798_v12, 2  ;;  %v3859_v47 = vsel %vm3437_vm8, %v3858_v18, %v3857_v21  ;;  %v13734_v18 = vrot.slane %v13733_v22, 3  ;;  %v13739_v5 = vrot.slane %v13738_v40, 2 }
 0x4aa   : > { %v3873_v24 = vsel %vm3437_vm8, %v3872_v58, %v3871_v7  ;;  %v13735_v58 = vld [vmem:[#allocation68_spill] sm:$0xff] }
 0x4ad   : > { %v3638_v4 = vld [vmem:[#allocation1] sm:$0xf] }
 0x4ae   : > { %3640 = vst [vmem:[#allocation1] ss:$9 sm:$0xff] %v10571_v23  ;;  %v3799_v28 = vunpack.c.l.b16 %v3638_v4  ;;  %v3861_v23 = vsel %vm3440_vm9, %v3860_v44, %v3859_v47  ;;  %v13737_v44 = vrot.slane %v13736_v8, 1 }
 0x4b0   : > { %v3874_v41 = vrot.slane %v3799_v28, 1 }
 0x4b2   : > { %v3875_v52 = vsel %vm3440_vm9, %v3874_v41, %v3873_v24  ;;  %v13740_v24 = vld [vmem:[#allocation72_spill] sm:$0xff] }
 0x4b3   : > { %v3960_v30 = vpack.c.b16 %v3875_v52, %v3861_v23  ;;  %v13741_v23 = vrot.slane %v13740_v24, 3 }
 0x4b5   : > { %v3641_v0 = vld [vmem:[#allocation1] sm:$0xf]  ;;  %8374 = vmatmul.msk.bf16.vlgmr.msrb.gmra.mxu2 %vm3550_vm10, %v3960_v30 }
 0x4b6   : > { %3643 = vst [vmem:[#allocation1] ss:$9 sm:$0xff] %v13720_v11  ;;  %v3800_v11 = vunpack.c.l.b16 %v3641_v0 }
 0x4bd   : > { %v3644_v17 = vld [vmem:[#allocation1] sm:$0xf] }
 0x4be   : > { %3646 = vst [vmem:[#allocation1] ss:$9 sm:$0xff] %v13721_v62  ;;  %v3801_v60 = vunpack.c.l.b16 %v3644_v17 }
 0x4c0   : > { %v3876_v50 = vrot.slane %v3801_v60, 7 }
 0x4c5   : > { %v3647_v19 = vld [vmem:[#allocation1] sm:$0xf] }
 0x4c6   : > { %3649 = vst [vmem:[#allocation1] ss:$9 sm:$0xff] %v13722_v1  ;;  %v3802_v41 = vunpack.c.l.b16 %v3647_v19 }
 0x4cd   : > { %v3650_v12 = vld [vmem:[#allocation1] sm:$0xf] }
 0x4ce   : > { %3652 = vst [vmem:[#allocation1] ss:$9 sm:$0xff] %v10650_v36  ;;  %v3803_v52 = vunpack.c.l.b16 %v3650_v12  ;;  %v3877_v12 = vsel %vm2928_vm0, %v3876_v50, %v3800_v11 }
 0x4d0   : > { %v3880_v19 = vrot.slane %v3803_v52, 5 }
 0x4d5   : > { %v3653_v34 = vld [vmem:[#allocation1] sm:$0xf] }
 0x4d6   : > { %3655 = vst [vmem:[#allocation1] ss:$9 sm:$0xff] %v13724_v6  ;;  %v3804_v62 = vunpack.c.l.b16 %v3653_v34 }
 0x4dd   : > { %v3656_v38 = vld [vmem:[#allocation1] sm:$0xf] }
 0x4de   : > { %3658 = vst [vmem:[#allocation1] ss:$9 sm:$0xff] %v13726_v32  ;;  %v3805_v33 = vunpack.c.l.b16 %v3656_v38 }
 0x4e0   : > { %v3884_v22 = vrot.slane %v3805_v33, 3 }
 0x4e5   : > { %v3659_v26 = vld [vmem:[#allocation1] sm:$0xf] }
 0x4e6   : > { %3661 = vst [vmem:[#allocation1] ss:$9 sm:$0xff] %v13728_v56  ;;  %v3806_v2 = vunpack.c.l.b16 %v3659_v26 }
 0x4ed   : > { %v3662_v29 = vld [vmem:[#allocation1] sm:$0xf] }
 0x4ee   : > { %3664 = vst [vmem:[#allocation1] ss:$9 sm:$0xff] %v13729_v31  ;;  %v3878_v31 = vrot.slane %v3802_v41, 6 }
 0x4f5   : > { %v3665_v25 = vld [vmem:[#allocation1] sm:$0xf] }
 0x4f6   : > { %3667 = vst [vmem:[#allocation1] ss:$9 sm:$0xff] %v13730_v57  ;;  %v3807_v57 = vunpack.c.l.b16 %v3662_v29 }
 0x4fd   : > { %v3668_v36 = vld [vmem:[#allocation1] sm:$0xf] }
 0x4fe   : > { %3670 = vst [vmem:[#allocation1] ss:$9 sm:$0xff] %v13732_v27  ;;  %v3809_v21 = vunpack.c.l.b16 %v3668_v36  ;;  %v3808_v36 = vunpack.c.l.b16 %v3665_v25  ;;  %v3882_v27 = vrot.slane %v3804_v62, 4  ;;  %v13744_v62 = vrot.slane %v10833_v16, 3 }
 0x500   : > { %v3890_v32 = vrot.slane %v3809_v21, 7 }
 0x502   : > { %v3891_v0 = vsel %vm2928_vm0, %v3890_v32, %v3808_v36  ;;  %v13746_v32 = vrot.slane %v10862_v39, 2  ;;  %v13752_v36 = vrot.slane %v10930_v53, 2 }
 0x505   : > { %v3671_v4 = vld [vmem:[#allocation1] sm:$0xf] }
 0x506   : > { %3673 = vst [vmem:[#allocation1] ss:$9 sm:$0xff] %v13734_v18  ;;  %v3810_v47 = vunpack.c.l.b16 %v3671_v4  ;;  %v3879_v18 = vsel %vm2932_vm2, %v3878_v31, %v3877_v12  ;;  %v13749_v31 = vrot.slane %v10899_v35, 2 }
 0x507   : > { %v3881_v25 = vsel %vm2936_vm3, %v3880_v19, %v3879_v18 }
 0x508   : > { %v3892_v17 = vrot.slane %v3810_v47, 6 }
 0x50a   : > { %v3893_v26 = vsel %vm2932_vm2, %v3892_v17, %v3891_v0  ;;  %v13750_v17 = vrot.slane %v10907_v63, 3 }
 0x50d   : > { %v3674_v14 = vld [vmem:[#allocation1] sm:$0xf] }
 0x50e   : > { %3676 = vst [vmem:[#allocation1] ss:$9 sm:$0xff] %v13735_v58  ;;  %v3811_v30 = vunpack.c.l.b16 %v3674_v14  ;;  %v3886_v14 = vrot.slane %v3806_v2, 2  ;;  %v13747_v2 = vrot.slane %v10872_v49, 3 }
 0x510   : > { %v3894_v45 = vrot.slane %v3811_v30, 5  ;;  %v13743_v30 = vrot.slane %v10822_v20, 2 }
 0x512   : > { %v3895_v8 = vsel %vm2936_vm3, %v3894_v45, %v3893_v26 }
 0x515   : > { %v3677_v28 = vld [vmem:[#allocation1] sm:$0xf] }
 0x516   : > { %3679 = vst [vmem:[#allocation1] ss:$9 sm:$0xff] %v13737_v44  ;;  %v3812_v1 = vunpack.c.l.b16 %v3677_v28  ;;  %v3888_v28 = vrot.slane %v3807_v57, 1  ;;  %v3883_v44 = vsel %vm479_vm6, %v3882_v27, %v3881_v25  ;;  %v13751_v57 = vrot.slane %v10923_v46, 1 }
 0x517   : > { %v3885_v40 = vsel %vm3434_vm7, %v3884_v22, %v3883_v44 }
 0x518   : > { %v3896_v4 = vrot.slane %v3812_v1, 4  ;;  %v3887_v21 = vsel %vm3437_vm8, %v3886_v14, %v3885_v40 }
 0x51d   : > { %v3680_v15 = vld [vmem:[#allocation1] sm:$0xf] }
 0x51e   : > { %3682 = vst [vmem:[#allocation1] ss:$9 sm:$0xff] %v13739_v5  ;;  %v3813_v6 = vunpack.c.l.b16 %v3680_v15  ;;  %v3897_v15 = vsel %vm479_vm6, %v3896_v4, %v3895_v8  ;;  %v13753_v4 = vrot.slane %v10940_v9, 3 }
 0x520   : > { %v3898_v34 = vrot.slane %v3813_v6, 3  ;;  %v13745_v6 = vrot.slane %v10851_v43, 1 }
 0x522   : > { %v3899_v5 = vsel %vm3434_vm7, %v3898_v34, %v3897_v15 }
 0x525   : > { %v3683_v7 = vld [vmem:[#allocation1] sm:$0xf] }
 0x526   : > { %3685 = vst [vmem:[#allocation1] ss:$9 sm:$0xff] %v13741_v23  ;;  %v3814_v56 = vunpack.c.l.b16 %v3683_v7  ;;  %v13742_v23 = vrot.slane %v10805_v42, 1 }
 0x528   : > { %v3900_v58 = vrot.slane %v3814_v56, 2  ;;  %v13748_v56 = vrot.slane %v10890_v37, 1 }
 0x52a   : > { %v3901_v7 = vsel %vm3437_vm8, %v3900_v58, %v3899_v5 }
 0x52d   : > { %v3686_v38 = vld [vmem:[#allocation1] sm:$0xf] }
 0x52e   : > { %3688 = vst [vmem:[#allocation1] ss:$9 sm:$0xff] %v10790_v10  ;;  %v3815_v29 = vunpack.c.l.b16 %v3686_v38  ;;  %v3889_v10 = vsel %vm3440_vm9, %v3888_v28, %v3887_v21 }
 0x530   : > { %v3902_v60 = vrot.slane %v3815_v29, 1 }
 0x532   : > { %v3903_v41 = vsel %vm3440_vm9, %v3902_v60, %v3901_v7 }
 0x533   : > { %v3961_v47 = vpack.c.b16 %v3903_v41, %v3889_v10 }
 0x535   : > { %v3689_v24 = vld [vmem:[#allocation1] sm:$0xf]  ;;  %8375 = vmatmul.msk.bf16.gmra.mxu2 %vm3550_vm10, %v3961_v47 }
 0x536   : > { %3691 = vst [vmem:[#allocation1] ss:$9 sm:$0xff] %v13742_v23  ;;  %v3816_v22 = vunpack.c.l.b16 %v3689_v24 }
 0x53d   : > { %v3692_v52 = vld [vmem:[#allocation1] sm:$0xf] }
 0x53e   : > { %3694 = vst [vmem:[#allocation1] ss:$9 sm:$0xff] %v13743_v30  ;;  %v3817_v37 = vunpack.c.l.b16 %v3692_v52 }
 0x540   : > { %v3904_v38 = vrot.slane %v3817_v37, 7 }
 0x542   : > { %v3905_v15 = vsel %vm2928_vm0, %v3904_v38, %v3816_v22 }
 0x545   : > { %v3695_v11 = vld [vmem:[#allocation1] sm:$0xf] }
 0x546   : > { %3697 = vst [vmem:[#allocation1] ss:$9 sm:$0xff] %v13744_v62  ;;  %v3818_v35 = vunpack.c.l.b16 %v3695_v11 }
 0x548   : > { %v3906_v26 = vrot.slane %v3818_v35, 6  ;;  %v13763_v35 = vld [vmem:[#allocation80_spill] sm:$0xff] }
 0x54a   : > { %v3907_v7 = vsel %vm2932_vm2, %v3906_v26, %v3905_v15  ;;  %v13773_v26 = vld [vmem:[#allocation86_spill] sm:$0xff] }
 0x54d   : > { %v3698_v1 = vld [vmem:[#allocation1] sm:$0xf] }
 0x54e   : > { %3700 = vst [vmem:[#allocation1] ss:$9 sm:$0xff] %v10847_v54  ;;  %v3819_v63 = vunpack.c.l.b16 %v3698_v1 }
 0x550   : > { %v3908_v28 = vrot.slane %v3819_v63, 5  ;;  %v13766_v63 = vld [vmem:[#allocation16_spill] sm:$0xff] }
 0x552   : > { %v3909_v23 = vsel %vm2936_vm3, %v3908_v28, %v3907_v7  ;;  %v8903_v28 = vld [vmem:[%s13390_s2 + $0x10] sm:$0xff] }
 0x553   : > { %4685 = vmatpush.bf16.msrb.mxu3 %v8903_v28 }
 0x555   : > { %v3701_v33 = vld [vmem:[#allocation1] sm:$0xf] }
 0x556   : > { %3703 = vst [vmem:[#allocation1] ss:$9 sm:$0xff] %v13745_v6 }
 0x55d   : > { %v3704_v50 = vld [vmem:[#allocation1] sm:$0xf] }
 0x55e   : > { %3706 = vst [vmem:[#allocation1] ss:$9 sm:$0xff] %v13746_v32  ;;  %v3821_v34 = vunpack.c.l.b16 %v3704_v50 }
 0x560   : > { %v3912_v40 = vrot.slane %v3821_v34, 3 }
 0x565   : > { %v3707_v42 = vld [vmem:[#allocation1] sm:$0xf] }
 0x566   : > { %3709 = vst [vmem:[#allocation1] ss:$9 sm:$0xff] %v13747_v2  ;;  %v3822_v14 = vunpack.c.l.b16 %v3707_v42 }
 0x568   : > { %v3914_v10 = vrot.slane %v3822_v14, 2 }
 0x56d   : > { %v3710_v20 = vld [vmem:[#allocation1] sm:$0xf] }
 0x56e   : > { %3712 = vst [vmem:[#allocation1] ss:$9 sm:$0xff] %v10886_v3  ;;  %v3823_v29 = vunpack.c.l.b16 %v3710_v20 }
 0x570   : > { %v3916_v52 = vrot.slane %v3823_v29, 1  ;;  %v13775_v29 = vld [vmem:[#allocation20_spill] sm:$0xff] }
 0x575   : > { %v3713_v16 = vld [vmem:[#allocation1] sm:$0xf] }
 0x576   : > { %3715 = vst [vmem:[#allocation1] ss:$9 sm:$0xff] %v13748_v56  ;;  %v3824_v25 = vunpack.c.l.b16 %v3713_v16  ;;  %v13754_v16 = vrot.slane %v10975_v48, 1 }
 0x57d   : > { %v3716_v54 = vld [vmem:[#allocation1] sm:$0xf] }
 0x57e   : > { %3718 = vst [vmem:[#allocation1] ss:$9 sm:$0xff] %v13749_v31  ;;  %v3825_v19 = vunpack.c.l.b16 %v3716_v54  ;;  %v13755_v54 = vrot.slane %v10992_v51, 2 }
 0x580   : > { %v3918_v18 = vrot.slane %v3825_v19, 7  ;;  %v13761_v19 = vld [vmem:[#allocation78_spill] sm:$0xff] }
 0x582   : > { %v3919_v5 = vsel %vm2928_vm0, %v3918_v18, %v3824_v25  ;;  %v13771_v18 = vld [vmem:[#allocation85_spill] sm:$0xff]  ;;  %v11290_v25 = vmax.f32 %v13775_v29, 0.0 }
 0x583   : > { %v13772_v14 = vrot.slane %v13771_v18, 1 }
 0x584   : > { %13776 = vst [vmem:[#allocation23_spill] sm:$0xff] %v11290_v25 }
 0x585   : > { %v3719_v43 = vld [vmem:[#allocation1] sm:$0xf] }
 0x586   : > { %3721 = vst [vmem:[#allocation1] ss:$9 sm:$0xff] %v13750_v17  ;;  %v3826_v27 = vunpack.c.l.b16 %v3719_v43  ;;  %v13756_v43 = vrot.slane %v11003_v61, 3 }
 0x588   : > { %v3920_v58 = vrot.slane %v3826_v27, 6  ;;  %v13764_v27 = vld [vmem:[#allocation81_spill] sm:$0xff] }
 0x58a   : > { %v3921_v41 = vsel %vm2932_vm2, %v3920_v58, %v3919_v5  ;;  %v13774_v58 = vrot.slane %v13773_v26, 2  ;;  %v13779_v26 = vld [vmem:[#allocation21_spill] sm:$0xff] }
 0x58d   : > { %v3722_v39 = vld [vmem:[#allocation1] sm:$0xf] }
 0x58e   : > { %3724 = vst [vmem:[#allocation1] ss:$9 sm:$0xff] %v10917_v13  ;;  %v3827_v12 = vunpack.c.l.b16 %v3722_v39  ;;  %v3820_v13 = vunpack.c.l.b16 %v3701_v33 }
 0x590   : > { %v3922_v8 = vrot.slane %v3827_v12, 5  ;;  %v3910_v44 = vrot.slane %v3820_v13, 4  ;;  %v13767_v12 = vrot.slane %v13766_v63, 2  ;;  %v13768_v13 = vld [vmem:[#allocation82_spill] sm:$0xff] }
 0x592   : > { %v3923_v30 = vsel %vm2936_vm3, %v3922_v8, %v3921_v41  ;;  %v3911_v11 = vsel %vm479_vm6, %v3910_v44, %v3909_v23  ;;  %v11297_v8 = vpack.c.bf16 %v11290_v25, %v11290_v25 }
 0x593   : > { %v3913_v1 = vsel %vm3434_vm7, %v3912_v40, %v3911_v11 }
 0x594   : > { %v3915_v50 = vsel %vm3437_vm8, %v3914_v10, %v3913_v1  ;;  %v4032_v41 = vrot.slane %v11297_v8, 3 }
 0x595   : > { %v3725_v49 = vld [vmem:[#allocation1] sm:$0xf] }
 0x596   : > { %3727 = vst [vmem:[#allocation1] ss:$9 sm:$0xff] %v13751_v57  ;;  %v3828_v0 = vunpack.c.l.b16 %v3725_v49  ;;  %v13757_v49 = vld [vmem:[#allocation77_spill] sm:$0xff] }
 0x597   : > { %v13758_v57 = vrot.slane %v13757_v49, 1 }
 0x598   : > { %v3924_v9 = vrot.slane %v3828_v0, 4  ;;  %v13769_v0 = vrot.slane %v13768_v13, 3 }
 0x59a   : > { %v3925_v62 = vsel %vm479_vm6, %v3924_v9, %v3923_v30 }
 0x59d   : > { %v3728_v3 = vld [vmem:[#allocation1] sm:$0xf] }
 0x59e   : > { %3730 = vst [vmem:[#allocation1] ss:$9 sm:$0xff] %v13752_v36  ;;  %v3829_v46 = vunpack.c.l.b16 %v3728_v3  ;;  %v13759_v36 = vld [vmem:[#allocation15_spill] sm:$0xff] }
 0x59f   : > { %v13760_v37 = vrot.slane %v13759_v36, 2 }
 0x5a0   : > { %v3926_v60 = vrot.slane %v3829_v46, 3  ;;  %v13770_v46 = vld [vmem:[#allocation84_spill] sm:$0xff] }
 0x5a2   : > { %v3927_v33 = vsel %vm3434_vm7, %v3926_v60, %v3925_v62  ;;  %v13777_v60 = vld [vmem:[#allocation87_spill] sm:$0xff] }
 0x5a5   : > { %v3731_v45 = vld [vmem:[#allocation1] sm:$0xf] }
 0x5a6   : > { %3733 = vst [vmem:[#allocation1] ss:$9 sm:$0xff] %v13753_v4  ;;  %v3830_v53 = vunpack.c.l.b16 %v3731_v45  ;;  %v13762_v45 = vrot.slane %v13761_v19, 3  ;;  %v13765_v4 = vrot.slane %v13764_v27, 1 }
 0x5a8   : > { %v3928_v47 = vrot.slane %v3830_v53, 2 }
 0x5aa   : > { %v3929_v32 = vsel %vm3437_vm8, %v3928_v47, %v3927_v33 }
 0x5ad   : > { %v3734_v21 = vld [vmem:[#allocation1] sm:$0xf] }
 0x5ae   : > { %3736 = vst [vmem:[#allocation1] ss:$9 sm:$0xff] %v10960_v59  ;;  %v3831_v24 = vunpack.c.l.b16 %v3734_v21  ;;  %v3917_v59 = vsel %vm3440_vm9, %v3916_v52, %v3915_v50  ;;  %v13778_v21 = vrot.slane %v13777_v60, 3 }
 0x5b0   : > { %v3930_v6 = vrot.slane %v3831_v24, 1 }
 0x5b2   : > { %v3931_v42 = vsel %vm3440_vm9, %v3930_v6, %v3929_v32 }
 0x5b3   : > { %v3962_v2 = vpack.c.b16 %v3931_v42, %v3917_v59 }
 0x5b5   : > { %v3737_v20 = vld [vmem:[#allocation1] sm:$0xf]  ;;  %8376 = vmatmul.msk.bf16.gmra.mxu2 %vm3550_vm10, %v3962_v2 }
 0x5b6   : > { %3739 = vst [vmem:[#allocation1] ss:$9 sm:$0xff] %v13754_v16  ;;  %v3832_v47 = vunpack.c.l.b16 %v3737_v20  ;;  %v11304_v16 = vsel %vm478_vm5, %v11297_v8, %v4032_v41 }
 0x5bd   : > { %v3740_v56 = vld [vmem:[#allocation1] sm:$0xf] }
 0x5be   : > { %3742 = vst [vmem:[#allocation1] ss:$9 sm:$0xff] %v13755_v54  ;;  %v3833_v44 = vunpack.c.l.b16 %v3740_v56 }
 0x5c0   : > { %v3932_v11 = vrot.slane %v3833_v44, 7 }
 0x5c2   : > { %v3933_v54 = vsel %vm2928_vm0, %v3932_v11, %v3832_v47  ;;  %v13781_v47 = vld [vmem:[#allocation25_spill] sm:$0xff] }
 0x5c5   : > { %v3743_v31 = vld [vmem:[#allocation1] sm:$0xf] }
 0x5c6   : > { %3745 = vst [vmem:[#allocation1] ss:$9 sm:$0xff] %v13756_v43  ;;  %v3834_v40 = vunpack.c.l.b16 %v3743_v31 }
 0x5c8   : > { %v3934_v6 = vrot.slane %v3834_v40, 6 }
 0x5ca   : > { %v3935_v49 = vsel %vm2932_vm2, %v3934_v6, %v3933_v54 }
 0x5cd   : > { %v3746_v17 = vld [vmem:[#allocation1] sm:$0xf] }
 0x5ce   : > { %3748 = vst [vmem:[#allocation1] ss:$9 sm:$0xff] %v11021_v55  ;;  %v3835_v7 = vunpack.c.l.b16 %v3746_v17 }
 0x5d0   : > { %v3936_v42 = vrot.slane %v3835_v7, 5 }
 0x5d5   : > { %v3749_v39 = vld [vmem:[#allocation1] sm:$0xf] }
 0x5d6   : > { %3751 = vst [vmem:[#allocation1] ss:$9 sm:$0xff] %v13758_v57  ;;  %v3836_v24 = vunpack.c.l.b16 %v3749_v39 }
 0x5d8   : > { %v3938_v56 = vrot.slane %v3836_v24, 4  ;;  %v11380_v24 = vmax.f32 %v13781_v47, 0.0 }
 0x5da   : > { %13782 = vst [vmem:[#allocation30_spill] sm:$0xff] %v11380_v24 }
 0x5dd   : > { %v3752_v3 = vld [vmem:[#allocation1] sm:$0xf] }
 0x5de   : > { %3754 = vst [vmem:[#allocation1] ss:$9 sm:$0xff] %v13760_v37  ;;  %v3837_v52 = vunpack.c.l.b16 %v3752_v3 }
 0x5e0   : > { %v3940_v31 = vrot.slane %v3837_v52, 3  ;;  %v2862_v52 = vpack.c.bf16 %v11380_v24, %v11380_v24 }
 0x5e2   : > { %v4034_v11 = vrot.slane %v2862_v52, 3 }
 0x5e5   : > { %v3755_v48 = vld [vmem:[#allocation1] sm:$0xf] }
 0x5e6   : > { %3757 = vst [vmem:[#allocation1] ss:$9 sm:$0xff] %v13762_v45  ;;  %v3838_v1 = vunpack.c.l.b16 %v3755_v48  ;;  %v3937_v48 = vsel %vm2936_vm3, %v3936_v42, %v3935_v49 }
 0x5e8   : > { %v3942_v57 = vrot.slane %v3838_v1, 2 }
 0x5ed   : > { %v3758_v51 = vld [vmem:[#allocation1] sm:$0xf] }
 0x5ee   : > { %3760 = vst [vmem:[#allocation1] ss:$9 sm:$0xff] %v13763_v35  ;;  %v3839_v32 = vunpack.c.l.b16 %v3758_v51  ;;  %v3939_v51 = vsel %vm479_vm6, %v3938_v56, %v3937_v48  ;;  %v13783_v56 = vld [vmem:[#allocation29_spill] sm:$0xff] }
 0x5f0   : > { %v3944_v19 = vrot.slane %v3839_v32, 1  ;;  %v11402_v32 = vsel %vm2932_vm2, %v2862_v52, %v4034_v11 }
 0x5f5   : > { %v3761_v61 = vld [vmem:[#allocation1] sm:$0xf] }
 0x5f6   : > { %3763 = vst [vmem:[#allocation1] ss:$9 sm:$0xff] %v13765_v4  ;;  %v3840_v59 = vunpack.c.l.b16 %v3761_v61  ;;  %v3941_v61 = vsel %vm3434_vm7, %v3940_v31, %v3939_v51 }
 0x5f7   : > { %v3943_v63 = vsel %vm3437_vm8, %v3942_v57, %v3941_v61 }
 0x5fd   : > { %v3764_v55 = vld [vmem:[#allocation1] sm:$0xf] }
 0x5fe   : > { %3766 = vst [vmem:[#allocation1] ss:$9 sm:$0xff] %v13767_v12  ;;  %v3841_v9 = vunpack.c.l.b16 %v3764_v55  ;;  %v11319_v55 = vsel %vm2928_vm0, %v11297_v8, %v4032_v41 }
 0x600   : > { %v3946_v62 = vrot.slane %v3841_v9, 7 }
 0x602   : > { %v3947_v43 = vsel %vm2928_vm0, %v3946_v62, %v3840_v59  ;;  %v11390_v62 = vsel %vm478_vm5, %v2862_v52, %v4034_v11  ;;  %v13505_v59 = vrot.slane %v11402_v32, 2 }
 0x605   : > { %v3767_v22 = vld [vmem:[#allocation1] sm:$0xf] }
 0x606   : > { %3769 = vst [vmem:[#allocation1] ss:$9 sm:$0xff] %v13769_v0  ;;  %v3842_v5 = vunpack.c.l.b16 %v3767_v22  ;;  %v3945_v22 = vsel %vm3440_vm9, %v3944_v19, %v3943_v63 }
 0x608   : > { %v3948_v50 = vrot.slane %v3842_v5, 6 }
 0x60a   : > { %v3949_v3 = vsel %vm2932_vm2, %v3948_v50, %v3947_v43 }
 0x60d   : > { %v3770_v34 = vld [vmem:[#allocation1] sm:$0xf] }
 0x60e   : > { %3772 = vst [vmem:[#allocation1] ss:$9 sm:$0xff] %v13770_v46  ;;  %v3843_v10 = vunpack.c.l.b16 %v3770_v34  ;;  %v13516_v34 = vrot.slane %v11319_v55, 1 }
 0x610   : > { %v3950_v2 = vrot.slane %v3843_v10, 5 }
 0x612   : > { %v3951_v45 = vsel %vm2936_vm3, %v3950_v2, %v3949_v3  ;;  %v11408_v2 = vsel %vm2936_vm3, %v2862_v52, %v4034_v11 }
 0x613   : > { %v13504_v54 = vrot.slane %v11408_v2, 3 }
 0x615   : > { %v3773_v38 = vld [vmem:[#allocation1] sm:$0xf] }
 0x616   : > { %3775 = vst [vmem:[#allocation1] ss:$9 sm:$0xff] %v13772_v14  ;;  %v3844_v23 = vunpack.c.l.b16 %v3773_v38  ;;  %v11333_v38 = vsel %vm2932_vm2, %v11297_v8, %v4032_v41 }
 0x617   : > { %v13515_v18 = vrot.slane %v11333_v38, 2 }
 0x618   : > { %v3952_v20 = vrot.slane %v3844_v23, 4 }
 0x61a   : > { %v3953_v35 = vsel %vm479_vm6, %v3952_v20, %v3951_v45  ;;  %v11411_v20 = vmax.f32 %v13783_v56, 0.0  ;;  %v13785_v45 = vld [vmem:[#allocation34_spill] sm:$0xff] }
 0x61b   : > { %v11435_v51 = vmax.f32 %v13785_v45, 0.0 }
 0x61c   : > { %13784 = vst [vmem:[#allocation32_spill] sm:$0xff] %v11411_v20  ;;  %v2863_v31 = vpack.c.bf16 %v11411_v20, %v11411_v20 }
 0x61d   : > { %v3776_v53 = vld [vmem:[#allocation1] sm:$0xf]  ;;  %13786 = vst [vmem:[#allocation33_spill] sm:$0xff] %v11435_v51  ;;  %v11442_v61 = vpack.c.bf16 %v11435_v51, %v11435_v51 }
 0x61e   : > { %3778 = vst [vmem:[#allocation1] ss:$9 sm:$0xff] %v13774_v58  ;;  %v3845_v30 = vunpack.c.l.b16 %v3776_v53  ;;  %v11342_v53 = vsel %vm2936_vm3, %v11297_v8, %v4032_v41  ;;  %v11345_v58 = vmax.f32 %v13779_v26, 0.0 }
 0x61f   : > { %v13514_v29 = vrot.slane %v11342_v53, 3 }
 0x620   : > { %v3954_v17 = vrot.slane %v3845_v30, 3  ;;  %13780 = vst [vmem:[#allocation27_spill] sm:$0xff] %v11345_v58  ;;  %v2859_v28 = vpack.c.bf16 %v11345_v58, %v11345_v58 }
 0x622   : > { %v3955_v27 = vsel %vm3434_vm7, %v3954_v17, %v3953_v35  ;;  %v4033_v9 = vrot.slane %v2859_v28, 3  ;;  %v4035_v17 = vrot.slane %v2863_v31, 3 }
 0x624   : > { %v11361_v8 = vsel %vm2928_vm0, %v2859_v28, %v4033_v9  ;;  %v11377_v41 = vsel %vm2936_vm3, %v2859_v28, %v4033_v9  ;;  %v11423_v57 = vsel %vm2928_vm0, %v2863_v31, %v4035_v17  ;;  %v11438_v35 = vsel %vm2936_vm3, %v2863_v31, %v4035_v17 }
 0x625   : > { %v3779_v15 = vld [vmem:[#allocation1] sm:$0xf]  ;;  %v13512_v5 = vrot.slane %v11361_v8, 1  ;;  %v13510_v23 = vrot.slane %v11377_v41, 3  ;;  %v13503_v3 = vrot.slane %v11423_v57, 1 }
 0x626   : > { %3781 = vst [vmem:[#allocation1] ss:$9 sm:$0xff] %v13778_v21  ;;  %v3846_v33 = vunpack.c.l.b16 %v3779_v15  ;;  %v11355_v15 = vsel %vm478_vm5, %v2859_v28, %v4033_v9  ;;  %v11369_v21 = vsel %vm2932_vm2, %v2859_v28, %v4033_v9  ;;  %v4036_v28 = vrot.slane %v11442_v61, 3 }
 0x627   : > { %v13511_v7 = vrot.slane %v11369_v21, 2 }
 0x628   : > { %v3956_v36 = vrot.slane %v3846_v33, 2  ;;  %v11396_v33 = vsel %vm2928_vm0, %v2862_v52, %v4034_v11 }
 0x629   : > { %v13509_v6 = vrot.slane %v11396_v33, 1 }
 0x62a   : > { %v3957_v12 = vsel %vm3437_vm8, %v3956_v36, %v3955_v27  ;;  %v13495_v27 = vrot.slane %v11438_v35, 3 }
 0x62d   : > { %v3782_v39 = vld [vmem:[#allocation1] sm:$0xf] }
 0x62e   : > { %4240 = vst [vmem:[#allocation1] ss:$9 sm:$0xff] %v11304_v16  ;;  %v3847_v37 = vunpack.c.l.b16 %v3782_v39  ;;  %v11419_v39 = vsel %vm478_vm5, %v2863_v31, %v4035_v17 }
 0x630   : > { %v3958_v4 = vrot.slane %v3847_v37, 1  ;;  %v11429_v37 = vsel %vm2932_vm2, %v2863_v31, %v4035_v17 }
 0x631   : > { %v13502_v48 = vrot.slane %v11429_v37, 2 }
 0x632   : > { %v3959_v13 = vsel %vm3440_vm9, %v3958_v4, %v3957_v12 }
 0x633   : > { %v3963_v0 = vpack.c.b16 %v3959_v13, %v3945_v22 }
 0x635   : > { %8377 = vmatmul.msk.bf16.gmra.mxu2 %vm3550_vm10, %v3963_v0  ;;  %v11327_v46 = vld [vmem:[#allocation1] sm:$0xf] }
 0x636   : > { %4244 = vst [vmem:[#allocation1] ss:$9 sm:$0xff] %v13516_v34  ;;  %v4480_v9 = vunpack.c.l.b16 %v11327_v46  ;;  %v11458_v46 = vsel %vm478_vm5, %v11442_v61, %v4036_v28 }
 0x63d   : > { %v11336_v14 = vld [vmem:[#allocation1] sm:$0xf] }
 0x63e   : > { %4248 = vst [vmem:[#allocation1] ss:$9 sm:$0xff] %v13515_v18  ;;  %v4481_v4 = vunpack.c.l.b16 %v11336_v14 }
 0x645   : > { %v11350_v44 = vld [vmem:[#allocation1] sm:$0xf] }
 0x646   : > { %4252 = vst [vmem:[#allocation1] ss:$9 sm:$0xff] %v13514_v29  ;;  %v4482_v22 = vunpack.c.l.b16 %v11350_v44 }
 0x64d   : > { %v11357_v40 = vld [vmem:[#allocation1] sm:$0xf] }
 0x64e   : > { %4255 = vst [vmem:[#allocation1] ss:$9 sm:$0xff] %v11355_v15  ;;  %v4483_v0 = vunpack.c.l.b16 %v11357_v40 }
 0x650   : > { %v4548_v45 = vrot.slane %v4483_v0, 5 }
 0x655   : > { %v11364_v60 = vld [vmem:[#allocation1] sm:$0xf] }
 0x656   : > { %4259 = vst [vmem:[#allocation1] ss:$9 sm:$0xff] %v13512_v5  ;;  %v4484_v47 = vunpack.c.l.b16 %v11364_v60 }
 0x658   : > { %v4550_v60 = vrot.slane %v4484_v47, 4 }
 0x65d   : > { %v11372_v10 = vld [vmem:[#allocation1] sm:$0xf] }
 0x65e   : > { %4263 = vst [vmem:[#allocation1] ss:$9 sm:$0xff] %v13511_v7  ;;  %v4485_v14 = vunpack.c.l.b16 %v11372_v10 }
 0x665   : > { %v11385_v30 = vld [vmem:[#allocation1] sm:$0xf] }
 0x666   : > { %4267 = vst [vmem:[#allocation1] ss:$9 sm:$0xff] %v13510_v23  ;;  %v4486_v44 = vunpack.c.l.b16 %v11385_v30 }
 0x66d   : > { %v11392_v1 = vld [vmem:[#allocation1] sm:$0xf] }
 0x66e   : > { %4270 = vst [vmem:[#allocation1] ss:$9 sm:$0xff] %v11390_v62  ;;  %v4487_v40 = vunpack.c.l.b16 %v11392_v1 }
 0x675   : > { %v4271_v50 = vld [vmem:[#allocation1] sm:$0xf] }
 0x676   : > { %4274 = vst [vmem:[#allocation1] ss:$9 sm:$0xff] %v13509_v6  ;;  %v13801_v6 = vld [vmem:[#allocation51_spill] sm:$0xff] }
 0x677   : > { %v11597_v23 = vmax.f32 %v13801_v6, 0.0 }
 0x679   : > { %13802 = vst [vmem:[#allocation44_spill] sm:$0xff] %v11597_v23  ;;  %v11604_v5 = vpack.c.bf16 %v11597_v23, %v11597_v23 }
 0x67d   : > { %v4275_v42 = vld [vmem:[#allocation1] sm:$0xf] }
 0x67e   : > { %4278 = vst [vmem:[#allocation1] ss:$9 sm:$0xff] %v13505_v59  ;;  %v4489_v63 = vunpack.c.l.b16 %v4275_v42  ;;  %v4544_v42 = vrot.slane %v4481_v4, 7 }
 0x680   : > { %v4558_v56 = vrot.slane %v4489_v63, 7  ;;  %v4545_v10 = vsel %vm2928_vm0, %v4544_v42, %v4480_v9 }
 0x685   : > { %v4279_v43 = vld [vmem:[#allocation1] sm:$0xf] }
 0x686   : > { %4282 = vst [vmem:[#allocation1] ss:$9 sm:$0xff] %v13504_v54  ;;  %v4490_v13 = vunpack.c.l.b16 %v4279_v43  ;;  %v4546_v43 = vrot.slane %v4482_v22, 6  ;;  %v4554_v22 = vrot.slane %v4486_v44, 2 }
 0x688   : > { %v4560_v17 = vrot.slane %v4490_v13, 6 }
 0x68d   : > { %v4283_v49 = vld [vmem:[#allocation1] sm:$0xf] }
 0x68e   : > { %4285 = vst [vmem:[#allocation1] ss:$9 sm:$0xff] %v11419_v39  ;;  %v4491_v26 = vunpack.c.l.b16 %v4283_v49  ;;  %v4488_v49 = vunpack.c.l.b16 %v4271_v50 }
 0x690   : > { %v4559_v4 = vsel %vm2928_vm0, %v4558_v56, %v4488_v49  ;;  %v11473_v56 = vsel %vm2928_vm0, %v11442_v61, %v4036_v28 }
 0x691   : > { %v4561_v1 = vsel %vm2932_vm2, %v4560_v17, %v4559_v4  ;;  %v13787_v17 = vld [vmem:[#allocation5_spill] sm:$0xff]  ;;  %v11490_v4 = vsel %vm2932_vm2, %v11442_v61, %v4036_v28 }
 0x695   : > { %v4286_v36 = vld [vmem:[#allocation1] sm:$0xf] }
 0x696   : > { %4289 = vst [vmem:[#allocation1] ss:$9 sm:$0xff] %v13503_v3  ;;  %v4492_v52 = vunpack.c.l.b16 %v4286_v36  ;;  %v13799_v3 = vld [vmem:[#allocation45_spill] sm:$0xff] }
 0x698   : > { %v4564_v36 = vrot.slane %v4492_v52, 4 }
 0x69d   : > { %v4290_v19 = vld [vmem:[#allocation1] sm:$0xf] }
 0x69e   : > { %4293 = vst [vmem:[#allocation1] ss:$9 sm:$0xff] %v13502_v48  ;;  %v4493_v11 = vunpack.c.l.b16 %v4290_v19  ;;  %v4552_v19 = vrot.slane %v4485_v14, 3 }
 0x6a0   : > { %v4566_v30 = vrot.slane %v4493_v11, 3 }
 0x6a5   : > { %v4294_v12 = vld [vmem:[#allocation1] sm:$0xf] }
 0x6a6   : > { %4297 = vst [vmem:[#allocation1] ss:$9 sm:$0xff] %v13495_v27  ;;  %v4494_v31 = vunpack.c.l.b16 %v4294_v12  ;;  %v4562_v27 = vrot.slane %v4491_v26, 5  ;;  %v4547_v12 = vsel %vm2932_vm2, %v4546_v43, %v4545_v10  ;;  %v4556_v26 = vrot.slane %v4487_v40, 1  ;;  %v13788_v40 = vld [vmem:[#allocation24_spill] sm:$0xff]  ;;  %v13789_v10 = vld [vmem:[#allocation26_spill] sm:$0xff] }
 0x6a7   : > { %v4549_v0 = vsel %vm2936_vm3, %v4548_v45, %v4547_v12  ;;  %v2320_v49 = vadd.f32 %v13788_v40, %v13787_v17  ;;  %v13500_v12 = vrot.slane %v11490_v4, 2  ;;  %v13793_v17 = vld [vmem:[#allocation43_spill] sm:$0xff] }
 0x6a8   : > { %v4568_v50 = vrot.slane %v4494_v31, 2  ;;  %v4563_v47 = vsel %vm2936_vm3, %v4562_v27, %v4561_v1  ;;  %v4551_v9 = vsel %vm479_vm6, %v4550_v60, %v4549_v0  ;;  %v13501_v60 = vrot.slane %v11473_v56, 1 }
 0x6a9   : > { %v4565_v52 = vsel %vm479_vm6, %v4564_v36, %v4563_v47  ;;  %v4553_v14 = vsel %vm3434_vm7, %v4552_v19, %v4551_v9  ;;  %v2479_v19 = vadd.f32 %v13789_v10, %v2320_v49  ;;  %v11538_v40 = vmax.f32 %v13793_v17, 0.0 }
 0x6aa   : > { %v4567_v11 = vsel %vm3434_vm7, %v4566_v30, %v4565_v52  ;;  %v4555_v44 = vsel %vm3437_vm8, %v4554_v22, %v4553_v14  ;;  %v13790_v30 = vld [vmem:[#allocation28_spill] sm:$0xff]  ;;  %v13791_v22 = vld [vmem:[#allocation37_spill] sm:$0xff] }
 0x6ab   : > { %v4569_v31 = vsel %vm3437_vm8, %v4568_v50, %v4567_v11  ;;  %v4557_v27 = vsel %vm3440_vm9, %v4556_v26, %v4555_v44  ;;  %13794 = vst [vmem:[#allocation39_spill] sm:$0xff] %v11538_v40 }
 0x6ad   : > { %v4298_v63 = vld [vmem:[#allocation1] sm:$0xf] }
 0x6ae   : > { %v4495_v13 = vunpack.c.l.b16 %v4298_v63  ;;  %4300 = vst [vmem:[#allocation1] ss:$9 sm:$0xff] %v11458_v46  ;;  %v2607_v63 = vadd.f32 %v13790_v30, %v2479_v19 }
 0x6b0   : > { %v4570_v42 = vrot.slane %v4495_v13, 1  ;;  %v2735_v1 = vadd.f32 %v13791_v22, %v2607_v63  ;;  %v11501_v13 = vsel %vm2936_vm3, %v11442_v61, %v4036_v28 }
 0x6b1   : > { %v13499_v26 = vrot.slane %v11501_v13, 3 }
 0x6b2   : > { %v4571_v43 = vsel %vm3440_vm9, %v4570_v42, %v4569_v31  ;;  %v11503_v0 = vmax.f32 %v2735_v1, 0.0  ;;  %v13795_v1 = vld [vmem:[#allocation6_spill] sm:$0xff] }
 0x6b3   : > { %v4656_v45 = vpack.c.b16 %v4571_v43, %v4557_v27 }
 0x6b4   : > { %13792 = vst [vmem:[#allocation35_spill] sm:$0xff] %v11503_v0  ;;  %v2867_v47 = vpack.c.bf16 %v11503_v0, %v11503_v0 }
 0x6b5   : > { %8386 = vmatmul.msk.bf16.vlgmr.msrb.gmra.mxu3 %vm3550_vm10, %v4656_v45  ;;  %v11483_v36 = vld [vmem:[#allocation1] sm:$0xf]  ;;  %v2870_v45 = vpack.c.bf16 %v11538_v40, %v11538_v40 }
 0x6b6   : > { %4304 = vst [vmem:[#allocation1] ss:$9 sm:$0xff] %v13501_v60  ;;  %v4037_v52 = vrot.slane %v2867_v47, 3 }
 0x6b7   : > { %v4038_v19 = vrot.slane %v2870_v45, 3 }
 0x6b8   : > { %v11513_v14 = vsel %vm478_vm5, %v2867_v47, %v4037_v52  ;;  %v11519_v61 = vsel %vm2928_vm0, %v2867_v47, %v4037_v52  ;;  %v11527_v44 = vsel %vm2932_vm2, %v2867_v47, %v4037_v52  ;;  %v11535_v43 = vsel %vm2936_vm3, %v2867_v47, %v4037_v52  ;;  %v13796_v47 = vld [vmem:[#allocation36_spill] sm:$0xff] }
 0x6b9   : > { %v13498_v28 = vrot.slane %v11519_v61, 1  ;;  %v13496_v31 = vrot.slane %v11527_v44, 2  ;;  %v13497_v49 = vrot.slane %v11535_v43, 3  ;;  %v11548_v30 = vsel %vm478_vm5, %v2870_v45, %v4038_v19 }
 0x6ba   : > { %v11554_v22 = vsel %vm2928_vm0, %v2870_v45, %v4038_v19  ;;  %v2330_v52 = vadd.f32 %v13796_v47, %v13795_v1  ;;  %v11571_v1 = vsel %vm2936_vm3, %v2870_v45, %v4038_v19 }
 0x6bb   : > { %v13506_v17 = vrot.slane %v11554_v22, 1 }
 0x6bd   : > { %v11495_v50 = vld [vmem:[#allocation1] sm:$0xf] }
 0x6be   : > { %4308 = vst [vmem:[#allocation1] ss:$9 sm:$0xff] %v13500_v12  ;;  %v13798_v12 = vld [vmem:[#allocation41_spill] sm:$0xff]  ;;  %v4497_v29 = vunpack.c.l.b16 %v11495_v50 }
 0x6c0   : > { %v4572_v51 = vrot.slane %v4497_v29, 7 }
 0x6c5   : > { %v11508_v9 = vld [vmem:[#allocation1] sm:$0xf] }
 0x6c6   : > { %4312 = vst [vmem:[#allocation1] ss:$9 sm:$0xff] %v13499_v26  ;;  %v11563_v26 = vsel %vm2932_vm2, %v2870_v45, %v4038_v19 }
 0x6c7   : > { %v13508_v48 = vrot.slane %v11563_v26, 2 }
 0x6cd   : > { %v11515_v11 = vld [vmem:[#allocation1] sm:$0xf] }
 0x6ce   : > { %4315 = vst [vmem:[#allocation1] ss:$9 sm:$0xff] %v11513_v14  ;;  %v4499_v6 = vunpack.c.l.b16 %v11515_v11 }
 0x6d0   : > { %v4576_v58 = vrot.slane %v4499_v6, 5 }
 0x6d5   : > { %v11522_v42 = vld [vmem:[#allocation1] sm:$0xf] }
 0x6d6   : > { %4319 = vst [vmem:[#allocation1] ss:$9 sm:$0xff] %v13498_v28  ;;  %v4500_v23 = vunpack.c.l.b16 %v11522_v42 }
 0x6d8   : > { %v4578_v42 = vrot.slane %v4500_v23, 4 }
 0x6dd   : > { %v11530_v27 = vld [vmem:[#allocation1] sm:$0xf] }
 0x6de   : > { %4323 = vst [vmem:[#allocation1] ss:$9 sm:$0xff] %v13496_v31  ;;  %v4501_v50 = vunpack.c.l.b16 %v11530_v27 }
 0x6e0   : > { %v4580_v29 = vrot.slane %v4501_v50, 3 }
 0x6e5   : > { %v11543_v10 = vld [vmem:[#allocation1] sm:$0xf] }
 0x6e6   : > { %4327 = vst [vmem:[#allocation1] ss:$9 sm:$0xff] %v13497_v49  ;;  %v13797_v49 = vld [vmem:[#allocation38_spill] sm:$0xff] }
 0x6e7   : > { %v2483_v28 = vadd.f32 %v13797_v49, %v2330_v52  ;;  %v13507_v49 = vrot.slane %v11571_v1, 3 }
 0x6e9   : > { %v2611_v60 = vadd.f32 %v13798_v12, %v2483_v28 }
 0x6eb   : > { %v2739_v54 = vadd.f32 %v13799_v3, %v2611_v60 }
 0x6ed   : > { %v11550_v63 = vld [vmem:[#allocation1] sm:$0xf]  ;;  %v11573_v47 = vmax.f32 %v2739_v54, 0.0 }
 0x6ee   : > { %4330 = vst [vmem:[#allocation1] ss:$9 sm:$0xff] %v11548_v30  ;;  %v4503_v11 = vunpack.c.l.b16 %v11550_v63 }
 0x6ef   : > { %13800 = vst [vmem:[#allocation42_spill] sm:$0xff] %v11573_v47  ;;  %v2871_v52 = vpack.c.bf16 %v11573_v47, %v11573_v47  ;;  %v4498_v47 = vunpack.c.l.b16 %v11508_v9  ;;  %v4502_v9 = vunpack.c.l.b16 %v11543_v10 }
 0x6f1   : > { %v4039_v12 = vrot.slane %v2871_v52, 3  ;;  %v4574_v24 = vrot.slane %v4498_v47, 6  ;;  %v4582_v10 = vrot.slane %v4502_v9, 2  ;;  %v13805_v9 = vld [vmem:[#allocation8_spill] sm:$0xff] }
 0x6f3   : > { %v11581_v3 = vsel %vm478_vm5, %v2871_v52, %v4039_v12  ;;  %v11585_v28 = vsel %vm2928_vm0, %v2871_v52, %v4039_v12  ;;  %v11591_v19 = vsel %vm2932_vm2, %v2871_v52, %v4039_v12  ;;  %v11600_v7 = vsel %vm2936_vm3, %v2871_v52, %v4039_v12 }
 0x6f4   : > { %v13513_v54 = vrot.slane %v11585_v28, 1  ;;  %v4040_v12 = vrot.slane %v11604_v5, 3 }
 0x6f5   : > { %v4331_v31 = vld [vmem:[#allocation1] sm:$0xf] }
 0x6f6   : > { %4334 = vst [vmem:[#allocation1] ss:$9 sm:$0xff] %v13506_v17 }
 0x6fd   : > { %v4335_v59 = vld [vmem:[#allocation1] sm:$0xf] }
 0x6fe   : > { %4338 = vst [vmem:[#allocation1] ss:$9 sm:$0xff] %v13508_v48  ;;  %v4505_v18 = vunpack.c.l.b16 %v4335_v59 }
 0x700   : > { %v4586_v20 = vrot.slane %v4505_v18, 7 }
 0x705   : > { %v4339_v17 = vld [vmem:[#allocation1] sm:$0xf] }
 0x706   : > { %4342 = vst [vmem:[#allocation1] ss:$9 sm:$0xff] %v13507_v49  ;;  %v13519_v49 = vrot.slane %v11591_v19, 2  ;;  %v4506_v40 = vunpack.c.l.b16 %v4339_v17 }
 0x70d   : > { %v4343_v60 = vld [vmem:[#allocation1] sm:$0xf] }
 0x70e   : > { %4345 = vst [vmem:[#allocation1] ss:$9 sm:$0xff] %v11581_v3  ;;  %v4507_v52 = vunpack.c.l.b16 %v4343_v60  ;;  %v4504_v60 = vunpack.c.l.b16 %v4331_v31 }
 0x710   : > { %v4590_v25 = vrot.slane %v4507_v52, 5  ;;  %v4587_v18 = vsel %vm2928_vm0, %v4586_v20, %v4504_v60  ;;  %v4584_v52 = vrot.slane %v4503_v11, 1 }
 0x715   : > { %v4346_v45 = vld [vmem:[#allocation1] sm:$0xf] }
 0x716   : > { %4349 = vst [vmem:[#allocation1] ss:$9 sm:$0xff] %v13513_v54  ;;  %v13525_v54 = vrot.slane %v11600_v7, 3  ;;  %v4508_v0 = vunpack.c.l.b16 %v4346_v45 }
 0x718   : > { %v4592_v45 = vrot.slane %v4508_v0, 4 }
 0x71d   : > { %v4350_v48 = vld [vmem:[#allocation1] sm:$0xf] }
 0x71e   : > { %4353 = vst [vmem:[#allocation1] ss:$9 sm:$0xff] %v13519_v49  ;;  %v4496_v49 = vunpack.c.l.b16 %v11483_v36  ;;  %v4509_v59 = vunpack.c.l.b16 %v4350_v48  ;;  %v11620_v36 = vsel %vm478_vm5, %v11604_v5, %v4040_v12 }
 0x71f   : > { %13803 = vst [vmem:[#allocation46_spill] sm:$0xff] %v11620_v36 }
 0x720   : > { %v4573_v48 = vsel %vm2928_vm0, %v4572_v51, %v4496_v49  ;;  %v4594_v27 = vrot.slane %v4509_v59, 3 }
 0x725   : > { %v4354_v34 = vld [vmem:[#allocation1] sm:$0xf] }
 0x726   : > { %4357 = vst [vmem:[#allocation1] ss:$9 sm:$0xff] %v13525_v54  ;;  %v4510_v17 = vunpack.c.l.b16 %v4354_v34  ;;  %v4588_v54 = vrot.slane %v4506_v40, 6  ;;  %v4575_v40 = vsel %vm2932_vm2, %v4574_v24, %v4573_v48  ;;  %v13807_v48 = vld [vmem:[#allocation49_spill] sm:$0xff] }
 0x727   : > { %v4577_v6 = vsel %vm2936_vm3, %v4576_v58, %v4575_v40 }
 0x728   : > { %v4589_v31 = vsel %vm2932_vm2, %v4588_v54, %v4587_v18  ;;  %v4596_v63 = vrot.slane %v4510_v17, 2  ;;  %v4579_v51 = vsel %vm479_vm6, %v4578_v42, %v4577_v6  ;;  %v11635_v54 = vsel %vm2928_vm0, %v11604_v5, %v4040_v12  ;;  %v13806_v17 = vld [vmem:[#allocation48_spill] sm:$0xff] }
 0x729   : > { %v4591_v23 = vsel %vm2936_vm3, %v4590_v25, %v4589_v31  ;;  %v4581_v0 = vsel %vm3434_vm7, %v4580_v29, %v4579_v51  ;;  %13804 = vst [vmem:[#allocation56_spill] sm:$0xff] %v11635_v54  ;;  %v2340_v11 = vadd.f32 %v13806_v17, %v13805_v9  ;;  %v13533_v42 = vrot.slane %v11635_v54, 1  ;;  %v13817_v9 = vld [vmem:[#allocation58_spill] sm:$0xff] }
 0x72a   : > { %v4593_v20 = vsel %vm479_vm6, %v4592_v45, %v4591_v23  ;;  %v4583_v58 = vsel %vm3437_vm8, %v4582_v10, %v4581_v0  ;;  %v11652_v18 = vsel %vm2932_vm2, %v11604_v5, %v4040_v12  ;;  %v13810_v10 = vld [vmem:[#allocation52_spill] sm:$0xff]  ;;  %v11700_v17 = vmax.f32 %v13817_v9, 0.0 }
 0x72b   : > { %v4595_v24 = vsel %vm3434_vm7, %v4594_v27, %v4593_v20  ;;  %v4585_v25 = vsel %vm3440_vm9, %v4584_v52, %v4583_v58  ;;  %v2487_v29 = vadd.f32 %v13807_v48, %v2340_v11  ;;  %13808 = vst [vmem:[#allocation59_spill] sm:$0xff] %v11652_v18  ;;  %v13809_v27 = vld [vmem:[#allocation50_spill] sm:$0xff]  ;;  %v13532_v40 = vrot.slane %v11652_v18, 2 }
 0x72c   : > { %v4597_v50 = vsel %vm3437_vm8, %v4596_v63, %v4595_v24  ;;  %13818 = vst [vmem:[#allocation70_spill] sm:$0xff] %v11700_v17 }
 0x72d   : > { %v4358_v34 = vld [vmem:[#allocation1] sm:$0xf] }
 0x72e   : > { %v4511_v47 = vunpack.c.l.b16 %v4358_v34  ;;  %4360 = vst [vmem:[#allocation1] ss:$9 sm:$0xff] %v11620_v36  ;;  %v2615_v34 = vadd.f32 %v13809_v27, %v2487_v29 }
 0x730   : > { %v4598_v49 = vrot.slane %v4511_v47, 1  ;;  %v2743_v31 = vadd.f32 %v13810_v10, %v2615_v34  ;;  %v11663_v47 = vsel %vm2936_vm3, %v11604_v5, %v4040_v12 }
 0x731   : > { %13811 = vst [vmem:[#allocation61_spill] sm:$0xff] %v11663_v47  ;;  %v13531_v52 = vrot.slane %v11663_v47, 3 }
 0x732   : > { %v4599_v59 = vsel %vm3440_vm9, %v4598_v49, %v4597_v50  ;;  %v11665_v6 = vmax.f32 %v2743_v31, 0.0  ;;  %v13821_v31 = vld [vmem:[#allocation11_spill] sm:$0xff] }
 0x733   : > { %v4657_v60 = vpack.c.b16 %v4599_v59, %v4585_v25 }
 0x734   : > { %13812 = vst [vmem:[#allocation63_spill] sm:$0xff] %v11665_v6  ;;  %v2875_v23 = vpack.c.bf16 %v11665_v6, %v11665_v6  ;;  %v13826_v6 = vld [vmem:[#allocation60_spill] sm:$0xff] }
 0x735   : > { %8387 = vmatmul.msk.bf16.gmra.mxu3 %vm3550_vm10, %v4657_v60  ;;  %v11645_v45 = vld [vmem:[#allocation1] sm:$0xf]  ;;  %v2878_v60 = vpack.c.bf16 %v11700_v17, %v11700_v17 }
 0x736   : > { %4364 = vst [vmem:[#allocation1] ss:$9 sm:$0xff] %v13533_v42  ;;  %v4041_v20 = vrot.slane %v2875_v23, 3 }
 0x737   : > { %v4042_v29 = vrot.slane %v2878_v60, 3 }
 0x738   : > { %v11675_v0 = vsel %vm478_vm5, %v2875_v23, %v4041_v20  ;;  %v11681_v5 = vsel %vm2928_vm0, %v2875_v23, %v4041_v20  ;;  %v11689_v58 = vsel %vm2932_vm2, %v2875_v23, %v4041_v20  ;;  %v11697_v59 = vsel %vm2936_vm3, %v2875_v23, %v4041_v20  ;;  %v13822_v23 = vld [vmem:[#allocation54_spill] sm:$0xff] }
 0x739   : > { %13813 = vst [vmem:[#allocation65_spill] sm:$0xff] %v11675_v0  ;;  %v13530_v12 = vrot.slane %v11681_v5, 1  ;;  %v13528_v50 = vrot.slane %v11689_v58, 2  ;;  %v13529_v11 = vrot.slane %v11697_v59, 3  ;;  %v11710_v27 = vsel %vm478_vm5, %v2878_v60, %v4042_v29 }
 0x73a   : > { %13814 = vst [vmem:[#allocation66_spill] sm:$0xff] %v11681_v5  ;;  %v11716_v10 = vsel %vm2928_vm0, %v2878_v60, %v4042_v29  ;;  %v2350_v20 = vadd.f32 %v13822_v23, %v13821_v31  ;;  %v11733_v31 = vsel %vm2936_vm3, %v2878_v60, %v4042_v29 }
 0x73b   : > { %13815 = vst [vmem:[#allocation68_spill] sm:$0xff] %v11689_v58  ;;  %v13538_v9 = vrot.slane %v11716_v10, 1 }
 0x73c   : > { %13816 = vst [vmem:[#allocation69_spill] sm:$0xff] %v11697_v59 }
 0x73d   : > { %v11657_v63 = vld [vmem:[#allocation1] sm:$0xf]  ;;  %13819 = vst [vmem:[#allocation72_spill] sm:$0xff] %v11710_v27 }
 0x73e   : > { %4368 = vst [vmem:[#allocation1] ss:$9 sm:$0xff] %v13532_v40  ;;  %v13825_v40 = vld [vmem:[#allocation57_spill] sm:$0xff] }
 0x73f   : > { %13820 = vst [vmem:[#allocation77_spill] sm:$0xff] %v11716_v10 }
 0x740   : > { %13827 = vst [vmem:[#allocation78_spill] sm:$0xff] %v11733_v31 }
 0x745   : > { %v11670_v51 = vld [vmem:[#allocation1] sm:$0xf] }
 0x746   : > { %4372 = vst [vmem:[#allocation1] ss:$9 sm:$0xff] %v13531_v52  ;;  %v11725_v52 = vsel %vm2932_vm2, %v2878_v60, %v4042_v29  ;;  %v4514_v5 = vunpack.c.l.b16 %v11670_v51 }
 0x747   : > { %13824 = vst [vmem:[#allocation15_spill] sm:$0xff] %v11725_v52  ;;  %v13540_v17 = vrot.slane %v11725_v52, 2 }
 0x74d   : > { %v11677_v24 = vld [vmem:[#allocation1] sm:$0xf] }
 0x74e   : > { %4375 = vst [vmem:[#allocation1] ss:$9 sm:$0xff] %v11675_v0 }
 0x755   : > { %v11684_v49 = vld [vmem:[#allocation1] sm:$0xf] }
 0x756   : > { %4379 = vst [vmem:[#allocation1] ss:$9 sm:$0xff] %v13530_v12 }
 0x75d   : > { %v11692_v25 = vld [vmem:[#allocation1] sm:$0xf] }
 0x75e   : > { %4383 = vst [vmem:[#allocation1] ss:$9 sm:$0xff] %v13528_v50 }
 0x765   : > { %v11705_v48 = vld [vmem:[#allocation1] sm:$0xf] }
 0x766   : > { %4387 = vst [vmem:[#allocation1] ss:$9 sm:$0xff] %v13529_v11  ;;  %v13823_v11 = vld [vmem:[#allocation55_spill] sm:$0xff]  ;;  %v4518_v51 = vunpack.c.l.b16 %v11705_v48 }
 0x767   : > { %v2491_v12 = vadd.f32 %v13823_v11, %v2350_v20  ;;  %v13539_v11 = vrot.slane %v11733_v31, 3 }
 0x769   : > { %v2619_v42 = vadd.f32 %v13825_v40, %v2491_v12 }
 0x76d   : > { %v11712_v34 = vld [vmem:[#allocation1] sm:$0xf] }
 0x76e   : > { %4390 = vst [vmem:[#allocation1] ss:$9 sm:$0xff] %v11710_v27  ;;  %v2747_v27 = vadd.f32 %v13826_v6, %v2619_v42 }
 0x770   : > { %v11735_v23 = vmax.f32 %v2747_v27, 0.0 }
 0x772   : > { %13828 = vst [vmem:[#allocation80_spill] sm:$0xff] %v11735_v23  ;;  %v2879_v20 = vpack.c.bf16 %v11735_v23, %v11735_v23  ;;  %v13832_v23 = vld [vmem:[#allocation64_spill] sm:$0xff] }
 0x774   : > { %v4043_v40 = vrot.slane %v2879_v20, 3 }
 0x775   : > { %v4391_v50 = vld [vmem:[#allocation1] sm:$0xf] }
 0x776   : > { %4394 = vst [vmem:[#allocation1] ss:$9 sm:$0xff] %v13538_v9  ;;  %v11743_v42 = vsel %vm478_vm5, %v2879_v20, %v4043_v40  ;;  %v11747_v12 = vsel %vm2928_vm0, %v2879_v20, %v4043_v40  ;;  %v11753_v27 = vsel %vm2932_vm2, %v2879_v20, %v4043_v40  ;;  %v11762_v31 = vsel %vm2936_vm3, %v2879_v20, %v4043_v40 }
 0x777   : > { %13829 = vst [vmem:[#allocation81_spill] sm:$0xff] %v11743_v42  ;;  %v13545_v60 = vrot.slane %v11747_v12, 1 }
 0x778   : > { %13830 = vst [vmem:[#allocation16_spill] sm:$0xff] %v11747_v12  ;;  %v4513_v12 = vunpack.c.l.b16 %v11657_v63  ;;  %v4517_v63 = vunpack.c.l.b16 %v11692_v25 }
 0x779   : > { %13831 = vst [vmem:[#allocation82_spill] sm:$0xff] %v11753_v27 }
 0x77a   : > { %13834 = vst [vmem:[#allocation85_spill] sm:$0xff] %v11762_v31  ;;  %v4600_v47 = vrot.slane %v4513_v12, 7  ;;  %v4610_v12 = vrot.slane %v4518_v51, 2  ;;  %v13836_v51 = vld [vmem:[#allocation14_spill] sm:$0xff] }
 0x77d   : > { %v4395_v59 = vld [vmem:[#allocation1] sm:$0xf] }
 0x77e   : > { %4398 = vst [vmem:[#allocation1] ss:$9 sm:$0xff] %v13540_v17  ;;  %v4521_v10 = vunpack.c.l.b16 %v4395_v59 }
 0x780   : > { %v4614_v18 = vrot.slane %v4521_v10, 7 }
 0x785   : > { %v4399_v9 = vld [vmem:[#allocation1] sm:$0xf] }
 0x786   : > { %4402 = vst [vmem:[#allocation1] ss:$9 sm:$0xff] %v13539_v11  ;;  %v13551_v11 = vrot.slane %v11753_v27, 2  ;;  %v4522_v27 = vunpack.c.l.b16 %v4399_v9 }
 0x78d   : > { %v4403_v6 = vld [vmem:[#allocation1] sm:$0xf] }
 0x78e   : > { %4405 = vst [vmem:[#allocation1] ss:$9 sm:$0xff] %v11743_v42  ;;  %v11759_v42 = vmax.f32 %v13832_v23, 0.0  ;;  %v4515_v23 = vunpack.c.l.b16 %v11677_v24  ;;  %v4523_v20 = vunpack.c.l.b16 %v4403_v6  ;;  %v4519_v24 = vunpack.c.l.b16 %v11712_v34 }
 0x78f   : > { %v4520_v6 = vunpack.c.l.b16 %v4391_v50 }
 0x790   : > { %13833 = vst [vmem:[#allocation84_spill] sm:$0xff] %v11759_v42  ;;  %v11766_v52 = vpack.c.bf16 %v11759_v42, %v11759_v42  ;;  %v4516_v42 = vunpack.c.l.b16 %v11684_v49  ;;  %v4604_v54 = vrot.slane %v4515_v23, 5  ;;  %v4618_v36 = vrot.slane %v4523_v20, 5 }
 0x791   : > { %v4615_v10 = vsel %vm2928_vm0, %v4614_v18, %v4520_v6  ;;  %v4612_v20 = vrot.slane %v4519_v24, 1 }
 0x792   : > { %v4044_v40 = vrot.slane %v11766_v52, 3  ;;  %v4606_v49 = vrot.slane %v4516_v42, 4 }
 0x795   : > { %v4406_v29 = vld [vmem:[#allocation1] sm:$0xf] }
 0x796   : > { %4409 = vst [vmem:[#allocation1] ss:$9 sm:$0xff] %v13545_v60  ;;  %v13557_v60 = vrot.slane %v11762_v31, 3  ;;  %v4524_v0 = vunpack.c.l.b16 %v4406_v29  ;;  %v4602_v31 = vrot.slane %v4514_v5, 6 }
 0x798   : > { %v4620_v29 = vrot.slane %v4524_v0, 4 }
 0x79d   : > { %v4410_v17 = vld [vmem:[#allocation1] sm:$0xf] }
 0x79e   : > { %4413 = vst [vmem:[#allocation1] ss:$9 sm:$0xff] %v13551_v11  ;;  %v4512_v11 = vunpack.c.l.b16 %v11645_v45  ;;  %v4525_v59 = vunpack.c.l.b16 %v4410_v17  ;;  %v11782_v45 = vsel %vm478_vm5, %v11766_v52, %v4044_v40  ;;  %v4608_v17 = vrot.slane %v4517_v63, 3 }
 0x7a0   : > { %v4601_v25 = vsel %vm2928_vm0, %v4600_v47, %v4512_v11  ;;  %v4622_v48 = vrot.slane %v4525_v59, 3 }
 0x7a1   : > { %v4603_v5 = vsel %vm2932_vm2, %v4602_v31, %v4601_v25  ;;  %v13838_v25 = vld [vmem:[#allocation74_spill] sm:$0xff] }
 0x7a2   : > { %v4605_v23 = vsel %vm2936_vm3, %v4604_v54, %v4603_v5 }
 0x7a3   : > { %v4607_v47 = vsel %vm479_vm6, %v4606_v49, %v4605_v23 }
 0x7a4   : > { %v4609_v0 = vsel %vm3434_vm7, %v4608_v17, %v4607_v47 }
 0x7a5   : > { %v4414_v58 = vld [vmem:[#allocation1] sm:$0xf]  ;;  %v4611_v54 = vsel %vm3437_vm8, %v4610_v12, %v4609_v0  ;;  %v13841_v12 = vld [vmem:[#allocation76_spill] sm:$0xff] }
 0x7a6   : > { %4417 = vst [vmem:[#allocation1] ss:$9 sm:$0xff] %v13557_v60  ;;  %v4526_v9 = vunpack.c.l.b16 %v4414_v58  ;;  %v4616_v60 = vrot.slane %v4522_v27, 6 }
 0x7a8   : > { %v4617_v50 = vsel %vm2932_vm2, %v4616_v60, %v4615_v10  ;;  %v4624_v34 = vrot.slane %v4526_v9, 2  ;;  %v11797_v60 = vsel %vm2928_vm0, %v11766_v52, %v4044_v40  ;;  %v13837_v9 = vld [vmem:[#allocation73_spill] sm:$0xff]  ;;  %v11814_v10 = vsel %vm2932_vm2, %v11766_v52, %v4044_v40 }
 0x7a9   : > { %v4619_v42 = vsel %vm2936_vm3, %v4618_v36, %v4617_v50  ;;  %13835 = vst [vmem:[#allocation86_spill] sm:$0xff] %v11797_v60  ;;  %v4613_v36 = vsel %vm3440_vm9, %v4612_v20, %v4611_v54  ;;  %v2360_v24 = vadd.f32 %v13837_v9, %v13836_v51  ;;  %v13565_v49 = vrot.slane %v11797_v60, 1  ;;  %v2591_v9 = vpop.f32.mrf.mxu3 }
 0x7aa   : > { %v4621_v18 = vsel %vm479_vm6, %v4620_v29, %v4619_v42  ;;  %13839 = vst [vmem:[#allocation20_spill] sm:$0xff] %v11814_v10  ;;  %v13564_v5 = vrot.slane %v11814_v10, 2 }
 0x7ab   : > { %v4623_v31 = vsel %vm3434_vm7, %v4622_v48, %v4621_v18  ;;  %v2495_v17 = vadd.f32 %v13838_v25, %v2360_v24  ;;  %v13840_v48 = vld [vmem:[#allocation75_spill] sm:$0xff] }
 0x7ac   : > { %v4625_v63 = vsel %vm3437_vm8, %v4624_v34, %v4623_v31 }
 0x7ad   : > { %v4418_v58 = vld [vmem:[#allocation1] sm:$0xf] }
 0x7ae   : > { %v4527_v27 = vunpack.c.l.b16 %v4418_v58  ;;  %4420 = vst [vmem:[#allocation1] ss:$9 sm:$0xff] %v11782_v45  ;;  %v2623_v58 = vadd.f32 %v13840_v48, %v2495_v17 }
 0x7b0   : > { %v4626_v11 = vrot.slane %v4527_v27, 1  ;;  %v2751_v50 = vadd.f32 %v13841_v12, %v2623_v58  ;;  %v11825_v27 = vsel %vm2936_vm3, %v11766_v52, %v4044_v40  ;;  %v2367_v52 = vpop.f32.mrf.mxu1 }
 0x7b1   : > { %13842 = vst [vmem:[#allocation87_spill] sm:$0xff] %v11825_v27  ;;  %v13563_v20 = vrot.slane %v11825_v27, 3 }
 0x7b2   : > { %v4627_v59 = vsel %vm3440_vm9, %v4626_v11, %v4625_v63  ;;  %v11827_v23 = vmax.f32 %v2751_v50, 0.0  ;;  %v13846_v11 = vld [vmem:[#allocation17_spill] sm:$0xff]  ;;  %v2463_v63 = vpop.f32.mrf.mxu2 }
 0x7b3   : > { %v4658_v6 = vpack.c.b16 %v4627_v59, %v4613_v36  ;;  %v2368_v54 = vadd.f32 %v2367_v52, %v13846_v11 }
 0x7b4   : > { %13843 = vst [vmem:[#allocation21_spill] sm:$0xff] %v11827_v23  ;;  %v2883_v42 = vpack.c.bf16 %v11827_v23, %v11827_v23 }
 0x7b5   : > { %8388 = vmatmul.msk.bf16.gmra.mxu3 %vm3550_vm10, %v4658_v6  ;;  %v11807_v29 = vld [vmem:[#allocation1] sm:$0xf]  ;;  %v2498_v51 = vadd.f32 %v2463_v63, %v2368_v54  ;;  %v2719_v6 = vpop.f32.mrf.mxu0 }
 0x7b6   : > { %4424 = vst [vmem:[#allocation1] ss:$9 sm:$0xff] %v13565_v49  ;;  %v4045_v18 = vrot.slane %v2883_v42, 3 }
 0x7b7   : > { %v2626_v25 = vadd.f32 %v2591_v9, %v2498_v51 }
 0x7b8   : > { %v11837_v0 = vsel %vm478_vm5, %v2883_v42, %v4045_v18  ;;  %v11843_v40 = vsel %vm2928_vm0, %v2883_v42, %v4045_v18  ;;  %v11852_v24 = vsel %vm2932_vm2, %v2883_v42, %v4045_v18  ;;  %v11860_v12 = vsel %vm2936_vm3, %v2883_v42, %v4045_v18  ;;  %v2369_v42 = vpop.f32.mrf.mxu1 }
 0x7b9   : > { %13844 = vst [vmem:[#allocation25_spill] sm:$0xff] %v11837_v0  ;;  %v13561_v36 = vrot.slane %v11843_v40, 1  ;;  %v13560_v17 = vrot.slane %v11852_v24, 2  ;;  %v2754_v48 = vadd.f32 %v2719_v6, %v2626_v25  ;;  %v13562_v52 = vrot.slane %v11860_v12, 3  ;;  %v13852_v6 = vld [vmem:[#allocation18_spill] sm:$0xff] }
 0x7ba   : > { %13845 = vst [vmem:[#allocation29_spill] sm:$0xff] %v11843_v40  ;;  %v2370_v25 = vadd.f32 %v2369_v42, %v13852_v6 }
 0x7bb   : > { %13847 = vst [vmem:[#allocation34_spill] sm:$0xff] %v11852_v24  ;;  %v11862_v50 = vmax.f32 %v2754_v48, 0.0  ;;  %v2465_v48 = vpop.f32.mrf.mxu2 }
 0x7bc   : > { %13848 = vst [vmem:[#allocation5_spill] sm:$0xff] %v11860_v12 }
 0x7bd   : > { %v11819_v34 = vld [vmem:[#allocation1] sm:$0xf]  ;;  %13849 = vst [vmem:[#allocation24_spill] sm:$0xff] %v11862_v50  ;;  %v2886_v11 = vpack.c.bf16 %v11862_v50, %v11862_v50  ;;  %v2721_v49 = vpop.f32.mrf.mxu0 }
 0x7be   : > { %4428 = vst [vmem:[#allocation1] ss:$9 sm:$0xff] %v13564_v5 }
 0x7bf   : > { %v4046_v63 = vrot.slane %v2886_v11, 3 }
 0x7c1   : > { %v11872_v51 = vsel %vm478_vm5, %v2886_v11, %v4046_v63  ;;  %v11878_v18 = vsel %vm2928_vm0, %v2886_v11, %v4046_v63  ;;  %v11885_v5 = vsel %vm2932_vm2, %v2886_v11, %v4046_v63  ;;  %v11891_v42 = vsel %vm2936_vm3, %v2886_v11, %v4046_v63 }
 0x7c2   : > { %13850 = vst [vmem:[#allocation26_spill] sm:$0xff] %v11872_v51  ;;  %v13572_v23 = vrot.slane %v11885_v5, 2 }
 0x7c3   : > { %13851 = vst [vmem:[#allocation28_spill] sm:$0xff] %v11878_v18 }
 0x7c4   : > { %13853 = vst [vmem:[#allocation37_spill] sm:$0xff] %v11885_v5 }
 0x7c5   : > { %v11832_v47 = vld [vmem:[#allocation1] sm:$0xf]  ;;  %13854 = vst [vmem:[#allocation43_spill] sm:$0xff] %v11891_v42 }
 0x7c6   : > { %4432 = vst [vmem:[#allocation1] ss:$9 sm:$0xff] %v13563_v20  ;;  %v2593_v20 = vpop.f32.mrf.mxu3 }
 0x7cd   : > { %v11839_v31 = vld [vmem:[#allocation1] sm:$0xf] }
 0x7ce   : > { %4435 = vst [vmem:[#allocation1] ss:$9 sm:$0xff] %v11837_v0 }
 0x7d5   : > { %v11847_v59 = vld [vmem:[#allocation1] sm:$0xf] }
 0x7d6   : > { %4439 = vst [vmem:[#allocation1] ss:$9 sm:$0xff] %v13561_v36 }
 0x7dd   : > { %v11855_v58 = vld [vmem:[#allocation1] sm:$0xf] }
 0x7de   : > { %4443 = vst [vmem:[#allocation1] ss:$9 sm:$0xff] %v13560_v17  ;;  %v13570_v17 = vrot.slane %v11878_v18, 1  ;;  %v4530_v18 = vunpack.c.l.b16 %v11832_v47  ;;  %v4533_v40 = vunpack.c.l.b16 %v11855_v58 }
 0x7e5   : > { %v11867_v54 = vld [vmem:[#allocation1] sm:$0xf] }
 0x7e6   : > { %4447 = vst [vmem:[#allocation1] ss:$9 sm:$0xff] %v13562_v52  ;;  %v2499_v52 = vadd.f32 %v2465_v48, %v2370_v25  ;;  %v13571_v25 = vrot.slane %v11891_v42, 3  ;;  %v4534_v27 = vunpack.c.l.b16 %v11867_v54 }
 0x7e8   : > { %v2627_v50 = vadd.f32 %v2593_v20, %v2499_v52  ;;  %v4638_v54 = vrot.slane %v4534_v27, 2 }
 0x7ed   : > { %v11874_v9 = vld [vmem:[#allocation1] sm:$0xf] }
 0x7ee   : > { %4450 = vst [vmem:[#allocation1] ss:$9 sm:$0xff] %v11872_v51  ;;  %v2755_v51 = vadd.f32 %v2721_v49, %v2627_v50 }
 0x7f0   : > { %v11893_v6 = vmax.f32 %v2755_v51, 0.0 }
 0x7f2   : > { %13855 = vst [vmem:[#allocation6_spill] sm:$0xff] %v11893_v6  ;;  %v2887_v48 = vpack.c.bf16 %v11893_v6, %v11893_v6 }
 0x7f4   : > { %v4047_v20 = vrot.slane %v2887_v48, 3 }
 0x7f5   : > { %v4451_v36 = vld [vmem:[#allocation1] sm:$0xf] }
 0x7f6   : > { %4454 = vst [vmem:[#allocation1] ss:$9 sm:$0xff] %v13570_v17  ;;  %v11901_v49 = vsel %vm478_vm5, %v2887_v48, %v4047_v20  ;;  %v11905_v52 = vsel %vm2928_vm0, %v2887_v48, %v4047_v20  ;;  %v11911_v51 = vsel %vm2932_vm2, %v2887_v48, %v4047_v20  ;;  %v11917_v6 = vsel %vm2936_vm3, %v2887_v48, %v4047_v20 }
 0x7f7   : > { %13856 = vst [vmem:[#allocation36_spill] sm:$0xff] %v11901_v49  ;;  %v13576_v11 = vrot.slane %v11905_v52, 1  ;;  %v4531_v48 = vunpack.c.l.b16 %v11839_v31 }
 0x7f8   : > { %13857 = vst [vmem:[#allocation38_spill] sm:$0xff] %v11905_v52  ;;  %v13587_v52 = vrot.slane %v11917_v6, 3 }
 0x7f9   : > { %13858 = vst [vmem:[#allocation41_spill] sm:$0xff] %v11911_v51  ;;  %v4632_v31 = vrot.slane %v4531_v48, 5 }
 0x7fa   : > { %13859 = vst [vmem:[#allocation45_spill] sm:$0xff] %v11917_v6  ;;  %v4536_v6 = vunpack.c.l.b16 %v4451_v36 }
 0x7fd   : > { %v4455_v12 = vld [vmem:[#allocation1] sm:$0xf] }
 0x7fe   : > { %4458 = vst [vmem:[#allocation1] ss:$9 sm:$0xff] %v13572_v23  ;;  %v4537_v42 = vunpack.c.l.b16 %v4455_v12 }
 0x800   : > { %v4642_v12 = vrot.slane %v4537_v42, 7 }
 0x802   : > { %v4643_v58 = vsel %vm2928_vm0, %v4642_v12, %v4536_v6  ;;  %v13861_v12 = vrot.slane %v11333_v38, 2 }
 0x805   : > { %v4459_v17 = vld [vmem:[#allocation1] sm:$0xf] }
 0x806   : > { %4462 = vst [vmem:[#allocation1] ss:$9 sm:$0xff] %v13571_v25  ;;  %v13581_v25 = vrot.slane %v11911_v51, 2  ;;  %v4538_v24 = vunpack.c.l.b16 %v4459_v17  ;;  %v4532_v51 = vunpack.c.l.b16 %v11847_v59  ;;  %v4630_v17 = vrot.slane %v4530_v18, 6 }
 0x808   : > { %v4644_v10 = vrot.slane %v4538_v24, 6  ;;  %v4634_v60 = vrot.slane %v4532_v51, 4 }
 0x80d   : > { %v4463_v50 = vld [vmem:[#allocation1] sm:$0xf] }
 0x80e   : > { %4465 = vst [vmem:[#allocation1] ss:$9 sm:$0xff] %v11901_v49  ;;  %v8904_v49 = vld [vmem:[%s13390_s2 + $0x18] sm:$0xff]  ;;  %v4539_v20 = vunpack.c.l.b16 %v4463_v50 }
 0x80f   : > { %5112 = vmatpush.bf16.msra.mxu1 %v8904_v49 }
 0x810   : > { %v4646_v50 = vrot.slane %v4539_v20, 5 }
 0x815   : > { %v4466_v63 = vld [vmem:[#allocation1] sm:$0xf] }
 0x816   : > { %4469 = vst [vmem:[#allocation1] ss:$9 sm:$0xff] %v13576_v11  ;;  %v4529_v11 = vunpack.c.l.b16 %v11819_v34  ;;  %v4540_v49 = vunpack.c.l.b16 %v4466_v63  ;;  %v4636_v63 = vrot.slane %v4533_v40, 3 }
 0x818   : > { %v4628_v34 = vrot.slane %v4529_v11, 7 }
 0x81d   : > { %v4470_v23 = vld [vmem:[#allocation1] sm:$0xf] }
 0x81e   : > { %4473 = vst [vmem:[#allocation1] ss:$9 sm:$0xff] %v13581_v25  ;;  %v4528_v25 = vunpack.c.l.b16 %v11807_v29  ;;  %v4541_v0 = vunpack.c.l.b16 %v4470_v23  ;;  %v4648_v29 = vrot.slane %v4540_v49, 4 }
 0x820   : > { %v4629_v59 = vsel %vm2928_vm0, %v4628_v34, %v4528_v25  ;;  %v4650_v23 = vrot.slane %v4541_v0, 3 }
 0x821   : > { %v4631_v42 = vsel %vm2932_vm2, %v4630_v17, %v4629_v59  ;;  %v13862_v17 = vrot.slane %v11342_v53, 3 }
 0x822   : > { %v4633_v36 = vsel %vm2936_vm3, %v4632_v31, %v4631_v42 }
 0x823   : > { %v4635_v40 = vsel %vm479_vm6, %v4634_v60, %v4633_v36  ;;  %v13860_v60 = vrot.slane %v11319_v55, 1  ;;  %v13864_v55 = vrot.slane %v11369_v21, 2  ;;  %v13868_v21 = vrot.slane %v11408_v2, 3 }
 0x824   : > { %v4637_v0 = vsel %vm3434_vm7, %v4636_v63, %v4635_v40 }
 0x825   : > { %v4474_v5 = vld [vmem:[#allocation1] sm:$0xf] }
 0x826   : > { %4477 = vst [vmem:[#allocation1] ss:$9 sm:$0xff] %v13587_v52  ;;  %v4542_v47 = vunpack.c.l.b16 %v4474_v5  ;;  %v4535_v52 = vunpack.c.l.b16 %v11874_v9  ;;  %v4645_v5 = vsel %vm2932_vm2, %v4644_v10, %v4643_v58  ;;  %v4639_v10 = vsel %vm3437_vm8, %v4638_v54, %v4637_v0 }
 0x827   : > { %v4647_v51 = vsel %vm2936_vm3, %v4646_v50, %v4645_v5  ;;  %v13865_v58 = vrot.slane %v11377_v41, 3  ;;  %v13869_v54 = vrot.slane %v11423_v57, 1  ;;  %v13870_v5 = vrot.slane %v11429_v37, 2 }
 0x828   : > { %v4652_v24 = vrot.slane %v4542_v47, 2  ;;  %v4640_v9 = vrot.slane %v4535_v52, 1  ;;  %v4649_v6 = vsel %vm479_vm6, %v4648_v29, %v4647_v51  ;;  %v13863_v29 = vrot.slane %v11361_v8, 1 }
 0x829   : > { %v4651_v25 = vsel %vm3434_vm7, %v4650_v23, %v4649_v6  ;;  %v13866_v23 = vrot.slane %v11396_v33, 1  ;;  %v13867_v8 = vrot.slane %v11402_v32, 2  ;;  %v13871_v33 = vmov 0  }
 0x82a   : > { %v4653_v48 = vsel %vm3437_vm8, %v4652_v24, %v4651_v25  ;;  %v4641_v20 = vsel %vm3440_vm9, %v4640_v9, %v4639_v10  ;;  %5154 = vst.msk [vmem:[#allocation3 + $0x8] sm:$0xf] %vm5150_vm11, %v13871_v33  ;;  %v13872_v37 = vrot.slane %v11438_v35, 3 }
 0x82b   : > { %5155 = vst.msk [vmem:[#allocation3 + $0xc] sm:$0x3] %vm5152_vm12, %v13871_v33 }
 0x82c   : > { %5151 = vst.msk [vmem:[#allocation3] sm:$0xf] %vm5150_vm11, %v13871_v33 }
 0x82d   : > { %v4478_v11 = vld [vmem:[#allocation1] sm:$0xf]  ;;  %5153 = vst.msk [vmem:[#allocation3 + $0x4] sm:$0x3] %vm5152_vm12, %v13871_v33 }
 0x82e   : > { %v4543_v18 = vunpack.c.l.b16 %v4478_v11  ;;  %4715 = vst [vmem:[#allocation1] ss:$9 sm:$0xff] %v11304_v16 }
 0x82f   : > { %5157 = vst.msk [vmem:[#allocation3 + $0x50] sm:$0xf] %vm5150_vm11, %v13871_v33 }
 0x830   : > { %v4654_v27 = vrot.slane %v4543_v18, 1  ;;  %5158 = vst.msk [vmem:[#allocation3 + $0x54] sm:$0x3] %vm5152_vm12, %v13871_v33 }
 0x831   : > { %5159 = vst.msk [vmem:[#allocation3 + $0x58] sm:$0xf] %vm5150_vm11, %v13871_v33  ;;  %vm5834_vm11 = vcmask 392192  }
 0x832   : > { %v4655_v52 = vsel %vm3440_vm9, %v4654_v27, %v4653_v48  ;;  %5160 = vst.msk [vmem:[#allocation3 + $0x5c] sm:$0x3] %vm5152_vm12, %v13871_v33  ;;  %vm5859_vm12 = vcmask 523264  }
 0x833   : > { %v4659_v49 = vpack.c.b16 %v4655_v52, %v4641_v20  ;;  %5163 = vst.msk [vmem:[#allocation3 + $0x10] sm:$0x1] %vm5162_vm15, %v13871_v33 }
 0x834   : > { %5164 = vst.msk [vmem:[#allocation3 + $0x18] sm:$0x1] %vm5162_vm15, %v13871_v33 }
 0x835   : > { %8389 = vmatmul.msk.bf16.gmra.mxu3 %vm3550_vm10, %v4659_v49  ;;  %v4716_v16 = vld [vmem:[#allocation1] sm:$0xf]  ;;  %5165 = vst.msk [vmem:[#allocation3 + $0x20] sm:$0x1] %vm5162_vm15, %v13871_v33 }
 0x836   : > { %4718 = vst [vmem:[#allocation1] ss:$9 sm:$0xff] %v13860_v60  ;;  %v4907_v32 = vunpack.c.l.b16 %v4716_v16  ;;  %v11993_v49 = vld [vmem:[#allocation3 + $0x8] sm:$0xe] }
 0x837   : > { %5166 = vst.msk [vmem:[#allocation3 + $0x28] sm:$0x1] %vm5162_vm15, %v13871_v33 }
 0x838   : > { %v4971_v6 = vrot.slane %v4907_v32, 1  ;;  %5167 = vst.msk [vmem:[#allocation3 + $0x30] sm:$0x1] %vm5162_vm15, %v13871_v33 }
 0x839   : > { %5168 = vst.msk [vmem:[#allocation3 + $0x38] sm:$0x1] %vm5162_vm15, %v13871_v33 }
 0x83a   : > { %5169 = vst.msk [vmem:[#allocation3 + $0x40] sm:$0x1] %vm5162_vm15, %v13871_v33 }
 0x83b   : > { %5170 = vst.msk [vmem:[#allocation3 + $0x48] sm:$0x1] %vm5162_vm15, %v13871_v33 }
 0x83c   : > { %5172 = vst.msk [vmem:[#allocation3 + $0x14] sm:$0x2] %vm5171_vm1, %v13871_v33 }
 0x83d   : > { %v11951_v34 = vld [vmem:[#allocation1] sm:$0xf]  ;;  %5173 = vst.msk [vmem:[#allocation3 + $0x1c] sm:$0x2] %vm5171_vm1, %v13871_v33 }
 0x83e   : > { %4721 = vst [vmem:[#allocation1] ss:$9 sm:$0xff] %v13861_v12  ;;  %v4908_v9 = vunpack.c.l.b16 %v11951_v34  ;;  %v11998_v12 = vld [vmem:[#allocation3 + $0xc] sm:$0x1] }
 0x83f   : > { %5174 = vst.msk [vmem:[#allocation3 + $0x24] sm:$0x2] %vm5171_vm1, %v13871_v33 }
 0x840   : > { %5175 = vst.msk [vmem:[#allocation3 + $0x2c] sm:$0x2] %vm5171_vm1, %v13871_v33 }
 0x841   : > { %5176 = vst.msk [vmem:[#allocation3 + $0x34] sm:$0x2] %vm5171_vm1, %v13871_v33 }
 0x842   : > { %5177 = vst.msk [vmem:[#allocation3 + $0x3c] sm:$0x2] %vm5171_vm1, %v13871_v33 }
 0x843   : > { %5178 = vst.msk [vmem:[#allocation3 + $0x44] sm:$0x2] %vm5171_vm1, %v13871_v33 }
 0x844   : > { %5179 = vst.msk [vmem:[#allocation3 + $0x4c] sm:$0x2] %vm5171_vm1, %v13871_v33  ;;  %vm5955_vm1 = vcmask 654336  }
 0x845   : > { %v4722_v47 = vld [vmem:[#allocation1] sm:$0xf] }
 0x846   : > { %4724 = vst [vmem:[#allocation1] ss:$9 sm:$0xff] %v13862_v17  ;;  %v4909_v2 = vunpack.c.l.b16 %v4722_v47  ;;  %v5486_v47 = vunpack.c.l.b16 %v11993_v49  ;;  %v4972_v17 = vsel %vm2928_vm0, %v4908_v9, %v4971_v6  ;;  %v13873_v9 = vrot.slane %v11473_v56, 1 }
 0x848   : > { %v4973_v10 = vrot.slane %v4909_v2, 7 }
 0x84d   : > { %v4725_v31 = vld [vmem:[#allocation1] sm:$0xf] }
 0x84e   : > { %4727 = vst [vmem:[#allocation1] ss:$9 sm:$0xff] %v11355_v15  ;;  %v4910_v57 = vunpack.c.l.b16 %v4725_v31 }
 0x850   : > { %v4975_v20 = vrot.slane %v4910_v57, 6 }
 0x855   : > { %v4728_v50 = vld [vmem:[#allocation1] sm:$0xf] }
 0x856   : > { %4730 = vst [vmem:[#allocation1] ss:$9 sm:$0xff] %v13863_v29  ;;  %v4911_v51 = vunpack.c.l.b16 %v4728_v50  ;;  %v5332_v29 = vunpack.c.l.b16 %v11998_v12 }
 0x858   : > { %v4977_v31 = vrot.slane %v4911_v51, 5 }
 0x85d   : > { %v4731_v59 = vld [vmem:[#allocation1] sm:$0xf] }
 0x85e   : > { %4733 = vst [vmem:[#allocation1] ss:$9 sm:$0xff] %v13864_v55  ;;  %v4912_v0 = vunpack.c.l.b16 %v4731_v59  ;;  %v4974_v59 = vsel %vm2932_vm2, %v4973_v10, %v4972_v17  ;;  %v13876_v10 = vrot.slane %v11519_v61, 1  ;;  %v13879_v61 = vrot.slane %v11554_v22, 1 }
 0x860   : > { %v4979_v55 = vrot.slane %v4912_v0, 4  ;;  %v13875_v0 = vrot.slane %v11501_v13, 3  ;;  %v3572_v13 = vpop.f32.mrf.mxu1 }
 0x865   : > { %v4734_v63 = vld [vmem:[#allocation1] sm:$0xf] }
 0x866   : > { %4736 = vst [vmem:[#allocation1] ss:$9 sm:$0xff] %v13865_v58  ;;  %v4913_v48 = vunpack.c.l.b16 %v4734_v63 }
 0x86d   : > { %v11964_v38 = vld [vmem:[#allocation1] sm:$0xf] }
 0x86e   : > { %4739 = vst [vmem:[#allocation1] ss:$9 sm:$0xff] %v11390_v62  ;;  %v4914_v16 = vunpack.c.l.b16 %v11964_v38 }
 0x875   : > { %v4740_v53 = vld [vmem:[#allocation1] sm:$0xf] }
 0x876   : > { %4742 = vst [vmem:[#allocation1] ss:$9 sm:$0xff] %v13866_v23  ;;  %v4915_v18 = vunpack.c.l.b16 %v4740_v53  ;;  %v4981_v53 = vrot.slane %v4913_v48, 3  ;;  %v13877_v48 = vrot.slane %v11527_v44, 2 }
 0x878   : > { %v4985_v60 = vrot.slane %v4915_v18, 1 }
 0x87d   : > { %v4743_v15 = vld [vmem:[#allocation1] sm:$0xf] }
 0x87e   : > { %4745 = vst [vmem:[#allocation1] ss:$9 sm:$0xff] %v13867_v8  ;;  %v4916_v25 = vunpack.c.l.b16 %v4743_v15  ;;  %v5498_v8 = vpack.c.b16 %v5332_v29, %v5486_v47 }
 0x880   : > { %v4986_v63 = vsel %vm2928_vm0, %v4916_v25, %v4985_v60  ;;  %v13880_v60 = vrot.slane %v11563_v26, 2 }
 0x885   : > { %v4746_v11 = vld [vmem:[#allocation1] sm:$0xf] }
 0x886   : > { %4748 = vst [vmem:[#allocation1] ss:$9 sm:$0xff] %v13868_v21  ;;  %v4917_v24 = vunpack.c.l.b16 %v4746_v11  ;;  %v4976_v21 = vsel %vm2936_vm3, %v4975_v20, %v4974_v59 }
 0x888   : > { %v4987_v52 = vrot.slane %v4917_v24, 7 }
 0x88a   : > { %v4988_v23 = vsel %vm2932_vm2, %v4987_v52, %v4986_v63  ;;  %v5282_v63 = vld [vmem:[#allocation3 + $0xc] sm:$0x3] }
 0x88d   : > { %v4749_v42 = vld [vmem:[#allocation1] sm:$0xf] }
 0x88e   : > { %4751 = vst [vmem:[#allocation1] ss:$9 sm:$0xff] %v11419_v39  ;;  %v4918_v36 = vunpack.c.l.b16 %v4749_v42  ;;  %v4983_v42 = vrot.slane %v4914_v16, 2 }
 0x890   : > { %v4989_v34 = vrot.slane %v4918_v36, 6 }
 0x895   : > { %v4752_v41 = vld [vmem:[#allocation1] sm:$0xf] }
 0x896   : > { %4754 = vst [vmem:[#allocation1] ss:$9 sm:$0xff] %v13869_v54  ;;  %v4919_v40 = vunpack.c.l.b16 %v4752_v41  ;;  %v4990_v41 = vsel %vm2936_vm3, %v4989_v34, %v4988_v23  ;;  %v4978_v54 = vsel %vm479_vm6, %v4977_v31, %v4976_v21 }
 0x897   : > { %v4980_v32 = vsel %vm3434_vm7, %v4979_v55, %v4978_v54 }
 0x898   : > { %v4991_v50 = vrot.slane %v4919_v40, 5  ;;  %v4982_v57 = vsel %vm3437_vm8, %v4981_v53, %v4980_v32  ;;  %v13874_v40 = vrot.slane %v11490_v4, 2  ;;  %v5269_v32 = vld [vmem:[#allocation3] sm:$0xe] }
 0x89d   : > { %v4755_v62 = vld [vmem:[#allocation1] sm:$0xf] }
 0x89e   : > { %4757 = vst [vmem:[#allocation1] ss:$9 sm:$0xff] %v13870_v5  ;;  %v4920_v27 = vunpack.c.l.b16 %v4755_v62  ;;  %v4992_v62 = vsel %vm479_vm6, %v4991_v50, %v4990_v41  ;;  %v5510_v5 = vrot.slane %v5498_v8, 1  ;;  %v13882_v50 = vrot.slane %v11585_v28, 1  ;;  %v3991_v28 = vpop.f32.mrf.mxu2 }
 0x8a0   : > { %v4993_v58 = vrot.slane %v4920_v27, 4  ;;  %5523 = vrot.lane.b32.xlu1 %v5510_v5, %s9076_s13 }
 0x8a2   : > { %v4994_v2 = vsel %vm3434_vm7, %v4993_v58, %v4992_v62  ;;  %v5558_v58 = vunpack.c.l.b16 %v5282_v63 }
 0x8a4   : > { %v5570_v23 = vpack.c.b16 %v5558_v58, %v5486_v47  ;;  %v5485_v47 = vunpack.c.l.b16 %v5269_v32 }
 0x8a5   : > { %v4758_v39 = vld [vmem:[#allocation1] sm:$0xf] }
 0x8a6   : > { %4760 = vst [vmem:[#allocation1] ss:$9 sm:$0xff] %v13872_v37  ;;  %v4921_v35 = vunpack.c.l.b16 %v4758_v39  ;;  %v4984_v37 = vsel %vm3440_vm9, %v4983_v42, %v4982_v57  ;;  %v5593_v21 = vshll.u32 %v5570_v23, 16  ;;  %v5294_v57 = vld [vmem:[#allocation3 + $0x8] sm:$0xc] }
 0x8a8   : > { %v4995_v15 = vrot.slane %v4921_v35, 3  ;;  %v13878_v35 = vrot.slane %v11535_v43, 3  ;;  %v5595_v5 = vrot.slane %v5593_v21, 2  ;;  %v13884_v21 = vrot.slane %v11600_v7, 3 }
 0x8aa   : > { %v4996_v24 = vsel %vm3437_vm8, %v4995_v15, %v4994_v2  ;;  %v13883_v2 = vrot.slane %v11591_v19, 2 }
 0x8ad   : > { %v4761_v38 = vld [vmem:[#allocation1] sm:$0xf] }
 0x8ae   : > { %v4922_v11 = vunpack.c.l.b16 %v4761_v38  ;;  %4763 = vst [vmem:[#allocation1] ss:$9 sm:$0xff] %v11458_v46 }
 0x8b0   : > { %v4997_v39 = vrot.slane %v4922_v11, 2  ;;  %v5590_v11 = vshrl.u32 %v5570_v23, 16 }
 0x8b2   : > { %v4998_v46 = vsel %vm3440_vm9, %v4997_v39, %v4996_v24  ;;  %v5592_v62 = vrot.slane %v5590_v11, 1  ;;  %v12113_v24 = vld [vmem:[#allocation3 + $0x8] sm:$0xf] }
 0x8b3   : > { %v5083_v18 = vpack.c.b16 %v4998_v46, %v4984_v37  ;;  %v4687_v37 = vpop.f32.mrf.mxu3 }
 0x8b4   : > { %v5596_v46 = vor.u32 %v5595_v5, %v5592_v62 }
 0x8b5   : > { %8394 = vmatmul.msk.bf16.vlgmr.msra.gmra.mxu1 %vm3550_vm10, %v5083_v18  ;;  %v12025_v36 = vld [vmem:[#allocation1] sm:$0xf]  ;;  %v5714_v18 = vunpack.c.l.b16 %v5294_v57 }
 0x8b6   : > { %4766 = vst [vmem:[#allocation1] ss:$9 sm:$0xff] %v13873_v9  ;;  %v4923_v42 = vunpack.c.l.b16 %v12025_v36  ;;  %v5331_v36 = vunpack.c.l.b16 %v12113_v24  ;;  %v5281_v9 = vld [vmem:[#allocation3 + $0x4] sm:$0x3]  ;;  %5679 = vrot.lane.b32.xlu1 %v5596_v46, %s9078_s15  ;;  %v3993_v46 = vpop.f32.mrf.mxu2 }
 0x8bd   : > { %v12029_v51 = vld [vmem:[#allocation1] sm:$0xf] }
 0x8be   : > { %4769 = vst [vmem:[#allocation1] ss:$9 sm:$0xff] %v13874_v40  ;;  %v4924_v39 = vunpack.c.l.b16 %v12029_v51  ;;  %v3992_v40 = vadd.f32 %v3991_v28, %v3572_v13  ;;  %v5726_v51 = vpack.c.b16 %v5558_v58, %v5714_v18 }
 0x8c5   : > { %v12033_v6 = vld [vmem:[#allocation1] sm:$0xf] }
 0x8c6   : > { %4772 = vst [vmem:[#allocation1] ss:$9 sm:$0xff] %v13875_v0  ;;  %v4999_v0 = vrot.slane %v4923_v42, 1 }
 0x8cd   : > { %v12037_v25 = vld [vmem:[#allocation1] sm:$0xf] }
 0x8ce   : > { %4775 = vst [vmem:[#allocation1] ss:$9 sm:$0xff] %v11513_v14  ;;  %v12055_v14 = vpop.f32.mrf.mxu1 }
 0x8d5   : > { %v12040_v27 = vld [vmem:[#allocation1] sm:$0xf] }
 0x8d6   : > { %4778 = vst [vmem:[#allocation1] ss:$9 sm:$0xff] %v13876_v10  ;;  %v12061_v16 = vpop.f32.mrf.mxu1  ;;  %v5557_v10 = vunpack.c.l.b16 %v5281_v9  ;;  %v4927_v12 = vunpack.c.l.b16 %v12040_v27 }
 0x8d8   : > { %v5569_v13 = vpack.c.b16 %v5557_v10, %v5485_v47  ;;  %v5005_v32 = vrot.slane %v4927_v12, 5 }
 0x8da   : > { %v5585_v23 = vshll.u32 %v5569_v13, 16 }
 0x8dd   : > { %v12044_v56 = vld [vmem:[#allocation1] sm:$0xf] }
 0x8de   : > { %4781 = vst [vmem:[#allocation1] ss:$9 sm:$0xff] %v13877_v48  ;;  %v12069_v34 = vpop.f32.mrf.mxu1  ;;  %v5354_v48 = vpack.c.b16 %v5332_v29, %v5331_v36 }
 0x8e5   : > { %v12048_v4 = vld [vmem:[#allocation1] sm:$0xf] }
 0x8e6   : > { %4784 = vst [vmem:[#allocation1] ss:$9 sm:$0xff] %v13878_v35  ;;  %v12075_v31 = vpop.f32.mrf.mxu1  ;;  %v5293_v35 = vld [vmem:[#allocation3] sm:$0xc] }
 0x8e7   : > { %v5713_v58 = vunpack.c.l.b16 %v5293_v35 }
 0x8ed   : > { %v12052_v20 = vld [vmem:[#allocation1] sm:$0xf] }
 0x8ee   : > { %4787 = vst [vmem:[#allocation1] ss:$9 sm:$0xff] %v11548_v30  ;;  %v13881_v30 = vrot.slane %v11571_v1, 3  ;;  %v12082_v26 = vpop.f32.mrf.mxu1  ;;  %v12098_v1 = vld [vmem:[#allocation3] sm:$0xf] }
 0x8ef   : > { %v5329_v59 = vunpack.c.l.b16 %v12098_v1 }
 0x8f5   : > { %v12057_v52 = vld [vmem:[#allocation1] sm:$0xf] }
 0x8f6   : > { %4790 = vst [vmem:[#allocation1] ss:$9 sm:$0xff] %v13879_v61  ;;  %v12103_v38 = vpop.f32.mrf.mxu1 }
 0x8fd   : > { %v12063_v44 = vld [vmem:[#allocation1] sm:$0xf] }
 0x8fe   : > { %4793 = vst [vmem:[#allocation1] ss:$9 sm:$0xff] %v13880_v60  ;;  %v12120_v61 = vpop.f32.mrf.mxu1  ;;  %v4707_v60 = vadd.f32 %v4687_v37, %v3992_v40  ;;  %v4932_v28 = vunpack.c.l.b16 %v12063_v44 }
 0x905   : > { %v12067_v43 = vld [vmem:[#allocation1] sm:$0xf] }
 0x906   : > { %4796 = vst [vmem:[#allocation1] ss:$9 sm:$0xff] %v13881_v30  ;;  %v5000_v30 = vsel %vm2928_vm0, %v4924_v39, %v4999_v0  ;;  %v4933_v29 = vunpack.c.l.b16 %v12067_v43  ;;  %v5587_v43 = vrot.slane %v5585_v23, 2 }
 0x908   : > { %v5015_v44 = vrot.slane %v4933_v29, 7 }
 0x90d   : > { %v12073_v17 = vld [vmem:[#allocation1] sm:$0xf] }
 0x90e   : > { %4799 = vst [vmem:[#allocation1] ss:$9 sm:$0xff] %v11581_v3  ;;  %v5257_v3 = vld [vmem:[#allocation3 + $0x4] sm:$0x1]  ;;  %v4934_v42 = vunpack.c.l.b16 %v12073_v17 }
 0x90f   : > { %v5330_v55 = vunpack.c.l.b16 %v5257_v3  ;;  %v4925_v3 = vunpack.c.l.b16 %v12033_v6  ;;  %v4928_v6 = vunpack.c.l.b16 %v12044_v56 }
 0x910   : > { %v5017_v39 = vrot.slane %v4934_v42, 6 }
 0x911   : > { %v5353_v53 = vpack.c.b16 %v5330_v55, %v5329_v59  ;;  %v5497_v19 = vpack.c.b16 %v5330_v55, %v5485_v47  ;;  %v5373_v59 = vshrl.u32 %v5354_v48, 16  ;;  %v5375_v55 = vshll.u32 %v5354_v48, 16  ;;  %v4689_v48 = vpop.f32.mrf.mxu3 }
 0x912   : > { %v5007_v47 = vrot.slane %v4928_v6, 4 }
 0x913   : > { %v5366_v15 = vshrl.u32 %v5353_v53, 16  ;;  %v5368_v8 = vshll.u32 %v5353_v53, 16  ;;  %v5509_v63 = vrot.slane %v5497_v19, 1  ;;  %v5582_v53 = vshrl.u32 %v5569_v13, 16 }
 0x914   : > { %v5377_v11 = vrot.slane %v5375_v55, 1 }
 0x915   : > { %v12092_v22 = vld [vmem:[#allocation1] sm:$0xf]  ;;  %v5370_v41 = vrot.slane %v5368_v8, 1  ;;  %v5738_v8 = vrot.slane %v5726_v51, 2  ;;  %v5584_v56 = vrot.slane %v5582_v53, 1 }
 0x916   : > { %4802 = vst [vmem:[#allocation1] ss:$9 sm:$0xff] %v13882_v50  ;;  %v4926_v50 = vunpack.c.l.b16 %v12037_v25  ;;  %v4931_v25 = vunpack.c.l.b16 %v12057_v52  ;;  %v4935_v27 = vunpack.c.l.b16 %v12092_v22  ;;  %v5378_v62 = vor.u32 %v5377_v11, %v5373_v59 }
 0x917   : > { %v5371_v49 = vor.u32 %v5370_v41, %v5366_v15  ;;  %v4929_v41 = vunpack.c.l.b16 %v12048_v4  ;;  %v5725_v52 = vpack.c.b16 %v5557_v10, %v5713_v58  ;;  %v5001_v4 = vrot.slane %v4925_v3, 7  ;;  %5751 = vrot.lane.b32.xlu1 %v5738_v8, %s9079_s16 }
 0x918   : > { %v5003_v5 = vrot.slane %v4926_v50, 6  ;;  %5451 = vrot.lane.b32.xlu2 %v5378_v62, %s9077_s14  ;;  %v5019_v37 = vrot.slane %v4935_v27, 5  ;;  %v5588_v9 = vor.u32 %v5587_v43, %v5584_v56  ;;  %v13885_v50 = vld [vmem:[#allocation46_spill] sm:$0xff]  ;;  %v3994_v59 = vadd.f32 %v3993_v46, %v12055_v14  ;;  %v13886_v27 = vld [vmem:[#allocation56_spill] sm:$0xff] }
 0x919   : > { %5449 = vrot.lane.b32.xlu0 %v5371_v49, %s9077_s14  ;;  %v5009_v57 = vrot.slane %v4929_v41, 3  ;;  %v5737_v40 = vrot.slane %v5725_v52, 2  ;;  %v5002_v19 = vsel %vm2932_vm2, %v5001_v4, %v5000_v30  ;;  %v13887_v62 = vrot.slane %v13886_v27, 1 }
 0x91d   : > { %v12108_v54 = vld [vmem:[#allocation1] sm:$0xf] }
 0x91e   : > { %4805 = vst [vmem:[#allocation1] ss:$9 sm:$0xff] %v13883_v2  ;;  %v4936_v7 = vunpack.c.l.b16 %v12108_v54  ;;  %v4930_v54 = vunpack.c.l.b16 %v12052_v20  ;;  %v5013_v2 = vrot.slane %v4931_v25, 1 }
 0x91f   : > { %5749 = vrot.lane.b32.xlu1 %v5737_v40, %s9079_s16 }
 0x920   : > { %v5014_v18 = vsel %vm2928_vm0, %v4932_v28, %v5013_v2  ;;  %v5021_v36 = vrot.slane %v4936_v7, 4  ;;  %v5011_v13 = vrot.slane %v4930_v54, 2  ;;  %v13888_v2 = vld [vmem:[#allocation59_spill] sm:$0xff] }
 0x921   : > { %5521 = vrot.lane.b32.xlu0 %v5509_v63, %s9076_s13  ;;  %v5016_v10 = vsel %vm2932_vm2, %v5015_v44, %v5014_v18 }
 0x922   : > { %v5018_v3 = vsel %vm2936_vm3, %v5017_v39, %v5016_v10  ;;  %v13889_v39 = vrot.slane %v13888_v2, 2 }
 0x923   : > { %v5020_v63 = vsel %vm479_vm6, %v5019_v37, %v5018_v3 }
 0x924   : > { %v5022_v23 = vsel %vm3434_vm7, %v5021_v36, %v5020_v63 }
 0x925   : > { %v4806_v15 = vld [vmem:[#allocation1] sm:$0xf] }
 0x926   : > { %4808 = vst [vmem:[#allocation1] ss:$9 sm:$0xff] %v13884_v21  ;;  %v4937_v17 = vunpack.c.l.b16 %v4806_v15  ;;  %v4708_v15 = vadd.f32 %v4689_v48, %v3994_v59 }
 0x928   : > { %v5023_v51 = vrot.slane %v4937_v17, 3 }
 0x929   : > { %5677 = vrot.lane.b32.xlu0 %v5588_v9, %s9078_s15 }
 0x92a   : > { %v5024_v29 = vsel %vm3437_vm8, %v5023_v51, %v5022_v23 }
 0x92d   : > { %v4809_v0 = vld [vmem:[#allocation1] sm:$0xf] }
 0x92e   : > { %v4938_v35 = vunpack.c.l.b16 %v4809_v0  ;;  %4811 = vst [vmem:[#allocation1] ss:$9 sm:$0xff] %v13885_v50  ;;  %v13890_v50 = vld [vmem:[#allocation61_spill] sm:$0xff] }
 0x92f   : > { %v13891_v59 = vrot.slane %v13890_v50, 3 }
 0x930   : > { %v5025_v58 = vrot.slane %v4938_v35, 2 }
 0x932   : > { %v5114_v22 = vpop.f32.mrf.mxu1  ;;  %v5026_v11 = vsel %vm3440_vm9, %v5025_v58, %v5024_v29 }
 0x933   : > { %v5134_v49 = vadd.f32 %v5114_v22, %v4707_v60  ;;  %v5004_v60 = vsel %vm2936_vm3, %v5003_v5, %v5002_v19 }
 0x934   : > { %v5006_v30 = vsel %vm479_vm6, %v5005_v32, %v5004_v60 }
 0x935   : > { %v5142_v20 = vmax.f32 %v5134_v49, 0.0  ;;  %v5008_v53 = vsel %vm3434_vm7, %v5007_v47, %v5006_v30  ;;  %v12176_v28 = vld [vmem:[#allocation1] sm:$0xf] }
 0x936   : > { %v5010_v14 = vsel %vm3437_vm8, %v5009_v57, %v5008_v53  ;;  %4814 = vst [vmem:[#allocation1] ss:$9 sm:$0xff] %v13887_v62 }
 0x937   : > { %v5180_v55 = vpack.c.bf16 %v5142_v20, %v5142_v20  ;;  %v5012_v8 = vsel %vm3440_vm9, %v5011_v13, %v5010_v14 }
 0x938   : > { %v5084_v25 = vpack.c.b16 %v5026_v11, %v5012_v8 }
 0x939   : > { %v5196_v12 = vrot.slane %v5180_v55, 7 }
 0x93a   : > { %v5116_v21 = vpop.f32.mrf.mxu1  ;;  %8395 = vmatmul.msk.bf16.gmra.mxu1 %vm3550_vm10, %v5084_v25  ;;  %v13892_v25 = vld [vmem:[#allocation65_spill] sm:$0xff] }
 0x93b   : > { %v5197_v6 = vrot.slane %v5196_v12, 4  ;;  %5229 = vst.msk [vmem:[#allocation3 + $0x10] sm:$0xe] %vm5228_vm4, %v5196_v12  ;;  %v5135_v42 = vadd.f32 %v5116_v21, %v4708_v15 }
 0x93d   : > { %5230 = vst.msk [vmem:[#allocation3 + $0x14] sm:$0x1] %vm5162_vm15, %v5197_v6  ;;  %v5143_v41 = vmax.f32 %v5135_v42, 0.0  ;;  %v12185_v32 = vld [vmem:[#allocation1] sm:$0xf] }
 0x93e   : > { %4817 = vst [vmem:[#allocation1] ss:$9 sm:$0xff] %v13889_v39  ;;  %v13895_v39 = vld [vmem:[#allocation68_spill] sm:$0xff] }
 0x93f   : > { %v5181_v7 = vpack.c.bf16 %v5143_v41, %v5143_v41 }
 0x941   : > { %v5198_v56 = vrot.slane %v5181_v7, 7 }
 0x942   : > { %v5271_v43 = vld [vmem:[#allocation3 + $0x10] sm:$0xe] }
 0x943   : > { %v12180_v52 = vld [vmem:[#allocation3 + $0x10] sm:$0xf]  ;;  %v5199_v17 = vrot.slane %v5198_v56, 4  ;;  %5231 = vst.msk [vmem:[#allocation3 + $0x18] sm:$0xe] %vm5228_vm4, %v5198_v56  ;;  %v5487_v44 = vunpack.c.l.b16 %v5271_v43 }
 0x944   : > { %v5259_v4 = vld [vmem:[#allocation3 + $0x14] sm:$0x1]  ;;  %v5333_v22 = vunpack.c.l.b16 %v12180_v52  ;;  %v5295_v57 = vld [vmem:[#allocation3 + $0x10] sm:$0xc] }
 0x945   : > { %5232 = vst.msk [vmem:[#allocation3 + $0x1c] sm:$0x1] %vm5162_vm15, %v5199_v17  ;;  %v5334_v5 = vunpack.c.l.b16 %v5259_v4  ;;  %v5283_v54 = vld [vmem:[#allocation3 + $0x14] sm:$0x3]  ;;  %v5715_v36 = vunpack.c.l.b16 %v5295_v57  ;;  %v12190_v3 = vld [vmem:[#allocation1] sm:$0xf] }
 0x946   : > { %v5559_v37 = vunpack.c.l.b16 %v5283_v54  ;;  %4820 = vst [vmem:[#allocation1] ss:$9 sm:$0xff] %v13891_v59  ;;  %v13893_v4 = vld [vmem:[#allocation66_spill] sm:$0xff]  ;;  %v5524_v59 = vpop.permute.xlu1 %5523 }
 0x947   : > { %v5499_v49 = vpack.c.b16 %v5334_v5, %v5487_v44  ;;  %v5355_v47 = vpack.c.b16 %v5334_v5, %v5333_v22  ;;  %v13894_v5 = vrot.slane %v13893_v4, 1 }
 0x948   : > { %v5727_v0 = vpack.c.b16 %v5559_v37, %v5715_v36  ;;  %v5571_v51 = vpack.c.b16 %v5559_v37, %v5487_v44 }
 0x949   : > { %v5511_v46 = vrot.slane %v5499_v49, 1  ;;  %v5382_v18 = vshll.u32 %v5355_v47, 16  ;;  %v5380_v40 = vshrl.u32 %v5355_v47, 16  ;;  %v13896_v49 = vrot.slane %v13895_v39, 2 }
 0x94a   : > { %v5272_v9 = vld [vmem:[#allocation3 + $0x18] sm:$0xe]  ;;  %v5739_v63 = vrot.slane %v5727_v0, 2  ;;  %v5598_v53 = vshrl.u32 %v5571_v51, 16  ;;  %v5601_v12 = vshll.u32 %v5571_v51, 16  ;;  %v13902_v51 = vld [vmem:[#allocation15_spill] sm:$0xff] }
 0x94b   : > { %5525 = vrot.lane.b32.xlu2 %v5511_v46, %s9076_s13  ;;  %v5384_v20 = vrot.slane %v5382_v18, 1  ;;  %v5488_v60 = vunpack.c.l.b16 %v5272_v9  ;;  %v5296_v42 = vld [vmem:[#allocation3 + $0x18] sm:$0xc]  ;;  %v13897_v46 = vld [vmem:[#allocation69_spill] sm:$0xff] }
 0x94c   : > { %v5260_v19 = vld [vmem:[#allocation3 + $0x1c] sm:$0x1]  ;;  %v5600_v11 = vrot.slane %v5598_v53, 1  ;;  %v5603_v21 = vrot.slane %v5601_v12, 2  ;;  %v12201_v41 = vld [vmem:[#allocation3 + $0x18] sm:$0xf]  ;;  %v5716_v62 = vunpack.c.l.b16 %v5296_v42 }
 0x94d   : > { %v5284_v10 = vld [vmem:[#allocation3 + $0x1c] sm:$0x3]  ;;  %v5385_v48 = vor.u32 %v5384_v20, %v5380_v40  ;;  %v5336_v35 = vunpack.c.l.b16 %v5260_v19  ;;  %v12197_v6 = vld [vmem:[#allocation1] sm:$0xf]  ;;  %v5335_v7 = vunpack.c.l.b16 %v12201_v41  ;;  %v13898_v18 = vrot.slane %v13897_v46, 3  ;;  %v13900_v20 = vld [vmem:[#allocation77_spill] sm:$0xff] }
 0x94e   : > { %v5560_v13 = vunpack.c.l.b16 %v5284_v10  ;;  %4823 = vst [vmem:[#allocation1] ss:$9 sm:$0xff] %v13892_v25  ;;  %v5604_v27 = vor.u32 %v5603_v21, %v5600_v11  ;;  %v13899_v9 = vld [vmem:[#allocation72_spill] sm:$0xff]  ;;  %v13901_v0 = vrot.slane %v13900_v20, 1  ;;  %v8909_v19 = vld [vmem:[%s13391_s3 + $0x20] sm:$0xff] }
 0x94f   : > { %5453 = vrot.lane.b32.xlu0 %v5385_v48, %s9077_s14  ;;  %v5500_v55 = vpack.c.b16 %v5336_v35, %v5488_v60  ;;  %v5356_v43 = vpack.c.b16 %v5336_v35, %v5335_v7  ;;  %v13903_v48 = vrot.slane %v13902_v51, 2  ;;  %6048 = vmatpush.bf16.msra.mxu3 %v8909_v19  ;;  %v8908_v35 = vld [vmem:[%s13391_s3 + $0x18] sm:$0xff]  ;;  %v13909_v7 = vld [vmem:[#allocation82_spill] sm:$0xff] }
 0x950   : > { %v5572_v30 = vpack.c.b16 %v5560_v13, %v5488_v60  ;;  %v5728_v56 = vpack.c.b16 %v5560_v13, %v5716_v62  ;;  %v13904_v13 = vld [vmem:[#allocation78_spill] sm:$0xff]  ;;  %v8907_v62 = vld [vmem:[%s13391_s3 + $0x10] sm:$0xff]  ;;  %v13911_v19 = vld [vmem:[#allocation85_spill] sm:$0xff] }
 0x951   : > { %v5512_v23 = vrot.slane %v5500_v55, 1  ;;  %v5389_v22 = vshll.u32 %v5356_v43, 16  ;;  %v5387_v47 = vshrl.u32 %v5356_v43, 16  ;;  %v13905_v50 = vrot.slane %v13904_v13, 3  ;;  %v8905_v20 = vld [vmem:[%s13391_s3] sm:$0xff] }
 0x952   : > { %v5606_v58 = vshrl.u32 %v5572_v30, 16  ;;  %v5609_v15 = vshll.u32 %v5572_v30, 16  ;;  %v5740_v44 = vrot.slane %v5728_v56, 2  ;;  %v13906_v30 = vld [vmem:[#allocation81_spill] sm:$0xff]  ;;  %v13910_v56 = vrot.slane %v13909_v7, 2 }
 0x953   : > { %5753 = vrot.lane.b32.xlu2 %v5739_v63, %s9079_s16  ;;  %5527 = vrot.lane.b32.xlu1 %v5512_v23, %s9076_s13  ;;  %v5391_v54 = vrot.slane %v5389_v22, 1  ;;  %v5680_v23 = vpop.permute.xlu1 %5679  ;;  %v13912_v51 = vrot.slane %v13911_v19, 3 }
 0x954   : > { %v5608_v14 = vrot.slane %v5606_v58, 1  ;;  %v5611_v29 = vrot.slane %v5609_v15, 2  ;;  %6049 = vmatpush.bf16.msra.mxu3 %v8908_v35  ;;  %v13907_v15 = vld [vmem:[#allocation16_spill] sm:$0xff] }
 0x955   : > { %v12205_v17 = vld [vmem:[#allocation1] sm:$0xf]  ;;  %v5392_v57 = vor.u32 %v5391_v54, %v5387_v47  ;;  %v13908_v12 = vrot.slane %v13907_v15, 1 }
 0x956   : > { %v5612_v8 = vor.u32 %v5611_v29, %v5608_v14  ;;  %4826 = vst [vmem:[#allocation1] ss:$9 sm:$0xff] %v13894_v5  ;;  %v4939_v5 = vunpack.c.l.b16 %v12176_v28  ;;  %v4943_v13 = vunpack.c.l.b16 %v12205_v17  ;;  %v8911_v17 = vld [vmem:[%s13391_s3 + $0x30] sm:$0xff] }
 0x958   : > { %5683 = vrot.lane.b32.xlu0 %v5612_v8, %s9078_s15  ;;  %6050 = vmatpush.bf16.msra.mxu3 %v8907_v62 }
 0x95b   : > { %5681 = vrot.lane.b32.xlu2 %v5604_v27, %s9078_s15 }
 0x95d   : > { %v12210_v2 = vld [vmem:[#allocation1] sm:$0xf] }
 0x95e   : > { %4829 = vst [vmem:[#allocation1] ss:$9 sm:$0xff] %v13896_v49  ;;  %v8913_v49 = vld [vmem:[%s13391_s3 + $0x40] sm:$0xff] }
 0x963   : > { %5755 = vrot.lane.b32.xlu2 %v5740_v44, %s9079_s16 }
 0x965   : > { %v12215_v37 = vld [vmem:[#allocation1] sm:$0xf] }
 0x966   : > { %4832 = vst [vmem:[#allocation1] ss:$9 sm:$0xff] %v13898_v18  ;;  %v4941_v18 = vunpack.c.l.b16 %v12190_v3 }
 0x96b   : > { %5455 = vrot.lane.b32.xlu2 %v5392_v57, %s9077_s14 }
 0x96d   : > { %v12219_v36 = vld [vmem:[#allocation1] sm:$0xf] }
 0x96e   : > { %4835 = vst [vmem:[#allocation1] ss:$9 sm:$0xff] %v13899_v9 }
 0x972   : > { %v5452_v53 = vpop.permute.xlu2 %5451 }
 0x973   : > { %v5778_v14 = vsel %vm3550_vm10, %v12113_v24, %v5452_v53  ;;  %v8914_v24 = vld [vmem:[%s13391_s3 + $0x48] sm:$0xff] }
 0x974   : > { %v5813_v29 = vsel %vm5809_vm14, %v5778_v14, %v5524_v59  ;;  %5971 = vmatpush.bf16.msra.mxu2 %v8914_v24 }
 0x975   : > { %v12222_v40 = vld [vmem:[#allocation1] sm:$0xf]  ;;  %v5838_v42 = vsel %vm5834_vm11, %v5813_v29, %v5680_v23  ;;  %v5029_v23 = vrot.slane %v4941_v18, 7 }
 0x976   : > { %4838 = vst [vmem:[#allocation1] ss:$9 sm:$0xff] %v13901_v0  ;;  %v8912_v0 = vld [vmem:[%s13391_s3 + $0x38] sm:$0xff]  ;;  %v4947_v35 = vunpack.c.l.b16 %v12222_v40  ;;  %v4945_v40 = vunpack.c.l.b16 %v12215_v37 }
 0x978   : > { %5972 = vmatpush.bf16.msra.mxu2 %v8913_v49  ;;  %v5037_v24 = vrot.slane %v4945_v40, 3 }
 0x97c   : > { %5973 = vmatpush.bf16.msra.mxu2 %v8912_v0 }
 0x97d   : > { %v12229_v10 = vld [vmem:[#allocation1] sm:$0xf] }
 0x97e   : > { %4841 = vst [vmem:[#allocation1] ss:$9 sm:$0xff] %v13903_v48  ;;  %v4942_v48 = vunpack.c.l.b16 %v12197_v6  ;;  %v4948_v6 = vunpack.c.l.b16 %v12229_v10 }
 0x980   : > { %v5031_v14 = vrot.slane %v4942_v48, 6  ;;  %5974 = vmatpush.bf16.msra.mxu2 %v8911_v17 }
 0x985   : > { %v12236_v60 = vld [vmem:[#allocation1] sm:$0xf] }
 0x986   : > { %4844 = vst [vmem:[#allocation1] ss:$9 sm:$0xff] %v13905_v50  ;;  %v4949_v28 = vunpack.c.l.b16 %v12236_v60  ;;  %v5027_v60 = vrot.slane %v4939_v5, 1 }
 0x988   : > { %v5043_v15 = vrot.slane %v4949_v28, 7 }
 0x989   : > { %v5752_v11 = vpop.permute.xlu1 %5751 }
 0x98a   : > { %v12268_v4 = vsel %vm5859_vm12, %v5838_v42, %v5752_v11 }
 0x98b   : > { %v5450_v63 = vpop.permute.xlu0 %5449  ;;  %v5913_v22 = vunpack.c.l.b16 %v12268_v4 }
 0x98c   : > { %v5775_v25 = vsel %vm3550_vm10, %v12098_v1, %v5450_v63  ;;  %v8906_v1 = vld [vmem:[%s13391_s3 + $0x8] sm:$0xff]  ;;  %v4944_v63 = vunpack.c.l.b16 %v12210_v2  ;;  %v5033_v2 = vrot.slane %v4943_v13, 5 }
 0x98d   : > { %v12240_v55 = vld [vmem:[#allocation1] sm:$0xf]  ;;  %6051 = vmatpush.bf16.msra.mxu3 %v8906_v1  ;;  %v8910_v1 = vld [vmem:[%s13391_s3 + $0x28] sm:$0xff] }
 0x98e   : > { %4847 = vst [vmem:[#allocation1] ss:$9 sm:$0xff] %v13906_v30  ;;  %v4950_v3 = vunpack.c.l.b16 %v12240_v55  ;;  %v4940_v30 = vunpack.c.l.b16 %v12185_v32  ;;  %v5041_v32 = vrot.slane %v4947_v35, 1  ;;  %v5035_v11 = vrot.slane %v4944_v63, 4  ;;  %5975 = vmatpush.bf16.msra.mxu2 %v8910_v1 }
 0x990   : > { %v5045_v29 = vrot.slane %v4950_v3, 6  ;;  %v5028_v37 = vsel %vm2928_vm0, %v4940_v30, %v5027_v60 }
 0x991   : > { %v5750_v39 = vpop.permute.xlu1 %5749  ;;  %6052 = vmatpush.bf16.msra.mxu3 %v8905_v20  ;;  %v5030_v62 = vsel %vm2932_vm2, %v5029_v23, %v5028_v37  ;;  %v13915_v37 = vld [vmem:[#allocation20_spill] sm:$0xff] }
 0x992   : > { %v5032_v5 = vsel %vm2936_vm3, %v5031_v14, %v5030_v62 }
 0x993   : > { %v5522_v8 = vpop.permute.xlu0 %5521  ;;  %v5034_v49 = vsel %vm479_vm6, %v5033_v2, %v5032_v5 }
 0x994   : > { %v5811_v43 = vsel %vm5809_vm14, %v5775_v25, %v5522_v8  ;;  %v4692_v8 = vpop.f32.mrf.mxu3  ;;  %v5042_v25 = vsel %vm2928_vm0, %v4948_v6, %v5041_v32 }
 0x995   : > { %v12243_v58 = vld [vmem:[#allocation1] sm:$0xf] }
 0x996   : > { %4850 = vst [vmem:[#allocation1] ss:$9 sm:$0xff] %v13908_v12  ;;  %v4951_v50 = vunpack.c.l.b16 %v12243_v58  ;;  %v3996_v58 = vpop.f32.mrf.mxu2  ;;  %v4946_v12 = vunpack.c.l.b16 %v12219_v36  ;;  %v5044_v36 = vsel %vm2932_vm2, %v5043_v15, %v5042_v25 }
 0x998   : > { %v5047_v10 = vrot.slane %v4951_v50, 5 }
 0x99b   : > { %v5678_v44 = vpop.permute.xlu0 %5677 }
 0x99c   : > { %v5836_v54 = vsel %vm5834_vm11, %v5811_v43, %v5678_v44  ;;  %v5039_v44 = vrot.slane %v4946_v12, 2  ;;  %v4694_v50 = vpop.f32.mrf.mxu3 }
 0x99d   : > { %v4851_v27 = vld [vmem:[#allocation1] sm:$0xf]  ;;  %v5861_v47 = vsel %vm5859_vm12, %v5836_v54, %v5750_v39  ;;  %v5046_v54 = vsel %vm2936_vm3, %v5045_v29, %v5044_v36  ;;  %v3997_v39 = vadd.f32 %v3996_v58, %v12061_v16 }
 0x99e   : > { %4853 = vst [vmem:[#allocation1] ss:$9 sm:$0xff] %v13910_v56  ;;  %v5998_v9 = vunpack.c.l.b16 %v5861_v47  ;;  %v4952_v53 = vunpack.c.l.b16 %v4851_v27  ;;  %v5048_v47 = vsel %vm479_vm6, %v5047_v10, %v5046_v54  ;;  %v3998_v35 = vpop.f32.mrf.mxu2 }
 0x99f   : > { %v3999_v63 = vadd.f32 %v3998_v35, %v12069_v34 }
 0x9a0   : > { %v5999_v59 = vpack.c.b16 %v5913_v22, %v5998_v9  ;;  %v5049_v42 = vrot.slane %v4952_v53, 4  ;;  %v4709_v9 = vadd.f32 %v4692_v8, %v3997_v39 }
 0x9a1   : > { %v4710_v53 = vadd.f32 %v4694_v50, %v3999_v63 }
 0x9a2   : > { %8452 = vmatmul.msk.bf16.vlgmr.msra.gmra.mxu3 %vm5955_vm1, %v5999_v59  ;;  %v5050_v18 = vsel %vm3434_vm7, %v5049_v42, %v5048_v47  ;;  %v13913_v59 = vld [vmem:[#allocation86_spill] sm:$0xff] }
 0x9a3   : > { %v13914_v30 = vrot.slane %v13913_v59, 1 }
 0x9a5   : > { %v12250_v21 = vpop.permute.xlu2 %5525  ;;  %v4854_v46 = vld [vmem:[#allocation1] sm:$0xf] }
 0x9a6   : > { %4856 = vst [vmem:[#allocation1] ss:$9 sm:$0xff] %v13912_v51  ;;  %v4953_v55 = vunpack.c.l.b16 %v4854_v46  ;;  %v5036_v46 = vsel %vm3434_vm7, %v5035_v11, %v5034_v49  ;;  %v13916_v11 = vrot.slane %v13915_v37, 2 }
 0x9a7   : > { %v5038_v20 = vsel %vm3437_vm8, %v5037_v24, %v5036_v46  ;;  %v13917_v46 = vld [vmem:[#allocation87_spill] sm:$0xff] }
 0x9a8   : > { %v5051_v7 = vrot.slane %v4953_v55, 3 }
 0x9aa   : > { %v5052_v0 = vsel %vm3437_vm8, %v5051_v7, %v5050_v18  ;;  %v13918_v18 = vrot.slane %v13917_v46, 3 }
 0x9ad   : > { %v12277_v57 = vpop.permute.xlu2 %5753  ;;  %v4857_v27 = vld [vmem:[#allocation1] sm:$0xf] }
 0x9ae   : > { %v4954_v43 = vunpack.c.l.b16 %v4857_v27  ;;  %4859 = vst [vmem:[#allocation1] ss:$9 sm:$0xff] %v11782_v45  ;;  %v5040_v45 = vsel %vm3440_vm9, %v5039_v44, %v5038_v20 }
 0x9b0   : > { %v5053_v28 = vrot.slane %v4954_v43, 2 }
 0x9b2   : > { %v5054_v16 = vsel %vm3440_vm9, %v5053_v28, %v5052_v0 }
 0x9b3   : > { %v5085_v48 = vpack.c.b16 %v5054_v16, %v5040_v45 }
 0x9b5   : > { %v5682_v56 = vpop.permute.xlu2 %5681  ;;  %8396 = vmatmul.msk.bf16.gmra.mxu1 %vm3550_vm10, %v5085_v48  ;;  %v12325_v13 = vld [vmem:[#allocation1] sm:$0xf] }
 0x9b6   : > { %4862 = vst [vmem:[#allocation1] ss:$9 sm:$0xff] %v13914_v30 }
 0x9b7   : > { %v5119_v19 = vpop.f32.mrf.mxu1 }
 0x9b8   : > { %v5136_v51 = vadd.f32 %v5119_v19, %v4709_v9 }
 0x9ba   : > { %v5144_v3 = vmax.f32 %v5136_v51, 0.0 }
 0x9bc   : > { %v5182_v6 = vpack.c.bf16 %v5144_v3, %v5144_v3 }
 0x9bd   : > { %v5756_v60 = vpop.permute.xlu2 %5755  ;;  %v12339_v2 = vld [vmem:[#allocation1] sm:$0xf] }
 0x9be   : > { %v5200_v40 = vrot.slane %v5182_v6, 7  ;;  %4865 = vst [vmem:[#allocation1] ss:$9 sm:$0xff] %v13916_v11 }
 0x9bf   : > { %v5121_v23 = vpop.f32.mrf.mxu1 }
 0x9c0   : > { %v5201_v17 = vrot.slane %v5200_v40, 4  ;;  %5233 = vst.msk [vmem:[#allocation3 + $0x20] sm:$0xe] %vm5228_vm4, %v5200_v40  ;;  %v5137_v58 = vadd.f32 %v5121_v23, %v4710_v53 }
 0x9c1   : > { %v5454_v55 = vpop.permute.xlu0 %5453 }
 0x9c2   : > { %v5781_v15 = vsel %vm3550_vm10, %v12180_v52, %v5454_v55  ;;  %5234 = vst.msk [vmem:[#allocation3 + $0x24] sm:$0x1] %vm5162_vm15, %v5201_v17  ;;  %v5145_v34 = vmax.f32 %v5137_v58, 0.0  ;;  %v13919_v58 = vld [vmem:[#allocation25_spill] sm:$0xff] }
 0x9c3   : > { %v5815_v12 = vsel %vm5809_vm14, %v5781_v15, %v12250_v21 }
 0x9c4   : > { %v5840_v14 = vsel %vm5834_vm11, %v5815_v12, %v5682_v56  ;;  %v5183_v21 = vpack.c.bf16 %v5145_v34, %v5145_v34 }
 0x9c5   : > { %v5456_v32 = vpop.permute.xlu2 %5455  ;;  %v5865_v29 = vsel %vm5859_vm12, %v5840_v14, %v12277_v57  ;;  %v5528_v10 = vpop.permute.xlu1 %5527  ;;  %v12359_v49 = vld [vmem:[#allocation1] sm:$0xf] }
 0x9c6   : > { %v5784_v52 = vsel %vm3550_vm10, %v12201_v41, %v5456_v32  ;;  %v5914_v8 = vunpack.c.l.b16 %v5865_v29  ;;  %v5202_v42 = vrot.slane %v5183_v21, 7  ;;  %4868 = vst [vmem:[#allocation1] ss:$9 sm:$0xff] %v13918_v18 }
 0x9c7   : > { %v5817_v62 = vsel %vm5809_vm14, %v5784_v52, %v5528_v10  ;;  %v5297_v24 = vld [vmem:[#allocation3 + $0x20] sm:$0xc] }
 0x9c8   : > { %v5921_v25 = vpack.c.b16 %v5914_v8, %v5913_v22  ;;  %v5273_v36 = vld [vmem:[#allocation3 + $0x20] sm:$0xe]  ;;  %v5203_v41 = vrot.slane %v5202_v42, 4  ;;  %5235 = vst.msk [vmem:[#allocation3 + $0x28] sm:$0xe] %vm5228_vm4, %v5202_v42  ;;  %v5717_v1 = vunpack.c.l.b16 %v5297_v24 }
 0x9c9   : > { %v12350_v7 = vld [vmem:[#allocation3 + $0x20] sm:$0xf]  ;;  %v5285_v22 = vld [vmem:[#allocation3 + $0x24] sm:$0x3]  ;;  %v5489_v54 = vunpack.c.l.b16 %v5273_v36 }
 0x9ca   : > { %v5684_v27 = vpop.permute.xlu0 %5683  ;;  %8428 = vmatmul.msk.bf16.vlgmr.msra.gmra.mxu2 %vm5955_vm1, %v5921_v25  ;;  %v5261_v43 = vld [vmem:[#allocation3 + $0x24] sm:$0x1]  ;;  %5236 = vst.msk [vmem:[#allocation3 + $0x2c] sm:$0x1] %vm5162_vm15, %v5203_v41  ;;  %v5561_v5 = vunpack.c.l.b16 %v5285_v22  ;;  %v5337_v39 = vunpack.c.l.b16 %v12350_v7 }
 0x9cb   : > { %v5842_v57 = vsel %vm5834_vm11, %v5817_v62, %v5684_v27  ;;  %v5338_v44 = vunpack.c.l.b16 %v5261_v43 }
 0x9cc   : > { %v12354_v56 = vsel %vm5859_vm12, %v5842_v57, %v5756_v60  ;;  %v5729_v28 = vpack.c.b16 %v5561_v5, %v5717_v1  ;;  %v5573_v20 = vpack.c.b16 %v5561_v5, %v5489_v54  ;;  %v13920_v57 = vld [vmem:[#allocation29_spill] sm:$0xff]  ;;  %v13922_v5 = vld [vmem:[#allocation34_spill] sm:$0xff] }
 0x9cd   : > { %v5915_v4 = vunpack.c.l.b16 %v12354_v56  ;;  %v5501_v9 = vpack.c.b16 %v5338_v44, %v5489_v54  ;;  %v5357_v0 = vpack.c.b16 %v5338_v44, %v5337_v39  ;;  %v12373_v15 = vld [vmem:[#allocation1] sm:$0xf]  ;;  %v13921_v24 = vrot.slane %v13920_v57, 1  ;;  %v13924_v39 = vld [vmem:[#allocation5_spill] sm:$0xff]  ;;  %v8915_v57 = vld [vmem:[%s13391_s3 + $0x50] sm:$0xff] }
 0x9ce   : > { %v5741_v19 = vrot.slane %v5729_v28, 2  ;;  %v5614_v16 = vshrl.u32 %v5573_v20, 16  ;;  %v5617_v51 = vshll.u32 %v5573_v20, 16  ;;  %4871 = vst [vmem:[#allocation1] ss:$9 sm:$0xff] %v13919_v58  ;;  %v13923_v44 = vrot.slane %v13922_v5, 2 }
 0x9cf   : > { %v12363_v47 = vpack.c.b16 %v5915_v4, %v5914_v8  ;;  %v5513_v45 = vrot.slane %v5501_v9, 1  ;;  %v5396_v48 = vshll.u32 %v5357_v0, 16  ;;  %v5274_v35 = vld [vmem:[#allocation3 + $0x28] sm:$0xe]  ;;  %v5394_v17 = vshrl.u32 %v5357_v0, 16  ;;  %v13927_v20 = vld [vmem:[#allocation28_spill] sm:$0xff] }
 0x9d0   : > { %5757 = vrot.lane.b32.xlu0 %v5741_v19, %s9079_s16  ;;  %v5616_v3 = vrot.slane %v5614_v16, 1  ;;  %v5619_v60 = vrot.slane %v5617_v51, 2  ;;  %v5298_v50 = vld [vmem:[#allocation3 + $0x28] sm:$0xc]  ;;  %v5490_v55 = vunpack.c.l.b16 %v5274_v35  ;;  %v13925_v46 = vrot.slane %v13924_v39, 3 }
 0x9d1   : > { %8453 = vmatmul.msk.bf16.gmra.mxu3 %vm5955_vm1, %v12363_v47  ;;  %5529 = vrot.lane.b32.xlu2 %v5513_v45, %s9076_s13  ;;  %v12371_v59 = vld [vmem:[#allocation3 + $0x28] sm:$0xf]  ;;  %v5398_v30 = vrot.slane %v5396_v48, 1  ;;  %v5286_v63 = vld [vmem:[#allocation3 + $0x2c] sm:$0x3]  ;;  %v5718_v12 = vunpack.c.l.b16 %v5298_v50  ;;  %v13928_v0 = vrot.slane %v13927_v20, 1  ;;  %v4955_v58 = vunpack.c.l.b16 %v12325_v13 }
 0x9d2   : > { %v5262_v6 = vld [vmem:[#allocation3 + $0x2c] sm:$0x1]  ;;  %v5620_v53 = vor.u32 %v5619_v60, %v5616_v3  ;;  %v5562_v40 = vunpack.c.l.b16 %v5286_v63  ;;  %v5339_v34 = vunpack.c.l.b16 %v12371_v59  ;;  %v13929_v45 = vld [vmem:[#allocation37_spill] sm:$0xff]  ;;  %v13931_v48 = vld [vmem:[#allocation43_spill] sm:$0xff]  ;;  %v4956_v13 = vunpack.c.l.b16 %v12339_v2 }
 0x9d3   : > { %v5340_v23 = vunpack.c.l.b16 %v5262_v6  ;;  %v5399_v32 = vor.u32 %v5398_v30, %v5394_v17  ;;  %v13926_v28 = vld [vmem:[#allocation26_spill] sm:$0xff]  ;;  %v13930_v16 = vrot.slane %v13929_v45, 2  ;;  %v13932_v35 = vrot.slane %v13931_v48, 3  ;;  %v13933_v60 = vld [vmem:[#allocation36_spill] sm:$0xff] }
 0x9d4   : > { %5685 = vrot.lane.b32.xlu1 %v5620_v53, %s9078_s15  ;;  %v5574_v14 = vpack.c.b16 %v5562_v40, %v5490_v55  ;;  %v5730_v29 = vpack.c.b16 %v5562_v40, %v5718_v12  ;;  %v13934_v30 = vld [vmem:[#allocation38_spill] sm:$0xff]  ;;  %v8919_v6 = vld [vmem:[%s13391_s3 + $0x70] sm:$0xff]  ;;  %v8918_v40 = vld [vmem:[%s13391_s3 + $0x68] sm:$0xff] }
 0x9d5   : > { %v5358_v8 = vpack.c.b16 %v5340_v23, %v5339_v34  ;;  %v5502_v42 = vpack.c.b16 %v5340_v23, %v5490_v55  ;;  %v4872_v62 = vld [vmem:[#allocation1] sm:$0xf]  ;;  %v13935_v63 = vrot.slane %v13934_v30, 1  ;;  %6124 = vmatpush.bf16.msrb.mxu1 %v8919_v6  ;;  %v13936_v55 = vld [vmem:[#allocation41_spill] sm:$0xff] }
 0x9d6   : > { %v5622_v10 = vshrl.u32 %v5574_v14, 16  ;;  %v5625_v52 = vshll.u32 %v5574_v14, 16  ;;  %v5742_v21 = vrot.slane %v5730_v29, 2  ;;  %4874 = vst [vmem:[#allocation1] ss:$9 sm:$0xff] %v13921_v24  ;;  %v13937_v23 = vrot.slane %v13936_v55, 2 }
 0x9d7   : > { %v5403_v27 = vshll.u32 %v5358_v8, 16  ;;  %v5514_v36 = vrot.slane %v5502_v42, 1  ;;  %v5401_v22 = vshrl.u32 %v5358_v8, 16  ;;  %v8917_v17 = vld [vmem:[%s13391_s3 + $0x60] sm:$0xff]  ;;  %v4957_v14 = vunpack.c.l.b16 %v12359_v49  ;;  %v13938_v29 = vld [vmem:[#allocation45_spill] sm:$0xff] }
 0x9d8   : > { %5457 = vrot.lane.b32.xlu0 %v5399_v32, %s9077_s14  ;;  %v5624_v37 = vrot.slane %v5622_v10, 1  ;;  %v5627_v11 = vrot.slane %v5625_v52, 2  ;;  %v8916_v32 = vld [vmem:[%s13391_s3 + $0x58] sm:$0xff]  ;;  %v13939_v10 = vrot.slane %v13938_v29, 3  ;;  %v4958_v52 = vunpack.c.l.b16 %v12373_v15  ;;  %v4001_v15 = vpop.f32.mrf.mxu2 }
 0x9d9   : > { %v5405_v41 = vrot.slane %v5403_v27, 1  ;;  %6125 = vmatpush.bf16.msrb.mxu1 %v8918_v40 }
 0x9da   : > { %v5628_v25 = vor.u32 %v5627_v11, %v5624_v37  ;;  %v4959_v11 = vunpack.c.l.b16 %v4872_v62  ;;  %v5059_v62 = vrot.slane %v4958_v52, 6 }
 0x9db   : > { %v5406_v1 = vor.u32 %v5405_v41, %v5401_v22  ;;  %v5057_v41 = vrot.slane %v4957_v14, 7 }
 0x9dc   : > { %5759 = vrot.lane.b32.xlu1 %v5742_v21, %s9079_s16  ;;  %5687 = vrot.lane.b32.xlu2 %v5628_v25, %s9078_s15  ;;  %v5055_v25 = vrot.slane %v4955_v58, 1  ;;  %v5061_v39 = vrot.slane %v4959_v11, 5 }
 0x9dd   : > { %v4875_v43 = vld [vmem:[#allocation1] sm:$0xf]  ;;  %6126 = vmatpush.bf16.msrb.mxu1 %v8917_v17 }
 0x9de   : > { %4877 = vst [vmem:[#allocation1] ss:$9 sm:$0xff] %v13923_v44  ;;  %v4960_v42 = vunpack.c.l.b16 %v4875_v43  ;;  %v4697_v43 = vpop.f32.mrf.mxu3 }
 0x9e0   : > { %5531 = vrot.lane.b32.xlu0 %v5514_v36, %s9076_s13  ;;  %v4003_v14 = vpop.f32.mrf.mxu2 }
 0x9e1   : > { %6127 = vmatpush.bf16.msrb.mxu1 %v8916_v32  ;;  %v4004_v29 = vadd.f32 %v4003_v14, %v12082_v26 }
 0x9e4   : > { %5459 = vrot.lane.b32.xlu1 %v5406_v1, %s9077_s14 }
 0x9e5   : > { %v4878_v54 = vld [vmem:[#allocation1] sm:$0xf]  ;;  %6128 = vmatpush.bf16.msrb.mxu1 %v8915_v57 }
 0x9e6   : > { %4880 = vst [vmem:[#allocation1] ss:$9 sm:$0xff] %v13925_v46  ;;  %v4961_v24 = vunpack.c.l.b16 %v4878_v54  ;;  %v5056_v46 = vsel %vm2928_vm0, %v4956_v13, %v5055_v25  ;;  %v4699_v32 = vpop.f32.mrf.mxu3 }
 0x9e7   : > { %v4712_v52 = vadd.f32 %v4699_v32, %v4004_v29 }
 0x9ed   : > { %v12389_v18 = vld [vmem:[#allocation1] sm:$0xf] }
 0x9ee   : > { %4883 = vst [vmem:[#allocation1] ss:$9 sm:$0xff] %v13926_v28  ;;  %v4962_v1 = vunpack.c.l.b16 %v12389_v18  ;;  %v5063_v28 = vrot.slane %v4960_v42, 4 }
 0x9f0   : > { %v5067_v48 = vrot.slane %v4962_v1, 2 }
 0x9f5   : > { %v4884_v9 = vld [vmem:[#allocation1] sm:$0xf] }
 0x9f6   : > { %4886 = vst [vmem:[#allocation1] ss:$9 sm:$0xff] %v13928_v0  ;;  %v4963_v8 = vunpack.c.l.b16 %v4884_v9  ;;  %v5058_v0 = vsel %vm2932_vm2, %v5057_v41, %v5056_v46 }
 0x9f8   : > { %v5069_v5 = vrot.slane %v4963_v8, 1 }
 0x9fd   : > { %v4887_v19 = vld [vmem:[#allocation1] sm:$0xf] }
 0x9fe   : > { %4889 = vst [vmem:[#allocation1] ss:$9 sm:$0xff] %v13930_v16  ;;  %v4964_v27 = vunpack.c.l.b16 %v4887_v19  ;;  %v5065_v19 = vrot.slane %v4961_v24, 3 }
 0xa00   : > { %v5070_v9 = vsel %vm2928_vm0, %v4964_v27, %v5069_v5 }
 0xa05   : > { %v4890_v51 = vld [vmem:[#allocation1] sm:$0xf] }
 0xa06   : > { %4892 = vst [vmem:[#allocation1] ss:$9 sm:$0xff] %v13932_v35  ;;  %v4965_v34 = vunpack.c.l.b16 %v4890_v51  ;;  %v5060_v51 = vsel %vm2936_vm3, %v5059_v62, %v5058_v0 }
 0xa08   : > { %v5071_v22 = vrot.slane %v4965_v34, 7 }
 0xa0a   : > { %v5072_v45 = vsel %vm2932_vm2, %v5071_v22, %v5070_v9 }
 0xa0d   : > { %v4893_v3 = vld [vmem:[#allocation1] sm:$0xf] }
 0xa0e   : > { %4895 = vst [vmem:[#allocation1] ss:$9 sm:$0xff] %v13933_v60  ;;  %v4966_v37 = vunpack.c.l.b16 %v4893_v3  ;;  %v4002_v3 = vadd.f32 %v4001_v15, %v12075_v31  ;;  %v5062_v60 = vsel %vm479_vm6, %v5061_v39, %v5060_v51 }
 0xa0f   : > { %v5064_v30 = vsel %vm3434_vm7, %v5063_v28, %v5062_v60 }
 0xa10   : > { %v5073_v44 = vrot.slane %v4966_v37, 6  ;;  %v5066_v40 = vsel %vm3437_vm8, %v5065_v19, %v5064_v30 }
 0xa11   : > { %v5068_v17 = vsel %vm3440_vm9, %v5067_v48, %v5066_v40 }
 0xa12   : > { %v5074_v35 = vsel %vm2936_vm3, %v5073_v44, %v5072_v45 }
 0xa15   : > { %v4896_v50 = vld [vmem:[#allocation1] sm:$0xf] }
 0xa16   : > { %4898 = vst [vmem:[#allocation1] ss:$9 sm:$0xff] %v13935_v63  ;;  %v4967_v21 = vunpack.c.l.b16 %v4896_v50 }
 0xa18   : > { %v5075_v2 = vrot.slane %v4967_v21, 5 }
 0xa1a   : > { %v5076_v50 = vsel %vm479_vm6, %v5075_v2, %v5074_v35 }
 0xa1d   : > { %v4899_v53 = vld [vmem:[#allocation1] sm:$0xf] }
 0xa1e   : > { %4901 = vst [vmem:[#allocation1] ss:$9 sm:$0xff] %v13937_v23  ;;  %v4968_v49 = vunpack.c.l.b16 %v4899_v53  ;;  %v4711_v53 = vadd.f32 %v4697_v43, %v4002_v3 }
 0xa20   : > { %v5077_v20 = vrot.slane %v4968_v49, 4 }
 0xa22   : > { %v5078_v63 = vsel %vm3434_vm7, %v5077_v20, %v5076_v50 }
 0xa25   : > { %v4902_v12 = vld [vmem:[#allocation1] sm:$0xf] }
 0xa26   : > { %4904 = vst [vmem:[#allocation1] ss:$9 sm:$0xff] %v13939_v10  ;;  %v4969_v36 = vunpack.c.l.b16 %v4902_v12 }
 0xa28   : > { %v5079_v18 = vrot.slane %v4969_v36, 3 }
 0xa2a   : > { %v5080_v55 = vsel %vm3437_vm8, %v5079_v18, %v5078_v63 }
 0xa2b   : > { %v5530_v44 = vpop.permute.xlu2 %5529 }
 0xa2d   : > { %v4905_v54 = vld [vmem:[#allocation1] sm:$0xf] }
 0xa2e   : > { %v4970_v16 = vunpack.c.l.b16 %v4905_v54 }
 0xa30   : > { %v5081_v6 = vrot.slane %v4970_v16, 2 }
 0xa32   : > { %v5124_v23 = vpop.f32.mrf.mxu1  ;;  %v5082_v58 = vsel %vm3440_vm9, %v5081_v6, %v5080_v55 }
 0xa33   : > { %v5138_v31 = vadd.f32 %v5124_v23, %v4711_v53  ;;  %v5086_v12 = vpack.c.b16 %v5082_v58, %v5068_v17 }
 0xa35   : > { %v5146_v34 = vmax.f32 %v5138_v31, 0.0  ;;  %8397 = vmatmul.msk.bf16.gmra.mxu1 %vm3550_vm10, %v5086_v12 }
 0xa37   : > { %v5184_v10 = vpack.c.bf16 %v5146_v34, %v5146_v34 }
 0xa39   : > { %v5204_v8 = vrot.slane %v5184_v10, 7 }
 0xa3a   : > { %v5126_v37 = vpop.f32.mrf.mxu1 }
 0xa3b   : > { %v5205_v11 = vrot.slane %v5204_v8, 4  ;;  %5237 = vst.msk [vmem:[#allocation3 + $0x30] sm:$0xe] %vm5228_vm4, %v5204_v8  ;;  %v5139_v21 = vadd.f32 %v5126_v37, %v4712_v52  ;;  %v5688_v8 = vpop.permute.xlu2 %5687 }
 0xa3d   : > { %5238 = vst.msk [vmem:[#allocation3 + $0x34] sm:$0x1] %vm5162_vm15, %v5205_v11  ;;  %v5147_v25 = vmax.f32 %v5139_v21, 0.0 }
 0xa3f   : > { %v5185_v42 = vpack.c.bf16 %v5147_v25, %v5147_v25 }
 0xa41   : > { %v5206_v27 = vrot.slane %v5185_v42, 7 }
 0xa42   : > { %v5758_v13 = vpop.permute.xlu0 %5757  ;;  %v5275_v57 = vld [vmem:[#allocation3 + $0x30] sm:$0xe] }
 0xa43   : > { %v12444_v24 = vld [vmem:[#allocation3 + $0x30] sm:$0xf]  ;;  %v5207_v36 = vrot.slane %v5206_v27, 4  ;;  %5239 = vst.msk [vmem:[#allocation3 + $0x38] sm:$0xe] %vm5228_vm4, %v5206_v27  ;;  %v5491_v1 = vunpack.c.l.b16 %v5275_v57 }
 0xa44   : > { %v5263_v26 = vld [vmem:[#allocation3 + $0x34] sm:$0x1]  ;;  %v5341_v5 = vunpack.c.l.b16 %v12444_v24  ;;  %v5299_v53 = vld [vmem:[#allocation3 + $0x30] sm:$0xc] }
 0xa45   : > { %v5287_v41 = vld [vmem:[#allocation3 + $0x34] sm:$0x3]  ;;  %5240 = vst.msk [vmem:[#allocation3 + $0x3c] sm:$0x1] %vm5162_vm15, %v5207_v36  ;;  %8486 = vmatmul.msk.bf16.vlgmr.msrb.gmra.mxu1 %vm5955_vm1, %v12363_v47  ;;  %v5342_v15 = vunpack.c.l.b16 %v5263_v26  ;;  %v5719_v58 = vunpack.c.l.b16 %v5299_v53 }
 0xa46   : > { %v5686_v49 = vpop.permute.xlu1 %5685  ;;  %v5563_v62 = vunpack.c.l.b16 %v5287_v41 }
 0xa47   : > { %v5503_v43 = vpack.c.b16 %v5342_v15, %v5491_v1  ;;  %v5359_v28 = vpack.c.b16 %v5342_v15, %v5341_v5  ;;  %v4702_v15 = vpop.f32.mrf.mxu3 }
 0xa48   : > { %v5575_v46 = vpack.c.b16 %v5563_v62, %v5491_v1  ;;  %v5731_v10 = vpack.c.b16 %v5563_v62, %v5719_v58 }
 0xa49   : > { %v5515_v47 = vrot.slane %v5503_v43, 1  ;;  %v5410_v18 = vshll.u32 %v5359_v28, 16  ;;  %v5408_v3 = vshrl.u32 %v5359_v28, 16 }
 0xa4a   : > { %v5458_v22 = vpop.permute.xlu0 %5457  ;;  %v5630_v0 = vshrl.u32 %v5575_v46, 16  ;;  %v5633_v19 = vshll.u32 %v5575_v46, 16  ;;  %v5276_v16 = vld [vmem:[#allocation3 + $0x38] sm:$0xe]  ;;  %v5743_v36 = vrot.slane %v5731_v10, 2 }
 0xa4b   : > { %v5787_v39 = vsel %vm3550_vm10, %v12350_v7, %v5458_v22  ;;  %5533 = vrot.lane.b32.xlu1 %v5515_v47, %s9076_s13  ;;  %v12457_v48 = vld [vmem:[#allocation3 + $0x38] sm:$0xf]  ;;  %v5412_v60 = vrot.slane %v5410_v18, 1  ;;  %v5492_v30 = vunpack.c.l.b16 %v5276_v16  ;;  %v4006_v22 = vpop.f32.mrf.mxu2 }
 0xa4c   : > { %v5819_v2 = vsel %vm5809_vm14, %v5787_v39, %v5530_v44  ;;  %v5632_v51 = vrot.slane %v5630_v0, 1  ;;  %v5635_v7 = vrot.slane %v5633_v19, 2  ;;  %v12463_v50 = vld [vmem:[#allocation3 + $0x3c] sm:$0x3]  ;;  %v5343_v55 = vunpack.c.l.b16 %v12457_v48 }
 0xa4d   : > { %v5844_v9 = vsel %vm5834_vm11, %v5819_v2, %v5686_v49  ;;  %v5264_v63 = vld [vmem:[#allocation3 + $0x3c] sm:$0x1]  ;;  %v5564_v40 = vunpack.c.l.b16 %v12463_v50  ;;  %v5413_v17 = vor.u32 %v5412_v60, %v5408_v3  ;;  %v4007_v1 = vadd.f32 %v4006_v22, %v12103_v38  ;;  %v12522_v22 = vld [vmem:[#allocation3 + $0x50] sm:$0xf]  ;;  %v12533_v50 = vld [vmem:[#allocation3 + $0x58] sm:$0xf] }
 0xa4e   : > { %v5869_v20 = vsel %vm5859_vm12, %v5844_v9, %v5758_v13  ;;  %v5760_v54 = vpop.permute.xlu1 %5759  ;;  %v5636_v6 = vor.u32 %v5635_v7, %v5632_v51  ;;  %v5344_v23 = vunpack.c.l.b16 %v5264_v63 }
 0xa4f   : > { %v5916_v45 = vunpack.c.l.b16 %v5869_v20  ;;  %v5576_v56 = vpack.c.b16 %v5564_v40, %v5492_v30  ;;  %5461 = vrot.lane.b32.xlu2 %v5413_v17, %s9077_s14  ;;  %v4713_v62 = vadd.f32 %v4702_v15, %v4007_v1  ;;  %v4704_v43 = vpop.f32.mrf.mxu3  ;;  %v12524_v15 = vld [vmem:[#allocation3 + $0x54] sm:$0x1] }
 0xa50   : > { %5689 = vrot.lane.b32.xlu0 %v5636_v6, %s9078_s15  ;;  %v5504_v26 = vpack.c.b16 %v5344_v23, %v5492_v30 }
 0xa51   : > { %v12461_v35 = vpack.c.b16 %v5916_v45, %v5915_v4  ;;  %v5360_v4 = vpack.c.b16 %v5344_v23, %v5343_v55  ;;  %v5638_v12 = vshrl.u32 %v5576_v56, 16  ;;  %v5641_v14 = vshll.u32 %v5576_v56, 16 }
 0xa52   : > { %v5532_v32 = vpop.permute.xlu0 %5531  ;;  %v5516_v41 = vrot.slane %v5504_v26, 1 }
 0xa53   : > { %8429 = vmatmul.msk.bf16.gmra.mxu2 %vm5955_vm1, %v12461_v35  ;;  %v5417_v34 = vshll.u32 %v5360_v4, 16  ;;  %v5415_v52 = vshrl.u32 %v5360_v4, 16  ;;  %v5640_v11 = vrot.slane %v5638_v12, 1  ;;  %v5643_v21 = vrot.slane %v5641_v14, 2  ;;  %v4008_v39 = vpop.f32.mrf.mxu2 }
 0xa54   : > { %v4009_v46 = vadd.f32 %v4008_v39, %v12120_v61 }
 0xa55   : > { %v5419_v25 = vrot.slane %v5417_v34, 1  ;;  %v5644_v27 = vor.u32 %v5643_v21, %v5640_v11 }
 0xa56   : > { %v5460_v31 = vpop.permute.xlu1 %5459  ;;  %v4714_v20 = vadd.f32 %v4704_v43, %v4009_v46 }
 0xa57   : > { %v5790_v29 = vsel %vm3550_vm10, %v12371_v59, %v5460_v31  ;;  %v5420_v49 = vor.u32 %v5419_v25, %v5415_v52  ;;  %5691 = vrot.lane.b32.xlu1 %v5644_v27, %s9078_s15  ;;  %5761 = vrot.lane.b32.xlu2 %v5743_v36, %s9079_s16  ;;  %v12494_v18 = vpop.f32.mrf.mxu3 }
 0xa58   : > { %v5821_v37 = vsel %vm5809_vm14, %v5790_v29, %v5532_v32 }
 0xa59   : > { %v5846_v13 = vsel %vm5834_vm11, %v5821_v37, %v5688_v8  ;;  %5463 = vrot.lane.b32.xlu0 %v5420_v49, %s9077_s14  ;;  %v5300_v37 = vld [vmem:[#allocation3 + $0x38] sm:$0xc] }
 0xa5a   : > { %v5871_v42 = vsel %vm5859_vm12, %v5846_v13, %v5760_v54 }
 0xa5b   : > { %v5917_v57 = vunpack.c.l.b16 %v5871_v42 }
 0xa5d   : > { %v12481_v59 = vpack.c.b16 %v5917_v57, %v5916_v45  ;;  %v12491_v45 = vpop.f32.mrf.mxu2 }
 0xa5f   : > { %8454 = vmatmul.msk.bf16.gmra.mxu3 %vm5955_vm1, %v12481_v59  ;;  %8487 = vmatmul.msk.bf16.gmra.mxu1 %vm5955_vm1, %v12481_v59  ;;  %v6056_v8 = vpop.f32.mrf.mxu3 }
 0xa60   : > { %5535 = vrot.lane.b32.xlu2 %v5516_v41, %s9076_s13  ;;  %v5720_v41 = vunpack.c.l.b16 %v5300_v37 }
 0xa65   : > { %v5979_v34 = vpop.f32.mrf.mxu2 }
 0xa66   : > { %v6057_v11 = vadd.f32 %v6056_v8, %v5979_v34 }
 0xaa9   : > { %v5462_v9 = vpop.permute.xlu2 %5461 }
 0xaaa   : > { %v5793_v61 = vsel %vm3550_vm10, %v12444_v24, %v5462_v9 }
 0xab1   : > { %v5762_v30 = vpop.permute.xlu2 %5761 }
 0xab2   : > { %v5129_v5 = vpop.f32.mrf.mxu1 }
 0xab3   : > { %v5140_v44 = vadd.f32 %v5129_v5, %v4713_v62 }
 0xab5   : > { %v5148_v2 = vmax.f32 %v5140_v44, 0.0 }
 0xab7   : > { %v5186_v28 = vpack.c.bf16 %v5148_v2, %v5148_v2  ;;  %v5732_v2 = vpack.c.b16 %v5564_v40, %v5720_v41  ;;  %v5268_v40 = vld [vmem:[#allocation3 + $0x5c] sm:$0x1] }
 0xab9   : > { %v5208_v54 = vrot.slane %v5186_v28, 7 }
 0xaba   : > { %v5131_v47 = vpop.f32.mrf.mxu1 }
 0xabb   : > { %v5209_v0 = vrot.slane %v5208_v54, 4  ;;  %5241 = vst.msk [vmem:[#allocation3 + $0x40] sm:$0xe] %vm5228_vm4, %v5208_v54  ;;  %v5141_v19 = vadd.f32 %v5131_v47, %v4714_v20  ;;  %v5349_v47 = vunpack.c.l.b16 %v12522_v22 }
 0xabd   : > { %5242 = vst.msk [vmem:[#allocation3 + $0x44] sm:$0x1] %vm5162_vm15, %v5209_v0  ;;  %v5149_v38 = vmax.f32 %v5141_v19, 0.0  ;;  %v5534_v16 = vpop.permute.xlu1 %5533  ;;  %v5350_v0 = vunpack.c.l.b16 %v12524_v15 }
 0xabe   : > { %v5823_v3 = vsel %vm5809_vm14, %v5793_v61, %v5534_v16 }
 0xabf   : > { %v5187_v51 = vpack.c.bf16 %v5149_v38, %v5149_v38 }
 0xac1   : > { %v5210_v7 = vrot.slane %v5187_v51, 7  ;;  %v5744_v51 = vrot.slane %v5732_v2, 2 }
 0xac2   : > { %v5690_v60 = vpop.permute.xlu0 %5689  ;;  %v12500_v6 = vpop.f32.mrf.mxu1  ;;  %v5277_v53 = vld [vmem:[#allocation3 + $0x40] sm:$0xe] }
 0xac3   : > { %v5848_v63 = vsel %vm5834_vm11, %v5823_v3, %v5690_v60  ;;  %v12502_v55 = vld [vmem:[#allocation3 + $0x40] sm:$0xf]  ;;  %v5211_v23 = vrot.slane %v5210_v7, 4  ;;  %5243 = vst.msk [vmem:[#allocation3 + $0x48] sm:$0xe] %vm5228_vm4, %v5210_v7  ;;  %v5493_v31 = vunpack.c.l.b16 %v5277_v53  ;;  %v5363_v60 = vpack.c.b16 %v5350_v0, %v5349_v47 }
 0xac4   : > { %v12506_v17 = vsel %vm5859_vm12, %v5848_v63, %v5762_v30  ;;  %v5265_v56 = vld [vmem:[#allocation3 + $0x44] sm:$0x1]  ;;  %v5345_v14 = vunpack.c.l.b16 %v12502_v55  ;;  %v5301_v43 = vld [vmem:[#allocation3 + $0x40] sm:$0xc]  ;;  %v5351_v53 = vunpack.c.l.b16 %v12533_v50 }
 0xac5   : > { %v5918_v24 = vunpack.c.l.b16 %v12506_v17  ;;  %v5289_v4 = vld [vmem:[#allocation3 + $0x44] sm:$0x3]  ;;  %5244 = vst.msk [vmem:[#allocation3 + $0x4c] sm:$0x1] %vm5162_vm15, %v5211_v23  ;;  %v5346_v58 = vunpack.c.l.b16 %v5265_v56  ;;  %v5721_v38 = vunpack.c.l.b16 %v5301_v43  ;;  %v5352_v23 = vunpack.c.l.b16 %v5268_v40 }
 0xac6   : > { %v5565_v12 = vunpack.c.l.b16 %v5289_v4  ;;  %v5279_v4 = vld [vmem:[#allocation3 + $0x50] sm:$0xe] }
 0xac7   : > { %v12513_v32 = vpack.c.b16 %v5918_v24, %v5917_v57  ;;  %v5505_v29 = vpack.c.b16 %v5346_v58, %v5493_v31  ;;  %v5361_v52 = vpack.c.b16 %v5346_v58, %v5345_v14  ;;  %v5291_v58 = vld [vmem:[#allocation3 + $0x54] sm:$0x3]  ;;  %v5364_v8 = vpack.c.b16 %v5352_v23, %v5351_v53 }
 0xac8   : > { %v5577_v10 = vpack.c.b16 %v5565_v12, %v5493_v31  ;;  %v5733_v7 = vpack.c.b16 %v5565_v12, %v5721_v38  ;;  %v5495_v37 = vunpack.c.l.b16 %v5279_v4 }
 0xac9   : > { %8430 = vmatmul.msk.bf16.gmra.mxu2 %vm5955_vm1, %v12513_v32  ;;  %v5517_v21 = vrot.slane %v5505_v29, 1  ;;  %v5424_v27 = vshll.u32 %v5361_v52, 16  ;;  %v5422_v1 = vshrl.u32 %v5361_v52, 16  ;;  %v5438_v52 = vshll.u32 %v5363_v60, 16 }
 0xaca   : > { %v5646_v25 = vshrl.u32 %v5577_v10, 16  ;;  %v5649_v13 = vshll.u32 %v5577_v10, 16  ;;  %v6132_v42 = vpop.f32.mrf.mxu1  ;;  %v12517_v49 = vld [vmem:[#allocation3 + $0x48] sm:$0xf]  ;;  %v5745_v34 = vrot.slane %v5733_v7, 2  ;;  %v5507_v43 = vpack.c.b16 %v5350_v0, %v5495_v37 }
 0xacb   : > { %v12519_v36 = vadd.f32 %v6132_v42, %v6057_v11  ;;  %5537 = vrot.lane.b32.xlu0 %v5517_v21, %s9076_s13  ;;  %v5426_v62 = vrot.slane %v5424_v27, 1  ;;  %v5347_v46 = vunpack.c.l.b16 %v12517_v49  ;;  %v5278_v9 = vld [vmem:[#allocation3 + $0x48] sm:$0xe]  ;;  %v5567_v11 = vunpack.c.l.b16 %v5291_v58  ;;  %v5292_v7 = vld [vmem:[#allocation3 + $0x5c] sm:$0x3] }
 0xacc   : > { %v5648_v57 = vrot.slane %v5646_v25, 1  ;;  %v5651_v26 = vrot.slane %v5649_v13, 2  ;;  %v5266_v5 = vld [vmem:[#allocation3 + $0x4c] sm:$0x1]  ;;  %v5494_v16 = vunpack.c.l.b16 %v5278_v9  ;;  %v5302_v56 = vld [vmem:[#allocation3 + $0x48] sm:$0xc] }
 0xacd   : > { %v5290_v44 = vld [vmem:[#allocation3 + $0x4c] sm:$0x3]  ;;  %v5348_v28 = vunpack.c.l.b16 %v5266_v5  ;;  %v5427_v20 = vor.u32 %v5426_v62, %v5422_v1  ;;  %v5722_v12 = vunpack.c.l.b16 %v5302_v56  ;;  %v5436_v27 = vshrl.u32 %v5363_v60, 16 }
 0xace   : > { %v5652_v39 = vor.u32 %v5651_v26, %v5648_v57  ;;  %v5566_v54 = vunpack.c.l.b16 %v5290_v44  ;;  %v5440_v57 = vrot.slane %v5438_v52, 1  ;;  %v5445_v26 = vshll.u32 %v5364_v8, 16  ;;  %v8928_v52 = vld [vmem:[%s13391_s3 + $0xb8] sm:$0xff] }
 0xacf   : > { %v5362_v19 = vpack.c.b16 %v5348_v28, %v5347_v46  ;;  %5465 = vrot.lane.b32.xlu1 %v5427_v20, %s9077_s14  ;;  %v5506_v14 = vpack.c.b16 %v5348_v28, %v5494_v16  ;;  %v5579_v41 = vpack.c.b16 %v5567_v11, %v5495_v37  ;;  %v5443_v5 = vshrl.u32 %v5364_v8, 16  ;;  %v5303_v46 = vld [vmem:[#allocation3 + $0x50] sm:$0xc]  ;;  %v5280_v28 = vld [vmem:[#allocation3 + $0x58] sm:$0xe] }
 0xad0   : > { %5693 = vrot.lane.b32.xlu2 %v5652_v39, %s9078_s15  ;;  %v5578_v3 = vpack.c.b16 %v5566_v54, %v5494_v16  ;;  %v5734_v25 = vpack.c.b16 %v5566_v54, %v5722_v12  ;;  %v5441_v62 = vor.u32 %v5440_v57, %v5436_v27  ;;  %v5447_v44 = vrot.slane %v5445_v26, 1  ;;  %v13940_v12 = vld [vmem:[#allocation19_spill] sm:$0xff]  ;;  %v8927_v37 = vld [vmem:[%s13391_s3 + $0xb0] sm:$0xff]  ;;  %v5464_v27 = vpop.permute.xlu0 %5463  ;;  %v5536_v26 = vpop.permute.xlu2 %5535 }
 0xad1   : > { %v5431_v61 = vshll.u32 %v5362_v19, 16  ;;  %v5429_v30 = vshrl.u32 %v5362_v19, 16  ;;  %v5518_v21 = vrot.slane %v5506_v14, 1  ;;  %v5662_v39 = vshrl.u32 %v5579_v41, 16  ;;  %v8922_v8 = vld [vmem:[%s13391_s3 + $0x88] sm:$0xff] }
 0xad2   : > { %v5654_v29 = vshrl.u32 %v5578_v3, 16  ;;  %v5657_v10 = vshll.u32 %v5578_v3, 16  ;;  %v5746_v15 = vrot.slane %v5734_v25, 2  ;;  %v5665_v2 = vshll.u32 %v5579_v41, 16  ;;  %v5304_v3 = vld [vmem:[#allocation3 + $0x58] sm:$0xc] }
 0xad3   : > { %5763 = vrot.lane.b32.xlu0 %v5744_v51, %s9079_s16  ;;  %v5433_v63 = vrot.slane %v5431_v61, 1  ;;  %v5448_v9 = vor.u32 %v5447_v44, %v5443_v5  ;;  %v5664_v20 = vrot.slane %v5662_v39, 1  ;;  %v5723_v47 = vunpack.c.l.b16 %v5303_v46  ;;  %v8921_v25 = vld [vmem:[%s13391_s3 + $0x80] sm:$0xff]  ;;  %v13944_v57 = vld [vmem:[#allocation31_spill] sm:$0xff]  ;;  %v8920_v41 = vld [vmem:[%s13391_s3 + $0x78] sm:$0xff] }
 0xad4   : > { %v5656_v13 = vrot.slane %v5654_v29, 1  ;;  %v5659_v42 = vrot.slane %v5657_v10, 2  ;;  %v5667_v54 = vrot.slane %v5665_v2, 2  ;;  %v5519_v19 = vrot.slane %v5507_v43, 1  ;;  %v8923_v10 = vld [vmem:[%s13391_s3 + $0x90] sm:$0xff] }
 0xad5   : > { %v5434_v31 = vor.u32 %v5433_v63, %v5429_v30  ;;  %v5496_v38 = vunpack.c.l.b16 %v5280_v28  ;;  %v5735_v40 = vpack.c.b16 %v5567_v11, %v5723_v47  ;;  %v5568_v60 = vunpack.c.l.b16 %v5292_v7  ;;  %v13941_v11 = vld [vmem:[#allocation22_spill] sm:$0xff]  ;;  %v13945_v5 = vld [vmem:[#allocation40_spill] sm:$0xff] }
 0xad6   : > { %v5660_v1 = vor.u32 %v5659_v42, %v5656_v13  ;;  %v5668_v16 = vor.u32 %v5667_v54, %v5664_v20  ;;  %v5724_v30 = vunpack.c.l.b16 %v5304_v3  ;;  %v8926_v13 = vld [vmem:[%s13391_s3 + $0xa8] sm:$0xff]  ;;  %v5796_v44 = vsel %vm3550_vm10, %v12457_v48, %v5464_v27  ;;  %v13946_v20 = vld [vmem:[#allocation30_spill] sm:$0xff] }
 0xad7   : > { %5765 = vrot.lane.b32.xlu1 %v5745_v34, %s9079_s16  ;;  %v5508_v51 = vpack.c.b16 %v5352_v23, %v5496_v38  ;;  %v5747_v0 = vrot.slane %v5735_v40, 2  ;;  %v5580_v63 = vpack.c.b16 %v5568_v60, %v5496_v38  ;;  %v8924_v23 = vld [vmem:[%s13391_s3 + $0x98] sm:$0xff]  ;;  %v8929_v34 = vld [vmem:[%s13391_s3 + $0xc0] sm:$0xff]  ;;  %v13943_v42 = vld [vmem:[#allocation27_spill] sm:$0xff]  ;;  %v5825_v2 = vsel %vm5809_vm14, %v5796_v44, %v5536_v26 }
 0xad8   : > { %5467 = vrot.lane.b32.xlu2 %v5434_v31, %s9077_s14  ;;  %v5736_v53 = vpack.c.b16 %v5568_v60, %v5724_v30  ;;  %6208 = vmatpush.bf16.msrb.mxu2 %v8924_v23  ;;  %v13951_v23 = vld [vmem:[#allocation35_spill] sm:$0xff] }
 0xad9   : > { %v5520_v61 = vrot.slane %v5508_v51, 1  ;;  %v5670_v56 = vshrl.u32 %v5580_v63, 16  ;;  %v5673_v4 = vshll.u32 %v5580_v63, 16  ;;  %6292 = vmatpush.bf16.msrb.mxu3 %v8929_v34 }
 0xada   : > { %v5748_v58 = vrot.slane %v5736_v53, 2 }
 0xadb   : > { %5539 = vrot.lane.b32.xlu0 %v5518_v21, %s9076_s13  ;;  %v5672_v31 = vrot.slane %v5670_v56, 1  ;;  %v5675_v14 = vrot.slane %v5673_v4, 2  ;;  %v13942_v21 = vld [vmem:[#allocation23_spill] sm:$0xff] }
 0xadc   : > { %6209 = vmatpush.bf16.msrb.mxu2 %v8923_v10  ;;  %v13948_v56 = vld [vmem:[#allocation47_spill] sm:$0xff] }
 0xadd   : > { %v5676_v29 = vor.u32 %v5675_v14, %v5672_v31  ;;  %6293 = vmatpush.bf16.msrb.mxu3 %v8928_v52 }
 0xadf   : > { %5695 = vrot.lane.b32.xlu1 %v5660_v1, %s9078_s15  ;;  %v5692_v1 = vpop.permute.xlu1 %5691 }
 0xae0   : > { %5767 = vrot.lane.b32.xlu2 %v5746_v15, %s9079_s16  ;;  %6210 = vmatpush.bf16.msrb.mxu2 %v8922_v8  ;;  %v8925_v15 = vld [vmem:[%s13391_s3 + $0xa0] sm:$0xff] }
 0xae1   : > { %6294 = vmatpush.bf16.msrb.mxu3 %v8927_v37 }
 0xae3   : > { %5469 = vrot.lane.b32.xlu0 %v5441_v62, %s9077_s14 }
 0xae4   : > { %6211 = vmatpush.bf16.msrb.mxu2 %v8921_v25 }
 0xae5   : > { %6295 = vmatpush.bf16.msrb.mxu3 %v8926_v13 }
 0xae7   : > { %5541 = vrot.lane.b32.xlu1 %v5519_v19, %s9076_s13 }
 0xae8   : > { %5471 = vrot.lane.b32.xlu2 %v5448_v9, %s9077_s14  ;;  %6212 = vmatpush.bf16.msrb.mxu2 %v8920_v41  ;;  %v5850_v9 = vsel %vm5834_vm11, %v5825_v2, %v5692_v1  ;;  %v13955_v41 = vld [vmem:[#allocation42_spill] sm:$0xff]  ;;  %v6059_v1 = vpop.f32.mrf.mxu3 }
 0xae9   : > { %6296 = vmatpush.bf16.msrb.mxu3 %v8925_v15 }
 0xaeb   : > { %5697 = vrot.lane.b32.xlu0 %v5668_v16, %s9078_s15 }
 0xaef   : > { %5543 = vrot.lane.b32.xlu1 %v5520_v61, %s9076_s13 }
 0xaf0   : > { %5769 = vrot.lane.b32.xlu2 %v5747_v0, %s9079_s16  ;;  %v13947_v0 = vld [vmem:[#allocation32_spill] sm:$0xff] }
 0xaf3   : > { %5699 = vrot.lane.b32.xlu0 %v5676_v29, %s9078_s15 }
 0xaf7   : > { %5771 = vrot.lane.b32.xlu1 %v5748_v58, %s9079_s16  ;;  %v13949_v58 = vld [vmem:[#allocation53_spill] sm:$0xff] }
 0xb16   : > { %2788 = vxpose.xlu2.b32.start [1/16] (narrow) %v13940_v12, 16 }
 0xb1e   : > { %2789 = vxpose.xlu2.b32.cont [2/16] (narrow) %v13941_v11, 16  ;;  %v13953_v11 = vld [vmem:[#allocation67_spill] sm:$0xff] }
 0xb26   : > { %2790 = vxpose.xlu2.b32.cont [3/16] (narrow) %v13942_v21, 16 }
 0xb2a   : > { %v5694_v39 = vpop.permute.xlu2 %5693 }
 0xb2e   : > { %2791 = vxpose.xlu2.b32.cont [4/16] (narrow) %v13943_v42, 16 }
 0xb32   : > { %v5468_v38 = vpop.permute.xlu2 %5467 }
 0xb33   : > { %v5802_v17 = vsel %vm3550_vm10, %v12517_v49, %v5468_v38  ;;  %v13950_v49 = vld [vmem:[#allocation33_spill] sm:$0xff] }
 0xb36   : > { %2792 = vxpose.xlu2.b32.cont [5/16] (narrow) %v13944_v57, 16  ;;  %v13954_v57 = vld [vmem:[#allocation39_spill] sm:$0xff] }
 0xb3a   : > { %v5768_v60 = vpop.permute.xlu2 %5767 }
 0xb3d   : > { %v5538_v62 = vpop.permute.xlu0 %5537 }
 0xb3e   : > { %2793 = vxpose.xlu2.b32.cont [6/16] (narrow) %v13945_v5, 16  ;;  %v6061_v5 = vpop.f32.mrf.mxu3 }
 0xb41   : > { %v5466_v43 = vpop.permute.xlu1 %5465 }
 0xb42   : > { %v5799_v46 = vsel %vm3550_vm10, %v12502_v55, %v5466_v43  ;;  %v5472_v10 = vpop.permute.xlu2 %5471 }
 0xb43   : > { %v5827_v47 = vsel %vm5809_vm14, %v5799_v46, %v5538_v62  ;;  %v5808_v52 = vsel %vm3550_vm10, %v12533_v50, %v5472_v10  ;;  %v5982_v62 = vpop.f32.mrf.mxu2 }
 0xb44   : > { %v5852_v40 = vsel %vm5834_vm11, %v5827_v47, %v5694_v39 }
 0xb45   : > { %v5764_v28 = vpop.permute.xlu0 %5763 }
 0xb46   : > { %2794 = vxpose.xlu2.b32.cont [7/16] (narrow) %v13946_v20, 16  ;;  %v5875_v54 = vsel %vm5859_vm12, %v5850_v9, %v5764_v28  ;;  %v12638_v39 = vpop.f32.mrf.mxu3 }
 0xb47   : > { %v5919_v19 = vunpack.c.l.b16 %v5875_v54 }
 0xb49   : > { %v6002_v48 = vpack.c.b16 %v5919_v19, %v5918_v24  ;;  %v5766_v16 = vpop.permute.xlu1 %5765 }
 0xb4a   : > { %v5877_v51 = vsel %vm5859_vm12, %v5852_v40, %v5766_v16  ;;  %v5770_v13 = vpop.permute.xlu2 %5769 }
 0xb4b   : > { %8455 = vmatmul.msk.bf16.gmra.mxu3 %vm5955_vm1, %v6002_v48  ;;  %8488 = vmatmul.msk.bf16.gmra.mxu1 %vm5955_vm1, %v6002_v48  ;;  %v5920_v55 = vunpack.c.l.b16 %v5877_v51  ;;  %v5984_v44 = vpop.f32.mrf.mxu2 }
 0xb4d   : > { %v5924_v61 = vpack.c.b16 %v5920_v55, %v5919_v19  ;;  %v5540_v7 = vpop.permute.xlu0 %5539 }
 0xb4e   : > { %2795 = vxpose.xlu2.b32.cont [8/16] (narrow) %v13947_v0, 16  ;;  %v5829_v24 = vsel %vm5809_vm14, %v5802_v17, %v5540_v7  ;;  %v6066_v43 = vpop.f32.mrf.mxu3  ;;  %v6135_v17 = vpop.f32.mrf.mxu1 }
 0xb4f   : > { %8431 = vmatmul.msk.bf16.gmra.mxu2 %vm5955_vm1, %v5924_v61 }
 0xb51   : > { %v5696_v3 = vpop.permute.xlu1 %5695 }
 0xb52   : > { %v5854_v30 = vsel %vm5834_vm11, %v5829_v24, %v5696_v3 }
 0xb53   : > { %v5879_v63 = vsel %vm5859_vm12, %v5854_v30, %v5768_v60  ;;  %v12640_v2 = vpop.f32.mrf.mxu2 }
 0xb54   : > { %v6086_v53 = vunpack.c.l.b16 %v5879_v63 }
 0xb55   : > { %v5470_v31 = vpop.permute.xlu0 %5469 }
 0xb56   : > { %2796 = vxpose.xlu2.b32.cont [9/16] (narrow) %v13948_v56, 16  ;;  %v6087_v4 = vpack.c.b16 %v6086_v53, %v5920_v55 }
 0xb59   : > { %v5542_v14 = vpop.permute.xlu1 %5541 }
 0xb5b   : > { %8489 = vmatmul.msk.bf16.gmra.mxu1 %vm5955_vm1, %v6087_v4  ;;  %8554 = vmatmul.msk.bf16.vlgmr.msrb.gmra.mxu3 %vm5955_vm1, %v12481_v59  ;;  %v13952_v59 = vld [vmem:[#allocation62_spill] sm:$0xff]  ;;  %v5989_v46 = vpop.f32.mrf.mxu2 }
 0xb5d   : > { %v5698_v34 = vpop.permute.xlu0 %5697 }
 0xb5e   : > { %2797 = vxpose.xlu2.b32.cont [10/16] (narrow) %v13949_v58, 16 }
 0xb5f   : > { %8520 = vmatmul.msk.bf16.vlgmr.msrb.gmra.mxu2 %vm5955_vm1, %v12461_v35  ;;  %v5805_v35 = vsel %vm3550_vm10, %v12522_v22, %v5470_v31 }
 0xb60   : > { %v5831_v37 = vsel %vm5809_vm14, %v5805_v35, %v5542_v14 }
 0xb61   : > { %v5544_v29 = vpop.permute.xlu1 %5543  ;;  %v5856_v25 = vsel %vm5834_vm11, %v5831_v37, %v5698_v34 }
 0xb62   : > { %v5833_v12 = vsel %vm5809_vm14, %v5808_v52, %v5544_v29  ;;  %v5881_v22 = vsel %vm5859_vm12, %v5856_v25, %v5770_v13 }
 0xb63   : > { %v6170_v27 = vunpack.c.l.b16 %v5881_v22 }
 0xb65   : > { %v5700_v8 = vpop.permute.xlu0 %5699  ;;  %v6171_v15 = vpack.c.b16 %v6170_v27, %v6086_v53  ;;  %v6137_v53 = vpop.f32.mrf.mxu1 }
 0xb66   : > { %2798 = vxpose.xlu2.b32.cont [11/16] (narrow) %v13950_v49, 16  ;;  %v6062_v49 = vadd.f32 %v6061_v5, %v5984_v44 }
 0xb68   : > { %v6153_v31 = vadd.f32 %v6137_v53, %v6062_v49 }
 0xb69   : > { %v5772_v21 = vpop.permute.xlu1 %5771 }
 0xb6b   : > { %8555 = vmatmul.msk.bf16.gmra.mxu3 %vm5955_vm1, %v6002_v48  ;;  %v6055_v48 = vadd.f32 %v12494_v18, %v12491_v45 }
 0xb6d   : > { %v6150_v16 = vadd.f32 %v12500_v6, %v6055_v48 }
 0xb6e   : > { %2799 = vxpose.xlu2.b32.cont [12/16] (narrow) %v13951_v23, 16 }
 0xb6f   : > { %8521 = vmatmul.msk.bf16.gmra.mxu2 %vm5955_vm1, %v12513_v32  ;;  %v5858_v32 = vsel %vm5834_vm11, %v5833_v12, %v5700_v8 }
 0xb70   : > { %v5883_v50 = vsel %vm5859_vm12, %v5858_v32, %v5772_v21 }
 0xb71   : > { %v6254_v42 = vunpack.c.l.b16 %v5883_v50 }
 0xb73   : > { %v6255_v26 = vpack.c.b16 %v6254_v42, %v6170_v27  ;;  %v6067_v42 = vadd.f32 %v6066_v43, %v5989_v46  ;;  %v8933_v27 = vld [vmem:[%s13392_s4 + $0x18] sm:$0xff] }
 0xb74   : > { %6568 = vmatpush.bf16.msra.mxu1 %v8933_v27 }
 0xb76   : > { %2800 = vxpose.xlu2.b32.cont [13/16] (narrow) %v13952_v59, 16 }
 0xb7b   : > { %8556 = vmatmul.msk.bf16.gmra.mxu3 %vm5955_vm1, %v6087_v4  ;;  %v6060_v4 = vadd.f32 %v6059_v1, %v5982_v62 }
 0xb7e   : > { %2801 = vxpose.xlu2.b32.cont [14/16] (narrow) %v13953_v11, 16 }
 0xb7f   : > { %8522 = vmatmul.msk.bf16.gmra.mxu2 %vm5955_vm1, %v5924_v61 }
 0xb86   : > { %2802 = vxpose.xlu2.b32.cont [15/16] (narrow) %v13954_v57, 16 }
 0xb8b   : > { %8557 = vmatmul.msk.bf16.gmra.mxu3 %vm5955_vm1, %v6255_v26 }
 0xb8e   : > { %2803 = vxpose.xlu2.b32.end [16/16] (narrow) %v13955_v41, 16  ;;  %v8932_v41 = vld [vmem:[%s13392_s4 + $0x10] sm:$0xff] }
 0xb8f   : > { %8523 = vmatmul.msk.bf16.gmra.mxu2 %vm5955_vm1, %v6171_v15  ;;  %6569 = vmatpush.bf16.msra.mxu1 %v8932_v41  ;;  %v8931_v41 = vld [vmem:[%s13392_s4 + $0x8] sm:$0xff] }
 0xb90   : > { %6690 = vmatpush.bf16.msra.mxu2 %v8931_v41 }
 0xbc8   : > { %v6140_v59 = vpop.f32.mrf.mxu1 }
 0xbce   : > { %v6069_v28 = vpop.f32.mrf.mxu3 }
 0xbd0   : > { %v6142_v22 = vpop.f32.mrf.mxu1 }
 0xbd1   : > { %v6155_v57 = vadd.f32 %v6142_v22, %v6067_v42 }
 0xbd2   : > { %v5992_v9 = vpop.f32.mrf.mxu2 }
 0xbd3   : > { %v12642_v20 = vadd.f32 %v6069_v28, %v5992_v9  ;;  %v6065_v9 = vadd.f32 %v12638_v39, %v12640_v2 }
 0xbd6   : > { %v6071_v54 = vpop.f32.mrf.mxu3 }
 0xbda   : > { %v5994_v47 = vpop.f32.mrf.mxu2 }
 0xbdb   : > { %v12644_v19 = vadd.f32 %v6071_v54, %v5994_v47  ;;  %v6154_v47 = vadd.f32 %v6140_v59, %v6065_v9 }
 0xbde   : > { %v6298_v38 = vpop.f32.mrf.mxu3 }
 0xbe2   : > { %v6214_v40 = vpop.f32.mrf.mxu2 }
 0xbe3   : > { %v6234_v51 = vadd.f32 %v6214_v40, %v6150_v16 }
 0xbe5   : > { %v6318_v55 = vadd.f32 %v6298_v38, %v6234_v51 }
 0xbe6   : > { %v6300_v0 = vpop.f32.mrf.mxu3 }
 0xbe7   : > { %v12649_v61 = vmax.f32 %v6318_v55, 0.0 }
 0xbe9   : > { %v6370_v7 = vpack.c.bf16 %v12649_v61, %v12649_v61 }
 0xbea   : > { %v6216_v24 = vpop.f32.mrf.mxu2 }
 0xbeb   : > { %v6390_v3 = vrot.slane %v6370_v7, 3  ;;  %v6235_v60 = vadd.f32 %v6216_v24, %v12519_v36  ;;  %v6152_v36 = vadd.f32 %v6135_v17, %v6060_v4 }
 0xbed   : > { %v12655_v30 = vsel %vm478_vm5, %v6370_v7, %v6390_v3  ;;  %v12658_v45 = vadd.f32 %v6300_v0, %v6235_v60  ;;  %v12661_v6 = vsel %vm2928_vm0, %v6370_v7, %v6390_v3  ;;  %v12669_v14 = vsel %vm2932_vm2, %v6370_v7, %v6390_v3 }
 0xbee   : > { %6442 = vst [vmem:[#allocation1] ss:$9 sm:$0xff] %v12655_v30  ;;  %v6303_v18 = vpop.f32.mrf.mxu3  ;;  %v6399_v56 = vrot.slane %v12661_v6, 1  ;;  %v6402_v52 = vrot.slane %v12669_v14, 2  ;;  %v12679_v37 = vsel %vm2936_vm3, %v6370_v7, %v6390_v3 }
 0xbef   : > { %v6405_v25 = vrot.slane %v12679_v37, 3 }
 0xbf2   : > { %v6219_v63 = vpop.f32.mrf.mxu2 }
 0xbf3   : > { %v6236_v23 = vadd.f32 %v6219_v63, %v6152_v36 }
 0xbf5   : > { %v12664_v58 = vld [vmem:[#allocation1] sm:$0xf]  ;;  %v6320_v35 = vadd.f32 %v6303_v18, %v6236_v23  ;;  %v6145_v18 = vpop.f32.mrf.mxu1 }
 0xbf6   : > { %6446 = vst [vmem:[#allocation1] ss:$9 sm:$0xff] %v6399_v56  ;;  %v6305_v34 = vpop.f32.mrf.mxu3  ;;  %v6156_v36 = vadd.f32 %v6145_v18, %v12642_v20 }
 0xbf7   : > { %v12681_v11 = vmax.f32 %v6320_v35, 0.0 }
 0xbf9   : > { %v6372_v13 = vpack.c.bf16 %v12681_v11, %v12681_v11 }
 0xbfa   : > { %v6221_v29 = vpop.f32.mrf.mxu2 }
 0xbfb   : > { %v6237_v10 = vadd.f32 %v6221_v29, %v6153_v31  ;;  %v6391_v26 = vrot.slane %v6372_v13, 3 }
 0xbfd   : > { %v12672_v12 = vld [vmem:[#allocation1] sm:$0xf]  ;;  %v12674_v8 = vadd.f32 %v6305_v34, %v6237_v10  ;;  %v12697_v62 = vsel %vm478_vm5, %v6372_v13, %v6391_v26  ;;  %v12705_v46 = vsel %vm2928_vm0, %v6372_v13, %v6391_v26  ;;  %v12715_v38 = vsel %vm2932_vm2, %v6372_v13, %v6391_v26 }
 0xbfe   : > { %6450 = vst [vmem:[#allocation1] ss:$9 sm:$0xff] %v6402_v52  ;;  %v6308_v21 = vpop.f32.mrf.mxu3  ;;  %v6411_v28 = vrot.slane %v12705_v46, 1  ;;  %v6414_v16 = vrot.slane %v12715_v38, 2  ;;  %v12723_v39 = vsel %vm2936_vm3, %v6372_v13, %v6391_v26  ;;  %v8930_v46 = vld [vmem:[%s13392_s4] sm:$0xff] }
 0xbff   : > { %v6417_v55 = vrot.slane %v12723_v39, 3  ;;  %6691 = vmatpush.bf16.msra.mxu2 %v8930_v46  ;;  %v8934_v39 = vld [vmem:[%s13392_s4 + $0x20] sm:$0xff] }
 0xc02   : > { %v6224_v32 = vpop.f32.mrf.mxu2 }
 0xc03   : > { %v6238_v48 = vadd.f32 %v6224_v32, %v6154_v47  ;;  %v6502_v47 = vunpack.c.l.b16 %v12664_v58 }
 0xc05   : > { %v12686_v50 = vld [vmem:[#allocation1] sm:$0xf]  ;;  %v6322_v40 = vadd.f32 %v6308_v21, %v6238_v48 }
 0xc06   : > { %6454 = vst [vmem:[#allocation1] ss:$9 sm:$0xff] %v6405_v25  ;;  %v6310_v5 = vpop.f32.mrf.mxu3 }
 0xc07   : > { %v12725_v2 = vmax.f32 %v6322_v40, 0.0 }
 0xc09   : > { %v6374_v0 = vpack.c.bf16 %v12725_v2, %v12725_v2 }
 0xc0a   : > { %v6226_v15 = vpop.f32.mrf.mxu2 }
 0xc0b   : > { %v6239_v1 = vadd.f32 %v6226_v15, %v6155_v57  ;;  %v6392_v17 = vrot.slane %v6374_v0, 3 }
 0xc0d   : > { %v12699_v44 = vld [vmem:[#allocation1] sm:$0xf]  ;;  %v12701_v43 = vadd.f32 %v6310_v5, %v6239_v1  ;;  %v12735_v24 = vsel %vm478_vm5, %v6374_v0, %v6392_v17  ;;  %v12741_v60 = vsel %vm2928_vm0, %v6374_v0, %v6392_v17  ;;  %v12748_v49 = vsel %vm2932_vm2, %v6374_v0, %v6392_v17 }
 0xc0e   : > { %6457 = vst [vmem:[#allocation1] ss:$9 sm:$0xff] %v12697_v62  ;;  %v6423_v63 = vrot.slane %v12741_v60, 1  ;;  %v6313_v23 = vpop.f32.mrf.mxu3  ;;  %v6426_v34 = vrot.slane %v12748_v49, 2  ;;  %v12754_v59 = vsel %vm2936_vm3, %v6374_v0, %v6392_v17  ;;  %v6504_v0 = vunpack.c.l.b16 %v12686_v50 }
 0xc0f   : > { %v13593_v32 = vrot.slane %v12754_v59, 3  ;;  %v6505_v18 = vunpack.c.l.b16 %v12699_v44  ;;  %v12849_v60 = vmax.f32 %v12658_v45, 0.0 }
 0xc11   : > { %v6522_v44 = vrot.slane %v6505_v18, 6 }
 0xc12   : > { %v6229_v4 = vpop.f32.mrf.mxu2 }
 0xc13   : > { %v6240_v31 = vadd.f32 %v6229_v4, %v6156_v36 }
 0xc15   : > { %v12710_v54 = vld [vmem:[#allocation1] sm:$0xf]  ;;  %v6324_v29 = vadd.f32 %v6313_v23, %v6240_v31 }
 0xc16   : > { %6461 = vst [vmem:[#allocation1] ss:$9 sm:$0xff] %v6411_v28  ;;  %v6506_v31 = vunpack.c.l.b16 %v12710_v54 }
 0xc17   : > { %v12756_v35 = vmax.f32 %v6324_v29, 0.0  ;;  %v6518_v29 = vrot.slane %v6502_v47, 1 }
 0xc19   : > { %v6376_v20 = vpack.c.bf16 %v12756_v35, %v12756_v35 }
 0xc1b   : > { %v6393_v13 = vrot.slane %v6376_v20, 3 }
 0xc1d   : > { %v12718_v51 = vld [vmem:[#allocation1] sm:$0xf]  ;;  %v12764_v22 = vsel %vm478_vm5, %v6376_v20, %v6393_v13  ;;  %v12768_v27 = vsel %vm2928_vm0, %v6376_v20, %v6393_v13  ;;  %v12777_v15 = vsel %vm2932_vm2, %v6376_v20, %v6393_v13  ;;  %v12783_v9 = vsel %vm2936_vm3, %v6376_v20, %v6393_v13 }
 0xc1e   : > { %6465 = vst [vmem:[#allocation1] ss:$9 sm:$0xff] %v6414_v16  ;;  %v13591_v57 = vrot.slane %v12768_v27, 1  ;;  %v13590_v1 = vrot.slane %v12777_v15, 2  ;;  %v13592_v48 = vrot.slane %v12783_v9, 3  ;;  %v6503_v20 = vunpack.c.l.b16 %v12672_v12 }
 0xc1f   : > { %v6507_v58 = vunpack.c.l.b16 %v12718_v51  ;;  %v13957_v38 = vrot.slane %v12768_v27, 1 }
 0xc21   : > { %v6526_v47 = vrot.slane %v6507_v58, 4 }
 0xc25   : > { %v12730_v7 = vld [vmem:[#allocation1] sm:$0xf] }
 0xc26   : > { %6469 = vst [vmem:[#allocation1] ss:$9 sm:$0xff] %v6417_v55  ;;  %v6508_v50 = vunpack.c.l.b16 %v12730_v7 }
 0xc28   : > { %v6528_v7 = vrot.slane %v6508_v50, 3 }
 0xc2d   : > { %v12737_v3 = vld [vmem:[#allocation1] sm:$0xf] }
 0xc2e   : > { %6472 = vst [vmem:[#allocation1] ss:$9 sm:$0xff] %v12735_v24 }
 0xc35   : > { %v6473_v53 = vld [vmem:[#allocation1] sm:$0xf] }
 0xc36   : > { %6476 = vst [vmem:[#allocation1] ss:$9 sm:$0xff] %v6423_v63  ;;  %v6510_v4 = vunpack.c.l.b16 %v6473_v53 }
 0xc38   : > { %v6532_v53 = vrot.slane %v6510_v4, 1 }
 0xc3d   : > { %v6477_v10 = vld [vmem:[#allocation1] sm:$0xf] }
 0xc3e   : > { %6480 = vst [vmem:[#allocation1] ss:$9 sm:$0xff] %v6426_v34  ;;  %v6511_v13 = vunpack.c.l.b16 %v6477_v10 }
 0xc40   : > { %v6533_v12 = vsel %vm2928_vm0, %v6511_v13, %v6532_v53  ;;  %v13959_v53 = vrot.slane %v12783_v9, 3 }
 0xc45   : > { %v6481_v21 = vld [vmem:[#allocation1] sm:$0xf] }
 0xc46   : > { %6484 = vst [vmem:[#allocation1] ss:$9 sm:$0xff] %v13593_v32  ;;  %v6512_v17 = vunpack.c.l.b16 %v6481_v21  ;;  %v6524_v32 = vrot.slane %v6506_v31, 5 }
 0xc4d   : > { %v6485_v42 = vld [vmem:[#allocation1] sm:$0xf] }
 0xc4e   : > { %6487 = vst [vmem:[#allocation1] ss:$9 sm:$0xff] %v12764_v22  ;;  %v6513_v36 = vunpack.c.l.b16 %v6485_v42 }
 0xc50   : > { %v6536_v42 = vrot.slane %v6513_v36, 6 }
 0xc55   : > { %v6488_v26 = vld [vmem:[#allocation1] sm:$0xf] }
 0xc56   : > { %6491 = vst [vmem:[#allocation1] ss:$9 sm:$0xff] %v13591_v57  ;;  %v6514_v23 = vunpack.c.l.b16 %v6488_v26  ;;  %v6534_v57 = vrot.slane %v6512_v17, 7  ;;  %v6519_v26 = vsel %vm2928_vm0, %v6503_v20, %v6518_v29 }
 0xc58   : > { %v6538_v54 = vrot.slane %v6514_v23, 5 }
 0xc5d   : > { %v6492_v5 = vld [vmem:[#allocation1] sm:$0xf] }
 0xc5e   : > { %6495 = vst [vmem:[#allocation1] ss:$9 sm:$0xff] %v13590_v1  ;;  %v6515_v41 = vunpack.c.l.b16 %v6492_v5  ;;  %v6520_v1 = vrot.slane %v6504_v0, 7 }
 0xc60   : > { %v6540_v51 = vrot.slane %v6515_v41, 4  ;;  %v6521_v5 = vsel %vm2932_vm2, %v6520_v1, %v6519_v26 }
 0xc65   : > { %v6496_v40 = vld [vmem:[#allocation1] sm:$0xf] }
 0xc66   : > { %6499 = vst [vmem:[#allocation1] ss:$9 sm:$0xff] %v13592_v48  ;;  %v6516_v21 = vunpack.c.l.b16 %v6496_v40  ;;  %v6509_v48 = vunpack.c.l.b16 %v12737_v3  ;;  %v6535_v40 = vsel %vm2932_vm2, %v6534_v57, %v6533_v12  ;;  %v6523_v3 = vsel %vm2936_vm3, %v6522_v44, %v6521_v5 }
 0xc67   : > { %v6537_v4 = vsel %vm2936_vm3, %v6536_v42, %v6535_v40  ;;  %v6525_v36 = vsel %vm479_vm6, %v6524_v32, %v6523_v3 }
 0xc68   : > { %v6542_v0 = vrot.slane %v6516_v21, 3  ;;  %v6530_v18 = vrot.slane %v6509_v48, 2  ;;  %v6539_v31 = vsel %vm479_vm6, %v6538_v54, %v6537_v4  ;;  %v6527_v23 = vsel %vm3434_vm7, %v6526_v47, %v6525_v36 }
 0xc69   : > { %v6541_v1 = vsel %vm3434_vm7, %v6540_v51, %v6539_v31  ;;  %v6529_v57 = vsel %vm3437_vm8, %v6528_v7, %v6527_v23 }
 0xc6a   : > { %v6543_v20 = vsel %vm3437_vm8, %v6542_v0, %v6541_v1  ;;  %v6531_v58 = vsel %vm3440_vm9, %v6530_v18, %v6529_v57 }
 0xc6d   : > { %v6500_v10 = vld [vmem:[#allocation1] sm:$0xf] }
 0xc6e   : > { %v6517_v17 = vunpack.c.l.b16 %v6500_v10  ;;  %6576 = vst [vmem:[#allocation1] ss:$9 sm:$0xff] %v12655_v30 }
 0xc70   : > { %v6544_v29 = vrot.slane %v6517_v17, 2 }
 0xc72   : > { %v6545_v48 = vsel %vm3440_vm9, %v6544_v29, %v6543_v20 }
 0xc73   : > { %v6546_v13 = vpack.c.b16 %v6545_v48, %v6531_v58 }
 0xc75   : > { %8566 = vmatmul.msk.bf16.vlgmr.msra.gmra.mxu1 %vm5809_vm14, %v6546_v13  ;;  %v12812_v30 = vld [vmem:[#allocation1] sm:$0xf] }
 0xc76   : > { %6579 = vst [vmem:[#allocation1] ss:$9 sm:$0xff] %v6399_v56 }
 0xc7d   : > { %v6580_v32 = vld [vmem:[#allocation1] sm:$0xf] }
 0xc7e   : > { %6582 = vst [vmem:[#allocation1] ss:$9 sm:$0xff] %v6402_v52  ;;  %v6625_v49 = vunpack.c.l.b16 %v6580_v32 }
 0xc80   : > { %v6640_v10 = vrot.slane %v6625_v49, 7 }
 0xc85   : > { %v6583_v41 = vld [vmem:[#allocation1] sm:$0xf] }
 0xc86   : > { %6585 = vst [vmem:[#allocation1] ss:$9 sm:$0xff] %v6405_v25  ;;  %v13956_v25 = vrot.slane %v12754_v59, 3 }
 0xc8d   : > { %v6586_v50 = vld [vmem:[#allocation1] sm:$0xf] }
 0xc8e   : > { %6588 = vst [vmem:[#allocation1] ss:$9 sm:$0xff] %v12697_v62  ;;  %v6627_v42 = vunpack.c.l.b16 %v6586_v50 }
 0xc90   : > { %v6644_v4 = vrot.slane %v6627_v42, 5 }
 0xc95   : > { %v6589_v21 = vld [vmem:[#allocation1] sm:$0xf] }
 0xc96   : > { %6591 = vst [vmem:[#allocation1] ss:$9 sm:$0xff] %v6411_v28  ;;  %v6628_v47 = vunpack.c.l.b16 %v6589_v21 }
 0xc98   : > { %v6646_v31 = vrot.slane %v6628_v47, 4 }
 0xc9d   : > { %v6592_v44 = vld [vmem:[#allocation1] sm:$0xf] }
 0xc9e   : > { %6594 = vst [vmem:[#allocation1] ss:$9 sm:$0xff] %v6414_v16  ;;  %v8935_v16 = vld [vmem:[%s13392_s4 + $0x28] sm:$0xff]  ;;  %v6629_v12 = vunpack.c.l.b16 %v6592_v44 }
 0xc9f   : > { %6889 = vmatpush.bf16.msra.mxu3 %v8935_v16 }
 0xca0   : > { %v6648_v29 = vrot.slane %v6629_v12, 3 }
 0xca3   : > { %6890 = vmatpush.bf16.msra.mxu3 %v8934_v39 }
 0xca5   : > { %v6595_v6 = vld [vmem:[#allocation1] sm:$0xf] }
 0xca6   : > { %6597 = vst [vmem:[#allocation1] ss:$9 sm:$0xff] %v6417_v55  ;;  %v6630_v7 = vunpack.c.l.b16 %v6595_v6 }
 0xca8   : > { %v6650_v13 = vrot.slane %v6630_v7, 2 }
 0xcad   : > { %v6598_v56 = vld [vmem:[#allocation1] sm:$0xf] }
 0xcae   : > { %6600 = vst [vmem:[#allocation1] ss:$9 sm:$0xff] %v12735_v24  ;;  %v13958_v24 = vrot.slane %v12777_v15, 2  ;;  %v6624_v15 = vunpack.c.l.b16 %v12812_v30  ;;  %v6631_v3 = vunpack.c.l.b16 %v6598_v56 }
 0xcb0   : > { %v6641_v1 = vsel %vm2928_vm0, %v6640_v10, %v6624_v15  ;;  %v6652_v21 = vrot.slane %v6631_v3, 1 }
 0xcb5   : > { %v6601_v14 = vld [vmem:[#allocation1] sm:$0xf] }
 0xcb6   : > { %6603 = vst [vmem:[#allocation1] ss:$9 sm:$0xff] %v6423_v63  ;;  %v6371_v63 = vpack.c.bf16 %v12849_v60, %v12849_v60  ;;  %v6632_v18 = vunpack.c.l.b16 %v6601_v14 }
 0xcb8   : > { %v6711_v26 = vrot.slane %v6371_v63, 3 }
 0xcba   : > { %v12857_v36 = vsel %vm478_vm5, %v6371_v63, %v6711_v26 }
 0xcbd   : > { %v6604_v52 = vld [vmem:[#allocation1] sm:$0xf] }
 0xcbe   : > { %6606 = vst [vmem:[#allocation1] ss:$9 sm:$0xff] %v6426_v34  ;;  %v6633_v34 = vunpack.c.l.b16 %v6604_v52 }
 0xcc0   : > { %v6654_v5 = vrot.slane %v6633_v34, 7 }
 0xcc2   : > { %v6655_v57 = vsel %vm2928_vm0, %v6654_v5, %v6632_v18  ;;  %v12930_v5 = vmax.f32 %v12701_v43, 0.0 }
 0xcc5   : > { %v6607_v37 = vld [vmem:[#allocation1] sm:$0xf] }
 0xcc6   : > { %6609 = vst [vmem:[#allocation1] ss:$9 sm:$0xff] %v13956_v25  ;;  %v6634_v27 = vunpack.c.l.b16 %v6607_v37  ;;  %v12871_v25 = vsel %vm2928_vm0, %v6371_v63, %v6711_v26 }
 0xcc7   : > { %v6720_v39 = vrot.slane %v12871_v25, 1 }
 0xcc8   : > { %v6656_v17 = vrot.slane %v6634_v27, 6 }
 0xcca   : > { %v6657_v30 = vsel %vm2932_vm2, %v6656_v17, %v6655_v57 }
 0xccd   : > { %v6610_v62 = vld [vmem:[#allocation1] sm:$0xf] }
 0xcce   : > { %6612 = vst [vmem:[#allocation1] ss:$9 sm:$0xff] %v12764_v22  ;;  %v6626_v22 = vunpack.c.l.b16 %v6583_v41  ;;  %v6635_v54 = vunpack.c.l.b16 %v6610_v62 }
 0xcd0   : > { %v6642_v0 = vrot.slane %v6626_v22, 6  ;;  %v6658_v9 = vrot.slane %v6635_v54, 5  ;;  %v12895_v22 = vmax.f32 %v12674_v8, 0.0 }
 0xcd2   : > { %v6643_v48 = vsel %vm2932_vm2, %v6642_v0, %v6641_v1  ;;  %v6659_v44 = vsel %vm2936_vm3, %v6658_v9, %v6657_v30 }
 0xcd3   : > { %v6645_v50 = vsel %vm2936_vm3, %v6644_v4, %v6643_v48  ;;  %v6147_v4 = vpop.f32.mrf.mxu1 }
 0xcd4   : > { %v6647_v6 = vsel %vm479_vm6, %v6646_v31, %v6645_v50  ;;  %v6157_v1 = vadd.f32 %v6147_v4, %v12644_v19 }
 0xcd5   : > { %v6613_v28 = vld [vmem:[#allocation1] sm:$0xf]  ;;  %v6649_v14 = vsel %vm3434_vm7, %v6648_v29, %v6647_v6 }
 0xcd6   : > { %6615 = vst [vmem:[#allocation1] ss:$9 sm:$0xff] %v13957_v38  ;;  %v6636_v45 = vunpack.c.l.b16 %v6613_v28  ;;  %v6651_v62 = vsel %vm3437_vm8, %v6650_v13, %v6649_v14 }
 0xcd7   : > { %v6653_v28 = vsel %vm3440_vm9, %v6652_v21, %v6651_v62 }
 0xcd8   : > { %v6660_v23 = vrot.slane %v6636_v45, 4 }
 0xcda   : > { %v6661_v56 = vsel %vm479_vm6, %v6660_v23, %v6659_v44  ;;  %v6231_v23 = vpop.f32.mrf.mxu2 }
 0xcdb   : > { %v6241_v57 = vadd.f32 %v6231_v23, %v6157_v1 }
 0xcdd   : > { %v6616_v55 = vld [vmem:[#allocation1] sm:$0xf] }
 0xcde   : > { %6618 = vst [vmem:[#allocation1] ss:$9 sm:$0xff] %v13958_v24  ;;  %v6637_v51 = vunpack.c.l.b16 %v6616_v55  ;;  %v12884_v24 = vsel %vm2932_vm2, %v6371_v63, %v6711_v26 }
 0xcdf   : > { %v6723_v49 = vrot.slane %v12884_v24, 2 }
 0xce0   : > { %v6662_v20 = vrot.slane %v6637_v51, 3 }
 0xce2   : > { %v6663_v52 = vsel %vm3434_vm7, %v6662_v20, %v6661_v56  ;;  %v6315_v20 = vpop.f32.mrf.mxu3 }
 0xce3   : > { %v6325_v48 = vadd.f32 %v6315_v20, %v6241_v57 }
 0xce5   : > { %v6619_v59 = vld [vmem:[#allocation1] sm:$0xf] }
 0xce6   : > { %6621 = vst [vmem:[#allocation1] ss:$9 sm:$0xff] %v13959_v53  ;;  %v6638_v40 = vunpack.c.l.b16 %v6619_v59  ;;  %v12892_v59 = vsel %vm2936_vm3, %v6371_v63, %v6711_v26  ;;  %v6373_v53 = vpack.c.bf16 %v12895_v22, %v12895_v22 }
 0xce7   : > { %v6726_v27 = vrot.slane %v12892_v59, 3 }
 0xce8   : > { %v6664_v32 = vrot.slane %v6638_v40, 2  ;;  %v6712_v54 = vrot.slane %v6373_v53, 3  ;;  %v6375_v40 = vpack.c.bf16 %v12930_v5, %v12930_v5 }
 0xcea   : > { %v6665_v46 = vsel %vm3437_vm8, %v6664_v32, %v6663_v52  ;;  %v12905_v15 = vsel %vm478_vm5, %v6373_v53, %v6712_v54  ;;  %v12911_v8 = vsel %vm2928_vm0, %v6373_v53, %v6712_v54  ;;  %v12919_v45 = vsel %vm2932_vm2, %v6373_v53, %v6712_v54 }
 0xceb   : > { %v6732_v63 = vrot.slane %v12911_v8, 1  ;;  %v6735_v12 = vrot.slane %v12919_v45, 2  ;;  %v12927_v10 = vsel %vm2936_vm3, %v6373_v53, %v6712_v54  ;;  %v6713_v17 = vrot.slane %v6375_v40, 3 }
 0xcec   : > { %v6738_v7 = vrot.slane %v12927_v10, 3  ;;  %v12963_v32 = vmax.f32 %v6325_v48, 0.0  ;;  %v8965_v10 = vld [vmem:[%s13393_s5 + $0xd8] sm:$0xff] }
 0xced   : > { %v6622_v58 = vld [vmem:[#allocation1] sm:$0xf]  ;;  %v12940_v3 = vsel %vm478_vm5, %v6375_v40, %v6713_v17  ;;  %v12946_v43 = vsel %vm2928_vm0, %v6375_v40, %v6713_v17  ;;  %v12955_v29 = vsel %vm2932_vm2, %v6375_v40, %v6713_v17  ;;  %v12961_v30 = vsel %vm2936_vm3, %v6375_v40, %v6713_v17  ;;  %7820 = vmatpush.bf16.msra.mxu0 %v8965_v10 }
 0xcee   : > { %v6639_v41 = vunpack.c.l.b16 %v6622_v58  ;;  %6763 = vst [vmem:[#allocation1] ss:$9 sm:$0xff] %v12857_v36  ;;  %v6744_v9 = vrot.slane %v12946_v43, 1  ;;  %v6747_v58 = vrot.slane %v12955_v29, 2  ;;  %v6377_v19 = vpack.c.bf16 %v12963_v32, %v12963_v32 }
 0xcf0   : > { %v6666_v37 = vrot.slane %v6639_v41, 1  ;;  %v13597_v41 = vrot.slane %v12961_v30, 3  ;;  %v6714_v21 = vrot.slane %v6377_v19, 3 }
 0xcf2   : > { %v6667_v38 = vsel %vm3440_vm9, %v6666_v37, %v6665_v46  ;;  %v12971_v44 = vsel %vm478_vm5, %v6377_v19, %v6714_v21  ;;  %v12975_v56 = vsel %vm2928_vm0, %v6377_v19, %v6714_v21  ;;  %v12981_v37 = vsel %vm2932_vm2, %v6377_v19, %v6714_v21 }
 0xcf3   : > { %v6668_v16 = vpack.c.b16 %v6667_v38, %v6653_v28  ;;  %v13595_v14 = vrot.slane %v12975_v56, 1  ;;  %v13594_v62 = vrot.slane %v12981_v37, 2  ;;  %v12987_v28 = vsel %vm2936_vm3, %v6377_v19, %v6714_v21  ;;  %v8937_v38 = vld [vmem:[%s13392_s4 + $0x38] sm:$0xff] }
 0xcf4   : > { %7013 = vmatpush.bf16.msrb.mxu1 %v8937_v38  ;;  %v13596_v53 = vrot.slane %v12987_v28, 3  ;;  %v13963_v29 = vrot.slane %v12987_v28, 3  ;;  %vm7025_vm5 = vcmask 257024  }
 0xcf5   : > { %8575 = vmatmul.msk.bf16.vlgmr.msra.gmra.mxu2 %vm5809_vm14, %v6668_v16  ;;  %v12879_v55 = vld [vmem:[#allocation1] sm:$0xf]  ;;  %v8936_v16 = vld [vmem:[%s13392_s4 + $0x30] sm:$0xff]  ;;  %7027 = vst.msk [vmem:[#allocation4 + $0x4] sm:$0xf] %vm7025_vm5, %v13871_v33 }
 0xcf6   : > { %6767 = vst [vmem:[#allocation1] ss:$9 sm:$0xff] %v6720_v39  ;;  %v6823_v20 = vunpack.c.l.b16 %v12879_v55 }
 0xcf7   : > { %7026 = vst.msk [vmem:[#allocation4] sm:$0xf] %vm7025_vm5, %v13871_v33 }
 0xcf8   : > { %7014 = vmatpush.bf16.msrb.mxu1 %v8936_v16  ;;  %7029 = vst.msk [vmem:[#allocation4 + $0x18] sm:$0xf] %vm7025_vm5, %v13871_v33 }
 0xcf9   : > { %7030 = vst.msk [vmem:[#allocation4 + $0x1c] sm:$0xf] %vm7025_vm5, %v13871_v33 }
 0xcfd   : > { %v12887_v34 = vld [vmem:[#allocation1] sm:$0xf] }
 0xcfe   : > { %6771 = vst [vmem:[#allocation1] ss:$9 sm:$0xff] %v6723_v49  ;;  %v6824_v54 = vunpack.c.l.b16 %v12887_v34 }
 0xd05   : > { %v12900_v42 = vld [vmem:[#allocation1] sm:$0xf] }
 0xd06   : > { %6775 = vst [vmem:[#allocation1] ss:$9 sm:$0xff] %v6726_v27  ;;  %v6825_v4 = vunpack.c.l.b16 %v12900_v42 }
 0xd0d   : > { %v12907_v47 = vld [vmem:[#allocation1] sm:$0xf] }
 0xd0e   : > { %6778 = vst [vmem:[#allocation1] ss:$9 sm:$0xff] %v12905_v15  ;;  %v6826_v1 = vunpack.c.l.b16 %v12907_v47 }
 0xd15   : > { %v12914_v26 = vld [vmem:[#allocation1] sm:$0xf] }
 0xd16   : > { %6782 = vst [vmem:[#allocation1] ss:$9 sm:$0xff] %v6732_v63  ;;  %v6827_v48 = vunpack.c.l.b16 %v12914_v26 }
 0xd1d   : > { %v12922_v51 = vld [vmem:[#allocation1] sm:$0xf] }
 0xd1e   : > { %6786 = vst [vmem:[#allocation1] ss:$9 sm:$0xff] %v6735_v12  ;;  %v6828_v21 = vunpack.c.l.b16 %v12922_v51 }
 0xd20   : > { %v6847_v16 = vrot.slane %v6828_v21, 3 }
 0xd25   : > { %v12935_v0 = vld [vmem:[#allocation1] sm:$0xf] }
 0xd26   : > { %6790 = vst [vmem:[#allocation1] ss:$9 sm:$0xff] %v6738_v7  ;;  %v6829_v42 = vunpack.c.l.b16 %v12935_v0 }
 0xd2d   : > { %v12942_v18 = vld [vmem:[#allocation1] sm:$0xf] }
 0xd2e   : > { %6793 = vst [vmem:[#allocation1] ss:$9 sm:$0xff] %v12940_v3 }
 0xd35   : > { %v12949_v31 = vld [vmem:[#allocation1] sm:$0xf] }
 0xd36   : > { %6797 = vst [vmem:[#allocation1] ss:$9 sm:$0xff] %v6744_v9  ;;  %v6831_v47 = vunpack.c.l.b16 %v12949_v31 }
 0xd3d   : > { %v6798_v13 = vld [vmem:[#allocation1] sm:$0xf] }
 0xd3e   : > { %6801 = vst [vmem:[#allocation1] ss:$9 sm:$0xff] %v6747_v58  ;;  %v6832_v40 = vunpack.c.l.b16 %v6798_v13  ;;  %v6839_v13 = vrot.slane %v6824_v54, 7 }
 0xd40   : > { %v6853_v38 = vrot.slane %v6832_v40, 7  ;;  %v6849_v40 = vrot.slane %v6829_v42, 2 }
 0xd42   : > { %v6854_v51 = vsel %vm2928_vm0, %v6853_v38, %v6831_v47 }
 0xd45   : > { %v6802_v50 = vld [vmem:[#allocation1] sm:$0xf] }
 0xd46   : > { %6805 = vst [vmem:[#allocation1] ss:$9 sm:$0xff] %v13597_v41  ;;  %v6833_v23 = vunpack.c.l.b16 %v6802_v50  ;;  %v6845_v41 = vrot.slane %v6827_v48, 4 }
 0xd4d   : > { %v6806_v6 = vld [vmem:[#allocation1] sm:$0xf] }
 0xd4e   : > { %6808 = vst [vmem:[#allocation1] ss:$9 sm:$0xff] %v12971_v44  ;;  %v6834_v57 = vunpack.c.l.b16 %v6806_v6  ;;  %v6843_v6 = vrot.slane %v6826_v1, 5 }
 0xd50   : > { %v6857_v55 = vrot.slane %v6834_v57, 5 }
 0xd55   : > { %v6809_v52 = vld [vmem:[#allocation1] sm:$0xf] }
 0xd56   : > { %6812 = vst [vmem:[#allocation1] ss:$9 sm:$0xff] %v13595_v14  ;;  %v6835_v19 = vunpack.c.l.b16 %v6809_v52  ;;  %v6855_v14 = vrot.slane %v6833_v23, 6  ;;  %v6840_v52 = vsel %vm2928_vm0, %v6839_v13, %v6823_v20 }
 0xd58   : > { %v6859_v26 = vrot.slane %v6835_v19, 4 }
 0xd5d   : > { %v6813_v46 = vld [vmem:[#allocation1] sm:$0xf] }
 0xd5e   : > { %6816 = vst [vmem:[#allocation1] ss:$9 sm:$0xff] %v13594_v62  ;;  %v6836_v34 = vunpack.c.l.b16 %v6813_v46  ;;  %v6841_v62 = vrot.slane %v6825_v4, 6 }
 0xd60   : > { %v6861_v46 = vrot.slane %v6836_v34, 3  ;;  %v6842_v0 = vsel %vm2932_vm2, %v6841_v62, %v6840_v52 }
 0xd61   : > { %v6844_v31 = vsel %vm2936_vm3, %v6843_v6, %v6842_v0 }
 0xd62   : > { %v6846_v57 = vsel %vm479_vm6, %v6845_v41, %v6844_v31 }
 0xd63   : > { %v6848_v48 = vsel %vm3434_vm7, %v6847_v16, %v6846_v57 }
 0xd65   : > { %v6817_v17 = vld [vmem:[#allocation1] sm:$0xf] }
 0xd66   : > { %6820 = vst [vmem:[#allocation1] ss:$9 sm:$0xff] %v13596_v53  ;;  %v6837_v50 = vunpack.c.l.b16 %v6817_v17  ;;  %v6830_v53 = vunpack.c.l.b16 %v12942_v18  ;;  %v6856_v17 = vsel %vm2932_vm2, %v6855_v14, %v6854_v51  ;;  %v6850_v14 = vsel %vm3437_vm8, %v6849_v40, %v6848_v48 }
 0xd67   : > { %v6858_v1 = vsel %vm2936_vm3, %v6857_v55, %v6856_v17 }
 0xd68   : > { %v6863_v4 = vrot.slane %v6837_v50, 2  ;;  %v6851_v23 = vrot.slane %v6830_v53, 1  ;;  %v6860_v20 = vsel %vm479_vm6, %v6859_v26, %v6858_v1 }
 0xd69   : > { %v6862_v62 = vsel %vm3434_vm7, %v6861_v46, %v6860_v20 }
 0xd6a   : > { %v6864_v21 = vsel %vm3437_vm8, %v6863_v4, %v6862_v62  ;;  %v6852_v34 = vsel %vm3440_vm9, %v6851_v23, %v6850_v14 }
 0xd6d   : > { %v6821_v54 = vld [vmem:[#allocation1] sm:$0xf] }
 0xd6e   : > { %v6838_v18 = vunpack.c.l.b16 %v6821_v54  ;;  %6899 = vst [vmem:[#allocation1] ss:$9 sm:$0xff] %v12857_v36 }
 0xd70   : > { %v6865_v19 = vrot.slane %v6838_v18, 1 }
 0xd72   : > { %v6866_v53 = vsel %vm3440_vm9, %v6865_v19, %v6864_v21 }
 0xd73   : > { %v6867_v13 = vpack.c.b16 %v6866_v53, %v6852_v34 }
 0xd75   : > { %8592 = vmatmul.msk.bf16.vlgmr.msra.gmra.mxu3 %vm5809_vm14, %v6867_v13  ;;  %v6900_v36 = vld [vmem:[#allocation1] sm:$0xf] }
 0xd76   : > { %6902 = vst [vmem:[#allocation1] ss:$9 sm:$0xff] %v6720_v39 }
 0xd7d   : > { %v6903_v41 = vld [vmem:[#allocation1] sm:$0xf] }
 0xd7e   : > { %6905 = vst [vmem:[#allocation1] ss:$9 sm:$0xff] %v6723_v49 }
 0xd85   : > { %v6906_v38 = vld [vmem:[#allocation1] sm:$0xf] }
 0xd86   : > { %6908 = vst [vmem:[#allocation1] ss:$9 sm:$0xff] %v6726_v27  ;;  %v13960_v27 = vrot.slane %v12961_v30, 3  ;;  %v6949_v43 = vunpack.c.l.b16 %v6906_v38 }
 0xd88   : > { %v6965_v54 = vrot.slane %v6949_v43, 7  ;;  %v6571_v43 = vpop.f32.mrf.mxu1 }
 0xd8d   : > { %v6909_v42 = vld [vmem:[#allocation1] sm:$0xf] }
 0xd8e   : > { %6911 = vst [vmem:[#allocation1] ss:$9 sm:$0xff] %v12905_v15 }
 0xd95   : > { %v6912_v50 = vld [vmem:[#allocation1] sm:$0xf] }
 0xd96   : > { %6914 = vst [vmem:[#allocation1] ss:$9 sm:$0xff] %v6732_v63  ;;  %v13961_v63 = vrot.slane %v12975_v56, 1  ;;  %v6951_v56 = vunpack.c.l.b16 %v6912_v50 }
 0xd98   : > { %v6969_v28 = vrot.slane %v6951_v56, 5  ;;  %v8964_v56 = vld [vmem:[%s13393_s5 + $0xd0] sm:$0xff] }
 0xd99   : > { %7821 = vmatpush.bf16.msra.mxu0 %v8964_v56 }
 0xd9d   : > { %v6915_v47 = vld [vmem:[#allocation1] sm:$0xf] }
 0xd9e   : > { %6917 = vst [vmem:[#allocation1] ss:$9 sm:$0xff] %v6735_v12  ;;  %v13962_v12 = vrot.slane %v12981_v37, 2  ;;  %v6948_v37 = vunpack.c.l.b16 %v6903_v41  ;;  %v6952_v26 = vunpack.c.l.b16 %v6915_v47 }
 0xda0   : > { %v6971_v1 = vrot.slane %v6952_v26, 4 }
 0xda5   : > { %v6918_v25 = vld [vmem:[#allocation1] sm:$0xf] }
 0xda6   : > { %6920 = vst [vmem:[#allocation1] ss:$9 sm:$0xff] %v6738_v7  ;;  %v6947_v7 = vunpack.c.l.b16 %v6900_v36  ;;  %v6953_v51 = vunpack.c.l.b16 %v6918_v25 }
 0xda8   : > { %v6963_v55 = vrot.slane %v6947_v7, 1  ;;  %v6973_v19 = vrot.slane %v6953_v51, 3  ;;  %v7108_v7 = vld [vmem:[#allocation4 + $0x4] sm:$0x6]  ;;  %v6693_v51 = vpop.f32.mrf.mxu2 }
 0xdaa   : > { %v6964_v23 = vsel %vm2928_vm0, %v6948_v37, %v6963_v55 }
 0xdab   : > { %v6966_v62 = vsel %vm2932_vm2, %v6965_v54, %v6964_v23 }
 0xdad   : > { %v6921_v39 = vld [vmem:[#allocation1] sm:$0xf] }
 0xdae   : > { %6923 = vst [vmem:[#allocation1] ss:$9 sm:$0xff] %v12940_v3  ;;  %v6954_v40 = vunpack.c.l.b16 %v6921_v39 }
 0xdb0   : > { %v6975_v13 = vrot.slane %v6954_v40, 2 }
 0xdb5   : > { %v6924_v24 = vld [vmem:[#allocation1] sm:$0xf] }
 0xdb6   : > { %6926 = vst [vmem:[#allocation1] ss:$9 sm:$0xff] %v6744_v9  ;;  %v6955_v30 = vunpack.c.l.b16 %v6924_v24 }
 0xdb8   : > { %v6977_v4 = vrot.slane %v6955_v30, 1 }
 0xdbd   : > { %v6927_v49 = vld [vmem:[#allocation1] sm:$0xf] }
 0xdbe   : > { %6929 = vst [vmem:[#allocation1] ss:$9 sm:$0xff] %v6747_v58  ;;  %v6950_v58 = vunpack.c.l.b16 %v6909_v42  ;;  %v6956_v52 = vunpack.c.l.b16 %v6927_v49 }
 0xdc0   : > { %v6967_v17 = vrot.slane %v6950_v58, 6  ;;  %v6978_v57 = vsel %vm2928_vm0, %v6956_v52, %v6977_v4  ;;  %v7099_v52 = vld [vmem:[#allocation4] sm:$0x7]  ;;  %vm7037_vm0 = vcmask 257027  }
 0xdc1   : > { %v7139_v54 = vunpack.c.l.b16 %v7099_v52  ;;  %7038 = vst.msk [vmem:[#allocation4 + $0x8] sm:$0x8] %vm7037_vm0, %v13871_v33 }
 0xdc2   : > { %v6968_v53 = vsel %vm2936_vm3, %v6967_v17, %v6966_v62  ;;  %7039 = vst.msk [vmem:[#allocation4 + $0xc] sm:$0x8] %vm7037_vm0, %v13871_v33 }
 0xdc3   : > { %v6970_v41 = vsel %vm479_vm6, %v6969_v28, %v6968_v53  ;;  %v7147_v40 = vpack.c.b16 %v7139_v54, %v7139_v54  ;;  %v6694_v28 = vadd.f32 %v6693_v51, %v6571_v43  ;;  %7040 = vst.msk [vmem:[#allocation4 + $0x10] sm:$0x8] %vm7037_vm0, %v13871_v33  ;;  %v8963_v53 = vld [vmem:[%s13393_s5 + $0xc8] sm:$0xff] }
 0xdc4   : > { %v6972_v42 = vsel %vm3434_vm7, %v6971_v1, %v6970_v41  ;;  %7041 = vst.msk [vmem:[#allocation4 + $0x14] sm:$0x8] %vm7037_vm0, %v13871_v33  ;;  %7822 = vmatpush.bf16.msra.mxu0 %v8963_v53 }
 0xdc5   : > { %v6930_v59 = vld [vmem:[#allocation1] sm:$0xf]  ;;  %v6974_v25 = vsel %vm3437_vm8, %v6973_v19, %v6972_v42  ;;  %v7156_v17 = vshrl.u32 %v7147_v40, 16  ;;  %v7158_v4 = vshll.u32 %v7147_v40, 16 }
 0xdc6   : > { %6932 = vst [vmem:[#allocation1] ss:$9 sm:$0xff] %v13960_v27  ;;  %v6957_v9 = vunpack.c.l.b16 %v6930_v59  ;;  %v6976_v24 = vsel %vm3440_vm9, %v6975_v13, %v6974_v25  ;;  %v7100_v27 = vld [vmem:[#allocation4 + $0x4] sm:$0x7] }
 0xdc7   : > { %v7160_v23 = vrot.slane %v7158_v4, 1 }
 0xdc8   : > { %v6979_v0 = vrot.slane %v6957_v9, 7 }
 0xdca   : > { %v6980_v14 = vsel %vm2932_vm2, %v6979_v0, %v6978_v57  ;;  %vm7051_vm2 = vcmask 1043458  }
 0xdcd   : > { %v6933_v15 = vld [vmem:[#allocation1] sm:$0xf] }
 0xdce   : > { %6935 = vst [vmem:[#allocation1] ss:$9 sm:$0xff] %v12971_v44  ;;  %v6958_v44 = vunpack.c.l.b16 %v6933_v15  ;;  %v7140_v15 = vunpack.c.l.b16 %v7100_v27 }
 0xdd0   : > { %v6981_v18 = vrot.slane %v6958_v44, 6 }
 0xdd2   : > { %v6982_v36 = vsel %vm2936_vm3, %v6981_v18, %v6980_v14  ;;  %v7107_v18 = vld [vmem:[#allocation4] sm:$0x6]  ;;  %v6695_v14 = vpop.f32.mrf.mxu2  ;;  %vm7086_vm3 = vcmask 256001  }
 0xdd5   : > { %v6936_v8 = vld [vmem:[#allocation1] sm:$0xf] }
 0xdd6   : > { %6938 = vst [vmem:[#allocation1] ss:$9 sm:$0xff] %v13961_v63  ;;  %v6959_v6 = vunpack.c.l.b16 %v6936_v8  ;;  %v7148_v8 = vpack.c.b16 %v7140_v15, %v7140_v15 }
 0xdd8   : > { %v6983_v31 = vrot.slane %v6959_v6, 5  ;;  %v7165_v63 = vshll.u32 %v7148_v8, 16 }
 0xdda   : > { %v6984_v38 = vsel %vm479_vm6, %v6983_v31, %v6982_v36  ;;  %vm7032_vm6 = vcmask 253952   ;;  %v7235_v31 = vunpack.c.l.b16 %v7107_v18 }
 0xddb   : > { %7033 = vst.msk [vmem:[#allocation4 + $0x8] sm:$0x1] %vm7032_vm6, %v13871_v33 }
 0xddc   : > { %7034 = vst.msk [vmem:[#allocation4 + $0xc] sm:$0x1] %vm7032_vm6, %v13871_v33  ;;  %v7243_v57 = vpack.c.b16 %v7235_v31, %v7235_v31 }
 0xddd   : > { %v6939_v45 = vld [vmem:[#allocation1] sm:$0xf]  ;;  %7035 = vst.msk [vmem:[#allocation4 + $0x10] sm:$0x1] %vm7032_vm6, %v13871_v33 }
 0xdde   : > { %6941 = vst [vmem:[#allocation1] ss:$9 sm:$0xff] %v13962_v12  ;;  %v6960_v16 = vunpack.c.l.b16 %v6939_v45  ;;  %v7163_v45 = vshrl.u32 %v7148_v8, 16  ;;  %v7167_v12 = vrot.slane %v7165_v63, 1  ;;  %v7251_v19 = vrot.slane %v7243_v57, 1 }
 0xddf   : > { %7036 = vst.msk [vmem:[#allocation4 + $0x14] sm:$0x1] %vm7032_vm6, %v13871_v33 }
 0xde0   : > { %v6985_v20 = vrot.slane %v6960_v16, 4  ;;  %v7168_v10 = vor.u32 %v7167_v12, %v7163_v45  ;;  %v6573_v16 = vpop.f32.mrf.mxu1  ;;  %7259 = vrot.lane.b32.xlu1 %v7251_v19, %s9079_s16 }
 0xde1   : > { %v6696_v13 = vadd.f32 %v6695_v14, %v6573_v16 }
 0xde2   : > { %v6986_v50 = vsel %vm3434_vm7, %v6985_v20, %v6984_v38  ;;  %7213 = vrot.lane.b32.xlu0 %v7168_v10, %s9076_s13  ;;  %vm7451_vm7 = vcmask 785408  }
 0xde5   : > { %v6942_v3 = vld [vmem:[#allocation1] sm:$0xf] }
 0xde6   : > { %6944 = vst [vmem:[#allocation1] ss:$9 sm:$0xff] %v13963_v29  ;;  %v6961_v46 = vunpack.c.l.b16 %v6942_v3  ;;  %v7236_v3 = vunpack.c.l.b16 %v7108_v7  ;;  %v7116_v29 = vld [vmem:[#allocation4 + $0x4] sm:$0xe] }
 0xde7   : > { %v7284_v30 = vunpack.c.l.b16 %v7116_v29 }
 0xde8   : > { %v6987_v21 = vrot.slane %v6961_v46, 3  ;;  %v7244_v9 = vpack.c.b16 %v7236_v3, %v7236_v3 }
 0xde9   : > { %v7292_v44 = vpack.c.b16 %v7284_v30, %v7284_v30 }
 0xdea   : > { %v6988_v39 = vsel %vm3437_vm8, %v6987_v21, %v6986_v50  ;;  %v7252_v58 = vrot.slane %v7244_v9, 1 }
 0xdeb   : > { %v7308_v6 = vshrl.u32 %v7292_v44, 16  ;;  %v7311_v55 = vshll.u32 %v7292_v44, 16 }
 0xdec   : > { %7261 = vrot.lane.b32.xlu0 %v7252_v58, %s9079_s16 }
 0xded   : > { %v6945_v48 = vld [vmem:[#allocation1] sm:$0xf]  ;;  %v7310_v37 = vrot.slane %v7308_v6, 1  ;;  %v7313_v26 = vrot.slane %v7311_v55, 2 }
 0xdee   : > { %v6962_v34 = vunpack.c.l.b16 %v6945_v48  ;;  %v7161_v48 = vor.u32 %v7160_v23, %v7156_v17 }
 0xdef   : > { %v7314_v46 = vor.u32 %v7313_v26, %v7310_v37 }
 0xdf0   : > { %v6989_v47 = vrot.slane %v6962_v34, 2 }
 0xdf2   : > { %v6990_v49 = vsel %vm3440_vm9, %v6989_v47, %v6988_v39 }
 0xdf3   : > { %v6991_v59 = vpack.c.b16 %v6990_v49, %v6976_v24 }
 0xdf4   : > { %7365 = vrot.lane.b32.xlu0 %v7314_v46, %s9080_s18 }
 0xdf5   : > { %8601 = vmatmul.msk.bf16.vlgmr.msrb.gmra.mxu1 %vm5809_vm14, %v6991_v59 }
 0xdf8   : > { %v6892_v0 = vpop.f32.mrf.mxu3 }
 0xdf9   : > { %v6897_v1 = vadd.f32 %v6892_v0, %v6694_v28  ;;  %v8962_v28 = vld [vmem:[%s13393_s5 + $0xc0] sm:$0xff] }
 0xdfa   : > { %7823 = vmatpush.bf16.msra.mxu0 %v8962_v28 }
 0xdfc   : > { %7211 = vrot.lane.b32.xlu0 %v7161_v48, %s9076_s13 }
 0xe00   : > { %v6894_v34 = vpop.f32.mrf.mxu3 }
 0xe01   : > { %v6898_v41 = vadd.f32 %v6894_v34, %v6696_v13 }
 0xe72   : > { %v7016_v20 = vpop.f32.mrf.mxu1 }
 0xe73   : > { %v7021_v62 = vadd.f32 %v7016_v20, %v6897_v1  ;;  %v7115_v1 = vld [vmem:[#allocation4] sm:$0xe] }
 0xe74   : > { %v7283_v19 = vunpack.c.l.b16 %v7115_v1 }
 0xe75   : > { %v7023_v21 = vmax.f32 %v7021_v62, 0.0 }
 0xe77   : > { %v7042_v36 = vpack.c.bf16 %v7023_v21, %v7023_v21 }
 0xe79   : > { %v7046_v38 = vrot.slane %v7042_v36, 2 }
 0xe7a   : > { %v7018_v42 = vpop.f32.mrf.mxu1 }
 0xe7b   : > { %v7050_v50 = vsel %vm2182_vm13, %v7042_v36, %v7046_v38  ;;  %v7052_v47 = vsel %vm7051_vm2, %v7042_v36, %v7046_v38  ;;  %v7022_v25 = vadd.f32 %v7018_v42, %v6898_v41  ;;  %v7291_v41 = vpack.c.b16 %v7283_v19, %v7283_v19 }
 0xe7c   : > { %v7054_v39 = vrot.slane %v7052_v47, 2  ;;  %7061 = vst [vmem:[#allocation1] ss:$2 sm:$0xff] %v7050_v50  ;;  %v7105_v50 = vld [vmem:[#allocation4 + $0x18] sm:$0x7] }
 0xe7d   : > { %v7024_v24 = vmax.f32 %v7022_v25, 0.0 }
 0xe7e   : > { %7066 = vst [vmem:[#allocation1 + $0x10] ss:$2 sm:$0xff] %v7054_v39 }
 0xe7f   : > { %v7043_v49 = vpack.c.bf16 %v7024_v24, %v7024_v24 }
 0xe81   : > { %v7047_v59 = vrot.slane %v7043_v49, 2 }
 0xe83   : > { %v7057_v27 = vsel %vm2182_vm13, %v7043_v49, %v7047_v59  ;;  %v7058_v33 = vsel %vm7051_vm2, %v7043_v49, %v7047_v59  ;;  %v7062_v15 = vld.sshfl [vmem:[#allocation1] sm:$0xff pattern:$0x75643120]  ;;  %v7300_v49 = vshrl.u32 %v7291_v41, 16  ;;  %v7303_v59 = vshll.u32 %v7291_v41, 16 }
 0xe84   : > { %v7060_v8 = vrot.slane %v7058_v33, 2  ;;  %7070 = vst [vmem:[#allocation1 + $0x20] ss:$2 sm:$0xff] %v7057_v27  ;;  %v7078_v63 = vrot.slane %v7062_v15, 7  ;;  %v7145_v27 = vunpack.c.l.b16 %v7105_v50  ;;  %v7114_v41 = vld [vmem:[#allocation4 + $0x1c] sm:$0x6] }
 0xe85   : > { %v7067_v45 = vld.sshfl [vmem:[#allocation1 + $0x10] sm:$0xff pattern:$0x75643120] }
 0xe86   : > { %7075 = vst [vmem:[#allocation1 + $0x30] ss:$2 sm:$0xff] %v7060_v8  ;;  %v7079_v12 = vrot.slane %v7067_v45, 7  ;;  %v7302_v45 = vrot.slane %v7300_v49, 1  ;;  %v7106_v49 = vld [vmem:[#allocation4 + $0x1c] sm:$0x7] }
 0xe87   : > { %7087 = vst.msk [vmem:[#allocation4 + $0x8] sm:$0x6] %vm7086_vm3, %v7078_v63 }
 0xe88   : > { %7088 = vst.msk [vmem:[#allocation4 + $0xc] sm:$0x6] %vm7086_vm3, %v7079_v12  ;;  %v7305_v12 = vrot.slane %v7303_v59, 2 }
 0xe8b   : > { %v7071_v10 = vld.sshfl [vmem:[#allocation1 + $0x20] sm:$0xff pattern:$0x75643120] }
 0xe8c   : > { %v7080_v3 = vrot.slane %v7071_v10, 7  ;;  %v7153_v10 = vpack.c.b16 %v7145_v27, %v7145_v27 }
 0xe8d   : > { %v7076_v7 = vld.sshfl [vmem:[#allocation1 + $0x30] sm:$0xff pattern:$0x75643120] }
 0xe8e   : > { %v7081_v43 = vrot.slane %v7076_v7, 7  ;;  %v7109_v9 = vld [vmem:[#allocation4 + $0x8] sm:$0x6]  ;;  %7089 = vst.msk [vmem:[#allocation4 + $0x10] sm:$0x6] %vm7086_vm3, %v7080_v3 }
 0xe8f   : > { %v7101_v29 = vld [vmem:[#allocation4 + $0x8] sm:$0x7]  ;;  %v7237_v58 = vunpack.c.l.b16 %v7109_v9  ;;  %v7110_v30 = vld [vmem:[#allocation4 + $0xc] sm:$0x6]  ;;  %v7306_v9 = vor.u32 %v7305_v12, %v7302_v45 }
 0xe90   : > { %v7141_v44 = vunpack.c.l.b16 %v7101_v29  ;;  %v7102_v56 = vld [vmem:[#allocation4 + $0xc] sm:$0x7]  ;;  %7090 = vst.msk [vmem:[#allocation4 + $0x14] sm:$0x6] %vm7086_vm3, %v7081_v43  ;;  %v7238_v6 = vunpack.c.l.b16 %v7110_v30  ;;  %v7117_v37 = vld [vmem:[#allocation4 + $0x8] sm:$0xe] }
 0xe91   : > { %v7142_v55 = vunpack.c.l.b16 %v7102_v56  ;;  %v7245_v26 = vpack.c.b16 %v7237_v58, %v7237_v58  ;;  %v7118_v16 = vld [vmem:[#allocation4 + $0xc] sm:$0xe]  ;;  %v7285_v40 = vunpack.c.l.b16 %v7117_v37  ;;  %v7200_v29 = vshll.u32 %v7153_v10, 16 }
 0xe92   : > { %v7149_v52 = vpack.c.b16 %v7141_v44, %v7141_v44  ;;  %v7246_v51 = vpack.c.b16 %v7238_v6, %v7238_v6  ;;  %v7286_v18 = vunpack.c.l.b16 %v7118_v16  ;;  %v7198_v56 = vshrl.u32 %v7153_v10, 16 }
 0xe93   : > { %v7150_v46 = vpack.c.b16 %v7142_v55, %v7142_v55  ;;  %v7253_v54 = vrot.slane %v7245_v26, 1  ;;  %v7293_v23 = vpack.c.b16 %v7285_v40, %v7285_v40  ;;  %v7202_v6 = vrot.slane %v7200_v29, 1  ;;  %v7121_v26 = vld [vmem:[#allocation4 + $0x18] sm:$0xe] }
 0xe94   : > { %v7172_v0 = vshll.u32 %v7149_v52, 16  ;;  %v7254_v17 = vrot.slane %v7246_v51, 1  ;;  %v7294_v20 = vpack.c.b16 %v7286_v18, %v7286_v18  ;;  %v7170_v48 = vshrl.u32 %v7149_v52, 16  ;;  %v7113_v18 = vld [vmem:[#allocation4 + $0x18] sm:$0x6] }
 0xe95   : > { %v7179_v4 = vshll.u32 %v7150_v46, 16  ;;  %7263 = vrot.lane.b32.xlu1 %v7253_v54, %s9079_s16  ;;  %v7177_v62 = vshrl.u32 %v7150_v46, 16  ;;  %v7316_v21 = vshrl.u32 %v7293_v23, 16  ;;  %v7319_v34 = vshll.u32 %v7293_v23, 16  ;;  %v7111_v39 = vld [vmem:[#allocation4 + $0x10] sm:$0x6] }
 0xe96   : > { %7265 = vrot.lane.b32.xlu0 %v7254_v17, %s9079_s16  ;;  %v7174_v31 = vrot.slane %v7172_v0, 1  ;;  %v7324_v13 = vshrl.u32 %v7294_v20, 16  ;;  %v7327_v36 = vshll.u32 %v7294_v20, 16  ;;  %v7103_v24 = vld [vmem:[#allocation4 + $0x10] sm:$0x7]  ;;  %v7239_v15 = vunpack.c.l.b16 %v7111_v39  ;;  %v8960_v29 = vld [vmem:[%s13393_s5 + $0xb0] sm:$0xff] }
 0xe97   : > { %v7181_v57 = vrot.slane %v7179_v4, 1  ;;  %v7318_v38 = vrot.slane %v7316_v21, 1  ;;  %v7321_v42 = vrot.slane %v7319_v34, 2  ;;  %v7143_v8 = vunpack.c.l.b16 %v7103_v24  ;;  %v7119_v43 = vld [vmem:[#allocation4 + $0x10] sm:$0xe]  ;;  %v8961_v4 = vld [vmem:[%s13393_s5 + $0xb8] sm:$0xff] }
 0xe98   : > { %v7175_v14 = vor.u32 %v7174_v31, %v7170_v48  ;;  %v7326_v47 = vrot.slane %v7324_v13, 1  ;;  %v7329_v25 = vrot.slane %v7327_v36, 2  ;;  %v7247_v7 = vpack.c.b16 %v7239_v15, %v7239_v15  ;;  %v7112_v16 = vld [vmem:[#allocation4 + $0x14] sm:$0x6]  ;;  %7824 = vmatpush.bf16.msra.mxu0 %v8961_v4 }
 0xe99   : > { %v7182_v53 = vor.u32 %v7181_v57, %v7177_v62  ;;  %v7322_v33 = vor.u32 %v7321_v42, %v7318_v38  ;;  %v7151_v3 = vpack.c.b16 %v7143_v8, %v7143_v8  ;;  %v7287_v44 = vunpack.c.l.b16 %v7119_v43  ;;  %v7104_v57 = vld [vmem:[#allocation4 + $0x14] sm:$0x7] }
 0xe9a   : > { %v7330_v63 = vor.u32 %v7329_v25, %v7326_v47  ;;  %v7255_v58 = vrot.slane %v7247_v7, 1  ;;  %v7203_v51 = vor.u32 %v7202_v6, %v7198_v56  ;;  %v7289_v46 = vunpack.c.l.b16 %v7121_v26  ;;  %v7120_v38 = vld [vmem:[#allocation4 + $0x14] sm:$0xe]  ;;  %v7122_v7 = vld [vmem:[#allocation4 + $0x1c] sm:$0xe] }
 0xe9b   : > { %v7186_v30 = vshll.u32 %v7151_v3, 16  ;;  %v7295_v37 = vpack.c.b16 %v7287_v44, %v7287_v44  ;;  %v7184_v52 = vshrl.u32 %v7151_v3, 16  ;;  %v7240_v17 = vunpack.c.l.b16 %v7112_v16  ;;  %v7214_v3 = vpop.permute.xlu0 %7213  ;;  %v7092_v26 = vld [vmem:[#allocation4 + $0x4] sm:$0x3] }
 0xe9c   : > { %v7297_v28 = vpack.c.b16 %v7289_v46, %v7289_v46  ;;  %v7241_v20 = vunpack.c.l.b16 %v7113_v18  ;;  %v7242_v47 = vunpack.c.l.b16 %v7114_v41  ;;  %v7288_v39 = vunpack.c.l.b16 %v7120_v38  ;;  %7825 = vmatpush.bf16.msra.mxu0 %v8960_v29  ;;  %v8952_v41 = vld [vmem:[%s13393_s5 + $0x70] sm:$0xff] }
 0xe9d   : > { %7215 = vrot.lane.b32.xlu1 %v7175_v14, %s9076_s13  ;;  %v7188_v55 = vrot.slane %v7186_v30, 1  ;;  %v7332_v0 = vshrl.u32 %v7295_v37, 16  ;;  %v7335_v40 = vshll.u32 %v7295_v37, 16  ;;  %v7248_v1 = vpack.c.b16 %v7240_v17, %v7240_v17  ;;  %v7124_v37 = vld [vmem:[#allocation4 + $0x4] sm:$0xc] }
 0xe9e   : > { %7217 = vrot.lane.b32.xlu0 %v7182_v53, %s9076_s13  ;;  %v7348_v48 = vshrl.u32 %v7297_v28, 16  ;;  %v7351_v62 = vshll.u32 %v7297_v28, 16  ;;  %v7144_v14 = vunpack.c.l.b16 %v7104_v57  ;;  %v7249_v34 = vpack.c.b16 %v7241_v20, %v7241_v20  ;;  %v13964_v57 = vld [vmem:[#allocation71_spill] sm:$0xff] }
 0xe9f   : > { %v7189_v54 = vor.u32 %v7188_v55, %v7184_v52  ;;  %v7334_v31 = vrot.slane %v7332_v0, 1  ;;  %v7337_v23 = vrot.slane %v7335_v40, 2  ;;  %v7256_v21 = vrot.slane %v7248_v1, 1  ;;  %v13965_v20 = vld [vmem:[#allocation7_spill] sm:$0xff] }
 0xea0   : > { %v7350_v53 = vrot.slane %v7348_v48, 1  ;;  %v7353_v13 = vrot.slane %v7351_v62, 2  ;;  %v7152_v36 = vpack.c.b16 %v7144_v14, %v7144_v14  ;;  %v7257_v42 = vrot.slane %v7249_v34, 1  ;;  %v8959_v48 = vld [vmem:[%s13393_s5 + $0xa8] sm:$0xff]  ;;  %v8954_v14 = vld [vmem:[%s13393_s5 + $0x80] sm:$0xff]  ;;  %v13966_v34 = vld [vmem:[#allocation44_spill] sm:$0xff] }
 0xea1   : > { %v7338_v19 = vor.u32 %v7337_v23, %v7334_v31  ;;  %v7250_v24 = vpack.c.b16 %v7242_v47, %v7242_v47  ;;  %v7296_v27 = vpack.c.b16 %v7288_v39, %v7288_v39  ;;  %v7146_v15 = vunpack.c.l.b16 %v7106_v49  ;;  %v8955_v62 = vld [vmem:[%s13393_s5 + $0x88] sm:$0xff]  ;;  %7826 = vmatpush.bf16.msra.mxu0 %v8959_v48  ;;  %v8942_v39 = vld [vmem:[%s13393_s5 + $0x20] sm:$0xff] }
 0xea2   : > { %v7354_v50 = vor.u32 %v7353_v13, %v7350_v53  ;;  %v7193_v25 = vshll.u32 %v7152_v36, 16  ;;  %v7290_v30 = vunpack.c.l.b16 %v7122_v7  ;;  %v7388_v16 = vunpack.c.l.b16 %v7124_v37  ;;  %7596 = vmatpush.bf16.msrb.mxu2 %v8955_v62  ;;  %v8953_v53 = vld [vmem:[%s13393_s5 + $0x78] sm:$0xff]  ;;  %v8951_v47 = vld [vmem:[%s13393_s5 + $0x68] sm:$0xff] }
 0xea3   : > { %v7258_v8 = vrot.slane %v7250_v24, 1  ;;  %v7340_v45 = vshrl.u32 %v7296_v27, 16  ;;  %v7343_v12 = vshll.u32 %v7296_v27, 16  ;;  %v7154_v10 = vpack.c.b16 %v7146_v15, %v7146_v15  ;;  %v7262_v52 = vpop.permute.xlu0 %7261  ;;  %v8945_v13 = vld [vmem:[%s13393_s5 + $0x38] sm:$0xff]  ;;  %v8950_v24 = vld [vmem:[%s13393_s5 + $0x60] sm:$0xff] }
 0xea4   : > { %v7195_v59 = vrot.slane %v7193_v25, 1  ;;  %v7298_v55 = vpack.c.b16 %v7290_v30, %v7290_v30  ;;  %v7416_v0 = vsel %vm5809_vm14, %v7092_v26, %v7214_v3  ;;  %v7396_v17 = vpack.c.b16 %v7388_v16, %v7388_v16  ;;  %7696 = vmatpush.bf16.msra.mxu1 %v8945_v13  ;;  %v8943_v25 = vld [vmem:[%s13393_s5 + $0x28] sm:$0xff]  ;;  %v13968_v27 = vld [vmem:[#allocation9_spill] sm:$0xff]  ;;  %v7126_v15 = vld [vmem:[#allocation4 + $0xc] sm:$0xc] }
 0xea5   : > { %7367 = vrot.lane.b32.xlu1 %v7322_v33, %s9080_s18  ;;  %v7191_v33 = vshrl.u32 %v7152_v36, 16  ;;  %v7342_v43 = vrot.slane %v7340_v45, 1  ;;  %v7205_v56 = vshrl.u32 %v7154_v10, 16  ;;  %v7438_v40 = vsel %vm5859_vm12, %v7416_v0, %v7262_v52  ;;  %v8944_v36 = vld [vmem:[%s13393_s5 + $0x30] sm:$0xff]  ;;  %v8941_v45 = vld [vmem:[%s13393_s5 + $0x18] sm:$0xff] }
 0xea6   : > { %7369 = vrot.lane.b32.xlu0 %v7330_v63, %s9080_s18  ;;  %v7356_v46 = vshrl.u32 %v7298_v55, 16  ;;  %7597 = vmatpush.bf16.msrb.mxu2 %v8954_v14  ;;  %v7094_v3 = vld [vmem:[#allocation4 + $0xc] sm:$0x3]  ;;  %v8948_v30 = vld [vmem:[%s13393_s5 + $0x50] sm:$0xff]  ;;  %v7127_v48 = vld [vmem:[#allocation4 + $0x10] sm:$0xc] }
 0xea7   : > { %v7196_v63 = vor.u32 %v7195_v59, %v7191_v33  ;;  %v7125_v33 = vld [vmem:[#allocation4 + $0x8] sm:$0xc]  ;;  %v7095_v62 = vld [vmem:[#allocation4 + $0x10] sm:$0x3]  ;;  %v7391_v14 = vunpack.c.l.b16 %v7127_v48  ;;  %v7091_v13 = vld [vmem:[#allocation4] sm:$0x3] }
 0xea8   : > { %v7358_v4 = vrot.slane %v7356_v46, 1  ;;  %7697 = vmatpush.bf16.msra.mxu1 %v8944_v36  ;;  %v8958_v46 = vld [vmem:[%s13393_s5 + $0xa0] sm:$0xff] }
 0xea9   : > { %7827 = vmatpush.bf16.msra.mxu0 %v8958_v46  ;;  %v7399_v36 = vpack.c.b16 %v7391_v14, %v7391_v14  ;;  %v7097_v46 = vld [vmem:[#allocation4 + $0x18] sm:$0x3]  ;;  %v8969_v14 = vld [vmem:[%s13393_s5 + $0xf8] sm:$0xff] }
 0xeaa   : > { %7598 = vmatpush.bf16.msrb.mxu2 %v8953_v53  ;;  %v7123_v53 = vld [vmem:[#allocation4] sm:$0xc] }
 0xeab   : > { %v7366_v28 = vpop.permute.xlu0 %7365 }
 0xeac   : > { %v7455_v31 = vsel %vm7451_vm7, %v7438_v40, %v7366_v28  ;;  %7698 = vmatpush.bf16.msra.mxu1 %v8943_v25 }
 0xead   : > { %7267 = vrot.lane.b32.xlu1 %v7255_v58, %s9079_s16  ;;  %v7207_v58 = vshll.u32 %v7154_v10, 16  ;;  %v13132_v23 = vsel %vm2182_vm13, %v7455_v31, %v7396_v17  ;;  %v7389_v10 = vunpack.c.l.b16 %v7125_v33  ;;  %v8946_v17 = vld [vmem:[%s13393_s5 + $0x40] sm:$0xff]  ;;  %v13973_v33 = vld [vmem:[#allocation13_spill] sm:$0xff] }
 0xeae   : > { %7363 = vrot.lane.b32.xlu0 %v7306_v9, %s9080_s18  ;;  %v7345_v9 = vrot.slane %v7343_v12, 2  ;;  %7524 = vst [vmem:[#allocation1] ss:$4 sm:$0xff] %v13132_v23  ;;  %7599 = vmatpush.bf16.msrb.mxu2 %v8952_v41  ;;  %v7093_v12 = vld [vmem:[#allocation4 + $0x8] sm:$0x3] }
 0xeaf   : > { %v7209_v6 = vrot.slane %v7207_v58, 1  ;;  %v8947_v58 = vld [vmem:[%s13393_s5 + $0x48] sm:$0xff]  ;;  %v13970_v31 = vld [vmem:[#allocation70_spill] sm:$0xff] }
 0xeb0   : > { %v7346_v44 = vor.u32 %v7345_v9, %v7342_v43  ;;  %7699 = vmatpush.bf16.msra.mxu1 %v8942_v39  ;;  %v7390_v43 = vunpack.c.l.b16 %v7126_v15  ;;  %v8956_v9 = vld [vmem:[%s13393_s5 + $0x90] sm:$0xff] }
 0xeb2   : > { %7600 = vmatpush.bf16.msrb.mxu2 %v8951_v47  ;;  %v7398_v26 = vpack.c.b16 %v7390_v43, %v7390_v43  ;;  %v7387_v47 = vunpack.c.l.b16 %v7123_v53  ;;  %v8973_v43 = vld [vmem:[%s13393_s5 + $0x118] sm:$0xff] }
 0xeb4   : > { %7700 = vmatpush.bf16.msra.mxu1 %v8941_v45 }
 0xeb5   : > { %7219 = vrot.lane.b32.xlu1 %v7189_v54, %s9076_s13  ;;  %v7359_v54 = vshll.u32 %v7298_v55, 16 }
 0xeb6   : > { %7223 = vrot.lane.b32.xlu0 %v7203_v51, %s9076_s13  ;;  %v7210_v51 = vor.u32 %v7209_v6, %v7205_v56  ;;  %7601 = vmatpush.bf16.msrb.mxu2 %v8950_v24  ;;  %v7397_v56 = vpack.c.b16 %v7389_v10, %v7389_v10  ;;  %v7395_v24 = vpack.c.b16 %v7387_v47, %v7387_v47  ;;  %v8984_v10 = vld [vmem:[%s13393_s5 + $0x170] sm:$0xff] }
 0xeb7   : > { %v7361_v18 = vrot.slane %v7359_v54, 2 }
 0xeb9   : > { %v7362_v1 = vor.u32 %v7361_v18, %v7358_v4  ;;  %v8939_v4 = vld [vmem:[%s13393_s5 + $0x8] sm:$0xff] }
 0xeba   : > { %v8967_v18 = vld [vmem:[%s13393_s5 + $0xe8] sm:$0xff] }
 0xebd   : > { %7371 = vrot.lane.b32.xlu1 %v7338_v19, %s9080_s18  ;;  %v13144_v19 = vpop.permute.xlu1 %7259 }
 0xebe   : > { %7269 = vrot.lane.b32.xlu0 %v7256_v21, %s9079_s16  ;;  %v13149_v21 = vpop.permute.xlu0 %7211 }
 0xec5   : > { %7271 = vrot.lane.b32.xlu1 %v7257_v42, %s9079_s16 }
 0xec6   : > { %7375 = vrot.lane.b32.xlu0 %v7354_v50, %s9080_s18  ;;  %v13967_v50 = vld [vmem:[#allocation63_spill] sm:$0xff] }
 0xecd   : > { %7221 = vrot.lane.b32.xlu1 %v7196_v63, %s9076_s13  ;;  %v8949_v63 = vld [vmem:[%s13393_s5 + $0x58] sm:$0xff] }
 0xece   : > { %7273 = vrot.lane.b32.xlu0 %v7258_v8, %s9079_s16  ;;  %v8957_v8 = vld [vmem:[%s13393_s5 + $0x98] sm:$0xff]  ;;  %7602 = vmatpush.bf16.msrb.mxu2 %v8949_v63 }
 0xecf   : > { %7616 = vmatpush.bf16.msrb.mxu3 %v8957_v8 }
 0xed2   : > { %7603 = vmatpush.bf16.msrb.mxu2 %v8948_v30 }
 0xed3   : > { %7617 = vmatpush.bf16.msrb.mxu3 %v8956_v9  ;;  %v7128_v9 = vld [vmem:[#allocation4 + $0x14] sm:$0xc] }
 0xed4   : > { %v7392_v30 = vunpack.c.l.b16 %v7128_v9 }
 0xed5   : > { %7373 = vrot.lane.b32.xlu1 %v7346_v44, %s9080_s18  ;;  %v8940_v44 = vld [vmem:[%s13393_s5 + $0x10] sm:$0xff] }
 0xed6   : > { %7701 = vmatpush.bf16.msra.mxu1 %v8940_v44  ;;  %7840 = vmatpush.bf16.msra.mxu2 %v8967_v18  ;;  %v8972_v44 = vld [vmem:[%s13393_s5 + $0x110] sm:$0xff] }
 0xed7   : > { %7716 = vmatpush.bf16.msra.mxu3 %v8947_v58  ;;  %v7096_v58 = vld [vmem:[#allocation4 + $0x14] sm:$0x3] }
 0xeda   : > { %7702 = vmatpush.bf16.msra.mxu1 %v8939_v4  ;;  %v7129_v4 = vld [vmem:[#allocation4 + $0x18] sm:$0xc] }
 0xedb   : > { %7717 = vmatpush.bf16.msra.mxu3 %v8946_v17  ;;  %v13975_v17 = vld [vmem:[#allocation21_spill] sm:$0xff] }
 0xedd   : > { %7225 = vrot.lane.b32.xlu1 %v7210_v51, %s9076_s13  ;;  %v13969_v51 = vld [vmem:[#allocation10_spill] sm:$0xff] }
 0xee5   : > { %7377 = vrot.lane.b32.xlu1 %v7362_v1, %s9080_s18  ;;  %v8966_v1 = vld [vmem:[%s13393_s5 + $0xe0] sm:$0xff]  ;;  %s13358_s18 = scalar_lea.vmem %s13394_s6, %s8898_s11 }
 0xee6   : > { %7841 = vmatpush.bf16.msra.mxu2 %v8966_v1  ;;  %v8970_v1 = vld [vmem:[%s13393_s5 + $0x100] sm:$0xff] }
 0xef0   : > { %2820 = vxpose.xlu0.b32.start [1/16] (narrow) %v13964_v57, 16 }
 0xef8   : > { %2821 = vxpose.xlu0.b32.cont [2/16] (narrow) %v13965_v20, 16  ;;  %v13971_v20 = vld [vmem:[#allocation80_spill] sm:$0xff] }
 0xf00   : > { %2822 = vxpose.xlu0.b32.cont [3/16] (narrow) %v13966_v34, 16 }
 0xf07   : > { %v7264_v38 = vpop.permute.xlu1 %7263 }
 0xf08   : > { %v7266_v42 = vpop.permute.xlu0 %7265  ;;  %2823 = vxpose.xlu0.b32.cont [4/16] (narrow) %v13967_v50, 16  ;;  %v13972_v50 = vld [vmem:[#allocation12_spill] sm:$0xff] }
 0xf0f   : > { %v7216_v49 = vpop.permute.xlu1 %7215 }
 0xf10   : > { %v7218_v59 = vpop.permute.xlu0 %7217  ;;  %2824 = vxpose.xlu0.b32.cont [5/16] (narrow) %v13968_v27, 16  ;;  %v7419_v7 = vsel %vm5809_vm14, %v7093_v12, %v7216_v49  ;;  %v8977_v49 = vld [vmem:[%s13393_s5 + $0x138] sm:$0xff]  ;;  %v8987_v12 = vld [vmem:[%s13393_s5 + $0x188] sm:$0xff] }
 0xf11   : > { %v7422_v29 = vsel %vm5809_vm14, %v7094_v3, %v7218_v59  ;;  %v7440_v55 = vsel %vm5859_vm12, %v7419_v7, %v7264_v38  ;;  %8092 = vmatpush.bf16.msrb.mxu0 %v8987_v12  ;;  %v13974_v3 = vld [vmem:[#allocation84_spill] sm:$0xff] }
 0xf12   : > { %v7442_v16 = vsel %vm5859_vm12, %v7422_v29, %v7266_v42  ;;  %v8986_v29 = vld [vmem:[%s13393_s5 + $0x180] sm:$0xff] }
 0xf15   : > { %8093 = vmatpush.bf16.msrb.mxu0 %v8986_v29 }
 0xf17   : > { %v7368_v6 = vpop.permute.xlu1 %7367 }
 0xf18   : > { %v7457_v37 = vsel %vm7451_vm7, %v7440_v55, %v7368_v6  ;;  %v7370_v52 = vpop.permute.xlu0 %7369  ;;  %2825 = vxpose.xlu0.b32.cont [6/16] (narrow) %v13969_v51, 16  ;;  %v8981_v51 = vld [vmem:[%s13393_s5 + $0x158] sm:$0xff] }
 0xf19   : > { %v13209_v54 = vsel %vm2182_vm13, %v7457_v37, %v7397_v56  ;;  %v7459_v0 = vsel %vm7451_vm7, %v7442_v16, %v7370_v52  ;;  %v8982_v56 = vld [vmem:[%s13393_s5 + $0x160] sm:$0xff] }
 0xf1a   : > { %7526 = vst [vmem:[#allocation1 + $0x1] ss:$4 sm:$0xff] %v13209_v54  ;;  %v13214_v40 = vsel %vm2182_vm13, %v7459_v0, %v7398_v26  ;;  %6334 = vxpose.xlu1.b32.start [1/8] (short) (narrow) %v12649_v61, 32  ;;  %v8938_v61 = vld [vmem:[%s13393_s5] sm:$0xff] }
 0xf1b   : > { %7528 = vst [vmem:[#allocation1 + $0x2] ss:$4 sm:$0xff] %v13214_v40  ;;  %7703 = vmatpush.bf16.msra.mxu1 %v8938_v61  ;;  %v8980_v61 = vld [vmem:[%s13393_s5 + $0x150] sm:$0xff] }
 0xf1f   : > { %v7268_v28 = vpop.permute.xlu1 %7267  ;;  %7966 = vmatpush.bf16.msrb.mxu1 %v8977_v49 }
 0xf20   : > { %2826 = vxpose.xlu0.b32.cont [7/16] (narrow) %v13970_v31, 16  ;;  %v7364_v42 = vpop.permute.xlu0 %7363  ;;  %v7393_v31 = vunpack.c.l.b16 %v7129_v4 }
 0xf22   : > { %6335 = vxpose.xlu1.b32.cont [2/8] (short) (narrow) %v12849_v60, 32  ;;  %v7401_v48 = vpack.c.b16 %v7393_v31, %v7393_v31 }
 0xf27   : > { %v7220_v57 = vpop.permute.xlu1 %7219 }
 0xf28   : > { %2827 = vxpose.xlu0.b32.cont [8/16] (narrow) %v13971_v20, 16  ;;  %v7425_v34 = vsel %vm5809_vm14, %v7095_v62, %v7220_v57  ;;  %v7224_v45 = vpop.permute.xlu0 %7223  ;;  %v13976_v62 = vld [vmem:[#allocation79_spill] sm:$0xff] }
 0xf29   : > { %v7444_v38 = vsel %vm5859_vm12, %v7425_v34, %v7268_v28  ;;  %v7431_v28 = vsel %vm5809_vm14, %v7097_v46, %v7224_v45  ;;  %v8979_v34 = vld [vmem:[%s13393_s5 + $0x148] sm:$0xff] }
 0xf2a   : > { %6336 = vxpose.xlu1.b32.cont [3/8] (short) (narrow) %v12681_v11, 32  ;;  %v7413_v11 = vsel %vm5809_vm14, %v7091_v13, %v13149_v21  ;;  %v8985_v21 = vld [vmem:[%s13393_s5 + $0x178] sm:$0xff] }
 0xf2b   : > { %v7436_v39 = vsel %vm5859_vm12, %v7413_v11, %v13144_v19  ;;  %v8976_v19 = vld [vmem:[%s13393_s5 + $0x130] sm:$0xff] }
 0xf2c   : > { %v7453_v59 = vsel %vm7451_vm7, %v7436_v39, %v7364_v42  ;;  %7967 = vmatpush.bf16.msrb.mxu1 %v8976_v19  ;;  %v13977_v39 = vld [vmem:[#allocation83_spill] sm:$0xff] }
 0xf2d   : > { %v7473_v15 = vsel %vm2182_vm13, %v7453_v59, %v7395_v24 }
 0xf2f   : > { %v7372_v41 = vpop.permute.xlu1 %7371 }
 0xf30   : > { %v7461_v60 = vsel %vm7451_vm7, %v7444_v38, %v7372_v41  ;;  %2828 = vxpose.xlu0.b32.cont [9/16] (narrow) %v13972_v50, 16  ;;  %v7270_v6 = vpop.permute.xlu0 %7269  ;;  %v7130_v41 = vld [vmem:[#allocation4 + $0x1c] sm:$0xc]  ;;  %v7098_v38 = vld [vmem:[#allocation4 + $0x1c] sm:$0x3] }
 0xf31   : > { %v13242_v25 = vsel %vm2182_vm13, %v7461_v60, %v7399_v36  ;;  %v8968_v60 = vld [vmem:[%s13393_s5 + $0xf0] sm:$0xff] }
 0xf32   : > { %7530 = vst [vmem:[#allocation1 + $0x3] ss:$4 sm:$0xff] %v13242_v25  ;;  %6337 = vxpose.xlu1.b32.cont [4/8] (short) (narrow) %v12895_v22, 32  ;;  %v8975_v22 = vld [vmem:[%s13393_s5 + $0x128] sm:$0xff] }
 0xf37   : > { %v13254_v27 = vpop.permute.xlu1 %7271 }
 0xf38   : > { %2829 = vxpose.xlu0.b32.cont [10/16] (narrow) %v13973_v33, 16  ;;  %v7448_v57 = vsel %vm5859_vm12, %v7431_v28, %v13254_v27 }
 0xf39   : > { %v7531_v8 = vld.sshfl [vmem:[#allocation1] sm:$0xff pattern:$0x73625140]  ;;  %v7532_v63 = vld.sshfl [vmem:[#allocation1 + $0x8] sm:$0xff pattern:$0x73625140] }
 0xf3a   : > { %6338 = vxpose.xlu1.b32.cont [5/8] (short) (narrow) %v12725_v2, 32  ;;  %7604 = vmatmul.bf16.vlgmr.msrb.gmra.mxu2 %v7531_v8  ;;  %7624 = vst [vmem:[#allocation1] ss:$4 sm:$0xff] %v7473_v15  ;;  %v8974_v2 = vld [vmem:[%s13393_s5 + $0x120] sm:$0xff] }
 0xf3b   : > { %8667 = vmatmul.msk.bf16.vlgmr.msrb.gmra.mxu3 %vm5809_vm14, %v7532_v63  ;;  %7626 = vst [vmem:[#allocation1 + $0x1] ss:$4 sm:$0xff] %v13132_v23  ;;  %8072 = vmatpush.bf16.msrb.mxu2 %v8985_v21  ;;  %v8983_v23 = vld [vmem:[%s13393_s5 + $0x168] sm:$0xff]  ;;  %v13979_v8 = vld [vmem:[#allocation6_spill] sm:$0xff] }
 0xf3c   : > { %7628 = vst [vmem:[#allocation1 + $0x2] ss:$4 sm:$0xff] %v13209_v54  ;;  %7946 = vmatpush.bf16.msrb.mxu3 %v8975_v22  ;;  %v13978_v22 = vld [vmem:[#allocation24_spill] sm:$0xff] }
 0xf3d   : > { %7630 = vst [vmem:[#allocation1 + $0x3] ss:$4 sm:$0xff] %v13214_v40 }
 0xf3f   : > { %v7222_v7 = vpop.permute.xlu1 %7221  ;;  %8073 = vmatpush.bf16.msrb.mxu2 %v8984_v10 }
 0xf40   : > { %7947 = vmatpush.bf16.msrb.mxu3 %v8974_v2  ;;  %2830 = vxpose.xlu0.b32.cont [11/16] (narrow) %v13974_v3, 16  ;;  %v7428_v55 = vsel %vm5809_vm14, %v7096_v58, %v7222_v7 }
 0xf41   : > { %v7446_v52 = vsel %vm5859_vm12, %v7428_v55, %v7270_v6 }
 0xf42   : > { %6339 = vxpose.xlu1.b32.cont [6/8] (short) (narrow) %v12930_v5, 32  ;;  %v7400_v5 = vpack.c.b16 %v7392_v30, %v7392_v30 }
 0xf43   : > { %8074 = vmatpush.bf16.msrb.mxu2 %v8983_v23 }
 0xf44   : > { %v7631_v37 = vld.sshfl [vmem:[#allocation1] sm:$0xff pattern:$0x73625140]  ;;  %7948 = vmatpush.bf16.msrb.mxu3 %v8973_v43  ;;  %v7632_v26 = vld.sshfl [vmem:[#allocation1 + $0x8] sm:$0xff pattern:$0x73625140]  ;;  %v2804_v43 = vpop.trf.xlu2 }
 0xf45   : > { %7704 = vmatmul.bf16.vlgmr.msra.gmra.mxu1 %v7631_v37  ;;  %7748 = vst [vmem:[#allocation1] ss:$4 sm:$0xff] %v13209_v54  ;;  %v8971_v54 = vld [vmem:[%s13393_s5 + $0x108] sm:$0xff] }
 0xf46   : > { %7750 = vst [vmem:[#allocation1 + $0x1] ss:$4 sm:$0xff] %v13214_v40 }
 0xf47   : > { %v7374_v16 = vpop.permute.xlu1 %7373  ;;  %7752 = vst [vmem:[#allocation1 + $0x2] ss:$4 sm:$0xff] %v13242_v25  ;;  %8075 = vmatpush.bf16.msrb.mxu2 %v8982_v56 }
 0xf48   : > { %v7463_v0 = vsel %vm7451_vm7, %v7446_v52, %v7374_v16  ;;  %7949 = vmatpush.bf16.msrb.mxu3 %v8972_v44  ;;  %2831 = vxpose.xlu0.b32.cont [12/16] (narrow) %v13975_v17, 16  ;;  %2852 = vst [vmem:[%s13358_s18] sm:$0xff] %v2804_v43 }
 0xf49   : > { %v7726_v18 = vsel %vm2182_vm13, %v7463_v0, %v7400_v5 }
 0xf4a   : > { %6340 = vxpose.xlu1.b32.cont [7/8] (short) (narrow) %v12756_v35, 32  ;;  %7754 = vst [vmem:[#allocation1 + $0x3] ss:$4 sm:$0xff] %v7726_v18  ;;  %v7376_v35 = vpop.permute.xlu0 %7375 }
 0xf4b   : > { %8708 = vmatmul.msk.bf16.vlgmr.msra.gmra.mxu3 %vm5809_vm14, %v7632_v26  ;;  %8076 = vmatpush.bf16.msrb.mxu2 %v8981_v51  ;;  %v7465_v53 = vsel %vm7451_vm7, %v7448_v57, %v7376_v35 }
 0xf4c   : > { %7950 = vmatpush.bf16.msrb.mxu3 %v8971_v54  ;;  %v7852_v42 = vsel %vm2182_vm13, %v7465_v53, %v7401_v48  ;;  %v2805_v44 = vpop.trf.xlu2 }
 0xf4d   : > { %2854 = vst [vmem:[%s13358_s18 + $0x10] sm:$0xff] %v2805_v44 }
 0xf4f   : > { %v7226_v20 = vpop.permute.xlu1 %7225  ;;  %8077 = vmatpush.bf16.msrb.mxu2 %v8980_v61 }
 0xf50   : > { %7951 = vmatpush.bf16.msrb.mxu3 %v8970_v1  ;;  %2832 = vxpose.xlu0.b32.cont [13/16] (narrow) %v13976_v62, 16  ;;  %v7434_v50 = vsel %vm5809_vm14, %v7098_v38, %v7226_v20 }
 0xf51   : > { %v7755_v13 = vld.sshfl [vmem:[#allocation1] sm:$0xff pattern:$0x73625140]  ;;  %v7756_v36 = vld.sshfl [vmem:[#allocation1 + $0x8] sm:$0xff pattern:$0x73625140] }
 0xf52   : > { %6341 = vxpose.xlu1.b32.end [8/8] (short) (narrow) %v12963_v32, 32  ;;  %7828 = vmatmul.bf16.vlgmr.msra.gmra.mxu0 %v7755_v13  ;;  %7874 = vst [vmem:[#allocation1] ss:$4 sm:$0xff] %v13214_v40  ;;  %v7394_v32 = vunpack.c.l.b16 %v7130_v41  ;;  %v8978_v40 = vld [vmem:[%s13393_s5 + $0x140] sm:$0xff]  ;;  %v7274_v47 = vpop.permute.xlu0 %7273 }
 0xf53   : > { %8770 = vmatmul.msk.bf16.vlgmr.msra.gmra.mxu2 %vm5809_vm14, %v7756_v36  ;;  %7876 = vst [vmem:[#allocation1 + $0x1] ss:$4 sm:$0xff] %v13242_v25  ;;  %v7450_v24 = vsel %vm5859_vm12, %v7434_v50, %v7274_v47 }
 0xf54   : > { %7878 = vst [vmem:[#allocation1 + $0x2] ss:$4 sm:$0xff] %v7726_v18  ;;  %7952 = vmatpush.bf16.msrb.mxu3 %v8969_v14  ;;  %8078 = vmatpush.bf16.msrb.mxu2 %v8979_v34  ;;  %v7402_v49 = vpack.c.b16 %v7394_v32, %v7394_v32 }
 0xf55   : > { %7880 = vst [vmem:[#allocation1 + $0x3] ss:$4 sm:$0xff] %v7852_v42 }
 0xf57   : > { %v7378_v11 = vpop.permute.xlu1 %7377 }
 0xf58   : > { %7953 = vmatpush.bf16.msrb.mxu3 %v8968_v60  ;;  %2833 = vxpose.xlu0.b32.cont [14/16] (narrow) %v13977_v39, 16  ;;  %v7467_v59 = vsel %vm7451_vm7, %v7450_v24, %v7378_v11 }
 0xf59   : > { %8079 = vmatpush.bf16.msrb.mxu2 %v8978_v40  ;;  %v7978_v33 = vsel %vm2182_vm13, %v7467_v59, %v7402_v49 }
 0xf5c   : > { %v7881_v27 = vld.sshfl [vmem:[#allocation1] sm:$0xff pattern:$0x73625140]  ;;  %v7882_v21 = vld.sshfl [vmem:[#allocation1 + $0x8] sm:$0xff pattern:$0x73625140] }
 0xf5d   : > { %7954 = vmatmul.bf16.vlgmr.msrb.gmra.mxu3 %v7881_v27  ;;  %8832 = vmatmul.msk.bf16.vlgmr.msrb.gmra.mxu1 %vm5809_vm14, %v7882_v21  ;;  %8000 = vst [vmem:[#allocation1] ss:$4 sm:$0xff] %v13242_v25 }
 0xf5e   : > { %8002 = vst [vmem:[#allocation1 + $0x1] ss:$4 sm:$0xff] %v7726_v18 }
 0xf5f   : > { %8004 = vst [vmem:[#allocation1 + $0x2] ss:$4 sm:$0xff] %v7852_v42 }
 0xf60   : > { %8006 = vst [vmem:[#allocation1 + $0x3] ss:$4 sm:$0xff] %v7978_v33  ;;  %2834 = vxpose.xlu0.b32.cont [15/16] (narrow) %v13978_v22, 16 }
 0xf67   : > { %v8007_v19 = vld.sshfl [vmem:[#allocation1] sm:$0xff pattern:$0x73625140]  ;;  %v8008_v15 = vld.sshfl [vmem:[#allocation1 + $0x8] sm:$0xff pattern:$0x73625140] }
 0xf68   : > { %8080 = vmatmul.bf16.vlgmr.msrb.gmra.mxu2 %v8007_v19  ;;  %8894 = vmatmul.msk.bf16.vlgmr.msrb.gmra.mxu0 %vm5809_vm14, %v8008_v15 }
 0xf69   : > { %2835 = vxpose.xlu0.b32.end [16/16] (narrow) %v13979_v8, 16 }
 0xf95   : > { %v2836_v42 = vpop.trf.xlu0 }
 0xf96   : > { %2853 = vst [vmem:[%s13358_s18 + $0x8] sm:$0xff] %v2836_v42 }
 0xf9d   : > { %v2837_v40 = vpop.trf.xlu0 }
 0xf9e   : > { %2855 = vst [vmem:[%s13358_s18 + $0x18] sm:$0xff] %v2837_v40 }
 0xfbd   : > { %v7605_v45 = vpop.f32.mrf.mxu2 }
 0xfbe   : > { %v7619_v63 = vpop.f32.mrf.mxu3  ;;  %v6350_v13 = vpop.trf.xlu1 }
 0xfbf   : > { %v7620_v30 = vadd.f32 %v7619_v63, %v7605_v45  ;;  %6366 = vst.msk [vmem:[%s325_s21] sm:$0xff] %vm5859_vm12, %v6350_v13 }
 0xfc2   : > { %v7705_v25 = vpop.f32.mrf.mxu1 }
 0xfc3   : > { %v7706_v55 = vadd.f32 %v7705_v25, %v7620_v30 }
 0xfc5   : > { %v7607_v10 = vpop.f32.mrf.mxu2 }
 0xfc6   : > { %v7621_v12 = vpop.f32.mrf.mxu3  ;;  %v6351_v41 = vpop.trf.xlu1 }
 0xfc7   : > { %v7622_v16 = vadd.f32 %v7621_v12, %v7607_v10  ;;  %6367 = vst.msk [vmem:[%s325_s21 + $0x8] sm:$0xff] %vm5859_vm12, %v6351_v41 }
 0xfca   : > { %v7707_v9 = vpop.f32.mrf.mxu1 }
 0xfcb   : > { %v7708_v4 = vadd.f32 %v7707_v9, %v7622_v16 }
 0xfce   : > { %v7719_v2 = vpop.f32.mrf.mxu3  ;;  %v6352_v60 = vpop.trf.xlu1 }
 0xfcf   : > { %v7829_v7 = vpop.f32.mrf.mxu0  ;;  %v7720_v26 = vadd.f32 %v7719_v2, %v7706_v55  ;;  %6368 = vst.msk [vmem:[%s325_s21 + $0x10] sm:$0xff] %vm5859_vm12, %v6352_v60 }
 0xfd6   : > { %v7843_v23 = vpop.f32.mrf.mxu2  ;;  %v7721_v3 = vpop.f32.mrf.mxu3 }
 0xfd7   : > { %v7831_v29 = vpop.f32.mrf.mxu0  ;;  %v7844_v37 = vadd.f32 %v7843_v23, %v7829_v7  ;;  %v7722_v31 = vadd.f32 %v7721_v3, %v7708_v4  ;;  %v6353_v50 = vpop.trf.xlu1 }
 0xfd8   : > { %6369 = vst.msk [vmem:[%s325_s21 + $0x18] sm:$0xff] %vm5859_vm12, %v6353_v50 }
 0xfd9   : > { %v7848_v51 = vadd.f32 %v7844_v37, %v7720_v26 }
 0xfda   : > { %v7969_v6 = vpop.f32.mrf.mxu1 }
 0xfde   : > { %v7845_v58 = vpop.f32.mrf.mxu2 }
 0xfdf   : > { %v7846_v18 = vadd.f32 %v7845_v58, %v7831_v29 }
 0xfe0   : > { %v7955_v56 = vpop.f32.mrf.mxu3 }
 0xfe1   : > { %v7970_v5 = vadd.f32 %v7969_v6, %v7955_v56  ;;  %v7849_v35 = vadd.f32 %v7846_v18, %v7722_v31 }
 0xfe2   : > { %v7971_v61 = vpop.f32.mrf.mxu1 }
 0xfe3   : > { %v7974_v0 = vadd.f32 %v7970_v5, %v7848_v51 }
 0xfe5   : > { %v8095_v52 = vpop.f32.mrf.mxu0 }
 0xfe8   : > { %v7957_v54 = vpop.f32.mrf.mxu3 }
 0xfe9   : > { %v7972_v1 = vadd.f32 %v7971_v61, %v7957_v54 }
 0xfeb   : > { %v8081_v46 = vpop.f32.mrf.mxu2  ;;  %v7975_v62 = vadd.f32 %v7972_v1, %v7849_v35 }
 0xfec   : > { %v8096_v17 = vadd.f32 %v8095_v52, %v8081_v46 }
 0xfed   : > { %v8097_v20 = vpop.f32.mrf.mxu0 }
 0xfee   : > { %v8100_v28 = vadd.f32 %v8096_v17, %v7974_v0 }
 0xff0   : > { %v8102_v57 = vmax.f32 %v8100_v28, 0.0 }
 0xff2   : > { %8104 = vxpose.xlu2.b32.start [1/2] (short) (narrow) %v8102_v57, 64 }
 0xff3   : > { %v8083_v48 = vpop.f32.mrf.mxu2 }
 0xff4   : > { %v8098_v14 = vadd.f32 %v8097_v20, %v8083_v48 }
 0xff6   : > { %v8101_v34 = vadd.f32 %v8098_v14, %v7975_v62 }
 0xff8   : > { %v8103_v53 = vmax.f32 %v8101_v34, 0.0 }
 0xffa   : > { %8105 = vxpose.xlu2.b32.end [2/2] (short) (narrow) %v8103_v53, 64 }
0x108b   : > { %v8120_v36 = vpop.trf.xlu2 }
0x108c   : > { %8136 = vst.msk [vmem:[%s330_s25] sm:$0xff] %vm3550_vm10, %v8120_v36 }
0x1093   : > { %v8121_v38 = vpop.trf.xlu2 }
0x1094   : > { %8137 = vst.msk [vmem:[%s330_s25 + $0x8] sm:$0xff] %vm3550_vm10, %v8121_v38 }
0x109b   : > { %v8122_v32 = vpop.trf.xlu2 }
0x109c   : > { %8138 = vst.msk [vmem:[%s330_s25 + $0x10] sm:$0xff] %vm3550_vm10, %v8122_v32 }
0x10a3   : > { %v8123_v47 = vpop.trf.xlu2 }
0x10a4   : > { %8139 = vst.msk [vmem:[%s330_s25 + $0x18] sm:$0xff] %vm3550_vm10, %v8123_v47 }
0x10ab   : > { %v8124_v11 = vpop.trf.xlu2 }
0x10ac   : > { %8140 = vst.msk [vmem:[%s330_s25 + $0x20] sm:$0xff] %vm3550_vm10, %v8124_v11 }
0x10b3   : > { %v8125_v39 = vpop.trf.xlu2 }
0x10b4   : > { %8141 = vst.msk [vmem:[%s330_s25 + $0x28] sm:$0xff] %vm3550_vm10, %v8125_v39 }
0x10bb   : > { %v8126_v24 = vpop.trf.xlu2 }
0x10bc   : > { %8142 = vst.msk [vmem:[%s330_s25 + $0x30] sm:$0xff] %vm3550_vm10, %v8126_v24 }
0x10c3   : > { %v8127_v49 = vpop.trf.xlu2 }
0x10c4   : > { %8143 = vst.msk [vmem:[%s330_s25 + $0x38] sm:$0xff] %vm3550_vm10, %v8127_v49 }
0x10c5 PF: > { %s19_s27 = sadd.s32 1, %s9068_s27  }
0x10c6   : > { %p16_p4 = scmp.ge.s32.totalorder %s19_s27, 4  }
0x10c8   :  { %18 = sbr.rel (!%p16_p4) target bundleno = 1 (0x1), region = 136 }

</bundles_post_ra>
